<compile_context>
chip_gen: v6e
topology: v6e:2x2x1
jax: 0.10.0
libtpu: 0.0.40
codegen_flags: <defaults>
</compile_context>

<pallas_src>
import functools

import jax
import jax.numpy as jnp
from jax.experimental import pallas as pl
from jax.experimental.pallas import tpu as pltpu

NEG_INF = -1e9  # additive mask value (PyTorch uses -inf; -1e9 avoids NaN rows)


# ----------------------------- fused Pallas kernel ---------------------------

def _decoder_kernel(tgt_row_ref, tgt_col_ref, enc_ref,
                    emb_ref, dpos_ref, epos_ref,
                    swqkv_ref, sbqkv_ref, swo_ref, sbo_ref,
                    cwqkv_ref, cbqkv_ref, cwo_ref, cbo_ref,
                    fw1_ref, fb1_ref, fw2_ref, fb2_ref,
                    lng_ref, lnb_ref, outw_ref, outb_ref,
                    o_ref, *, num_heads, pad_idx):
    f32, bf16 = jnp.float32, jnp.bfloat16
    L = tgt_col_ref.shape[1]          # block is (1, L, 1)
    Lk, D = enc_ref.shape[1], enc_ref.shape[2]
    V = emb_ref.shape[0]
    num_layers = swqkv_ref.shape[0]
    H = num_heads
    Dh = D // H
    scale = 1.0 / float(Dh) ** 0.5

    def layer_norm(z, g, b):
        # z: (rows, D); g/b: (1, D).  Post-LN, eps=1e-5 (PyTorch default), f32.
        mu = jnp.mean(z, axis=-1, keepdims=True)
        var = jnp.mean(jnp.square(z - mu), axis=-1, keepdims=True)
        return (z - mu) * jax.lax.rsqrt(var + 1e-5) * g + b

    def softmax(s):
        m = jnp.max(s, axis=-1, keepdims=True)
        p = jnp.exp(s - m)
        return p / jnp.sum(p, axis=-1, keepdims=True)   # exact (parity w/ reference)

    def mha(x_q, x_kv, bias, wqkv_ref_, bqkv_ref_, wo_ref_, bo_ref_, l):
        """x_q: (Lq, D) bf16, x_kv: (Lkv, D) bf16 -> (Lq, D) f32.

        Per-head weights live on leading ref axes (no lane slicing of activations).
        The output projection is fused into the head loop: out = sum_h head_h @ Wo[h].
        """
        out = None
        for h in range(H):            # static unroll; everything stays in VMEM/vregs
            q = jnp.dot(x_q, wqkv_ref_[l, 0, h],
                        preferred_element_type=f32) + bqkv_ref_[l, 0, h]
            k = jnp.dot(x_kv, wqkv_ref_[l, 1, h],
                        preferred_element_type=f32) + bqkv_ref_[l, 1, h]
            v = jnp.dot(x_kv, wqkv_ref_[l, 2, h],
                        preferred_element_type=f32) + bqkv_ref_[l, 2, h]
            s = jnp.einsum('qd,kd->qk', (q * scale).astype(bf16), k.astype(bf16),
                           preferred_element_type=f32)            # (Lq, Lkv)
            if bias is not None:
                s = s + bias
            p = softmax(s)
            oh = jnp.dot(p.astype(bf16), v.astype(bf16),
                         preferred_element_type=f32)               # (Lq, Dh)
            contrib = jnp.dot(oh.astype(bf16), wo_ref_[l, h],
                              preferred_element_type=f32)          # (Lq, D)
            out = contrib if out is None else out + contrib
        return out + bo_ref_[l]

    # ---- embedding gather (one-hot matmul), positional adds (dropout = identity) ----
    tok_col = tgt_col_ref[...]                                       # (1, L, 1) int32
    iota_v = jax.lax.broadcasted_iota(jnp.int32, (1, L, V), 2)
    onehot = (tok_col == iota_v).astype(bf16)                        # (1, L, V)
    x = jnp.dot(onehot.reshape(L, V), emb_ref[...],
                preferred_element_type=f32) + dpos_ref[0]            # (L, D) f32

    mem = enc_ref[0] + epos_ref[0]                                   # (Lk, D) f32
    memb = mem.astype(bf16)                                          # hoisted cast

    # ---- causal + key-padding additive bias, built in-kernel ----
    tok_row = tgt_row_ref[0]                                         # (1, L) int32
    rows = jax.lax.broadcasted_iota(jnp.int32, (L, L), 0)
    cols = jax.lax.broadcasted_iota(jnp.int32, (L, L), 1)
    bias = (jnp.where(cols > rows, NEG_INF, 0.0)
            + jnp.where(tok_row == pad_idx, NEG_INF, 0.0))           # (L, L) f32

    # ---- decoder layers (static unroll) ----
    for l in range(num_layers):
        xb = x.astype(bf16)

        # self-attention + Add&Norm
        sa = mha(xb, xb, bias, swqkv_ref, sbqkv_ref, swo_ref, sbo_ref, l)
        x1 = layer_norm(x + sa, lng_ref[l, 0], lnb_ref[l, 0])

        # cross-attention (no mask) + Add&Norm
        ca = mha(x1.astype(bf16), memb, None,
                 cwqkv_ref, cbqkv_ref, cwo_ref, cbo_ref, l)
        x2 = layer_norm(x1 + ca, lng_ref[l, 1], lnb_ref[l, 1])

        # feed-forward (ReLU) + Add&Norm
        h1 = jnp.maximum(
            jnp.dot(x2.astype(bf16), fw1_ref[l],
                    preferred_element_type=f32) + fb1_ref[l], 0.0)
        ff = jnp.dot(h1.astype(bf16), fw2_ref[l],
                     preferred_element_type=f32) + fb2_ref[l]
        x = layer_norm(x2 + ff, lng_ref[l, 2], lnb_ref[l, 2])

    # ---- output projection (lane-dense: vocab padded to a multiple of 128) ----
    logits = jnp.dot(x.astype(bf16), outw_ref[...],
                     preferred_element_type=f32) + outb_ref[...]     # (L, Vp)
    o_ref[...] = logits.reshape(1, L, o_ref.shape[-1])


# ------------------------------- model wrapper --------------------------------

@functools.partial(jax.jit, static_argnames=('num_heads', 'pad_idx', 'vocab_size'))
def decoder_forward(params, encoder_out, tgt, *, num_heads, pad_idx, vocab_size):
    """encoder_out: (N, Lenc, D) f32, tgt: (N, L) int -> (N, L, vocab) f32."""
    N, L = tgt.shape
    Vp = params['out_w'].shape[1]
    tgt = tgt.astype(jnp.int32)
    # two trivial reshapes so the kernel never needs a lane<->sublane relayout of ids:
    tgt_row = tgt.reshape(N, 1, L)      # keys along lanes  -> key-padding bias
    tgt_col = tgt.reshape(N, L, 1)      # tokens along sublanes -> one-hot embedding
    dec_pos = params['dec_pos'][:, :L]

    weights = [params['embedding'], dec_pos, params['enc_pos'],
               params['self_wqkv'], params['self_bqkv'],
               params['self_wo'], params['self_bo'],
               params['cross_wqkv'], params['cross_bqkv'],
               params['cross_wo'], params['cross_bo'],
               params['ffn_w1'], params['ffn_b1'],
               params['ffn_w2'], params['ffn_b2'],
               params['ln_g'], params['ln_b'],
               params['out_w'], params['out_b']]

    def batch_spec(shape):              # blocked over the batch grid axis
        nd = len(shape)
        return pl.BlockSpec((1,) + tuple(shape[1:]),
                            lambda n, _nd=nd: (n,) + (0,) * (_nd - 1))

    def full_spec(shape):               # full-extent block, revisited (no re-DMA)
        nd = len(shape)
        return pl.BlockSpec(tuple(shape), lambda n, _nd=nd: (0,) * _nd)

    in_specs = ([batch_spec(tgt_row.shape), batch_spec(tgt_col.shape),
                 batch_spec(encoder_out.shape)]
                + [full_spec(w.shape) for w in weights])

    kernel = functools.partial(_decoder_kernel, num_heads=num_heads, pad_idx=pad_idx)
    logits_p = pl.pallas_call(
        kernel,
        out_shape=jax.ShapeDtypeStruct((N, L, Vp), jnp.float32),
        grid_spec=pltpu.PrefetchScalarGridSpec(
            num_scalar_prefetch=0,
            grid=(N,),                                   # batch grid -> both TCs on v7x
            in_specs=in_specs,
            out_specs=pl.BlockSpec((1, L, Vp), lambda n: (n, 0, 0))),
        compiler_params=pltpu.CompilerParams(
            dimension_semantics=("parallel",),
            vmem_limit_bytes=64 * 1024 * 1024),
    )(tgt_row, tgt_col, encoder_out, *weights)
    return logits_p[:, :, :vocab_size]


# -------------------------------- param init ----------------------------------

def init_params(key, vocab_size, encoder_length, max_len, dim, num_heads,
                num_layers, dim_ff):
    H, Dh = num_heads, dim // num_heads
    keys = iter(jax.random.split(key, 256))

    def xavier(shape):
        lim = (6.0 / (shape[-2] + shape[-1])) ** 0.5
        return jax.random.uniform(next(keys), shape, jnp.float32, -lim, lim)

    def qkv_heads():
        # fused (D, 3D) in-projection, split per head on LEADING axes -> (3, H, D, Dh)
        w = xavier((dim, 3 * dim))
        return jnp.transpose(w.reshape(dim, 3, H, Dh), (1, 2, 0, 3))

    def o_heads():
        # out-projection (D, D) split per head -> (H, Dh, D)
        return xavier((dim, dim)).reshape(H, Dh, dim)

    def stack(fn):
        return jnp.stack([fn() for _ in range(num_layers)], axis=0)

    vocab_pad = ((vocab_size + 127) // 128) * 128
    out_w = jnp.pad(xavier((dim, vocab_size)), ((0, 0), (0, vocab_pad - vocab_size)))

    bf = jnp.bfloat16
    params = {
        # bf16 matmul weights (half the HBM->VMEM DMA; f32 accumulation in-kernel)
        'embedding':  xavier((vocab_size, dim)).astype(bf),
        'self_wqkv':  stack(qkv_heads).astype(bf),      # (nl, 3, H, D, Dh)
        'self_wo':    stack(o_heads).astype(bf),        # (nl, H, Dh, D)
        'cross_wqkv': stack(qkv_heads).astype(bf),
        'cross_wo':   stack(o_heads).astype(bf),
        'ffn_w1':     stack(lambda: xavier((dim, dim_ff))).astype(bf),
        'ffn_w2':     stack(lambda: xavier((dim_ff, dim))).astype(bf),
        'out_w':      out_w.astype(bf),
        # f32: biases / norms / positional embeddings (kept f32 for v5e VPU)
        'self_bqkv':  jnp.zeros((num_layers, 3, H, 1, Dh), jnp.float32),
        'self_bo':    jnp.zeros((num_layers, 1, dim), jnp.float32),
        'cross_bqkv': jnp.zeros((num_layers, 3, H, 1, Dh), jnp.float32),
        'cross_bo':   jnp.zeros((num_layers, 1, dim), jnp.float32),
        'ffn_b1':     jnp.zeros((num_layers, 1, dim_ff), jnp.float32),
        'ffn_b2':     jnp.zeros((num_layers, 1, dim), jnp.float32),
        'ln_g':       jnp.ones((num_layers, 3, 1, dim), jnp.float32),
        'ln_b':       jnp.zeros((num_layers, 3, 1, dim), jnp.float32),
        'out_b':      jnp.zeros((1, vocab_pad), jnp.float32),
        # trunc_normal(std=0.02) approximated by normal*0.02 (deterministic)
        'dec_pos':    0.02 * jax.random.normal(next(keys), (1, max_len - 1, dim),
                                               jnp.float32),
        'enc_pos':    0.02 * jax.random.normal(next(keys), (1, encoder_length, dim),
                                               jnp.float32),
    }
    return params


# ----------------------------------- main --------------------------------------

if __name__ == "__main__":
    # small config consistent with the module's __init__
    max_len = 9          # cfg.max_len -> decoder seq length L = max_len - 1 = 8
    pad_idx = 0          # cfg.pad_idx
    vocab_size = 64
    encoder_length = 16
    dim = 32
    num_heads = 4
    num_layers = 2
    dim_ff = 2048        # PyTorch TransformerDecoderLayer default dim_feedforward

    key = jax.random.PRNGKey(0)
    pkey, ekey, tkey = jax.random.split(key, 3)

    params = init_params(pkey, vocab_size, encoder_length, max_len, dim,
                         num_heads, num_layers, dim_ff)

    N = 2
    L = max_len - 1
    encoder_out = jax.random.normal(ekey, (N, encoder_length, dim), jnp.float32)
    # tokens in [1, vocab) so no padding positions (avoids fully-masked rows)
    tgt = jax.random.randint(tkey, (N, L), 1, vocab_size, dtype=jnp.int32)

    logits = decoder_forward(params, encoder_out, tgt,
                             num_heads=num_heads, pad_idx=pad_idx,
                             vocab_size=vocab_size)
    jax.block_until_ready(logits)
    assert logits.shape == (N, L, vocab_size), logits.shape
    assert bool(jnp.all(jnp.isfinite(logits)))
    print("KERNEL_OK")
</pallas_src>

<mosaic_0001>
module attributes {stable_mosaic.version = 11 : i64} {
  func.func @_decoder_kernel(%arg0: i32, %arg1: memref<1x1x8xi32, #tpu.memory_space<vmem>>, %arg2: memref<1x8x1xi32, #tpu.memory_space<vmem>>, %arg3: memref<1x16x32xf32, #tpu.memory_space<vmem>>, %arg4: memref<64x32xbf16, #tpu.memory_space<vmem>>, %arg5: memref<1x8x32xf32, #tpu.memory_space<vmem>>, %arg6: memref<1x16x32xf32, #tpu.memory_space<vmem>>, %arg7: memref<2x3x4x32x8xbf16, #tpu.memory_space<vmem>>, %arg8: memref<2x3x4x1x8xf32, #tpu.memory_space<vmem>>, %arg9: memref<2x4x8x32xbf16, #tpu.memory_space<vmem>>, %arg10: memref<2x1x32xf32, #tpu.memory_space<vmem>>, %arg11: memref<2x3x4x32x8xbf16, #tpu.memory_space<vmem>>, %arg12: memref<2x3x4x1x8xf32, #tpu.memory_space<vmem>>, %arg13: memref<2x4x8x32xbf16, #tpu.memory_space<vmem>>, %arg14: memref<2x1x32xf32, #tpu.memory_space<vmem>>, %arg15: memref<2x32x2048xbf16, #tpu.memory_space<vmem>>, %arg16: memref<2x1x2048xf32, #tpu.memory_space<vmem>>, %arg17: memref<2x2048x32xbf16, #tpu.memory_space<vmem>>, %arg18: memref<2x1x32xf32, #tpu.memory_space<vmem>>, %arg19: memref<2x3x1x32xf32, #tpu.memory_space<vmem>>, %arg20: memref<2x3x1x32xf32, #tpu.memory_space<vmem>>, %arg21: memref<32x128xbf16, #tpu.memory_space<vmem>>, %arg22: memref<1x128xf32, #tpu.memory_space<vmem>>, %arg23: memref<1x8x128xf32, #tpu.memory_space<vmem>>) attributes {dimension_semantics = [#tpu.dimension_semantics<parallel>], iteration_bounds = array<i64: 2>, scalar_prefetch = 0 : i64, scratch_operands = 0 : i64, tpu.core_type = #tpu.core_type<tc>, window_params = [{transform_indices = @transform_0, window_bounds = array<i64: 1, 1, 8>}, {transform_indices = @transform_1, window_bounds = array<i64: 1, 8, 1>}, {transform_indices = @transform_2, window_bounds = array<i64: 1, 16, 32>}, {pipeline_mode = #tpu.pipeline_mode<synchronous>, transform_indices = @transform_3, window_bounds = array<i64: 64, 32>}, {pipeline_mode = #tpu.pipeline_mode<synchronous>, transform_indices = @transform_4, window_bounds = array<i64: 1, 8, 32>}, {pipeline_mode = #tpu.pipeline_mode<synchronous>, transform_indices = @transform_5, window_bounds = array<i64: 1, 16, 32>}, {pipeline_mode = #tpu.pipeline_mode<synchronous>, transform_indices = @transform_6, window_bounds = array<i64: 2, 3, 4, 32, 8>}, {pipeline_mode = #tpu.pipeline_mode<synchronous>, transform_indices = @transform_7, window_bounds = array<i64: 2, 3, 4, 1, 8>}, {pipeline_mode = #tpu.pipeline_mode<synchronous>, transform_indices = @transform_8, window_bounds = array<i64: 2, 4, 8, 32>}, {pipeline_mode = #tpu.pipeline_mode<synchronous>, transform_indices = @transform_9, window_bounds = array<i64: 2, 1, 32>}, {pipeline_mode = #tpu.pipeline_mode<synchronous>, transform_indices = @transform_10, window_bounds = array<i64: 2, 3, 4, 32, 8>}, {pipeline_mode = #tpu.pipeline_mode<synchronous>, transform_indices = @transform_11, window_bounds = array<i64: 2, 3, 4, 1, 8>}, {pipeline_mode = #tpu.pipeline_mode<synchronous>, transform_indices = @transform_12, window_bounds = array<i64: 2, 4, 8, 32>}, {pipeline_mode = #tpu.pipeline_mode<synchronous>, transform_indices = @transform_13, window_bounds = array<i64: 2, 1, 32>}, {pipeline_mode = #tpu.pipeline_mode<synchronous>, transform_indices = @transform_14, window_bounds = array<i64: 2, 32, 2048>}, {pipeline_mode = #tpu.pipeline_mode<synchronous>, transform_indices = @transform_15, window_bounds = array<i64: 2, 1, 2048>}, {pipeline_mode = #tpu.pipeline_mode<synchronous>, transform_indices = @transform_16, window_bounds = array<i64: 2, 2048, 32>}, {pipeline_mode = #tpu.pipeline_mode<synchronous>, transform_indices = @transform_17, window_bounds = array<i64: 2, 1, 32>}, {pipeline_mode = #tpu.pipeline_mode<synchronous>, transform_indices = @transform_18, window_bounds = array<i64: 2, 3, 1, 32>}, {pipeline_mode = #tpu.pipeline_mode<synchronous>, transform_indices = @transform_19, window_bounds = array<i64: 2, 3, 1, 32>}, {pipeline_mode = #tpu.pipeline_mode<synchronous>, transform_indices = @transform_20, window_bounds = array<i64: 32, 128>}, {pipeline_mode = #tpu.pipeline_mode<synchronous>, transform_indices = @transform_21, window_bounds = array<i64: 1, 128>}, {transform_indices = @transform_22, window_bounds = array<i64: 1, 8, 128>}]} {
    %c0 = arith.constant 0 : index
    %c0_0 = arith.constant 0 : index
    %c0_1 = arith.constant 0 : index
    %0 = vector.load %arg2[%c0, %c0_0, %c0_1] : memref<1x8x1xi32, #tpu.memory_space<vmem>>, vector<1x8x1xi32>
    %1 = tpu.iota {dimensions = array<i32: 2>} : vector<1x8x64xi32>
    %2 = vector.broadcast %0 : vector<1x8x1xi32> to vector<1x8x64xi32>
    %3 = arith.cmpi eq, %2, %1 : vector<1x8x64xi32>
    %4 = arith.extui %3 : vector<1x8x64xi1> to vector<1x8x64xi32>
    %5 = arith.sitofp %4 : vector<1x8x64xi32> to vector<1x8x64xf32>
    %6 = arith.truncf %5 : vector<1x8x64xf32> to vector<1x8x64xbf16>
    %7 = vector.shape_cast %6 : vector<1x8x64xbf16> to vector<8x64xbf16>
    %c0_2 = arith.constant 0 : index
    %c0_3 = arith.constant 0 : index
    %8 = vector.load %arg4[%c0_2, %c0_3] : memref<64x32xbf16, #tpu.memory_space<vmem>>, vector<64x32xbf16>
    %cst = arith.constant dense<0.000000e+00> : vector<8x32xf32>
    %9 = tpu.matmul %7, %8, %cst {dimension_numbers = #tpu.dot_dimension_numbers<[1], [0], [0], [1], [0, 0, 1, 1], [], []>} : vector<8x64xbf16>, vector<64x32xbf16>, vector<8x32xf32> -> vector<8x32xf32>
    %c0_4 = arith.constant 0 : index
    %c0_5 = arith.constant 0 : index
    %c0_6 = arith.constant 0 : index
    %10 = vector.load %arg5[%c0_4, %c0_5, %c0_6] : memref<1x8x32xf32, #tpu.memory_space<vmem>>, vector<1x8x32xf32>
    %11 = vector.shape_cast %10 : vector<1x8x32xf32> to vector<8x32xf32>
    %12 = arith.addf %9, %11 : vector<8x32xf32>
    %c0_7 = arith.constant 0 : index
    %c0_8 = arith.constant 0 : index
    %c0_9 = arith.constant 0 : index
    %13 = vector.load %arg3[%c0_7, %c0_8, %c0_9] : memref<1x16x32xf32, #tpu.memory_space<vmem>>, vector<1x16x32xf32>
    %14 = vector.shape_cast %13 : vector<1x16x32xf32> to vector<16x32xf32>
    %c0_10 = arith.constant 0 : index
    %c0_11 = arith.constant 0 : index
    %c0_12 = arith.constant 0 : index
    %15 = vector.load %arg6[%c0_10, %c0_11, %c0_12] : memref<1x16x32xf32, #tpu.memory_space<vmem>>, vector<1x16x32xf32>
    %16 = vector.shape_cast %15 : vector<1x16x32xf32> to vector<16x32xf32>
    %17 = arith.addf %14, %16 : vector<16x32xf32>
    %18 = arith.truncf %17 : vector<16x32xf32> to vector<16x32xbf16>
    %c0_13 = arith.constant 0 : index
    %c0_14 = arith.constant 0 : index
    %c0_15 = arith.constant 0 : index
    %19 = vector.load %arg1[%c0_13, %c0_14, %c0_15] : memref<1x1x8xi32, #tpu.memory_space<vmem>>, vector<1x1x8xi32>
    %20 = vector.shape_cast %19 : vector<1x1x8xi32> to vector<1x8xi32>
    %21 = tpu.iota {dimensions = array<i32: 0>} : vector<8x8xi32>
    %22 = tpu.iota {dimensions = array<i32: 1>} : vector<8x8xi32>
    %23 = arith.cmpi sgt, %22, %21 : vector<8x8xi32>
    %cst_16 = arith.constant -1.000000e+09 : f32
    %cst_17 = arith.constant 0.000000e+00 : f32
    %24 = vector.broadcast %cst_16 : f32 to vector<8x8xf32>
    %25 = vector.broadcast %cst_17 : f32 to vector<8x8xf32>
    %26 = arith.select %23, %24, %25 : vector<8x8xi1>, vector<8x8xf32>
    %c0_i32 = arith.constant 0 : i32
    %27 = vector.broadcast %c0_i32 : i32 to vector<1x8xi32>
    %28 = arith.cmpi eq, %20, %27 : vector<1x8xi32>
    %cst_18 = arith.constant -1.000000e+09 : f32
    %cst_19 = arith.constant 0.000000e+00 : f32
    %29 = vector.broadcast %cst_18 : f32 to vector<1x8xf32>
    %30 = vector.broadcast %cst_19 : f32 to vector<1x8xf32>
    %31 = arith.select %28, %29, %30 : vector<1x8xi1>, vector<1x8xf32>
    %32 = vector.broadcast %31 : vector<1x8xf32> to vector<8x8xf32>
    %33 = arith.addf %26, %32 : vector<8x8xf32>
    %34 = arith.truncf %12 : vector<8x32xf32> to vector<8x32xbf16>
    %c0_20 = arith.constant 0 : index
    %c0_21 = arith.constant 0 : index
    %c0_22 = arith.constant 0 : index
    %c0_23 = arith.constant 0 : index
    %c0_24 = arith.constant 0 : index
    %35 = vector.load %arg7[%c0_20, %c0_21, %c0_22, %c0_23, %c0_24] : memref<2x3x4x32x8xbf16, #tpu.memory_space<vmem>>, vector<1x1x1x32x8xbf16>
    %36 = vector.shape_cast %35 : vector<1x1x1x32x8xbf16> to vector<32x8xbf16>
    %cst_25 = arith.constant dense<0.000000e+00> : vector<8x8xf32>
    %37 = tpu.matmul %34, %36, %cst_25 {dimension_numbers = #tpu.dot_dimension_numbers<[1], [0], [0], [1], [0, 0, 1, 1], [], []>} : vector<8x32xbf16>, vector<32x8xbf16>, vector<8x8xf32> -> vector<8x8xf32>
    %c0_26 = arith.constant 0 : index
    %c0_27 = arith.constant 0 : index
    %c0_28 = arith.constant 0 : index
    %c0_29 = arith.constant 0 : index
    %c0_30 = arith.constant 0 : index
    %38 = vector.load %arg8[%c0_26, %c0_27, %c0_28, %c0_29, %c0_30] : memref<2x3x4x1x8xf32, #tpu.memory_space<vmem>>, vector<1x1x1x1x8xf32>
    %39 = vector.shape_cast %38 : vector<1x1x1x1x8xf32> to vector<1x8xf32>
    %40 = vector.broadcast %39 : vector<1x8xf32> to vector<8x8xf32>
    %41 = arith.addf %37, %40 : vector<8x8xf32>
    %c0_31 = arith.constant 0 : index
    %c1 = arith.constant 1 : index
    %c0_32 = arith.constant 0 : index
    %c0_33 = arith.constant 0 : index
    %c0_34 = arith.constant 0 : index
    %42 = vector.load %arg7[%c0_31, %c1, %c0_32, %c0_33, %c0_34] : memref<2x3x4x32x8xbf16, #tpu.memory_space<vmem>>, vector<1x1x1x32x8xbf16>
    %43 = vector.shape_cast %42 : vector<1x1x1x32x8xbf16> to vector<32x8xbf16>
    %cst_35 = arith.constant dense<0.000000e+00> : vector<8x8xf32>
    %44 = tpu.matmul %34, %43, %cst_35 {dimension_numbers = #tpu.dot_dimension_numbers<[1], [0], [0], [1], [0, 0, 1, 1], [], []>} : vector<8x32xbf16>, vector<32x8xbf16>, vector<8x8xf32> -> vector<8x8xf32>
    %c0_36 = arith.constant 0 : index
    %c1_37 = arith.constant 1 : index
    %c0_38 = arith.constant 0 : index
    %c0_39 = arith.constant 0 : index
    %c0_40 = arith.constant 0 : index
    %45 = vector.load %arg8[%c0_36, %c1_37, %c0_38, %c0_39, %c0_40] : memref<2x3x4x1x8xf32, #tpu.memory_space<vmem>>, vector<1x1x1x1x8xf32>
    %46 = vector.shape_cast %45 : vector<1x1x1x1x8xf32> to vector<1x8xf32>
    %47 = vector.broadcast %46 : vector<1x8xf32> to vector<8x8xf32>
    %48 = arith.addf %44, %47 : vector<8x8xf32>
    %c0_41 = arith.constant 0 : index
    %c2 = arith.constant 2 : index
    %c0_42 = arith.constant 0 : index
    %c0_43 = arith.constant 0 : index
    %c0_44 = arith.constant 0 : index
    %49 = vector.load %arg7[%c0_41, %c2, %c0_42, %c0_43, %c0_44] : memref<2x3x4x32x8xbf16, #tpu.memory_space<vmem>>, vector<1x1x1x32x8xbf16>
    %50 = vector.shape_cast %49 : vector<1x1x1x32x8xbf16> to vector<32x8xbf16>
    %cst_45 = arith.constant dense<0.000000e+00> : vector<8x8xf32>
    %51 = tpu.matmul %34, %50, %cst_45 {dimension_numbers = #tpu.dot_dimension_numbers<[1], [0], [0], [1], [0, 0, 1, 1], [], []>} : vector<8x32xbf16>, vector<32x8xbf16>, vector<8x8xf32> -> vector<8x8xf32>
    %c0_46 = arith.constant 0 : index
    %c2_47 = arith.constant 2 : index
    %c0_48 = arith.constant 0 : index
    %c0_49 = arith.constant 0 : index
    %c0_50 = arith.constant 0 : index
    %52 = vector.load %arg8[%c0_46, %c2_47, %c0_48, %c0_49, %c0_50] : memref<2x3x4x1x8xf32, #tpu.memory_space<vmem>>, vector<1x1x1x1x8xf32>
    %53 = vector.shape_cast %52 : vector<1x1x1x1x8xf32> to vector<1x8xf32>
    %54 = vector.broadcast %53 : vector<1x8xf32> to vector<8x8xf32>
    %55 = arith.addf %51, %54 : vector<8x8xf32>
    %cst_51 = arith.constant 0.353553385 : f32
    %56 = vector.broadcast %cst_51 : f32 to vector<8x8xf32>
    %57 = arith.mulf %41, %56 : vector<8x8xf32>
    %58 = arith.truncf %57 : vector<8x8xf32> to vector<8x8xbf16>
    %59 = arith.truncf %48 : vector<8x8xf32> to vector<8x8xbf16>
    "tpu.trace_start"() <{level = 10 : i32, message = "qd,kd->qk"}> : () -> ()
    %cst_52 = arith.constant dense<0.000000e+00> : vector<8x8xf32>
    %60 = tpu.matmul %58, %59, %cst_52 {dimension_numbers = #tpu.dot_dimension_numbers<[1], [1], [0], [0], [0, 0, 1, 0], [], []>} : vector<8x8xbf16>, vector<8x8xbf16>, vector<8x8xf32> -> vector<8x8xf32>
    "tpu.trace_stop"() : () -> ()
    %61 = arith.addf %60, %33 : vector<8x8xf32>
    %cst_53 = arith.constant dense<0xFF800000> : vector<8xf32>
    %62 = vector.multi_reduction <maximumf>, %61, %cst_53 [1] : vector<8x8xf32> to vector<8xf32>
    %63 = vector.shape_cast %62 : vector<8xf32> to vector<8x1xf32>
    %64 = vector.broadcast %63 : vector<8x1xf32> to vector<8x8xf32>
    %65 = arith.subf %61, %64 : vector<8x8xf32>
    %66 = math.exp %65 : vector<8x8xf32>
    %cst_54 = arith.constant dense<0.000000e+00> : vector<8xf32>
    %67 = vector.multi_reduction <add>, %66, %cst_54 [1] : vector<8x8xf32> to vector<8xf32>
    %68 = vector.shape_cast %67 : vector<8xf32> to vector<8x1xf32>
    %69 = vector.broadcast %68 : vector<8x1xf32> to vector<8x8xf32>
    %70 = arith.divf %66, %69 : vector<8x8xf32>
    %71 = arith.truncf %70 : vector<8x8xf32> to vector<8x8xbf16>
    %72 = arith.truncf %55 : vector<8x8xf32> to vector<8x8xbf16>
    %cst_55 = arith.constant dense<0.000000e+00> : vector<8x8xf32>
    %73 = tpu.matmul %71, %72, %cst_55 {dimension_numbers = #tpu.dot_dimension_numbers<[1], [0], [0], [1], [0, 0, 1, 1], [], []>} : vector<8x8xbf16>, vector<8x8xbf16>, vector<8x8xf32> -> vector<8x8xf32>
    %74 = arith.truncf %73 : vector<8x8xf32> to vector<8x8xbf16>
    %c0_56 = arith.constant 0 : index
    %c0_57 = arith.constant 0 : index
    %c0_58 = arith.constant 0 : index
    %c0_59 = arith.constant 0 : index
    %75 = vector.load %arg9[%c0_56, %c0_57, %c0_58, %c0_59] : memref<2x4x8x32xbf16, #tpu.memory_space<vmem>>, vector<1x1x8x32xbf16>
    %76 = vector.shape_cast %75 : vector<1x1x8x32xbf16> to vector<8x32xbf16>
    %cst_60 = arith.constant dense<0.000000e+00> : vector<8x32xf32>
    %77 = tpu.matmul %74, %76, %cst_60 {dimension_numbers = #tpu.dot_dimension_numbers<[1], [0], [0], [1], [0, 0, 1, 1], [], []>} : vector<8x8xbf16>, vector<8x32xbf16>, vector<8x32xf32> -> vector<8x32xf32>
    %c0_61 = arith.constant 0 : index
    %c0_62 = arith.constant 0 : index
    %c1_63 = arith.constant 1 : index
    %c0_64 = arith.constant 0 : index
    %c0_65 = arith.constant 0 : index
    %78 = vector.load %arg7[%c0_61, %c0_62, %c1_63, %c0_64, %c0_65] : memref<2x3x4x32x8xbf16, #tpu.memory_space<vmem>>, vector<1x1x1x32x8xbf16>
    %79 = vector.shape_cast %78 : vector<1x1x1x32x8xbf16> to vector<32x8xbf16>
    %cst_66 = arith.constant dense<0.000000e+00> : vector<8x8xf32>
    %80 = tpu.matmul %34, %79, %cst_66 {dimension_numbers = #tpu.dot_dimension_numbers<[1], [0], [0], [1], [0, 0, 1, 1], [], []>} : vector<8x32xbf16>, vector<32x8xbf16>, vector<8x8xf32> -> vector<8x8xf32>
    %c0_67 = arith.constant 0 : index
    %c0_68 = arith.constant 0 : index
    %c1_69 = arith.constant 1 : index
    %c0_70 = arith.constant 0 : index
    %c0_71 = arith.constant 0 : index
    %81 = vector.load %arg8[%c0_67, %c0_68, %c1_69, %c0_70, %c0_71] : memref<2x3x4x1x8xf32, #tpu.memory_space<vmem>>, vector<1x1x1x1x8xf32>
    %82 = vector.shape_cast %81 : vector<1x1x1x1x8xf32> to vector<1x8xf32>
    %83 = vector.broadcast %82 : vector<1x8xf32> to vector<8x8xf32>
    %84 = arith.addf %80, %83 : vector<8x8xf32>
    %c0_72 = arith.constant 0 : index
    %c1_73 = arith.constant 1 : index
    %c1_74 = arith.constant 1 : index
    %c0_75 = arith.constant 0 : index
    %c0_76 = arith.constant 0 : index
    %85 = vector.load %arg7[%c0_72, %c1_73, %c1_74, %c0_75, %c0_76] : memref<2x3x4x32x8xbf16, #tpu.memory_space<vmem>>, vector<1x1x1x32x8xbf16>
    %86 = vector.shape_cast %85 : vector<1x1x1x32x8xbf16> to vector<32x8xbf16>
    %cst_77 = arith.constant dense<0.000000e+00> : vector<8x8xf32>
    %87 = tpu.matmul %34, %86, %cst_77 {dimension_numbers = #tpu.dot_dimension_numbers<[1], [0], [0], [1], [0, 0, 1, 1], [], []>} : vector<8x32xbf16>, vector<32x8xbf16>, vector<8x8xf32> -> vector<8x8xf32>
    %c0_78 = arith.constant 0 : index
    %c1_79 = arith.constant 1 : index
    %c1_80 = arith.constant 1 : index
    %c0_81 = arith.constant 0 : index
    %c0_82 = arith.constant 0 : index
    %88 = vector.load %arg8[%c0_78, %c1_79, %c1_80, %c0_81, %c0_82] : memref<2x3x4x1x8xf32, #tpu.memory_space<vmem>>, vector<1x1x1x1x8xf32>
    %89 = vector.shape_cast %88 : vector<1x1x1x1x8xf32> to vector<1x8xf32>
    %90 = vector.broadcast %89 : vector<1x8xf32> to vector<8x8xf32>
    %91 = arith.addf %87, %90 : vector<8x8xf32>
    %c0_83 = arith.constant 0 : index
    %c2_84 = arith.constant 2 : index
    %c1_85 = arith.constant 1 : index
    %c0_86 = arith.constant 0 : index
    %c0_87 = arith.constant 0 : index
    %92 = vector.load %arg7[%c0_83, %c2_84, %c1_85, %c0_86, %c0_87] : memref<2x3x4x32x8xbf16, #tpu.memory_space<vmem>>, vector<1x1x1x32x8xbf16>
    %93 = vector.shape_cast %92 : vector<1x1x1x32x8xbf16> to vector<32x8xbf16>
    %cst_88 = arith.constant dense<0.000000e+00> : vector<8x8xf32>
    %94 = tpu.matmul %34, %93, %cst_88 {dimension_numbers = #tpu.dot_dimension_numbers<[1], [0], [0], [1], [0, 0, 1, 1], [], []>} : vector<8x32xbf16>, vector<32x8xbf16>, vector<8x8xf32> -> vector<8x8xf32>
    %c0_89 = arith.constant 0 : index
    %c2_90 = arith.constant 2 : index
    %c1_91 = arith.constant 1 : index
    %c0_92 = arith.constant 0 : index
    %c0_93 = arith.constant 0 : index
    %95 = vector.load %arg8[%c0_89, %c2_90, %c1_91, %c0_92, %c0_93] : memref<2x3x4x1x8xf32, #tpu.memory_space<vmem>>, vector<1x1x1x1x8xf32>
    %96 = vector.shape_cast %95 : vector<1x1x1x1x8xf32> to vector<1x8xf32>
    %97 = vector.broadcast %96 : vector<1x8xf32> to vector<8x8xf32>
    %98 = arith.addf %94, %97 : vector<8x8xf32>
    %cst_94 = arith.constant 0.353553385 : f32
    %99 = vector.broadcast %cst_94 : f32 to vector<8x8xf32>
    %100 = arith.mulf %84, %99 : vector<8x8xf32>
    %101 = arith.truncf %100 : vector<8x8xf32> to vector<8x8xbf16>
    %102 = arith.truncf %91 : vector<8x8xf32> to vector<8x8xbf16>
    "tpu.trace_start"() <{level = 10 : i32, message = "qd,kd->qk"}> : () -> ()
    %cst_95 = arith.constant dense<0.000000e+00> : vector<8x8xf32>
    %103 = tpu.matmul %101, %102, %cst_95 {dimension_numbers = #tpu.dot_dimension_numbers<[1], [1], [0], [0], [0, 0, 1, 0], [], []>} : vector<8x8xbf16>, vector<8x8xbf16>, vector<8x8xf32> -> vector<8x8xf32>
    "tpu.trace_stop"() : () -> ()
    %104 = arith.addf %103, %33 : vector<8x8xf32>
    %cst_96 = arith.constant dense<0xFF800000> : vector<8xf32>
    %105 = vector.multi_reduction <maximumf>, %104, %cst_96 [1] : vector<8x8xf32> to vector<8xf32>
    %106 = vector.shape_cast %105 : vector<8xf32> to vector<8x1xf32>
    %107 = vector.broadcast %106 : vector<8x1xf32> to vector<8x8xf32>
    %108 = arith.subf %104, %107 : vector<8x8xf32>
    %109 = math.exp %108 : vector<8x8xf32>
    %cst_97 = arith.constant dense<0.000000e+00> : vector<8xf32>
    %110 = vector.multi_reduction <add>, %109, %cst_97 [1] : vector<8x8xf32> to vector<8xf32>
    %111 = vector.shape_cast %110 : vector<8xf32> to vector<8x1xf32>
    %112 = vector.broadcast %111 : vector<8x1xf32> to vector<8x8xf32>
    %113 = arith.divf %109, %112 : vector<8x8xf32>
    %114 = arith.truncf %113 : vector<8x8xf32> to vector<8x8xbf16>
    %115 = arith.truncf %98 : vector<8x8xf32> to vector<8x8xbf16>
    %cst_98 = arith.constant dense<0.000000e+00> : vector<8x8xf32>
    %116 = tpu.matmul %114, %115, %cst_98 {dimension_numbers = #tpu.dot_dimension_numbers<[1], [0], [0], [1], [0, 0, 1, 1], [], []>} : vector<8x8xbf16>, vector<8x8xbf16>, vector<8x8xf32> -> vector<8x8xf32>
    %117 = arith.truncf %116 : vector<8x8xf32> to vector<8x8xbf16>
    %c0_99 = arith.constant 0 : index
    %c1_100 = arith.constant 1 : index
    %c0_101 = arith.constant 0 : index
    %c0_102 = arith.constant 0 : index
    %118 = vector.load %arg9[%c0_99, %c1_100, %c0_101, %c0_102] : memref<2x4x8x32xbf16, #tpu.memory_space<vmem>>, vector<1x1x8x32xbf16>
    %119 = vector.shape_cast %118 : vector<1x1x8x32xbf16> to vector<8x32xbf16>
    %cst_103 = arith.constant dense<0.000000e+00> : vector<8x32xf32>
    %120 = tpu.matmul %117, %119, %cst_103 {dimension_numbers = #tpu.dot_dimension_numbers<[1], [0], [0], [1], [0, 0, 1, 1], [], []>} : vector<8x8xbf16>, vector<8x32xbf16>, vector<8x32xf32> -> vector<8x32xf32>
    %121 = arith.addf %77, %120 : vector<8x32xf32>
    %c0_104 = arith.constant 0 : index
    %c0_105 = arith.constant 0 : index
    %c2_106 = arith.constant 2 : index
    %c0_107 = arith.constant 0 : index
    %c0_108 = arith.constant 0 : index
    %122 = vector.load %arg7[%c0_104, %c0_105, %c2_106, %c0_107, %c0_108] : memref<2x3x4x32x8xbf16, #tpu.memory_space<vmem>>, vector<1x1x1x32x8xbf16>
    %123 = vector.shape_cast %122 : vector<1x1x1x32x8xbf16> to vector<32x8xbf16>
    %cst_109 = arith.constant dense<0.000000e+00> : vector<8x8xf32>
    %124 = tpu.matmul %34, %123, %cst_109 {dimension_numbers = #tpu.dot_dimension_numbers<[1], [0], [0], [1], [0, 0, 1, 1], [], []>} : vector<8x32xbf16>, vector<32x8xbf16>, vector<8x8xf32> -> vector<8x8xf32>
    %c0_110 = arith.constant 0 : index
    %c0_111 = arith.constant 0 : index
    %c2_112 = arith.constant 2 : index
    %c0_113 = arith.constant 0 : index
    %c0_114 = arith.constant 0 : index
    %125 = vector.load %arg8[%c0_110, %c0_111, %c2_112, %c0_113, %c0_114] : memref<2x3x4x1x8xf32, #tpu.memory_space<vmem>>, vector<1x1x1x1x8xf32>
    %126 = vector.shape_cast %125 : vector<1x1x1x1x8xf32> to vector<1x8xf32>
    %127 = vector.broadcast %126 : vector<1x8xf32> to vector<8x8xf32>
    %128 = arith.addf %124, %127 : vector<8x8xf32>
    %c0_115 = arith.constant 0 : index
    %c1_116 = arith.constant 1 : index
    %c2_117 = arith.constant 2 : index
    %c0_118 = arith.constant 0 : index
    %c0_119 = arith.constant 0 : index
    %129 = vector.load %arg7[%c0_115, %c1_116, %c2_117, %c0_118, %c0_119] : memref<2x3x4x32x8xbf16, #tpu.memory_space<vmem>>, vector<1x1x1x32x8xbf16>
    %130 = vector.shape_cast %129 : vector<1x1x1x32x8xbf16> to vector<32x8xbf16>
    %cst_120 = arith.constant dense<0.000000e+00> : vector<8x8xf32>
    %131 = tpu.matmul %34, %130, %cst_120 {dimension_numbers = #tpu.dot_dimension_numbers<[1], [0], [0], [1], [0, 0, 1, 1], [], []>} : vector<8x32xbf16>, vector<32x8xbf16>, vector<8x8xf32> -> vector<8x8xf32>
    %c0_121 = arith.constant 0 : index
    %c1_122 = arith.constant 1 : index
    %c2_123 = arith.constant 2 : index
    %c0_124 = arith.constant 0 : index
    %c0_125 = arith.constant 0 : index
    %132 = vector.load %arg8[%c0_121, %c1_122, %c2_123, %c0_124, %c0_125] : memref<2x3x4x1x8xf32, #tpu.memory_space<vmem>>, vector<1x1x1x1x8xf32>
    %133 = vector.shape_cast %132 : vector<1x1x1x1x8xf32> to vector<1x8xf32>
    %134 = vector.broadcast %133 : vector<1x8xf32> to vector<8x8xf32>
    %135 = arith.addf %131, %134 : vector<8x8xf32>
    %c0_126 = arith.constant 0 : index
    %c2_127 = arith.constant 2 : index
    %c2_128 = arith.constant 2 : index
    %c0_129 = arith.constant 0 : index
    %c0_130 = arith.constant 0 : index
    %136 = vector.load %arg7[%c0_126, %c2_127, %c2_128, %c0_129, %c0_130] : memref<2x3x4x32x8xbf16, #tpu.memory_space<vmem>>, vector<1x1x1x32x8xbf16>
    %137 = vector.shape_cast %136 : vector<1x1x1x32x8xbf16> to vector<32x8xbf16>
    %cst_131 = arith.constant dense<0.000000e+00> : vector<8x8xf32>
    %138 = tpu.matmul %34, %137, %cst_131 {dimension_numbers = #tpu.dot_dimension_numbers<[1], [0], [0], [1], [0, 0, 1, 1], [], []>} : vector<8x32xbf16>, vector<32x8xbf16>, vector<8x8xf32> -> vector<8x8xf32>
    %c0_132 = arith.constant 0 : index
    %c2_133 = arith.constant 2 : index
    %c2_134 = arith.constant 2 : index
    %c0_135 = arith.constant 0 : index
    %c0_136 = arith.constant 0 : index
    %139 = vector.load %arg8[%c0_132, %c2_133, %c2_134, %c0_135, %c0_136] : memref<2x3x4x1x8xf32, #tpu.memory_space<vmem>>, vector<1x1x1x1x8xf32>
    %140 = vector.shape_cast %139 : vector<1x1x1x1x8xf32> to vector<1x8xf32>
    %141 = vector.broadcast %140 : vector<1x8xf32> to vector<8x8xf32>
    %142 = arith.addf %138, %141 : vector<8x8xf32>
    %cst_137 = arith.constant 0.353553385 : f32
    %143 = vector.broadcast %cst_137 : f32 to vector<8x8xf32>
    %144 = arith.mulf %128, %143 : vector<8x8xf32>
    %145 = arith.truncf %144 : vector<8x8xf32> to vector<8x8xbf16>
    %146 = arith.truncf %135 : vector<8x8xf32> to vector<8x8xbf16>
    "tpu.trace_start"() <{level = 10 : i32, message = "qd,kd->qk"}> : () -> ()
    %cst_138 = arith.constant dense<0.000000e+00> : vector<8x8xf32>
    %147 = tpu.matmul %145, %146, %cst_138 {dimension_numbers = #tpu.dot_dimension_numbers<[1], [1], [0], [0], [0, 0, 1, 0], [], []>} : vector<8x8xbf16>, vector<8x8xbf16>, vector<8x8xf32> -> vector<8x8xf32>
    "tpu.trace_stop"() : () -> ()
    %148 = arith.addf %147, %33 : vector<8x8xf32>
    %cst_139 = arith.constant dense<0xFF800000> : vector<8xf32>
    %149 = vector.multi_reduction <maximumf>, %148, %cst_139 [1] : vector<8x8xf32> to vector<8xf32>
    %150 = vector.shape_cast %149 : vector<8xf32> to vector<8x1xf32>
    %151 = vector.broadcast %150 : vector<8x1xf32> to vector<8x8xf32>
    %152 = arith.subf %148, %151 : vector<8x8xf32>
    %153 = math.exp %152 : vector<8x8xf32>
    %cst_140 = arith.constant dense<0.000000e+00> : vector<8xf32>
    %154 = vector.multi_reduction <add>, %153, %cst_140 [1] : vector<8x8xf32> to vector<8xf32>
    %155 = vector.shape_cast %154 : vector<8xf32> to vector<8x1xf32>
    %156 = vector.broadcast %155 : vector<8x1xf32> to vector<8x8xf32>
    %157 = arith.divf %153, %156 : vector<8x8xf32>
    %158 = arith.truncf %157 : vector<8x8xf32> to vector<8x8xbf16>
    %159 = arith.truncf %142 : vector<8x8xf32> to vector<8x8xbf16>
    %cst_141 = arith.constant dense<0.000000e+00> : vector<8x8xf32>
    %160 = tpu.matmul %158, %159, %cst_141 {dimension_numbers = #tpu.dot_dimension_numbers<[1], [0], [0], [1], [0, 0, 1, 1], [], []>} : vector<8x8xbf16>, vector<8x8xbf16>, vector<8x8xf32> -> vector<8x8xf32>
    %161 = arith.truncf %160 : vector<8x8xf32> to vector<8x8xbf16>
    %c0_142 = arith.constant 0 : index
    %c2_143 = arith.constant 2 : index
    %c0_144 = arith.constant 0 : index
    %c0_145 = arith.constant 0 : index
    %162 = vector.load %arg9[%c0_142, %c2_143, %c0_144, %c0_145] : memref<2x4x8x32xbf16, #tpu.memory_space<vmem>>, vector<1x1x8x32xbf16>
    %163 = vector.shape_cast %162 : vector<1x1x8x32xbf16> to vector<8x32xbf16>
    %cst_146 = arith.constant dense<0.000000e+00> : vector<8x32xf32>
    %164 = tpu.matmul %161, %163, %cst_146 {dimension_numbers = #tpu.dot_dimension_numbers<[1], [0], [0], [1], [0, 0, 1, 1], [], []>} : vector<8x8xbf16>, vector<8x32xbf16>, vector<8x32xf32> -> vector<8x32xf32>
    %165 = arith.addf %121, %164 : vector<8x32xf32>
    %c0_147 = arith.constant 0 : index
    %c0_148 = arith.constant 0 : index
    %c3 = arith.constant 3 : index
    %c0_149 = arith.constant 0 : index
    %c0_150 = arith.constant 0 : index
    %166 = vector.load %arg7[%c0_147, %c0_148, %c3, %c0_149, %c0_150] : memref<2x3x4x32x8xbf16, #tpu.memory_space<vmem>>, vector<1x1x1x32x8xbf16>
    %167 = vector.shape_cast %166 : vector<1x1x1x32x8xbf16> to vector<32x8xbf16>
    %cst_151 = arith.constant dense<0.000000e+00> : vector<8x8xf32>
    %168 = tpu.matmul %34, %167, %cst_151 {dimension_numbers = #tpu.dot_dimension_numbers<[1], [0], [0], [1], [0, 0, 1, 1], [], []>} : vector<8x32xbf16>, vector<32x8xbf16>, vector<8x8xf32> -> vector<8x8xf32>
    %c0_152 = arith.constant 0 : index
    %c0_153 = arith.constant 0 : index
    %c3_154 = arith.constant 3 : index
    %c0_155 = arith.constant 0 : index
    %c0_156 = arith.constant 0 : index
    %169 = vector.load %arg8[%c0_152, %c0_153, %c3_154, %c0_155, %c0_156] : memref<2x3x4x1x8xf32, #tpu.memory_space<vmem>>, vector<1x1x1x1x8xf32>
    %170 = vector.shape_cast %169 : vector<1x1x1x1x8xf32> to vector<1x8xf32>
    %171 = vector.broadcast %170 : vector<1x8xf32> to vector<8x8xf32>
    %172 = arith.addf %168, %171 : vector<8x8xf32>
    %c0_157 = arith.constant 0 : index
    %c1_158 = arith.constant 1 : index
    %c3_159 = arith.constant 3 : index
    %c0_160 = arith.constant 0 : index
    %c0_161 = arith.constant 0 : index
    %173 = vector.load %arg7[%c0_157, %c1_158, %c3_159, %c0_160, %c0_161] : memref<2x3x4x32x8xbf16, #tpu.memory_space<vmem>>, vector<1x1x1x32x8xbf16>
    %174 = vector.shape_cast %173 : vector<1x1x1x32x8xbf16> to vector<32x8xbf16>
    %cst_162 = arith.constant dense<0.000000e+00> : vector<8x8xf32>
    %175 = tpu.matmul %34, %174, %cst_162 {dimension_numbers = #tpu.dot_dimension_numbers<[1], [0], [0], [1], [0, 0, 1, 1], [], []>} : vector<8x32xbf16>, vector<32x8xbf16>, vector<8x8xf32> -> vector<8x8xf32>
    %c0_163 = arith.constant 0 : index
    %c1_164 = arith.constant 1 : index
    %c3_165 = arith.constant 3 : index
    %c0_166 = arith.constant 0 : index
    %c0_167 = arith.constant 0 : index
    %176 = vector.load %arg8[%c0_163, %c1_164, %c3_165, %c0_166, %c0_167] : memref<2x3x4x1x8xf32, #tpu.memory_space<vmem>>, vector<1x1x1x1x8xf32>
    %177 = vector.shape_cast %176 : vector<1x1x1x1x8xf32> to vector<1x8xf32>
    %178 = vector.broadcast %177 : vector<1x8xf32> to vector<8x8xf32>
    %179 = arith.addf %175, %178 : vector<8x8xf32>
    %c0_168 = arith.constant 0 : index
    %c2_169 = arith.constant 2 : index
    %c3_170 = arith.constant 3 : index
    %c0_171 = arith.constant 0 : index
    %c0_172 = arith.constant 0 : index
    %180 = vector.load %arg7[%c0_168, %c2_169, %c3_170, %c0_171, %c0_172] : memref<2x3x4x32x8xbf16, #tpu.memory_space<vmem>>, vector<1x1x1x32x8xbf16>
    %181 = vector.shape_cast %180 : vector<1x1x1x32x8xbf16> to vector<32x8xbf16>
    %cst_173 = arith.constant dense<0.000000e+00> : vector<8x8xf32>
    %182 = tpu.matmul %34, %181, %cst_173 {dimension_numbers = #tpu.dot_dimension_numbers<[1], [0], [0], [1], [0, 0, 1, 1], [], []>} : vector<8x32xbf16>, vector<32x8xbf16>, vector<8x8xf32> -> vector<8x8xf32>
    %c0_174 = arith.constant 0 : index
    %c2_175 = arith.constant 2 : index
    %c3_176 = arith.constant 3 : index
    %c0_177 = arith.constant 0 : index
    %c0_178 = arith.constant 0 : index
    %183 = vector.load %arg8[%c0_174, %c2_175, %c3_176, %c0_177, %c0_178] : memref<2x3x4x1x8xf32, #tpu.memory_space<vmem>>, vector<1x1x1x1x8xf32>
    %184 = vector.shape_cast %183 : vector<1x1x1x1x8xf32> to vector<1x8xf32>
    %185 = vector.broadcast %184 : vector<1x8xf32> to vector<8x8xf32>
    %186 = arith.addf %182, %185 : vector<8x8xf32>
    %cst_179 = arith.constant 0.353553385 : f32
    %187 = vector.broadcast %cst_179 : f32 to vector<8x8xf32>
    %188 = arith.mulf %172, %187 : vector<8x8xf32>
    %189 = arith.truncf %188 : vector<8x8xf32> to vector<8x8xbf16>
    %190 = arith.truncf %179 : vector<8x8xf32> to vector<8x8xbf16>
    "tpu.trace_start"() <{level = 10 : i32, message = "qd,kd->qk"}> : () -> ()
    %cst_180 = arith.constant dense<0.000000e+00> : vector<8x8xf32>
    %191 = tpu.matmul %189, %190, %cst_180 {dimension_numbers = #tpu.dot_dimension_numbers<[1], [1], [0], [0], [0, 0, 1, 0], [], []>} : vector<8x8xbf16>, vector<8x8xbf16>, vector<8x8xf32> -> vector<8x8xf32>
    "tpu.trace_stop"() : () -> ()
    %192 = arith.addf %191, %33 : vector<8x8xf32>
    %cst_181 = arith.constant dense<0xFF800000> : vector<8xf32>
    %193 = vector.multi_reduction <maximumf>, %192, %cst_181 [1] : vector<8x8xf32> to vector<8xf32>
    %194 = vector.shape_cast %193 : vector<8xf32> to vector<8x1xf32>
    %195 = vector.broadcast %194 : vector<8x1xf32> to vector<8x8xf32>
    %196 = arith.subf %192, %195 : vector<8x8xf32>
    %197 = math.exp %196 : vector<8x8xf32>
    %cst_182 = arith.constant dense<0.000000e+00> : vector<8xf32>
    %198 = vector.multi_reduction <add>, %197, %cst_182 [1] : vector<8x8xf32> to vector<8xf32>
    %199 = vector.shape_cast %198 : vector<8xf32> to vector<8x1xf32>
    %200 = vector.broadcast %199 : vector<8x1xf32> to vector<8x8xf32>
    %201 = arith.divf %197, %200 : vector<8x8xf32>
    %202 = arith.truncf %201 : vector<8x8xf32> to vector<8x8xbf16>
    %203 = arith.truncf %186 : vector<8x8xf32> to vector<8x8xbf16>
    %cst_183 = arith.constant dense<0.000000e+00> : vector<8x8xf32>
    %204 = tpu.matmul %202, %203, %cst_183 {dimension_numbers = #tpu.dot_dimension_numbers<[1], [0], [0], [1], [0, 0, 1, 1], [], []>} : vector<8x8xbf16>, vector<8x8xbf16>, vector<8x8xf32> -> vector<8x8xf32>
    %205 = arith.truncf %204 : vector<8x8xf32> to vector<8x8xbf16>
    %c0_184 = arith.constant 0 : index
    %c3_185 = arith.constant 3 : index
    %c0_186 = arith.constant 0 : index
    %c0_187 = arith.constant 0 : index
    %206 = vector.load %arg9[%c0_184, %c3_185, %c0_186, %c0_187] : memref<2x4x8x32xbf16, #tpu.memory_space<vmem>>, vector<1x1x8x32xbf16>
    %207 = vector.shape_cast %206 : vector<1x1x8x32xbf16> to vector<8x32xbf16>
    %cst_188 = arith.constant dense<0.000000e+00> : vector<8x32xf32>
    %208 = tpu.matmul %205, %207, %cst_188 {dimension_numbers = #tpu.dot_dimension_numbers<[1], [0], [0], [1], [0, 0, 1, 1], [], []>} : vector<8x8xbf16>, vector<8x32xbf16>, vector<8x32xf32> -> vector<8x32xf32>
    %209 = arith.addf %165, %208 : vector<8x32xf32>
    %c0_189 = arith.constant 0 : index
    %c0_190 = arith.constant 0 : index
    %c0_191 = arith.constant 0 : index
    %210 = vector.load %arg10[%c0_189, %c0_190, %c0_191] : memref<2x1x32xf32, #tpu.memory_space<vmem>>, vector<1x1x32xf32>
    %211 = vector.shape_cast %210 : vector<1x1x32xf32> to vector<1x32xf32>
    %212 = vector.broadcast %211 : vector<1x32xf32> to vector<8x32xf32>
    %213 = arith.addf %209, %212 : vector<8x32xf32>
    %214 = arith.addf %12, %213 : vector<8x32xf32>
    %c0_192 = arith.constant 0 : index
    %c0_193 = arith.constant 0 : index
    %c0_194 = arith.constant 0 : index
    %c0_195 = arith.constant 0 : index
    %215 = vector.load %arg19[%c0_192, %c0_193, %c0_194, %c0_195] : memref<2x3x1x32xf32, #tpu.memory_space<vmem>>, vector<1x1x1x32xf32>
    %216 = vector.shape_cast %215 : vector<1x1x1x32xf32> to vector<1x32xf32>
    %c0_196 = arith.constant 0 : index
    %c0_197 = arith.constant 0 : index
    %c0_198 = arith.constant 0 : index
    %c0_199 = arith.constant 0 : index
    %217 = vector.load %arg20[%c0_196, %c0_197, %c0_198, %c0_199] : memref<2x3x1x32xf32, #tpu.memory_space<vmem>>, vector<1x1x1x32xf32>
    %218 = vector.shape_cast %217 : vector<1x1x1x32xf32> to vector<1x32xf32>
    %cst_200 = arith.constant dense<0.000000e+00> : vector<8xf32>
    %219 = vector.multi_reduction <add>, %214, %cst_200 [1] : vector<8x32xf32> to vector<8xf32>
    %220 = vector.shape_cast %219 : vector<8xf32> to vector<8x1xf32>
    %cst_201 = arith.constant 3.200000e+01 : f32
    %221 = vector.broadcast %cst_201 : f32 to vector<8x1xf32>
    %222 = arith.divf %220, %221 : vector<8x1xf32>
    %223 = vector.broadcast %222 : vector<8x1xf32> to vector<8x32xf32>
    %224 = arith.subf %214, %223 : vector<8x32xf32>
    %225 = arith.mulf %224, %224 : vector<8x32xf32>
    %cst_202 = arith.constant dense<0.000000e+00> : vector<8xf32>
    %226 = vector.multi_reduction <add>, %225, %cst_202 [1] : vector<8x32xf32> to vector<8xf32>
    %227 = vector.shape_cast %226 : vector<8xf32> to vector<8x1xf32>
    %cst_203 = arith.constant 3.200000e+01 : f32
    %228 = vector.broadcast %cst_203 : f32 to vector<8x1xf32>
    %229 = arith.divf %227, %228 : vector<8x1xf32>
    %230 = vector.broadcast %222 : vector<8x1xf32> to vector<8x32xf32>
    %231 = arith.subf %214, %230 : vector<8x32xf32>
    %cst_204 = arith.constant 9.99999974E-6 : f32
    %232 = vector.broadcast %cst_204 : f32 to vector<8x1xf32>
    %233 = arith.addf %229, %232 : vector<8x1xf32>
    %234 = math.rsqrt %233 : vector<8x1xf32>
    %235 = vector.broadcast %234 : vector<8x1xf32> to vector<8x32xf32>
    %236 = arith.mulf %231, %235 : vector<8x32xf32>
    %237 = vector.broadcast %216 : vector<1x32xf32> to vector<8x32xf32>
    %238 = arith.mulf %236, %237 : vector<8x32xf32>
    %239 = vector.broadcast %218 : vector<1x32xf32> to vector<8x32xf32>
    %240 = arith.addf %238, %239 : vector<8x32xf32>
    %241 = arith.truncf %240 : vector<8x32xf32> to vector<8x32xbf16>
    %c0_205 = arith.constant 0 : index
    %c0_206 = arith.constant 0 : index
    %c0_207 = arith.constant 0 : index
    %c0_208 = arith.constant 0 : index
    %c0_209 = arith.constant 0 : index
    %242 = vector.load %arg11[%c0_205, %c0_206, %c0_207, %c0_208, %c0_209] : memref<2x3x4x32x8xbf16, #tpu.memory_space<vmem>>, vector<1x1x1x32x8xbf16>
    %243 = vector.shape_cast %242 : vector<1x1x1x32x8xbf16> to vector<32x8xbf16>
    %cst_210 = arith.constant dense<0.000000e+00> : vector<8x8xf32>
    %244 = tpu.matmul %241, %243, %cst_210 {dimension_numbers = #tpu.dot_dimension_numbers<[1], [0], [0], [1], [0, 0, 1, 1], [], []>} : vector<8x32xbf16>, vector<32x8xbf16>, vector<8x8xf32> -> vector<8x8xf32>
    %c0_211 = arith.constant 0 : index
    %c0_212 = arith.constant 0 : index
    %c0_213 = arith.constant 0 : index
    %c0_214 = arith.constant 0 : index
    %c0_215 = arith.constant 0 : index
    %245 = vector.load %arg12[%c0_211, %c0_212, %c0_213, %c0_214, %c0_215] : memref<2x3x4x1x8xf32, #tpu.memory_space<vmem>>, vector<1x1x1x1x8xf32>
    %246 = vector.shape_cast %245 : vector<1x1x1x1x8xf32> to vector<1x8xf32>
    %247 = vector.broadcast %246 : vector<1x8xf32> to vector<8x8xf32>
    %248 = arith.addf %244, %247 : vector<8x8xf32>
    %c0_216 = arith.constant 0 : index
    %c1_217 = arith.constant 1 : index
    %c0_218 = arith.constant 0 : index
    %c0_219 = arith.constant 0 : index
    %c0_220 = arith.constant 0 : index
    %249 = vector.load %arg11[%c0_216, %c1_217, %c0_218, %c0_219, %c0_220] : memref<2x3x4x32x8xbf16, #tpu.memory_space<vmem>>, vector<1x1x1x32x8xbf16>
    %250 = vector.shape_cast %249 : vector<1x1x1x32x8xbf16> to vector<32x8xbf16>
    %cst_221 = arith.constant dense<0.000000e+00> : vector<16x8xf32>
    %251 = tpu.matmul %18, %250, %cst_221 {dimension_numbers = #tpu.dot_dimension_numbers<[1], [0], [0], [1], [0, 0, 1, 1], [], []>} : vector<16x32xbf16>, vector<32x8xbf16>, vector<16x8xf32> -> vector<16x8xf32>
    %c0_222 = arith.constant 0 : index
    %c1_223 = arith.constant 1 : index
    %c0_224 = arith.constant 0 : index
    %c0_225 = arith.constant 0 : index
    %c0_226 = arith.constant 0 : index
    %252 = vector.load %arg12[%c0_222, %c1_223, %c0_224, %c0_225, %c0_226] : memref<2x3x4x1x8xf32, #tpu.memory_space<vmem>>, vector<1x1x1x1x8xf32>
    %253 = vector.shape_cast %252 : vector<1x1x1x1x8xf32> to vector<1x8xf32>
    %254 = vector.broadcast %253 : vector<1x8xf32> to vector<16x8xf32>
    %255 = arith.addf %251, %254 : vector<16x8xf32>
    %c0_227 = arith.constant 0 : index
    %c2_228 = arith.constant 2 : index
    %c0_229 = arith.constant 0 : index
    %c0_230 = arith.constant 0 : index
    %c0_231 = arith.constant 0 : index
    %256 = vector.load %arg11[%c0_227, %c2_228, %c0_229, %c0_230, %c0_231] : memref<2x3x4x32x8xbf16, #tpu.memory_space<vmem>>, vector<1x1x1x32x8xbf16>
    %257 = vector.shape_cast %256 : vector<1x1x1x32x8xbf16> to vector<32x8xbf16>
    %cst_232 = arith.constant dense<0.000000e+00> : vector<16x8xf32>
    %258 = tpu.matmul %18, %257, %cst_232 {dimension_numbers = #tpu.dot_dimension_numbers<[1], [0], [0], [1], [0, 0, 1, 1], [], []>} : vector<16x32xbf16>, vector<32x8xbf16>, vector<16x8xf32> -> vector<16x8xf32>
    %c0_233 = arith.constant 0 : index
    %c2_234 = arith.constant 2 : index
    %c0_235 = arith.constant 0 : index
    %c0_236 = arith.constant 0 : index
    %c0_237 = arith.constant 0 : index
    %259 = vector.load %arg12[%c0_233, %c2_234, %c0_235, %c0_236, %c0_237] : memref<2x3x4x1x8xf32, #tpu.memory_space<vmem>>, vector<1x1x1x1x8xf32>
    %260 = vector.shape_cast %259 : vector<1x1x1x1x8xf32> to vector<1x8xf32>
    %261 = vector.broadcast %260 : vector<1x8xf32> to vector<16x8xf32>
    %262 = arith.addf %258, %261 : vector<16x8xf32>
    %cst_238 = arith.constant 0.353553385 : f32
    %263 = vector.broadcast %cst_238 : f32 to vector<8x8xf32>
    %264 = arith.mulf %248, %263 : vector<8x8xf32>
    %265 = arith.truncf %264 : vector<8x8xf32> to vector<8x8xbf16>
    %266 = arith.truncf %255 : vector<16x8xf32> to vector<16x8xbf16>
    "tpu.trace_start"() <{level = 10 : i32, message = "qd,kd->qk"}> : () -> ()
    %cst_239 = arith.constant dense<0.000000e+00> : vector<8x16xf32>
    %267 = tpu.matmul %265, %266, %cst_239 {dimension_numbers = #tpu.dot_dimension_numbers<[1], [1], [0], [0], [0, 0, 1, 0], [], []>} : vector<8x8xbf16>, vector<16x8xbf16>, vector<8x16xf32> -> vector<8x16xf32>
    "tpu.trace_stop"() : () -> ()
    %cst_240 = arith.constant dense<0xFF800000> : vector<8xf32>
    %268 = vector.multi_reduction <maximumf>, %267, %cst_240 [1] : vector<8x16xf32> to vector<8xf32>
    %269 = vector.shape_cast %268 : vector<8xf32> to vector<8x1xf32>
    %270 = vector.broadcast %269 : vector<8x1xf32> to vector<8x16xf32>
    %271 = arith.subf %267, %270 : vector<8x16xf32>
    %272 = math.exp %271 : vector<8x16xf32>
    %cst_241 = arith.constant dense<0.000000e+00> : vector<8xf32>
    %273 = vector.multi_reduction <add>, %272, %cst_241 [1] : vector<8x16xf32> to vector<8xf32>
    %274 = vector.shape_cast %273 : vector<8xf32> to vector<8x1xf32>
    %275 = vector.broadcast %274 : vector<8x1xf32> to vector<8x16xf32>
    %276 = arith.divf %272, %275 : vector<8x16xf32>
    %277 = arith.truncf %276 : vector<8x16xf32> to vector<8x16xbf16>
    %278 = arith.truncf %262 : vector<16x8xf32> to vector<16x8xbf16>
    %cst_242 = arith.constant dense<0.000000e+00> : vector<8x8xf32>
    %279 = tpu.matmul %277, %278, %cst_242 {dimension_numbers = #tpu.dot_dimension_numbers<[1], [0], [0], [1], [0, 0, 1, 1], [], []>} : vector<8x16xbf16>, vector<16x8xbf16>, vector<8x8xf32> -> vector<8x8xf32>
    %280 = arith.truncf %279 : vector<8x8xf32> to vector<8x8xbf16>
    %c0_243 = arith.constant 0 : index
    %c0_244 = arith.constant 0 : index
    %c0_245 = arith.constant 0 : index
    %c0_246 = arith.constant 0 : index
    %281 = vector.load %arg13[%c0_243, %c0_244, %c0_245, %c0_246] : memref<2x4x8x32xbf16, #tpu.memory_space<vmem>>, vector<1x1x8x32xbf16>
    %282 = vector.shape_cast %281 : vector<1x1x8x32xbf16> to vector<8x32xbf16>
    %cst_247 = arith.constant dense<0.000000e+00> : vector<8x32xf32>
    %283 = tpu.matmul %280, %282, %cst_247 {dimension_numbers = #tpu.dot_dimension_numbers<[1], [0], [0], [1], [0, 0, 1, 1], [], []>} : vector<8x8xbf16>, vector<8x32xbf16>, vector<8x32xf32> -> vector<8x32xf32>
    %c0_248 = arith.constant 0 : index
    %c0_249 = arith.constant 0 : index
    %c1_250 = arith.constant 1 : index
    %c0_251 = arith.constant 0 : index
    %c0_252 = arith.constant 0 : index
    %284 = vector.load %arg11[%c0_248, %c0_249, %c1_250, %c0_251, %c0_252] : memref<2x3x4x32x8xbf16, #tpu.memory_space<vmem>>, vector<1x1x1x32x8xbf16>
    %285 = vector.shape_cast %284 : vector<1x1x1x32x8xbf16> to vector<32x8xbf16>
    %cst_253 = arith.constant dense<0.000000e+00> : vector<8x8xf32>
    %286 = tpu.matmul %241, %285, %cst_253 {dimension_numbers = #tpu.dot_dimension_numbers<[1], [0], [0], [1], [0, 0, 1, 1], [], []>} : vector<8x32xbf16>, vector<32x8xbf16>, vector<8x8xf32> -> vector<8x8xf32>
    %c0_254 = arith.constant 0 : index
    %c0_255 = arith.constant 0 : index
    %c1_256 = arith.constant 1 : index
    %c0_257 = arith.constant 0 : index
    %c0_258 = arith.constant 0 : index
    %287 = vector.load %arg12[%c0_254, %c0_255, %c1_256, %c0_257, %c0_258] : memref<2x3x4x1x8xf32, #tpu.memory_space<vmem>>, vector<1x1x1x1x8xf32>
    %288 = vector.shape_cast %287 : vector<1x1x1x1x8xf32> to vector<1x8xf32>
    %289 = vector.broadcast %288 : vector<1x8xf32> to vector<8x8xf32>
    %290 = arith.addf %286, %289 : vector<8x8xf32>
    %c0_259 = arith.constant 0 : index
    %c1_260 = arith.constant 1 : index
    %c1_261 = arith.constant 1 : index
    %c0_262 = arith.constant 0 : index
    %c0_263 = arith.constant 0 : index
    %291 = vector.load %arg11[%c0_259, %c1_260, %c1_261, %c0_262, %c0_263] : memref<2x3x4x32x8xbf16, #tpu.memory_space<vmem>>, vector<1x1x1x32x8xbf16>
    %292 = vector.shape_cast %291 : vector<1x1x1x32x8xbf16> to vector<32x8xbf16>
    %cst_264 = arith.constant dense<0.000000e+00> : vector<16x8xf32>
    %293 = tpu.matmul %18, %292, %cst_264 {dimension_numbers = #tpu.dot_dimension_numbers<[1], [0], [0], [1], [0, 0, 1, 1], [], []>} : vector<16x32xbf16>, vector<32x8xbf16>, vector<16x8xf32> -> vector<16x8xf32>
    %c0_265 = arith.constant 0 : index
    %c1_266 = arith.constant 1 : index
    %c1_267 = arith.constant 1 : index
    %c0_268 = arith.constant 0 : index
    %c0_269 = arith.constant 0 : index
    %294 = vector.load %arg12[%c0_265, %c1_266, %c1_267, %c0_268, %c0_269] : memref<2x3x4x1x8xf32, #tpu.memory_space<vmem>>, vector<1x1x1x1x8xf32>
    %295 = vector.shape_cast %294 : vector<1x1x1x1x8xf32> to vector<1x8xf32>
    %296 = vector.broadcast %295 : vector<1x8xf32> to vector<16x8xf32>
    %297 = arith.addf %293, %296 : vector<16x8xf32>
    %c0_270 = arith.constant 0 : index
    %c2_271 = arith.constant 2 : index
    %c1_272 = arith.constant 1 : index
    %c0_273 = arith.constant 0 : index
    %c0_274 = arith.constant 0 : index
    %298 = vector.load %arg11[%c0_270, %c2_271, %c1_272, %c0_273, %c0_274] : memref<2x3x4x32x8xbf16, #tpu.memory_space<vmem>>, vector<1x1x1x32x8xbf16>
    %299 = vector.shape_cast %298 : vector<1x1x1x32x8xbf16> to vector<32x8xbf16>
    %cst_275 = arith.constant dense<0.000000e+00> : vector<16x8xf32>
    %300 = tpu.matmul %18, %299, %cst_275 {dimension_numbers = #tpu.dot_dimension_numbers<[1], [0], [0], [1], [0, 0, 1, 1], [], []>} : vector<16x32xbf16>, vector<32x8xbf16>, vector<16x8xf32> -> vector<16x8xf32>
    %c0_276 = arith.constant 0 : index
    %c2_277 = arith.constant 2 : index
    %c1_278 = arith.constant 1 : index
    %c0_279 = arith.constant 0 : index
    %c0_280 = arith.constant 0 : index
    %301 = vector.load %arg12[%c0_276, %c2_277, %c1_278, %c0_279, %c0_280] : memref<2x3x4x1x8xf32, #tpu.memory_space<vmem>>, vector<1x1x1x1x8xf32>
    %302 = vector.shape_cast %301 : vector<1x1x1x1x8xf32> to vector<1x8xf32>
    %303 = vector.broadcast %302 : vector<1x8xf32> to vector<16x8xf32>
    %304 = arith.addf %300, %303 : vector<16x8xf32>
    %cst_281 = arith.constant 0.353553385 : f32
    %305 = vector.broadcast %cst_281 : f32 to vector<8x8xf32>
    %306 = arith.mulf %290, %305 : vector<8x8xf32>
    %307 = arith.truncf %306 : vector<8x8xf32> to vector<8x8xbf16>
    %308 = arith.truncf %297 : vector<16x8xf32> to vector<16x8xbf16>
    "tpu.trace_start"() <{level = 10 : i32, message = "qd,kd->qk"}> : () -> ()
    %cst_282 = arith.constant dense<0.000000e+00> : vector<8x16xf32>
    %309 = tpu.matmul %307, %308, %cst_282 {dimension_numbers = #tpu.dot_dimension_numbers<[1], [1], [0], [0], [0, 0, 1, 0], [], []>} : vector<8x8xbf16>, vector<16x8xbf16>, vector<8x16xf32> -> vector<8x16xf32>
    "tpu.trace_stop"() : () -> ()
    %cst_283 = arith.constant dense<0xFF800000> : vector<8xf32>
    %310 = vector.multi_reduction <maximumf>, %309, %cst_283 [1] : vector<8x16xf32> to vector<8xf32>
    %311 = vector.shape_cast %310 : vector<8xf32> to vector<8x1xf32>
    %312 = vector.broadcast %311 : vector<8x1xf32> to vector<8x16xf32>
    %313 = arith.subf %309, %312 : vector<8x16xf32>
    %314 = math.exp %313 : vector<8x16xf32>
    %cst_284 = arith.constant dense<0.000000e+00> : vector<8xf32>
    %315 = vector.multi_reduction <add>, %314, %cst_284 [1] : vector<8x16xf32> to vector<8xf32>
    %316 = vector.shape_cast %315 : vector<8xf32> to vector<8x1xf32>
    %317 = vector.broadcast %316 : vector<8x1xf32> to vector<8x16xf32>
    %318 = arith.divf %314, %317 : vector<8x16xf32>
    %319 = arith.truncf %318 : vector<8x16xf32> to vector<8x16xbf16>
    %320 = arith.truncf %304 : vector<16x8xf32> to vector<16x8xbf16>
    %cst_285 = arith.constant dense<0.000000e+00> : vector<8x8xf32>
    %321 = tpu.matmul %319, %320, %cst_285 {dimension_numbers = #tpu.dot_dimension_numbers<[1], [0], [0], [1], [0, 0, 1, 1], [], []>} : vector<8x16xbf16>, vector<16x8xbf16>, vector<8x8xf32> -> vector<8x8xf32>
    %322 = arith.truncf %321 : vector<8x8xf32> to vector<8x8xbf16>
    %c0_286 = arith.constant 0 : index
    %c1_287 = arith.constant 1 : index
    %c0_288 = arith.constant 0 : index
    %c0_289 = arith.constant 0 : index
    %323 = vector.load %arg13[%c0_286, %c1_287, %c0_288, %c0_289] : memref<2x4x8x32xbf16, #tpu.memory_space<vmem>>, vector<1x1x8x32xbf16>
    %324 = vector.shape_cast %323 : vector<1x1x8x32xbf16> to vector<8x32xbf16>
    %cst_290 = arith.constant dense<0.000000e+00> : vector<8x32xf32>
    %325 = tpu.matmul %322, %324, %cst_290 {dimension_numbers = #tpu.dot_dimension_numbers<[1], [0], [0], [1], [0, 0, 1, 1], [], []>} : vector<8x8xbf16>, vector<8x32xbf16>, vector<8x32xf32> -> vector<8x32xf32>
    %326 = arith.addf %283, %325 : vector<8x32xf32>
    %c0_291 = arith.constant 0 : index
    %c0_292 = arith.constant 0 : index
    %c2_293 = arith.constant 2 : index
    %c0_294 = arith.constant 0 : index
    %c0_295 = arith.constant 0 : index
    %327 = vector.load %arg11[%c0_291, %c0_292, %c2_293, %c0_294, %c0_295] : memref<2x3x4x32x8xbf16, #tpu.memory_space<vmem>>, vector<1x1x1x32x8xbf16>
    %328 = vector.shape_cast %327 : vector<1x1x1x32x8xbf16> to vector<32x8xbf16>
    %cst_296 = arith.constant dense<0.000000e+00> : vector<8x8xf32>
    %329 = tpu.matmul %241, %328, %cst_296 {dimension_numbers = #tpu.dot_dimension_numbers<[1], [0], [0], [1], [0, 0, 1, 1], [], []>} : vector<8x32xbf16>, vector<32x8xbf16>, vector<8x8xf32> -> vector<8x8xf32>
    %c0_297 = arith.constant 0 : index
    %c0_298 = arith.constant 0 : index
    %c2_299 = arith.constant 2 : index
    %c0_300 = arith.constant 0 : index
    %c0_301 = arith.constant 0 : index
    %330 = vector.load %arg12[%c0_297, %c0_298, %c2_299, %c0_300, %c0_301] : memref<2x3x4x1x8xf32, #tpu.memory_space<vmem>>, vector<1x1x1x1x8xf32>
    %331 = vector.shape_cast %330 : vector<1x1x1x1x8xf32> to vector<1x8xf32>
    %332 = vector.broadcast %331 : vector<1x8xf32> to vector<8x8xf32>
    %333 = arith.addf %329, %332 : vector<8x8xf32>
    %c0_302 = arith.constant 0 : index
    %c1_303 = arith.constant 1 : index
    %c2_304 = arith.constant 2 : index
    %c0_305 = arith.constant 0 : index
    %c0_306 = arith.constant 0 : index
    %334 = vector.load %arg11[%c0_302, %c1_303, %c2_304, %c0_305, %c0_306] : memref<2x3x4x32x8xbf16, #tpu.memory_space<vmem>>, vector<1x1x1x32x8xbf16>
    %335 = vector.shape_cast %334 : vector<1x1x1x32x8xbf16> to vector<32x8xbf16>
    %cst_307 = arith.constant dense<0.000000e+00> : vector<16x8xf32>
    %336 = tpu.matmul %18, %335, %cst_307 {dimension_numbers = #tpu.dot_dimension_numbers<[1], [0], [0], [1], [0, 0, 1, 1], [], []>} : vector<16x32xbf16>, vector<32x8xbf16>, vector<16x8xf32> -> vector<16x8xf32>
    %c0_308 = arith.constant 0 : index
    %c1_309 = arith.constant 1 : index
    %c2_310 = arith.constant 2 : index
    %c0_311 = arith.constant 0 : index
    %c0_312 = arith.constant 0 : index
    %337 = vector.load %arg12[%c0_308, %c1_309, %c2_310, %c0_311, %c0_312] : memref<2x3x4x1x8xf32, #tpu.memory_space<vmem>>, vector<1x1x1x1x8xf32>
    %338 = vector.shape_cast %337 : vector<1x1x1x1x8xf32> to vector<1x8xf32>
    %339 = vector.broadcast %338 : vector<1x8xf32> to vector<16x8xf32>
    %340 = arith.addf %336, %339 : vector<16x8xf32>
    %c0_313 = arith.constant 0 : index
    %c2_314 = arith.constant 2 : index
    %c2_315 = arith.constant 2 : index
    %c0_316 = arith.constant 0 : index
    %c0_317 = arith.constant 0 : index
    %341 = vector.load %arg11[%c0_313, %c2_314, %c2_315, %c0_316, %c0_317] : memref<2x3x4x32x8xbf16, #tpu.memory_space<vmem>>, vector<1x1x1x32x8xbf16>
    %342 = vector.shape_cast %341 : vector<1x1x1x32x8xbf16> to vector<32x8xbf16>
    %cst_318 = arith.constant dense<0.000000e+00> : vector<16x8xf32>
    %343 = tpu.matmul %18, %342, %cst_318 {dimension_numbers = #tpu.dot_dimension_numbers<[1], [0], [0], [1], [0, 0, 1, 1], [], []>} : vector<16x32xbf16>, vector<32x8xbf16>, vector<16x8xf32> -> vector<16x8xf32>
    %c0_319 = arith.constant 0 : index
    %c2_320 = arith.constant 2 : index
    %c2_321 = arith.constant 2 : index
    %c0_322 = arith.constant 0 : index
    %c0_323 = arith.constant 0 : index
    %344 = vector.load %arg12[%c0_319, %c2_320, %c2_321, %c0_322, %c0_323] : memref<2x3x4x1x8xf32, #tpu.memory_space<vmem>>, vector<1x1x1x1x8xf32>
    %345 = vector.shape_cast %344 : vector<1x1x1x1x8xf32> to vector<1x8xf32>
    %346 = vector.broadcast %345 : vector<1x8xf32> to vector<16x8xf32>
    %347 = arith.addf %343, %346 : vector<16x8xf32>
    %cst_324 = arith.constant 0.353553385 : f32
    %348 = vector.broadcast %cst_324 : f32 to vector<8x8xf32>
    %349 = arith.mulf %333, %348 : vector<8x8xf32>
    %350 = arith.truncf %349 : vector<8x8xf32> to vector<8x8xbf16>
    %351 = arith.truncf %340 : vector<16x8xf32> to vector<16x8xbf16>
    "tpu.trace_start"() <{level = 10 : i32, message = "qd,kd->qk"}> : () -> ()
    %cst_325 = arith.constant dense<0.000000e+00> : vector<8x16xf32>
    %352 = tpu.matmul %350, %351, %cst_325 {dimension_numbers = #tpu.dot_dimension_numbers<[1], [1], [0], [0], [0, 0, 1, 0], [], []>} : vector<8x8xbf16>, vector<16x8xbf16>, vector<8x16xf32> -> vector<8x16xf32>
    "tpu.trace_stop"() : () -> ()
    %cst_326 = arith.constant dense<0xFF800000> : vector<8xf32>
    %353 = vector.multi_reduction <maximumf>, %352, %cst_326 [1] : vector<8x16xf32> to vector<8xf32>
    %354 = vector.shape_cast %353 : vector<8xf32> to vector<8x1xf32>
    %355 = vector.broadcast %354 : vector<8x1xf32> to vector<8x16xf32>
    %356 = arith.subf %352, %355 : vector<8x16xf32>
    %357 = math.exp %356 : vector<8x16xf32>
    %cst_327 = arith.constant dense<0.000000e+00> : vector<8xf32>
    %358 = vector.multi_reduction <add>, %357, %cst_327 [1] : vector<8x16xf32> to vector<8xf32>
    %359 = vector.shape_cast %358 : vector<8xf32> to vector<8x1xf32>
    %360 = vector.broadcast %359 : vector<8x1xf32> to vector<8x16xf32>
    %361 = arith.divf %357, %360 : vector<8x16xf32>
    %362 = arith.truncf %361 : vector<8x16xf32> to vector<8x16xbf16>
    %363 = arith.truncf %347 : vector<16x8xf32> to vector<16x8xbf16>
    %cst_328 = arith.constant dense<0.000000e+00> : vector<8x8xf32>
    %364 = tpu.matmul %362, %363, %cst_328 {dimension_numbers = #tpu.dot_dimension_numbers<[1], [0], [0], [1], [0, 0, 1, 1], [], []>} : vector<8x16xbf16>, vector<16x8xbf16>, vector<8x8xf32> -> vector<8x8xf32>
    %365 = arith.truncf %364 : vector<8x8xf32> to vector<8x8xbf16>
    %c0_329 = arith.constant 0 : index
    %c2_330 = arith.constant 2 : index
    %c0_331 = arith.constant 0 : index
    %c0_332 = arith.constant 0 : index
    %366 = vector.load %arg13[%c0_329, %c2_330, %c0_331, %c0_332] : memref<2x4x8x32xbf16, #tpu.memory_space<vmem>>, vector<1x1x8x32xbf16>
    %367 = vector.shape_cast %366 : vector<1x1x8x32xbf16> to vector<8x32xbf16>
    %cst_333 = arith.constant dense<0.000000e+00> : vector<8x32xf32>
    %368 = tpu.matmul %365, %367, %cst_333 {dimension_numbers = #tpu.dot_dimension_numbers<[1], [0], [0], [1], [0, 0, 1, 1], [], []>} : vector<8x8xbf16>, vector<8x32xbf16>, vector<8x32xf32> -> vector<8x32xf32>
    %369 = arith.addf %326, %368 : vector<8x32xf32>
    %c0_334 = arith.constant 0 : index
    %c0_335 = arith.constant 0 : index
    %c3_336 = arith.constant 3 : index
    %c0_337 = arith.constant 0 : index
    %c0_338 = arith.constant 0 : index
    %370 = vector.load %arg11[%c0_334, %c0_335, %c3_336, %c0_337, %c0_338] : memref<2x3x4x32x8xbf16, #tpu.memory_space<vmem>>, vector<1x1x1x32x8xbf16>
    %371 = vector.shape_cast %370 : vector<1x1x1x32x8xbf16> to vector<32x8xbf16>
    %cst_339 = arith.constant dense<0.000000e+00> : vector<8x8xf32>
    %372 = tpu.matmul %241, %371, %cst_339 {dimension_numbers = #tpu.dot_dimension_numbers<[1], [0], [0], [1], [0, 0, 1, 1], [], []>} : vector<8x32xbf16>, vector<32x8xbf16>, vector<8x8xf32> -> vector<8x8xf32>
    %c0_340 = arith.constant 0 : index
    %c0_341 = arith.constant 0 : index
    %c3_342 = arith.constant 3 : index
    %c0_343 = arith.constant 0 : index
    %c0_344 = arith.constant 0 : index
    %373 = vector.load %arg12[%c0_340, %c0_341, %c3_342, %c0_343, %c0_344] : memref<2x3x4x1x8xf32, #tpu.memory_space<vmem>>, vector<1x1x1x1x8xf32>
    %374 = vector.shape_cast %373 : vector<1x1x1x1x8xf32> to vector<1x8xf32>
    %375 = vector.broadcast %374 : vector<1x8xf32> to vector<8x8xf32>
    %376 = arith.addf %372, %375 : vector<8x8xf32>
    %c0_345 = arith.constant 0 : index
    %c1_346 = arith.constant 1 : index
    %c3_347 = arith.constant 3 : index
    %c0_348 = arith.constant 0 : index
    %c0_349 = arith.constant 0 : index
    %377 = vector.load %arg11[%c0_345, %c1_346, %c3_347, %c0_348, %c0_349] : memref<2x3x4x32x8xbf16, #tpu.memory_space<vmem>>, vector<1x1x1x32x8xbf16>
    %378 = vector.shape_cast %377 : vector<1x1x1x32x8xbf16> to vector<32x8xbf16>
    %cst_350 = arith.constant dense<0.000000e+00> : vector<16x8xf32>
    %379 = tpu.matmul %18, %378, %cst_350 {dimension_numbers = #tpu.dot_dimension_numbers<[1], [0], [0], [1], [0, 0, 1, 1], [], []>} : vector<16x32xbf16>, vector<32x8xbf16>, vector<16x8xf32> -> vector<16x8xf32>
    %c0_351 = arith.constant 0 : index
    %c1_352 = arith.constant 1 : index
    %c3_353 = arith.constant 3 : index
    %c0_354 = arith.constant 0 : index
    %c0_355 = arith.constant 0 : index
    %380 = vector.load %arg12[%c0_351, %c1_352, %c3_353, %c0_354, %c0_355] : memref<2x3x4x1x8xf32, #tpu.memory_space<vmem>>, vector<1x1x1x1x8xf32>
    %381 = vector.shape_cast %380 : vector<1x1x1x1x8xf32> to vector<1x8xf32>
    %382 = vector.broadcast %381 : vector<1x8xf32> to vector<16x8xf32>
    %383 = arith.addf %379, %382 : vector<16x8xf32>
    %c0_356 = arith.constant 0 : index
    %c2_357 = arith.constant 2 : index
    %c3_358 = arith.constant 3 : index
    %c0_359 = arith.constant 0 : index
    %c0_360 = arith.constant 0 : index
    %384 = vector.load %arg11[%c0_356, %c2_357, %c3_358, %c0_359, %c0_360] : memref<2x3x4x32x8xbf16, #tpu.memory_space<vmem>>, vector<1x1x1x32x8xbf16>
    %385 = vector.shape_cast %384 : vector<1x1x1x32x8xbf16> to vector<32x8xbf16>
    %cst_361 = arith.constant dense<0.000000e+00> : vector<16x8xf32>
    %386 = tpu.matmul %18, %385, %cst_361 {dimension_numbers = #tpu.dot_dimension_numbers<[1], [0], [0], [1], [0, 0, 1, 1], [], []>} : vector<16x32xbf16>, vector<32x8xbf16>, vector<16x8xf32> -> vector<16x8xf32>
    %c0_362 = arith.constant 0 : index
    %c2_363 = arith.constant 2 : index
    %c3_364 = arith.constant 3 : index
    %c0_365 = arith.constant 0 : index
    %c0_366 = arith.constant 0 : index
    %387 = vector.load %arg12[%c0_362, %c2_363, %c3_364, %c0_365, %c0_366] : memref<2x3x4x1x8xf32, #tpu.memory_space<vmem>>, vector<1x1x1x1x8xf32>
    %388 = vector.shape_cast %387 : vector<1x1x1x1x8xf32> to vector<1x8xf32>
    %389 = vector.broadcast %388 : vector<1x8xf32> to vector<16x8xf32>
    %390 = arith.addf %386, %389 : vector<16x8xf32>
    %cst_367 = arith.constant 0.353553385 : f32
    %391 = vector.broadcast %cst_367 : f32 to vector<8x8xf32>
    %392 = arith.mulf %376, %391 : vector<8x8xf32>
    %393 = arith.truncf %392 : vector<8x8xf32> to vector<8x8xbf16>
    %394 = arith.truncf %383 : vector<16x8xf32> to vector<16x8xbf16>
    "tpu.trace_start"() <{level = 10 : i32, message = "qd,kd->qk"}> : () -> ()
    %cst_368 = arith.constant dense<0.000000e+00> : vector<8x16xf32>
    %395 = tpu.matmul %393, %394, %cst_368 {dimension_numbers = #tpu.dot_dimension_numbers<[1], [1], [0], [0], [0, 0, 1, 0], [], []>} : vector<8x8xbf16>, vector<16x8xbf16>, vector<8x16xf32> -> vector<8x16xf32>
    "tpu.trace_stop"() : () -> ()
    %cst_369 = arith.constant dense<0xFF800000> : vector<8xf32>
    %396 = vector.multi_reduction <maximumf>, %395, %cst_369 [1] : vector<8x16xf32> to vector<8xf32>
    %397 = vector.shape_cast %396 : vector<8xf32> to vector<8x1xf32>
    %398 = vector.broadcast %397 : vector<8x1xf32> to vector<8x16xf32>
    %399 = arith.subf %395, %398 : vector<8x16xf32>
    %400 = math.exp %399 : vector<8x16xf32>
    %cst_370 = arith.constant dense<0.000000e+00> : vector<8xf32>
    %401 = vector.multi_reduction <add>, %400, %cst_370 [1] : vector<8x16xf32> to vector<8xf32>
    %402 = vector.shape_cast %401 : vector<8xf32> to vector<8x1xf32>
    %403 = vector.broadcast %402 : vector<8x1xf32> to vector<8x16xf32>
    %404 = arith.divf %400, %403 : vector<8x16xf32>
    %405 = arith.truncf %404 : vector<8x16xf32> to vector<8x16xbf16>
    %406 = arith.truncf %390 : vector<16x8xf32> to vector<16x8xbf16>
    %cst_371 = arith.constant dense<0.000000e+00> : vector<8x8xf32>
    %407 = tpu.matmul %405, %406, %cst_371 {dimension_numbers = #tpu.dot_dimension_numbers<[1], [0], [0], [1], [0, 0, 1, 1], [], []>} : vector<8x16xbf16>, vector<16x8xbf16>, vector<8x8xf32> -> vector<8x8xf32>
    %408 = arith.truncf %407 : vector<8x8xf32> to vector<8x8xbf16>
    %c0_372 = arith.constant 0 : index
    %c3_373 = arith.constant 3 : index
    %c0_374 = arith.constant 0 : index
    %c0_375 = arith.constant 0 : index
    %409 = vector.load %arg13[%c0_372, %c3_373, %c0_374, %c0_375] : memref<2x4x8x32xbf16, #tpu.memory_space<vmem>>, vector<1x1x8x32xbf16>
    %410 = vector.shape_cast %409 : vector<1x1x8x32xbf16> to vector<8x32xbf16>
    %cst_376 = arith.constant dense<0.000000e+00> : vector<8x32xf32>
    %411 = tpu.matmul %408, %410, %cst_376 {dimension_numbers = #tpu.dot_dimension_numbers<[1], [0], [0], [1], [0, 0, 1, 1], [], []>} : vector<8x8xbf16>, vector<8x32xbf16>, vector<8x32xf32> -> vector<8x32xf32>
    %412 = arith.addf %369, %411 : vector<8x32xf32>
    %c0_377 = arith.constant 0 : index
    %c0_378 = arith.constant 0 : index
    %c0_379 = arith.constant 0 : index
    %413 = vector.load %arg14[%c0_377, %c0_378, %c0_379] : memref<2x1x32xf32, #tpu.memory_space<vmem>>, vector<1x1x32xf32>
    %414 = vector.shape_cast %413 : vector<1x1x32xf32> to vector<1x32xf32>
    %415 = vector.broadcast %414 : vector<1x32xf32> to vector<8x32xf32>
    %416 = arith.addf %412, %415 : vector<8x32xf32>
    %417 = arith.addf %240, %416 : vector<8x32xf32>
    %c0_380 = arith.constant 0 : index
    %c1_381 = arith.constant 1 : index
    %c0_382 = arith.constant 0 : index
    %c0_383 = arith.constant 0 : index
    %418 = vector.load %arg19[%c0_380, %c1_381, %c0_382, %c0_383] : memref<2x3x1x32xf32, #tpu.memory_space<vmem>>, vector<1x1x1x32xf32>
    %419 = vector.shape_cast %418 : vector<1x1x1x32xf32> to vector<1x32xf32>
    %c0_384 = arith.constant 0 : index
    %c1_385 = arith.constant 1 : index
    %c0_386 = arith.constant 0 : index
    %c0_387 = arith.constant 0 : index
    %420 = vector.load %arg20[%c0_384, %c1_385, %c0_386, %c0_387] : memref<2x3x1x32xf32, #tpu.memory_space<vmem>>, vector<1x1x1x32xf32>
    %421 = vector.shape_cast %420 : vector<1x1x1x32xf32> to vector<1x32xf32>
    %cst_388 = arith.constant dense<0.000000e+00> : vector<8xf32>
    %422 = vector.multi_reduction <add>, %417, %cst_388 [1] : vector<8x32xf32> to vector<8xf32>
    %423 = vector.shape_cast %422 : vector<8xf32> to vector<8x1xf32>
    %cst_389 = arith.constant 3.200000e+01 : f32
    %424 = vector.broadcast %cst_389 : f32 to vector<8x1xf32>
    %425 = arith.divf %423, %424 : vector<8x1xf32>
    %426 = vector.broadcast %425 : vector<8x1xf32> to vector<8x32xf32>
    %427 = arith.subf %417, %426 : vector<8x32xf32>
    %428 = arith.mulf %427, %427 : vector<8x32xf32>
    %cst_390 = arith.constant dense<0.000000e+00> : vector<8xf32>
    %429 = vector.multi_reduction <add>, %428, %cst_390 [1] : vector<8x32xf32> to vector<8xf32>
    %430 = vector.shape_cast %429 : vector<8xf32> to vector<8x1xf32>
    %cst_391 = arith.constant 3.200000e+01 : f32
    %431 = vector.broadcast %cst_391 : f32 to vector<8x1xf32>
    %432 = arith.divf %430, %431 : vector<8x1xf32>
    %433 = vector.broadcast %425 : vector<8x1xf32> to vector<8x32xf32>
    %434 = arith.subf %417, %433 : vector<8x32xf32>
    %cst_392 = arith.constant 9.99999974E-6 : f32
    %435 = vector.broadcast %cst_392 : f32 to vector<8x1xf32>
    %436 = arith.addf %432, %435 : vector<8x1xf32>
    %437 = math.rsqrt %436 : vector<8x1xf32>
    %438 = vector.broadcast %437 : vector<8x1xf32> to vector<8x32xf32>
    %439 = arith.mulf %434, %438 : vector<8x32xf32>
    %440 = vector.broadcast %419 : vector<1x32xf32> to vector<8x32xf32>
    %441 = arith.mulf %439, %440 : vector<8x32xf32>
    %442 = vector.broadcast %421 : vector<1x32xf32> to vector<8x32xf32>
    %443 = arith.addf %441, %442 : vector<8x32xf32>
    %444 = arith.truncf %443 : vector<8x32xf32> to vector<8x32xbf16>
    %c0_393 = arith.constant 0 : index
    %c0_394 = arith.constant 0 : index
    %c0_395 = arith.constant 0 : index
    %445 = vector.load %arg15[%c0_393, %c0_394, %c0_395] : memref<2x32x2048xbf16, #tpu.memory_space<vmem>>, vector<1x32x2048xbf16>
    %446 = vector.shape_cast %445 : vector<1x32x2048xbf16> to vector<32x2048xbf16>
    %cst_396 = arith.constant dense<0.000000e+00> : vector<8x2048xf32>
    %447 = tpu.matmul %444, %446, %cst_396 {dimension_numbers = #tpu.dot_dimension_numbers<[1], [0], [0], [1], [0, 0, 1, 1], [], []>} : vector<8x32xbf16>, vector<32x2048xbf16>, vector<8x2048xf32> -> vector<8x2048xf32>
    %c0_397 = arith.constant 0 : index
    %c0_398 = arith.constant 0 : index
    %c0_399 = arith.constant 0 : index
    %448 = vector.load %arg16[%c0_397, %c0_398, %c0_399] : memref<2x1x2048xf32, #tpu.memory_space<vmem>>, vector<1x1x2048xf32>
    %449 = vector.shape_cast %448 : vector<1x1x2048xf32> to vector<1x2048xf32>
    %450 = vector.broadcast %449 : vector<1x2048xf32> to vector<8x2048xf32>
    %451 = arith.addf %447, %450 : vector<8x2048xf32>
    %cst_400 = arith.constant 0.000000e+00 : f32
    %452 = vector.broadcast %cst_400 : f32 to vector<8x2048xf32>
    %453 = arith.maximumf %451, %452 : vector<8x2048xf32>
    %454 = arith.truncf %453 : vector<8x2048xf32> to vector<8x2048xbf16>
    %c0_401 = arith.constant 0 : index
    %c0_402 = arith.constant 0 : index
    %c0_403 = arith.constant 0 : index
    %455 = vector.load %arg17[%c0_401, %c0_402, %c0_403] : memref<2x2048x32xbf16, #tpu.memory_space<vmem>>, vector<1x2048x32xbf16>
    %456 = vector.shape_cast %455 : vector<1x2048x32xbf16> to vector<2048x32xbf16>
    %cst_404 = arith.constant dense<0.000000e+00> : vector<8x32xf32>
    %457 = tpu.matmul %454, %456, %cst_404 {dimension_numbers = #tpu.dot_dimension_numbers<[1], [0], [0], [1], [0, 0, 1, 1], [], []>} : vector<8x2048xbf16>, vector<2048x32xbf16>, vector<8x32xf32> -> vector<8x32xf32>
    %c0_405 = arith.constant 0 : index
    %c0_406 = arith.constant 0 : index
    %c0_407 = arith.constant 0 : index
    %458 = vector.load %arg18[%c0_405, %c0_406, %c0_407] : memref<2x1x32xf32, #tpu.memory_space<vmem>>, vector<1x1x32xf32>
    %459 = vector.shape_cast %458 : vector<1x1x32xf32> to vector<1x32xf32>
    %460 = vector.broadcast %459 : vector<1x32xf32> to vector<8x32xf32>
    %461 = arith.addf %457, %460 : vector<8x32xf32>
    %462 = arith.addf %443, %461 : vector<8x32xf32>
    %c0_408 = arith.constant 0 : index
    %c2_409 = arith.constant 2 : index
    %c0_410 = arith.constant 0 : index
    %c0_411 = arith.constant 0 : index
    %463 = vector.load %arg19[%c0_408, %c2_409, %c0_410, %c0_411] : memref<2x3x1x32xf32, #tpu.memory_space<vmem>>, vector<1x1x1x32xf32>
    %464 = vector.shape_cast %463 : vector<1x1x1x32xf32> to vector<1x32xf32>
    %c0_412 = arith.constant 0 : index
    %c2_413 = arith.constant 2 : index
    %c0_414 = arith.constant 0 : index
    %c0_415 = arith.constant 0 : index
    %465 = vector.load %arg20[%c0_412, %c2_413, %c0_414, %c0_415] : memref<2x3x1x32xf32, #tpu.memory_space<vmem>>, vector<1x1x1x32xf32>
    %466 = vector.shape_cast %465 : vector<1x1x1x32xf32> to vector<1x32xf32>
    %cst_416 = arith.constant dense<0.000000e+00> : vector<8xf32>
    %467 = vector.multi_reduction <add>, %462, %cst_416 [1] : vector<8x32xf32> to vector<8xf32>
    %468 = vector.shape_cast %467 : vector<8xf32> to vector<8x1xf32>
    %cst_417 = arith.constant 3.200000e+01 : f32
    %469 = vector.broadcast %cst_417 : f32 to vector<8x1xf32>
    %470 = arith.divf %468, %469 : vector<8x1xf32>
    %471 = vector.broadcast %470 : vector<8x1xf32> to vector<8x32xf32>
    %472 = arith.subf %462, %471 : vector<8x32xf32>
    %473 = arith.mulf %472, %472 : vector<8x32xf32>
    %cst_418 = arith.constant dense<0.000000e+00> : vector<8xf32>
    %474 = vector.multi_reduction <add>, %473, %cst_418 [1] : vector<8x32xf32> to vector<8xf32>
    %475 = vector.shape_cast %474 : vector<8xf32> to vector<8x1xf32>
    %cst_419 = arith.constant 3.200000e+01 : f32
    %476 = vector.broadcast %cst_419 : f32 to vector<8x1xf32>
    %477 = arith.divf %475, %476 : vector<8x1xf32>
    %478 = vector.broadcast %470 : vector<8x1xf32> to vector<8x32xf32>
    %479 = arith.subf %462, %478 : vector<8x32xf32>
    %cst_420 = arith.constant 9.99999974E-6 : f32
    %480 = vector.broadcast %cst_420 : f32 to vector<8x1xf32>
    %481 = arith.addf %477, %480 : vector<8x1xf32>
    %482 = math.rsqrt %481 : vector<8x1xf32>
    %483 = vector.broadcast %482 : vector<8x1xf32> to vector<8x32xf32>
    %484 = arith.mulf %479, %483 : vector<8x32xf32>
    %485 = vector.broadcast %464 : vector<1x32xf32> to vector<8x32xf32>
    %486 = arith.mulf %484, %485 : vector<8x32xf32>
    %487 = vector.broadcast %466 : vector<1x32xf32> to vector<8x32xf32>
    %488 = arith.addf %486, %487 : vector<8x32xf32>
    %489 = arith.truncf %488 : vector<8x32xf32> to vector<8x32xbf16>
    %c1_421 = arith.constant 1 : index
    %c0_422 = arith.constant 0 : index
    %c0_423 = arith.constant 0 : index
    %c0_424 = arith.constant 0 : index
    %c0_425 = arith.constant 0 : index
    %490 = vector.load %arg7[%c1_421, %c0_422, %c0_423, %c0_424, %c0_425] : memref<2x3x4x32x8xbf16, #tpu.memory_space<vmem>>, vector<1x1x1x32x8xbf16>
    %491 = vector.shape_cast %490 : vector<1x1x1x32x8xbf16> to vector<32x8xbf16>
    %cst_426 = arith.constant dense<0.000000e+00> : vector<8x8xf32>
    %492 = tpu.matmul %489, %491, %cst_426 {dimension_numbers = #tpu.dot_dimension_numbers<[1], [0], [0], [1], [0, 0, 1, 1], [], []>} : vector<8x32xbf16>, vector<32x8xbf16>, vector<8x8xf32> -> vector<8x8xf32>
    %c1_427 = arith.constant 1 : index
    %c0_428 = arith.constant 0 : index
    %c0_429 = arith.constant 0 : index
    %c0_430 = arith.constant 0 : index
    %c0_431 = arith.constant 0 : index
    %493 = vector.load %arg8[%c1_427, %c0_428, %c0_429, %c0_430, %c0_431] : memref<2x3x4x1x8xf32, #tpu.memory_space<vmem>>, vector<1x1x1x1x8xf32>
    %494 = vector.shape_cast %493 : vector<1x1x1x1x8xf32> to vector<1x8xf32>
    %495 = vector.broadcast %494 : vector<1x8xf32> to vector<8x8xf32>
    %496 = arith.addf %492, %495 : vector<8x8xf32>
    %c1_432 = arith.constant 1 : index
    %c1_433 = arith.constant 1 : index
    %c0_434 = arith.constant 0 : index
    %c0_435 = arith.constant 0 : index
    %c0_436 = arith.constant 0 : index
    %497 = vector.load %arg7[%c1_432, %c1_433, %c0_434, %c0_435, %c0_436] : memref<2x3x4x32x8xbf16, #tpu.memory_space<vmem>>, vector<1x1x1x32x8xbf16>
    %498 = vector.shape_cast %497 : vector<1x1x1x32x8xbf16> to vector<32x8xbf16>
    %cst_437 = arith.constant dense<0.000000e+00> : vector<8x8xf32>
    %499 = tpu.matmul %489, %498, %cst_437 {dimension_numbers = #tpu.dot_dimension_numbers<[1], [0], [0], [1], [0, 0, 1, 1], [], []>} : vector<8x32xbf16>, vector<32x8xbf16>, vector<8x8xf32> -> vector<8x8xf32>
    %c1_438 = arith.constant 1 : index
    %c1_439 = arith.constant 1 : index
    %c0_440 = arith.constant 0 : index
    %c0_441 = arith.constant 0 : index
    %c0_442 = arith.constant 0 : index
    %500 = vector.load %arg8[%c1_438, %c1_439, %c0_440, %c0_441, %c0_442] : memref<2x3x4x1x8xf32, #tpu.memory_space<vmem>>, vector<1x1x1x1x8xf32>
    %501 = vector.shape_cast %500 : vector<1x1x1x1x8xf32> to vector<1x8xf32>
    %502 = vector.broadcast %501 : vector<1x8xf32> to vector<8x8xf32>
    %503 = arith.addf %499, %502 : vector<8x8xf32>
    %c1_443 = arith.constant 1 : index
    %c2_444 = arith.constant 2 : index
    %c0_445 = arith.constant 0 : index
    %c0_446 = arith.constant 0 : index
    %c0_447 = arith.constant 0 : index
    %504 = vector.load %arg7[%c1_443, %c2_444, %c0_445, %c0_446, %c0_447] : memref<2x3x4x32x8xbf16, #tpu.memory_space<vmem>>, vector<1x1x1x32x8xbf16>
    %505 = vector.shape_cast %504 : vector<1x1x1x32x8xbf16> to vector<32x8xbf16>
    %cst_448 = arith.constant dense<0.000000e+00> : vector<8x8xf32>
    %506 = tpu.matmul %489, %505, %cst_448 {dimension_numbers = #tpu.dot_dimension_numbers<[1], [0], [0], [1], [0, 0, 1, 1], [], []>} : vector<8x32xbf16>, vector<32x8xbf16>, vector<8x8xf32> -> vector<8x8xf32>
    %c1_449 = arith.constant 1 : index
    %c2_450 = arith.constant 2 : index
    %c0_451 = arith.constant 0 : index
    %c0_452 = arith.constant 0 : index
    %c0_453 = arith.constant 0 : index
    %507 = vector.load %arg8[%c1_449, %c2_450, %c0_451, %c0_452, %c0_453] : memref<2x3x4x1x8xf32, #tpu.memory_space<vmem>>, vector<1x1x1x1x8xf32>
    %508 = vector.shape_cast %507 : vector<1x1x1x1x8xf32> to vector<1x8xf32>
    %509 = vector.broadcast %508 : vector<1x8xf32> to vector<8x8xf32>
    %510 = arith.addf %506, %509 : vector<8x8xf32>
    %cst_454 = arith.constant 0.353553385 : f32
    %511 = vector.broadcast %cst_454 : f32 to vector<8x8xf32>
    %512 = arith.mulf %496, %511 : vector<8x8xf32>
    %513 = arith.truncf %512 : vector<8x8xf32> to vector<8x8xbf16>
    %514 = arith.truncf %503 : vector<8x8xf32> to vector<8x8xbf16>
    "tpu.trace_start"() <{level = 10 : i32, message = "qd,kd->qk"}> : () -> ()
    %cst_455 = arith.constant dense<0.000000e+00> : vector<8x8xf32>
    %515 = tpu.matmul %513, %514, %cst_455 {dimension_numbers = #tpu.dot_dimension_numbers<[1], [1], [0], [0], [0, 0, 1, 0], [], []>} : vector<8x8xbf16>, vector<8x8xbf16>, vector<8x8xf32> -> vector<8x8xf32>
    "tpu.trace_stop"() : () -> ()
    %516 = arith.addf %515, %33 : vector<8x8xf32>
    %cst_456 = arith.constant dense<0xFF800000> : vector<8xf32>
    %517 = vector.multi_reduction <maximumf>, %516, %cst_456 [1] : vector<8x8xf32> to vector<8xf32>
    %518 = vector.shape_cast %517 : vector<8xf32> to vector<8x1xf32>
    %519 = vector.broadcast %518 : vector<8x1xf32> to vector<8x8xf32>
    %520 = arith.subf %516, %519 : vector<8x8xf32>
    %521 = math.exp %520 : vector<8x8xf32>
    %cst_457 = arith.constant dense<0.000000e+00> : vector<8xf32>
    %522 = vector.multi_reduction <add>, %521, %cst_457 [1] : vector<8x8xf32> to vector<8xf32>
    %523 = vector.shape_cast %522 : vector<8xf32> to vector<8x1xf32>
    %524 = vector.broadcast %523 : vector<8x1xf32> to vector<8x8xf32>
    %525 = arith.divf %521, %524 : vector<8x8xf32>
    %526 = arith.truncf %525 : vector<8x8xf32> to vector<8x8xbf16>
    %527 = arith.truncf %510 : vector<8x8xf32> to vector<8x8xbf16>
    %cst_458 = arith.constant dense<0.000000e+00> : vector<8x8xf32>
    %528 = tpu.matmul %526, %527, %cst_458 {dimension_numbers = #tpu.dot_dimension_numbers<[1], [0], [0], [1], [0, 0, 1, 1], [], []>} : vector<8x8xbf16>, vector<8x8xbf16>, vector<8x8xf32> -> vector<8x8xf32>
    %529 = arith.truncf %528 : vector<8x8xf32> to vector<8x8xbf16>
    %c1_459 = arith.constant 1 : index
    %c0_460 = arith.constant 0 : index
    %c0_461 = arith.constant 0 : index
    %c0_462 = arith.constant 0 : index
    %530 = vector.load %arg9[%c1_459, %c0_460, %c0_461, %c0_462] : memref<2x4x8x32xbf16, #tpu.memory_space<vmem>>, vector<1x1x8x32xbf16>
    %531 = vector.shape_cast %530 : vector<1x1x8x32xbf16> to vector<8x32xbf16>
    %cst_463 = arith.constant dense<0.000000e+00> : vector<8x32xf32>
    %532 = tpu.matmul %529, %531, %cst_463 {dimension_numbers = #tpu.dot_dimension_numbers<[1], [0], [0], [1], [0, 0, 1, 1], [], []>} : vector<8x8xbf16>, vector<8x32xbf16>, vector<8x32xf32> -> vector<8x32xf32>
    %c1_464 = arith.constant 1 : index
    %c0_465 = arith.constant 0 : index
    %c1_466 = arith.constant 1 : index
    %c0_467 = arith.constant 0 : index
    %c0_468 = arith.constant 0 : index
    %533 = vector.load %arg7[%c1_464, %c0_465, %c1_466, %c0_467, %c0_468] : memref<2x3x4x32x8xbf16, #tpu.memory_space<vmem>>, vector<1x1x1x32x8xbf16>
    %534 = vector.shape_cast %533 : vector<1x1x1x32x8xbf16> to vector<32x8xbf16>
    %cst_469 = arith.constant dense<0.000000e+00> : vector<8x8xf32>
    %535 = tpu.matmul %489, %534, %cst_469 {dimension_numbers = #tpu.dot_dimension_numbers<[1], [0], [0], [1], [0, 0, 1, 1], [], []>} : vector<8x32xbf16>, vector<32x8xbf16>, vector<8x8xf32> -> vector<8x8xf32>
    %c1_470 = arith.constant 1 : index
    %c0_471 = arith.constant 0 : index
    %c1_472 = arith.constant 1 : index
    %c0_473 = arith.constant 0 : index
    %c0_474 = arith.constant 0 : index
    %536 = vector.load %arg8[%c1_470, %c0_471, %c1_472, %c0_473, %c0_474] : memref<2x3x4x1x8xf32, #tpu.memory_space<vmem>>, vector<1x1x1x1x8xf32>
    %537 = vector.shape_cast %536 : vector<1x1x1x1x8xf32> to vector<1x8xf32>
    %538 = vector.broadcast %537 : vector<1x8xf32> to vector<8x8xf32>
    %539 = arith.addf %535, %538 : vector<8x8xf32>
    %c1_475 = arith.constant 1 : index
    %c1_476 = arith.constant 1 : index
    %c1_477 = arith.constant 1 : index
    %c0_478 = arith.constant 0 : index
    %c0_479 = arith.constant 0 : index
    %540 = vector.load %arg7[%c1_475, %c1_476, %c1_477, %c0_478, %c0_479] : memref<2x3x4x32x8xbf16, #tpu.memory_space<vmem>>, vector<1x1x1x32x8xbf16>
    %541 = vector.shape_cast %540 : vector<1x1x1x32x8xbf16> to vector<32x8xbf16>
    %cst_480 = arith.constant dense<0.000000e+00> : vector<8x8xf32>
    %542 = tpu.matmul %489, %541, %cst_480 {dimension_numbers = #tpu.dot_dimension_numbers<[1], [0], [0], [1], [0, 0, 1, 1], [], []>} : vector<8x32xbf16>, vector<32x8xbf16>, vector<8x8xf32> -> vector<8x8xf32>
    %c1_481 = arith.constant 1 : index
    %c1_482 = arith.constant 1 : index
    %c1_483 = arith.constant 1 : index
    %c0_484 = arith.constant 0 : index
    %c0_485 = arith.constant 0 : index
    %543 = vector.load %arg8[%c1_481, %c1_482, %c1_483, %c0_484, %c0_485] : memref<2x3x4x1x8xf32, #tpu.memory_space<vmem>>, vector<1x1x1x1x8xf32>
    %544 = vector.shape_cast %543 : vector<1x1x1x1x8xf32> to vector<1x8xf32>
    %545 = vector.broadcast %544 : vector<1x8xf32> to vector<8x8xf32>
    %546 = arith.addf %542, %545 : vector<8x8xf32>
    %c1_486 = arith.constant 1 : index
    %c2_487 = arith.constant 2 : index
    %c1_488 = arith.constant 1 : index
    %c0_489 = arith.constant 0 : index
    %c0_490 = arith.constant 0 : index
    %547 = vector.load %arg7[%c1_486, %c2_487, %c1_488, %c0_489, %c0_490] : memref<2x3x4x32x8xbf16, #tpu.memory_space<vmem>>, vector<1x1x1x32x8xbf16>
    %548 = vector.shape_cast %547 : vector<1x1x1x32x8xbf16> to vector<32x8xbf16>
    %cst_491 = arith.constant dense<0.000000e+00> : vector<8x8xf32>
    %549 = tpu.matmul %489, %548, %cst_491 {dimension_numbers = #tpu.dot_dimension_numbers<[1], [0], [0], [1], [0, 0, 1, 1], [], []>} : vector<8x32xbf16>, vector<32x8xbf16>, vector<8x8xf32> -> vector<8x8xf32>
    %c1_492 = arith.constant 1 : index
    %c2_493 = arith.constant 2 : index
    %c1_494 = arith.constant 1 : index
    %c0_495 = arith.constant 0 : index
    %c0_496 = arith.constant 0 : index
    %550 = vector.load %arg8[%c1_492, %c2_493, %c1_494, %c0_495, %c0_496] : memref<2x3x4x1x8xf32, #tpu.memory_space<vmem>>, vector<1x1x1x1x8xf32>
    %551 = vector.shape_cast %550 : vector<1x1x1x1x8xf32> to vector<1x8xf32>
    %552 = vector.broadcast %551 : vector<1x8xf32> to vector<8x8xf32>
    %553 = arith.addf %549, %552 : vector<8x8xf32>
    %cst_497 = arith.constant 0.353553385 : f32
    %554 = vector.broadcast %cst_497 : f32 to vector<8x8xf32>
    %555 = arith.mulf %539, %554 : vector<8x8xf32>
    %556 = arith.truncf %555 : vector<8x8xf32> to vector<8x8xbf16>
    %557 = arith.truncf %546 : vector<8x8xf32> to vector<8x8xbf16>
    "tpu.trace_start"() <{level = 10 : i32, message = "qd,kd->qk"}> : () -> ()
    %cst_498 = arith.constant dense<0.000000e+00> : vector<8x8xf32>
    %558 = tpu.matmul %556, %557, %cst_498 {dimension_numbers = #tpu.dot_dimension_numbers<[1], [1], [0], [0], [0, 0, 1, 0], [], []>} : vector<8x8xbf16>, vector<8x8xbf16>, vector<8x8xf32> -> vector<8x8xf32>
    "tpu.trace_stop"() : () -> ()
    %559 = arith.addf %558, %33 : vector<8x8xf32>
    %cst_499 = arith.constant dense<0xFF800000> : vector<8xf32>
    %560 = vector.multi_reduction <maximumf>, %559, %cst_499 [1] : vector<8x8xf32> to vector<8xf32>
    %561 = vector.shape_cast %560 : vector<8xf32> to vector<8x1xf32>
    %562 = vector.broadcast %561 : vector<8x1xf32> to vector<8x8xf32>
    %563 = arith.subf %559, %562 : vector<8x8xf32>
    %564 = math.exp %563 : vector<8x8xf32>
    %cst_500 = arith.constant dense<0.000000e+00> : vector<8xf32>
    %565 = vector.multi_reduction <add>, %564, %cst_500 [1] : vector<8x8xf32> to vector<8xf32>
    %566 = vector.shape_cast %565 : vector<8xf32> to vector<8x1xf32>
    %567 = vector.broadcast %566 : vector<8x1xf32> to vector<8x8xf32>
    %568 = arith.divf %564, %567 : vector<8x8xf32>
    %569 = arith.truncf %568 : vector<8x8xf32> to vector<8x8xbf16>
    %570 = arith.truncf %553 : vector<8x8xf32> to vector<8x8xbf16>
    %cst_501 = arith.constant dense<0.000000e+00> : vector<8x8xf32>
    %571 = tpu.matmul %569, %570, %cst_501 {dimension_numbers = #tpu.dot_dimension_numbers<[1], [0], [0], [1], [0, 0, 1, 1], [], []>} : vector<8x8xbf16>, vector<8x8xbf16>, vector<8x8xf32> -> vector<8x8xf32>
    %572 = arith.truncf %571 : vector<8x8xf32> to vector<8x8xbf16>
    %c1_502 = arith.constant 1 : index
    %c1_503 = arith.constant 1 : index
    %c0_504 = arith.constant 0 : index
    %c0_505 = arith.constant 0 : index
    %573 = vector.load %arg9[%c1_502, %c1_503, %c0_504, %c0_505] : memref<2x4x8x32xbf16, #tpu.memory_space<vmem>>, vector<1x1x8x32xbf16>
    %574 = vector.shape_cast %573 : vector<1x1x8x32xbf16> to vector<8x32xbf16>
    %cst_506 = arith.constant dense<0.000000e+00> : vector<8x32xf32>
    %575 = tpu.matmul %572, %574, %cst_506 {dimension_numbers = #tpu.dot_dimension_numbers<[1], [0], [0], [1], [0, 0, 1, 1], [], []>} : vector<8x8xbf16>, vector<8x32xbf16>, vector<8x32xf32> -> vector<8x32xf32>
    %576 = arith.addf %532, %575 : vector<8x32xf32>
    %c1_507 = arith.constant 1 : index
    %c0_508 = arith.constant 0 : index
    %c2_509 = arith.constant 2 : index
    %c0_510 = arith.constant 0 : index
    %c0_511 = arith.constant 0 : index
    %577 = vector.load %arg7[%c1_507, %c0_508, %c2_509, %c0_510, %c0_511] : memref<2x3x4x32x8xbf16, #tpu.memory_space<vmem>>, vector<1x1x1x32x8xbf16>
    %578 = vector.shape_cast %577 : vector<1x1x1x32x8xbf16> to vector<32x8xbf16>
    %cst_512 = arith.constant dense<0.000000e+00> : vector<8x8xf32>
    %579 = tpu.matmul %489, %578, %cst_512 {dimension_numbers = #tpu.dot_dimension_numbers<[1], [0], [0], [1], [0, 0, 1, 1], [], []>} : vector<8x32xbf16>, vector<32x8xbf16>, vector<8x8xf32> -> vector<8x8xf32>
    %c1_513 = arith.constant 1 : index
    %c0_514 = arith.constant 0 : index
    %c2_515 = arith.constant 2 : index
    %c0_516 = arith.constant 0 : index
    %c0_517 = arith.constant 0 : index
    %580 = vector.load %arg8[%c1_513, %c0_514, %c2_515, %c0_516, %c0_517] : memref<2x3x4x1x8xf32, #tpu.memory_space<vmem>>, vector<1x1x1x1x8xf32>
    %581 = vector.shape_cast %580 : vector<1x1x1x1x8xf32> to vector<1x8xf32>
    %582 = vector.broadcast %581 : vector<1x8xf32> to vector<8x8xf32>
    %583 = arith.addf %579, %582 : vector<8x8xf32>
    %c1_518 = arith.constant 1 : index
    %c1_519 = arith.constant 1 : index
    %c2_520 = arith.constant 2 : index
    %c0_521 = arith.constant 0 : index
    %c0_522 = arith.constant 0 : index
    %584 = vector.load %arg7[%c1_518, %c1_519, %c2_520, %c0_521, %c0_522] : memref<2x3x4x32x8xbf16, #tpu.memory_space<vmem>>, vector<1x1x1x32x8xbf16>
    %585 = vector.shape_cast %584 : vector<1x1x1x32x8xbf16> to vector<32x8xbf16>
    %cst_523 = arith.constant dense<0.000000e+00> : vector<8x8xf32>
    %586 = tpu.matmul %489, %585, %cst_523 {dimension_numbers = #tpu.dot_dimension_numbers<[1], [0], [0], [1], [0, 0, 1, 1], [], []>} : vector<8x32xbf16>, vector<32x8xbf16>, vector<8x8xf32> -> vector<8x8xf32>
    %c1_524 = arith.constant 1 : index
    %c1_525 = arith.constant 1 : index
    %c2_526 = arith.constant 2 : index
    %c0_527 = arith.constant 0 : index
    %c0_528 = arith.constant 0 : index
    %587 = vector.load %arg8[%c1_524, %c1_525, %c2_526, %c0_527, %c0_528] : memref<2x3x4x1x8xf32, #tpu.memory_space<vmem>>, vector<1x1x1x1x8xf32>
    %588 = vector.shape_cast %587 : vector<1x1x1x1x8xf32> to vector<1x8xf32>
    %589 = vector.broadcast %588 : vector<1x8xf32> to vector<8x8xf32>
    %590 = arith.addf %586, %589 : vector<8x8xf32>
    %c1_529 = arith.constant 1 : index
    %c2_530 = arith.constant 2 : index
    %c2_531 = arith.constant 2 : index
    %c0_532 = arith.constant 0 : index
    %c0_533 = arith.constant 0 : index
    %591 = vector.load %arg7[%c1_529, %c2_530, %c2_531, %c0_532, %c0_533] : memref<2x3x4x32x8xbf16, #tpu.memory_space<vmem>>, vector<1x1x1x32x8xbf16>
    %592 = vector.shape_cast %591 : vector<1x1x1x32x8xbf16> to vector<32x8xbf16>
    %cst_534 = arith.constant dense<0.000000e+00> : vector<8x8xf32>
    %593 = tpu.matmul %489, %592, %cst_534 {dimension_numbers = #tpu.dot_dimension_numbers<[1], [0], [0], [1], [0, 0, 1, 1], [], []>} : vector<8x32xbf16>, vector<32x8xbf16>, vector<8x8xf32> -> vector<8x8xf32>
    %c1_535 = arith.constant 1 : index
    %c2_536 = arith.constant 2 : index
    %c2_537 = arith.constant 2 : index
    %c0_538 = arith.constant 0 : index
    %c0_539 = arith.constant 0 : index
    %594 = vector.load %arg8[%c1_535, %c2_536, %c2_537, %c0_538, %c0_539] : memref<2x3x4x1x8xf32, #tpu.memory_space<vmem>>, vector<1x1x1x1x8xf32>
    %595 = vector.shape_cast %594 : vector<1x1x1x1x8xf32> to vector<1x8xf32>
    %596 = vector.broadcast %595 : vector<1x8xf32> to vector<8x8xf32>
    %597 = arith.addf %593, %596 : vector<8x8xf32>
    %cst_540 = arith.constant 0.353553385 : f32
    %598 = vector.broadcast %cst_540 : f32 to vector<8x8xf32>
    %599 = arith.mulf %583, %598 : vector<8x8xf32>
    %600 = arith.truncf %599 : vector<8x8xf32> to vector<8x8xbf16>
    %601 = arith.truncf %590 : vector<8x8xf32> to vector<8x8xbf16>
    "tpu.trace_start"() <{level = 10 : i32, message = "qd,kd->qk"}> : () -> ()
    %cst_541 = arith.constant dense<0.000000e+00> : vector<8x8xf32>
    %602 = tpu.matmul %600, %601, %cst_541 {dimension_numbers = #tpu.dot_dimension_numbers<[1], [1], [0], [0], [0, 0, 1, 0], [], []>} : vector<8x8xbf16>, vector<8x8xbf16>, vector<8x8xf32> -> vector<8x8xf32>
    "tpu.trace_stop"() : () -> ()
    %603 = arith.addf %602, %33 : vector<8x8xf32>
    %cst_542 = arith.constant dense<0xFF800000> : vector<8xf32>
    %604 = vector.multi_reduction <maximumf>, %603, %cst_542 [1] : vector<8x8xf32> to vector<8xf32>
    %605 = vector.shape_cast %604 : vector<8xf32> to vector<8x1xf32>
    %606 = vector.broadcast %605 : vector<8x1xf32> to vector<8x8xf32>
    %607 = arith.subf %603, %606 : vector<8x8xf32>
    %608 = math.exp %607 : vector<8x8xf32>
    %cst_543 = arith.constant dense<0.000000e+00> : vector<8xf32>
    %609 = vector.multi_reduction <add>, %608, %cst_543 [1] : vector<8x8xf32> to vector<8xf32>
    %610 = vector.shape_cast %609 : vector<8xf32> to vector<8x1xf32>
    %611 = vector.broadcast %610 : vector<8x1xf32> to vector<8x8xf32>
    %612 = arith.divf %608, %611 : vector<8x8xf32>
    %613 = arith.truncf %612 : vector<8x8xf32> to vector<8x8xbf16>
    %614 = arith.truncf %597 : vector<8x8xf32> to vector<8x8xbf16>
    %cst_544 = arith.constant dense<0.000000e+00> : vector<8x8xf32>
    %615 = tpu.matmul %613, %614, %cst_544 {dimension_numbers = #tpu.dot_dimension_numbers<[1], [0], [0], [1], [0, 0, 1, 1], [], []>} : vector<8x8xbf16>, vector<8x8xbf16>, vector<8x8xf32> -> vector<8x8xf32>
    %616 = arith.truncf %615 : vector<8x8xf32> to vector<8x8xbf16>
    %c1_545 = arith.constant 1 : index
    %c2_546 = arith.constant 2 : index
    %c0_547 = arith.constant 0 : index
    %c0_548 = arith.constant 0 : index
    %617 = vector.load %arg9[%c1_545, %c2_546, %c0_547, %c0_548] : memref<2x4x8x32xbf16, #tpu.memory_space<vmem>>, vector<1x1x8x32xbf16>
    %618 = vector.shape_cast %617 : vector<1x1x8x32xbf16> to vector<8x32xbf16>
    %cst_549 = arith.constant dense<0.000000e+00> : vector<8x32xf32>
    %619 = tpu.matmul %616, %618, %cst_549 {dimension_numbers = #tpu.dot_dimension_numbers<[1], [0], [0], [1], [0, 0, 1, 1], [], []>} : vector<8x8xbf16>, vector<8x32xbf16>, vector<8x32xf32> -> vector<8x32xf32>
    %620 = arith.addf %576, %619 : vector<8x32xf32>
    %c1_550 = arith.constant 1 : index
    %c0_551 = arith.constant 0 : index
    %c3_552 = arith.constant 3 : index
    %c0_553 = arith.constant 0 : index
    %c0_554 = arith.constant 0 : index
    %621 = vector.load %arg7[%c1_550, %c0_551, %c3_552, %c0_553, %c0_554] : memref<2x3x4x32x8xbf16, #tpu.memory_space<vmem>>, vector<1x1x1x32x8xbf16>
    %622 = vector.shape_cast %621 : vector<1x1x1x32x8xbf16> to vector<32x8xbf16>
    %cst_555 = arith.constant dense<0.000000e+00> : vector<8x8xf32>
    %623 = tpu.matmul %489, %622, %cst_555 {dimension_numbers = #tpu.dot_dimension_numbers<[1], [0], [0], [1], [0, 0, 1, 1], [], []>} : vector<8x32xbf16>, vector<32x8xbf16>, vector<8x8xf32> -> vector<8x8xf32>
    %c1_556 = arith.constant 1 : index
    %c0_557 = arith.constant 0 : index
    %c3_558 = arith.constant 3 : index
    %c0_559 = arith.constant 0 : index
    %c0_560 = arith.constant 0 : index
    %624 = vector.load %arg8[%c1_556, %c0_557, %c3_558, %c0_559, %c0_560] : memref<2x3x4x1x8xf32, #tpu.memory_space<vmem>>, vector<1x1x1x1x8xf32>
    %625 = vector.shape_cast %624 : vector<1x1x1x1x8xf32> to vector<1x8xf32>
    %626 = vector.broadcast %625 : vector<1x8xf32> to vector<8x8xf32>
    %627 = arith.addf %623, %626 : vector<8x8xf32>
    %c1_561 = arith.constant 1 : index
    %c1_562 = arith.constant 1 : index
    %c3_563 = arith.constant 3 : index
    %c0_564 = arith.constant 0 : index
    %c0_565 = arith.constant 0 : index
    %628 = vector.load %arg7[%c1_561, %c1_562, %c3_563, %c0_564, %c0_565] : memref<2x3x4x32x8xbf16, #tpu.memory_space<vmem>>, vector<1x1x1x32x8xbf16>
    %629 = vector.shape_cast %628 : vector<1x1x1x32x8xbf16> to vector<32x8xbf16>
    %cst_566 = arith.constant dense<0.000000e+00> : vector<8x8xf32>
    %630 = tpu.matmul %489, %629, %cst_566 {dimension_numbers = #tpu.dot_dimension_numbers<[1], [0], [0], [1], [0, 0, 1, 1], [], []>} : vector<8x32xbf16>, vector<32x8xbf16>, vector<8x8xf32> -> vector<8x8xf32>
    %c1_567 = arith.constant 1 : index
    %c1_568 = arith.constant 1 : index
    %c3_569 = arith.constant 3 : index
    %c0_570 = arith.constant 0 : index
    %c0_571 = arith.constant 0 : index
    %631 = vector.load %arg8[%c1_567, %c1_568, %c3_569, %c0_570, %c0_571] : memref<2x3x4x1x8xf32, #tpu.memory_space<vmem>>, vector<1x1x1x1x8xf32>
    %632 = vector.shape_cast %631 : vector<1x1x1x1x8xf32> to vector<1x8xf32>
    %633 = vector.broadcast %632 : vector<1x8xf32> to vector<8x8xf32>
    %634 = arith.addf %630, %633 : vector<8x8xf32>
    %c1_572 = arith.constant 1 : index
    %c2_573 = arith.constant 2 : index
    %c3_574 = arith.constant 3 : index
    %c0_575 = arith.constant 0 : index
    %c0_576 = arith.constant 0 : index
    %635 = vector.load %arg7[%c1_572, %c2_573, %c3_574, %c0_575, %c0_576] : memref<2x3x4x32x8xbf16, #tpu.memory_space<vmem>>, vector<1x1x1x32x8xbf16>
    %636 = vector.shape_cast %635 : vector<1x1x1x32x8xbf16> to vector<32x8xbf16>
    %cst_577 = arith.constant dense<0.000000e+00> : vector<8x8xf32>
    %637 = tpu.matmul %489, %636, %cst_577 {dimension_numbers = #tpu.dot_dimension_numbers<[1], [0], [0], [1], [0, 0, 1, 1], [], []>} : vector<8x32xbf16>, vector<32x8xbf16>, vector<8x8xf32> -> vector<8x8xf32>
    %c1_578 = arith.constant 1 : index
    %c2_579 = arith.constant 2 : index
    %c3_580 = arith.constant 3 : index
    %c0_581 = arith.constant 0 : index
    %c0_582 = arith.constant 0 : index
    %638 = vector.load %arg8[%c1_578, %c2_579, %c3_580, %c0_581, %c0_582] : memref<2x3x4x1x8xf32, #tpu.memory_space<vmem>>, vector<1x1x1x1x8xf32>
    %639 = vector.shape_cast %638 : vector<1x1x1x1x8xf32> to vector<1x8xf32>
    %640 = vector.broadcast %639 : vector<1x8xf32> to vector<8x8xf32>
    %641 = arith.addf %637, %640 : vector<8x8xf32>
    %cst_583 = arith.constant 0.353553385 : f32
    %642 = vector.broadcast %cst_583 : f32 to vector<8x8xf32>
    %643 = arith.mulf %627, %642 : vector<8x8xf32>
    %644 = arith.truncf %643 : vector<8x8xf32> to vector<8x8xbf16>
    %645 = arith.truncf %634 : vector<8x8xf32> to vector<8x8xbf16>
    "tpu.trace_start"() <{level = 10 : i32, message = "qd,kd->qk"}> : () -> ()
    %cst_584 = arith.constant dense<0.000000e+00> : vector<8x8xf32>
    %646 = tpu.matmul %644, %645, %cst_584 {dimension_numbers = #tpu.dot_dimension_numbers<[1], [1], [0], [0], [0, 0, 1, 0], [], []>} : vector<8x8xbf16>, vector<8x8xbf16>, vector<8x8xf32> -> vector<8x8xf32>
    "tpu.trace_stop"() : () -> ()
    %647 = arith.addf %646, %33 : vector<8x8xf32>
    %cst_585 = arith.constant dense<0xFF800000> : vector<8xf32>
    %648 = vector.multi_reduction <maximumf>, %647, %cst_585 [1] : vector<8x8xf32> to vector<8xf32>
    %649 = vector.shape_cast %648 : vector<8xf32> to vector<8x1xf32>
    %650 = vector.broadcast %649 : vector<8x1xf32> to vector<8x8xf32>
    %651 = arith.subf %647, %650 : vector<8x8xf32>
    %652 = math.exp %651 : vector<8x8xf32>
    %cst_586 = arith.constant dense<0.000000e+00> : vector<8xf32>
    %653 = vector.multi_reduction <add>, %652, %cst_586 [1] : vector<8x8xf32> to vector<8xf32>
    %654 = vector.shape_cast %653 : vector<8xf32> to vector<8x1xf32>
    %655 = vector.broadcast %654 : vector<8x1xf32> to vector<8x8xf32>
    %656 = arith.divf %652, %655 : vector<8x8xf32>
    %657 = arith.truncf %656 : vector<8x8xf32> to vector<8x8xbf16>
    %658 = arith.truncf %641 : vector<8x8xf32> to vector<8x8xbf16>
    %cst_587 = arith.constant dense<0.000000e+00> : vector<8x8xf32>
    %659 = tpu.matmul %657, %658, %cst_587 {dimension_numbers = #tpu.dot_dimension_numbers<[1], [0], [0], [1], [0, 0, 1, 1], [], []>} : vector<8x8xbf16>, vector<8x8xbf16>, vector<8x8xf32> -> vector<8x8xf32>
    %660 = arith.truncf %659 : vector<8x8xf32> to vector<8x8xbf16>
    %c1_588 = arith.constant 1 : index
    %c3_589 = arith.constant 3 : index
    %c0_590 = arith.constant 0 : index
    %c0_591 = arith.constant 0 : index
    %661 = vector.load %arg9[%c1_588, %c3_589, %c0_590, %c0_591] : memref<2x4x8x32xbf16, #tpu.memory_space<vmem>>, vector<1x1x8x32xbf16>
    %662 = vector.shape_cast %661 : vector<1x1x8x32xbf16> to vector<8x32xbf16>
    %cst_592 = arith.constant dense<0.000000e+00> : vector<8x32xf32>
    %663 = tpu.matmul %660, %662, %cst_592 {dimension_numbers = #tpu.dot_dimension_numbers<[1], [0], [0], [1], [0, 0, 1, 1], [], []>} : vector<8x8xbf16>, vector<8x32xbf16>, vector<8x32xf32> -> vector<8x32xf32>
    %664 = arith.addf %620, %663 : vector<8x32xf32>
    %c1_593 = arith.constant 1 : index
    %c0_594 = arith.constant 0 : index
    %c0_595 = arith.constant 0 : index
    %665 = vector.load %arg10[%c1_593, %c0_594, %c0_595] : memref<2x1x32xf32, #tpu.memory_space<vmem>>, vector<1x1x32xf32>
    %666 = vector.shape_cast %665 : vector<1x1x32xf32> to vector<1x32xf32>
    %667 = vector.broadcast %666 : vector<1x32xf32> to vector<8x32xf32>
    %668 = arith.addf %664, %667 : vector<8x32xf32>
    %669 = arith.addf %488, %668 : vector<8x32xf32>
    %c1_596 = arith.constant 1 : index
    %c0_597 = arith.constant 0 : index
    %c0_598 = arith.constant 0 : index
    %c0_599 = arith.constant 0 : index
    %670 = vector.load %arg19[%c1_596, %c0_597, %c0_598, %c0_599] : memref<2x3x1x32xf32, #tpu.memory_space<vmem>>, vector<1x1x1x32xf32>
    %671 = vector.shape_cast %670 : vector<1x1x1x32xf32> to vector<1x32xf32>
    %c1_600 = arith.constant 1 : index
    %c0_601 = arith.constant 0 : index
    %c0_602 = arith.constant 0 : index
    %c0_603 = arith.constant 0 : index
    %672 = vector.load %arg20[%c1_600, %c0_601, %c0_602, %c0_603] : memref<2x3x1x32xf32, #tpu.memory_space<vmem>>, vector<1x1x1x32xf32>
    %673 = vector.shape_cast %672 : vector<1x1x1x32xf32> to vector<1x32xf32>
    %cst_604 = arith.constant dense<0.000000e+00> : vector<8xf32>
    %674 = vector.multi_reduction <add>, %669, %cst_604 [1] : vector<8x32xf32> to vector<8xf32>
    %675 = vector.shape_cast %674 : vector<8xf32> to vector<8x1xf32>
    %cst_605 = arith.constant 3.200000e+01 : f32
    %676 = vector.broadcast %cst_605 : f32 to vector<8x1xf32>
    %677 = arith.divf %675, %676 : vector<8x1xf32>
    %678 = vector.broadcast %677 : vector<8x1xf32> to vector<8x32xf32>
    %679 = arith.subf %669, %678 : vector<8x32xf32>
    %680 = arith.mulf %679, %679 : vector<8x32xf32>
    %cst_606 = arith.constant dense<0.000000e+00> : vector<8xf32>
    %681 = vector.multi_reduction <add>, %680, %cst_606 [1] : vector<8x32xf32> to vector<8xf32>
    %682 = vector.shape_cast %681 : vector<8xf32> to vector<8x1xf32>
    %cst_607 = arith.constant 3.200000e+01 : f32
    %683 = vector.broadcast %cst_607 : f32 to vector<8x1xf32>
    %684 = arith.divf %682, %683 : vector<8x1xf32>
    %685 = vector.broadcast %677 : vector<8x1xf32> to vector<8x32xf32>
    %686 = arith.subf %669, %685 : vector<8x32xf32>
    %cst_608 = arith.constant 9.99999974E-6 : f32
    %687 = vector.broadcast %cst_608 : f32 to vector<8x1xf32>
    %688 = arith.addf %684, %687 : vector<8x1xf32>
    %689 = math.rsqrt %688 : vector<8x1xf32>
    %690 = vector.broadcast %689 : vector<8x1xf32> to vector<8x32xf32>
    %691 = arith.mulf %686, %690 : vector<8x32xf32>
    %692 = vector.broadcast %671 : vector<1x32xf32> to vector<8x32xf32>
    %693 = arith.mulf %691, %692 : vector<8x32xf32>
    %694 = vector.broadcast %673 : vector<1x32xf32> to vector<8x32xf32>
    %695 = arith.addf %693, %694 : vector<8x32xf32>
    %696 = arith.truncf %695 : vector<8x32xf32> to vector<8x32xbf16>
    %c1_609 = arith.constant 1 : index
    %c0_610 = arith.constant 0 : index
    %c0_611 = arith.constant 0 : index
    %c0_612 = arith.constant 0 : index
    %c0_613 = arith.constant 0 : index
    %697 = vector.load %arg11[%c1_609, %c0_610, %c0_611, %c0_612, %c0_613] : memref<2x3x4x32x8xbf16, #tpu.memory_space<vmem>>, vector<1x1x1x32x8xbf16>
    %698 = vector.shape_cast %697 : vector<1x1x1x32x8xbf16> to vector<32x8xbf16>
    %cst_614 = arith.constant dense<0.000000e+00> : vector<8x8xf32>
    %699 = tpu.matmul %696, %698, %cst_614 {dimension_numbers = #tpu.dot_dimension_numbers<[1], [0], [0], [1], [0, 0, 1, 1], [], []>} : vector<8x32xbf16>, vector<32x8xbf16>, vector<8x8xf32> -> vector<8x8xf32>
    %c1_615 = arith.constant 1 : index
    %c0_616 = arith.constant 0 : index
    %c0_617 = arith.constant 0 : index
    %c0_618 = arith.constant 0 : index
    %c0_619 = arith.constant 0 : index
    %700 = vector.load %arg12[%c1_615, %c0_616, %c0_617, %c0_618, %c0_619] : memref<2x3x4x1x8xf32, #tpu.memory_space<vmem>>, vector<1x1x1x1x8xf32>
    %701 = vector.shape_cast %700 : vector<1x1x1x1x8xf32> to vector<1x8xf32>
    %702 = vector.broadcast %701 : vector<1x8xf32> to vector<8x8xf32>
    %703 = arith.addf %699, %702 : vector<8x8xf32>
    %c1_620 = arith.constant 1 : index
    %c1_621 = arith.constant 1 : index
    %c0_622 = arith.constant 0 : index
    %c0_623 = arith.constant 0 : index
    %c0_624 = arith.constant 0 : index
    %704 = vector.load %arg11[%c1_620, %c1_621, %c0_622, %c0_623, %c0_624] : memref<2x3x4x32x8xbf16, #tpu.memory_space<vmem>>, vector<1x1x1x32x8xbf16>
    %705 = vector.shape_cast %704 : vector<1x1x1x32x8xbf16> to vector<32x8xbf16>
    %cst_625 = arith.constant dense<0.000000e+00> : vector<16x8xf32>
    %706 = tpu.matmul %18, %705, %cst_625 {dimension_numbers = #tpu.dot_dimension_numbers<[1], [0], [0], [1], [0, 0, 1, 1], [], []>} : vector<16x32xbf16>, vector<32x8xbf16>, vector<16x8xf32> -> vector<16x8xf32>
    %c1_626 = arith.constant 1 : index
    %c1_627 = arith.constant 1 : index
    %c0_628 = arith.constant 0 : index
    %c0_629 = arith.constant 0 : index
    %c0_630 = arith.constant 0 : index
    %707 = vector.load %arg12[%c1_626, %c1_627, %c0_628, %c0_629, %c0_630] : memref<2x3x4x1x8xf32, #tpu.memory_space<vmem>>, vector<1x1x1x1x8xf32>
    %708 = vector.shape_cast %707 : vector<1x1x1x1x8xf32> to vector<1x8xf32>
    %709 = vector.broadcast %708 : vector<1x8xf32> to vector<16x8xf32>
    %710 = arith.addf %706, %709 : vector<16x8xf32>
    %c1_631 = arith.constant 1 : index
    %c2_632 = arith.constant 2 : index
    %c0_633 = arith.constant 0 : index
    %c0_634 = arith.constant 0 : index
    %c0_635 = arith.constant 0 : index
    %711 = vector.load %arg11[%c1_631, %c2_632, %c0_633, %c0_634, %c0_635] : memref<2x3x4x32x8xbf16, #tpu.memory_space<vmem>>, vector<1x1x1x32x8xbf16>
    %712 = vector.shape_cast %711 : vector<1x1x1x32x8xbf16> to vector<32x8xbf16>
    %cst_636 = arith.constant dense<0.000000e+00> : vector<16x8xf32>
    %713 = tpu.matmul %18, %712, %cst_636 {dimension_numbers = #tpu.dot_dimension_numbers<[1], [0], [0], [1], [0, 0, 1, 1], [], []>} : vector<16x32xbf16>, vector<32x8xbf16>, vector<16x8xf32> -> vector<16x8xf32>
    %c1_637 = arith.constant 1 : index
    %c2_638 = arith.constant 2 : index
    %c0_639 = arith.constant 0 : index
    %c0_640 = arith.constant 0 : index
    %c0_641 = arith.constant 0 : index
    %714 = vector.load %arg12[%c1_637, %c2_638, %c0_639, %c0_640, %c0_641] : memref<2x3x4x1x8xf32, #tpu.memory_space<vmem>>, vector<1x1x1x1x8xf32>
    %715 = vector.shape_cast %714 : vector<1x1x1x1x8xf32> to vector<1x8xf32>
    %716 = vector.broadcast %715 : vector<1x8xf32> to vector<16x8xf32>
    %717 = arith.addf %713, %716 : vector<16x8xf32>
    %cst_642 = arith.constant 0.353553385 : f32
    %718 = vector.broadcast %cst_642 : f32 to vector<8x8xf32>
    %719 = arith.mulf %703, %718 : vector<8x8xf32>
    %720 = arith.truncf %719 : vector<8x8xf32> to vector<8x8xbf16>
    %721 = arith.truncf %710 : vector<16x8xf32> to vector<16x8xbf16>
    "tpu.trace_start"() <{level = 10 : i32, message = "qd,kd->qk"}> : () -> ()
    %cst_643 = arith.constant dense<0.000000e+00> : vector<8x16xf32>
    %722 = tpu.matmul %720, %721, %cst_643 {dimension_numbers = #tpu.dot_dimension_numbers<[1], [1], [0], [0], [0, 0, 1, 0], [], []>} : vector<8x8xbf16>, vector<16x8xbf16>, vector<8x16xf32> -> vector<8x16xf32>
    "tpu.trace_stop"() : () -> ()
    %cst_644 = arith.constant dense<0xFF800000> : vector<8xf32>
    %723 = vector.multi_reduction <maximumf>, %722, %cst_644 [1] : vector<8x16xf32> to vector<8xf32>
    %724 = vector.shape_cast %723 : vector<8xf32> to vector<8x1xf32>
    %725 = vector.broadcast %724 : vector<8x1xf32> to vector<8x16xf32>
    %726 = arith.subf %722, %725 : vector<8x16xf32>
    %727 = math.exp %726 : vector<8x16xf32>
    %cst_645 = arith.constant dense<0.000000e+00> : vector<8xf32>
    %728 = vector.multi_reduction <add>, %727, %cst_645 [1] : vector<8x16xf32> to vector<8xf32>
    %729 = vector.shape_cast %728 : vector<8xf32> to vector<8x1xf32>
    %730 = vector.broadcast %729 : vector<8x1xf32> to vector<8x16xf32>
    %731 = arith.divf %727, %730 : vector<8x16xf32>
    %732 = arith.truncf %731 : vector<8x16xf32> to vector<8x16xbf16>
    %733 = arith.truncf %717 : vector<16x8xf32> to vector<16x8xbf16>
    %cst_646 = arith.constant dense<0.000000e+00> : vector<8x8xf32>
    %734 = tpu.matmul %732, %733, %cst_646 {dimension_numbers = #tpu.dot_dimension_numbers<[1], [0], [0], [1], [0, 0, 1, 1], [], []>} : vector<8x16xbf16>, vector<16x8xbf16>, vector<8x8xf32> -> vector<8x8xf32>
    %735 = arith.truncf %734 : vector<8x8xf32> to vector<8x8xbf16>
    %c1_647 = arith.constant 1 : index
    %c0_648 = arith.constant 0 : index
    %c0_649 = arith.constant 0 : index
    %c0_650 = arith.constant 0 : index
    %736 = vector.load %arg13[%c1_647, %c0_648, %c0_649, %c0_650] : memref<2x4x8x32xbf16, #tpu.memory_space<vmem>>, vector<1x1x8x32xbf16>
    %737 = vector.shape_cast %736 : vector<1x1x8x32xbf16> to vector<8x32xbf16>
    %cst_651 = arith.constant dense<0.000000e+00> : vector<8x32xf32>
    %738 = tpu.matmul %735, %737, %cst_651 {dimension_numbers = #tpu.dot_dimension_numbers<[1], [0], [0], [1], [0, 0, 1, 1], [], []>} : vector<8x8xbf16>, vector<8x32xbf16>, vector<8x32xf32> -> vector<8x32xf32>
    %c1_652 = arith.constant 1 : index
    %c0_653 = arith.constant 0 : index
    %c1_654 = arith.constant 1 : index
    %c0_655 = arith.constant 0 : index
    %c0_656 = arith.constant 0 : index
    %739 = vector.load %arg11[%c1_652, %c0_653, %c1_654, %c0_655, %c0_656] : memref<2x3x4x32x8xbf16, #tpu.memory_space<vmem>>, vector<1x1x1x32x8xbf16>
    %740 = vector.shape_cast %739 : vector<1x1x1x32x8xbf16> to vector<32x8xbf16>
    %cst_657 = arith.constant dense<0.000000e+00> : vector<8x8xf32>
    %741 = tpu.matmul %696, %740, %cst_657 {dimension_numbers = #tpu.dot_dimension_numbers<[1], [0], [0], [1], [0, 0, 1, 1], [], []>} : vector<8x32xbf16>, vector<32x8xbf16>, vector<8x8xf32> -> vector<8x8xf32>
    %c1_658 = arith.constant 1 : index
    %c0_659 = arith.constant 0 : index
    %c1_660 = arith.constant 1 : index
    %c0_661 = arith.constant 0 : index
    %c0_662 = arith.constant 0 : index
    %742 = vector.load %arg12[%c1_658, %c0_659, %c1_660, %c0_661, %c0_662] : memref<2x3x4x1x8xf32, #tpu.memory_space<vmem>>, vector<1x1x1x1x8xf32>
    %743 = vector.shape_cast %742 : vector<1x1x1x1x8xf32> to vector<1x8xf32>
    %744 = vector.broadcast %743 : vector<1x8xf32> to vector<8x8xf32>
    %745 = arith.addf %741, %744 : vector<8x8xf32>
    %c1_663 = arith.constant 1 : index
    %c1_664 = arith.constant 1 : index
    %c1_665 = arith.constant 1 : index
    %c0_666 = arith.constant 0 : index
    %c0_667 = arith.constant 0 : index
    %746 = vector.load %arg11[%c1_663, %c1_664, %c1_665, %c0_666, %c0_667] : memref<2x3x4x32x8xbf16, #tpu.memory_space<vmem>>, vector<1x1x1x32x8xbf16>
    %747 = vector.shape_cast %746 : vector<1x1x1x32x8xbf16> to vector<32x8xbf16>
    %cst_668 = arith.constant dense<0.000000e+00> : vector<16x8xf32>
    %748 = tpu.matmul %18, %747, %cst_668 {dimension_numbers = #tpu.dot_dimension_numbers<[1], [0], [0], [1], [0, 0, 1, 1], [], []>} : vector<16x32xbf16>, vector<32x8xbf16>, vector<16x8xf32> -> vector<16x8xf32>
    %c1_669 = arith.constant 1 : index
    %c1_670 = arith.constant 1 : index
    %c1_671 = arith.constant 1 : index
    %c0_672 = arith.constant 0 : index
    %c0_673 = arith.constant 0 : index
    %749 = vector.load %arg12[%c1_669, %c1_670, %c1_671, %c0_672, %c0_673] : memref<2x3x4x1x8xf32, #tpu.memory_space<vmem>>, vector<1x1x1x1x8xf32>
    %750 = vector.shape_cast %749 : vector<1x1x1x1x8xf32> to vector<1x8xf32>
    %751 = vector.broadcast %750 : vector<1x8xf32> to vector<16x8xf32>
    %752 = arith.addf %748, %751 : vector<16x8xf32>
    %c1_674 = arith.constant 1 : index
    %c2_675 = arith.constant 2 : index
    %c1_676 = arith.constant 1 : index
    %c0_677 = arith.constant 0 : index
    %c0_678 = arith.constant 0 : index
    %753 = vector.load %arg11[%c1_674, %c2_675, %c1_676, %c0_677, %c0_678] : memref<2x3x4x32x8xbf16, #tpu.memory_space<vmem>>, vector<1x1x1x32x8xbf16>
    %754 = vector.shape_cast %753 : vector<1x1x1x32x8xbf16> to vector<32x8xbf16>
    %cst_679 = arith.constant dense<0.000000e+00> : vector<16x8xf32>
    %755 = tpu.matmul %18, %754, %cst_679 {dimension_numbers = #tpu.dot_dimension_numbers<[1], [0], [0], [1], [0, 0, 1, 1], [], []>} : vector<16x32xbf16>, vector<32x8xbf16>, vector<16x8xf32> -> vector<16x8xf32>
    %c1_680 = arith.constant 1 : index
    %c2_681 = arith.constant 2 : index
    %c1_682 = arith.constant 1 : index
    %c0_683 = arith.constant 0 : index
    %c0_684 = arith.constant 0 : index
    %756 = vector.load %arg12[%c1_680, %c2_681, %c1_682, %c0_683, %c0_684] : memref<2x3x4x1x8xf32, #tpu.memory_space<vmem>>, vector<1x1x1x1x8xf32>
    %757 = vector.shape_cast %756 : vector<1x1x1x1x8xf32> to vector<1x8xf32>
    %758 = vector.broadcast %757 : vector<1x8xf32> to vector<16x8xf32>
    %759 = arith.addf %755, %758 : vector<16x8xf32>
    %cst_685 = arith.constant 0.353553385 : f32
    %760 = vector.broadcast %cst_685 : f32 to vector<8x8xf32>
    %761 = arith.mulf %745, %760 : vector<8x8xf32>
    %762 = arith.truncf %761 : vector<8x8xf32> to vector<8x8xbf16>
    %763 = arith.truncf %752 : vector<16x8xf32> to vector<16x8xbf16>
    "tpu.trace_start"() <{level = 10 : i32, message = "qd,kd->qk"}> : () -> ()
    %cst_686 = arith.constant dense<0.000000e+00> : vector<8x16xf32>
    %764 = tpu.matmul %762, %763, %cst_686 {dimension_numbers = #tpu.dot_dimension_numbers<[1], [1], [0], [0], [0, 0, 1, 0], [], []>} : vector<8x8xbf16>, vector<16x8xbf16>, vector<8x16xf32> -> vector<8x16xf32>
    "tpu.trace_stop"() : () -> ()
    %cst_687 = arith.constant dense<0xFF800000> : vector<8xf32>
    %765 = vector.multi_reduction <maximumf>, %764, %cst_687 [1] : vector<8x16xf32> to vector<8xf32>
    %766 = vector.shape_cast %765 : vector<8xf32> to vector<8x1xf32>
    %767 = vector.broadcast %766 : vector<8x1xf32> to vector<8x16xf32>
    %768 = arith.subf %764, %767 : vector<8x16xf32>
    %769 = math.exp %768 : vector<8x16xf32>
    %cst_688 = arith.constant dense<0.000000e+00> : vector<8xf32>
    %770 = vector.multi_reduction <add>, %769, %cst_688 [1] : vector<8x16xf32> to vector<8xf32>
    %771 = vector.shape_cast %770 : vector<8xf32> to vector<8x1xf32>
    %772 = vector.broadcast %771 : vector<8x1xf32> to vector<8x16xf32>
    %773 = arith.divf %769, %772 : vector<8x16xf32>
    %774 = arith.truncf %773 : vector<8x16xf32> to vector<8x16xbf16>
    %775 = arith.truncf %759 : vector<16x8xf32> to vector<16x8xbf16>
    %cst_689 = arith.constant dense<0.000000e+00> : vector<8x8xf32>
    %776 = tpu.matmul %774, %775, %cst_689 {dimension_numbers = #tpu.dot_dimension_numbers<[1], [0], [0], [1], [0, 0, 1, 1], [], []>} : vector<8x16xbf16>, vector<16x8xbf16>, vector<8x8xf32> -> vector<8x8xf32>
    %777 = arith.truncf %776 : vector<8x8xf32> to vector<8x8xbf16>
    %c1_690 = arith.constant 1 : index
    %c1_691 = arith.constant 1 : index
    %c0_692 = arith.constant 0 : index
    %c0_693 = arith.constant 0 : index
    %778 = vector.load %arg13[%c1_690, %c1_691, %c0_692, %c0_693] : memref<2x4x8x32xbf16, #tpu.memory_space<vmem>>, vector<1x1x8x32xbf16>
    %779 = vector.shape_cast %778 : vector<1x1x8x32xbf16> to vector<8x32xbf16>
    %cst_694 = arith.constant dense<0.000000e+00> : vector<8x32xf32>
    %780 = tpu.matmul %777, %779, %cst_694 {dimension_numbers = #tpu.dot_dimension_numbers<[1], [0], [0], [1], [0, 0, 1, 1], [], []>} : vector<8x8xbf16>, vector<8x32xbf16>, vector<8x32xf32> -> vector<8x32xf32>
    %781 = arith.addf %738, %780 : vector<8x32xf32>
    %c1_695 = arith.constant 1 : index
    %c0_696 = arith.constant 0 : index
    %c2_697 = arith.constant 2 : index
    %c0_698 = arith.constant 0 : index
    %c0_699 = arith.constant 0 : index
    %782 = vector.load %arg11[%c1_695, %c0_696, %c2_697, %c0_698, %c0_699] : memref<2x3x4x32x8xbf16, #tpu.memory_space<vmem>>, vector<1x1x1x32x8xbf16>
    %783 = vector.shape_cast %782 : vector<1x1x1x32x8xbf16> to vector<32x8xbf16>
    %cst_700 = arith.constant dense<0.000000e+00> : vector<8x8xf32>
    %784 = tpu.matmul %696, %783, %cst_700 {dimension_numbers = #tpu.dot_dimension_numbers<[1], [0], [0], [1], [0, 0, 1, 1], [], []>} : vector<8x32xbf16>, vector<32x8xbf16>, vector<8x8xf32> -> vector<8x8xf32>
    %c1_701 = arith.constant 1 : index
    %c0_702 = arith.constant 0 : index
    %c2_703 = arith.constant 2 : index
    %c0_704 = arith.constant 0 : index
    %c0_705 = arith.constant 0 : index
    %785 = vector.load %arg12[%c1_701, %c0_702, %c2_703, %c0_704, %c0_705] : memref<2x3x4x1x8xf32, #tpu.memory_space<vmem>>, vector<1x1x1x1x8xf32>
    %786 = vector.shape_cast %785 : vector<1x1x1x1x8xf32> to vector<1x8xf32>
    %787 = vector.broadcast %786 : vector<1x8xf32> to vector<8x8xf32>
    %788 = arith.addf %784, %787 : vector<8x8xf32>
    %c1_706 = arith.constant 1 : index
    %c1_707 = arith.constant 1 : index
    %c2_708 = arith.constant 2 : index
    %c0_709 = arith.constant 0 : index
    %c0_710 = arith.constant 0 : index
    %789 = vector.load %arg11[%c1_706, %c1_707, %c2_708, %c0_709, %c0_710] : memref<2x3x4x32x8xbf16, #tpu.memory_space<vmem>>, vector<1x1x1x32x8xbf16>
    %790 = vector.shape_cast %789 : vector<1x1x1x32x8xbf16> to vector<32x8xbf16>
    %cst_711 = arith.constant dense<0.000000e+00> : vector<16x8xf32>
    %791 = tpu.matmul %18, %790, %cst_711 {dimension_numbers = #tpu.dot_dimension_numbers<[1], [0], [0], [1], [0, 0, 1, 1], [], []>} : vector<16x32xbf16>, vector<32x8xbf16>, vector<16x8xf32> -> vector<16x8xf32>
    %c1_712 = arith.constant 1 : index
    %c1_713 = arith.constant 1 : index
    %c2_714 = arith.constant 2 : index
    %c0_715 = arith.constant 0 : index
    %c0_716 = arith.constant 0 : index
    %792 = vector.load %arg12[%c1_712, %c1_713, %c2_714, %c0_715, %c0_716] : memref<2x3x4x1x8xf32, #tpu.memory_space<vmem>>, vector<1x1x1x1x8xf32>
    %793 = vector.shape_cast %792 : vector<1x1x1x1x8xf32> to vector<1x8xf32>
    %794 = vector.broadcast %793 : vector<1x8xf32> to vector<16x8xf32>
    %795 = arith.addf %791, %794 : vector<16x8xf32>
    %c1_717 = arith.constant 1 : index
    %c2_718 = arith.constant 2 : index
    %c2_719 = arith.constant 2 : index
    %c0_720 = arith.constant 0 : index
    %c0_721 = arith.constant 0 : index
    %796 = vector.load %arg11[%c1_717, %c2_718, %c2_719, %c0_720, %c0_721] : memref<2x3x4x32x8xbf16, #tpu.memory_space<vmem>>, vector<1x1x1x32x8xbf16>
    %797 = vector.shape_cast %796 : vector<1x1x1x32x8xbf16> to vector<32x8xbf16>
    %cst_722 = arith.constant dense<0.000000e+00> : vector<16x8xf32>
    %798 = tpu.matmul %18, %797, %cst_722 {dimension_numbers = #tpu.dot_dimension_numbers<[1], [0], [0], [1], [0, 0, 1, 1], [], []>} : vector<16x32xbf16>, vector<32x8xbf16>, vector<16x8xf32> -> vector<16x8xf32>
    %c1_723 = arith.constant 1 : index
    %c2_724 = arith.constant 2 : index
    %c2_725 = arith.constant 2 : index
    %c0_726 = arith.constant 0 : index
    %c0_727 = arith.constant 0 : index
    %799 = vector.load %arg12[%c1_723, %c2_724, %c2_725, %c0_726, %c0_727] : memref<2x3x4x1x8xf32, #tpu.memory_space<vmem>>, vector<1x1x1x1x8xf32>
    %800 = vector.shape_cast %799 : vector<1x1x1x1x8xf32> to vector<1x8xf32>
    %801 = vector.broadcast %800 : vector<1x8xf32> to vector<16x8xf32>
    %802 = arith.addf %798, %801 : vector<16x8xf32>
    %cst_728 = arith.constant 0.353553385 : f32
    %803 = vector.broadcast %cst_728 : f32 to vector<8x8xf32>
    %804 = arith.mulf %788, %803 : vector<8x8xf32>
    %805 = arith.truncf %804 : vector<8x8xf32> to vector<8x8xbf16>
    %806 = arith.truncf %795 : vector<16x8xf32> to vector<16x8xbf16>
    "tpu.trace_start"() <{level = 10 : i32, message = "qd,kd->qk"}> : () -> ()
    %cst_729 = arith.constant dense<0.000000e+00> : vector<8x16xf32>
    %807 = tpu.matmul %805, %806, %cst_729 {dimension_numbers = #tpu.dot_dimension_numbers<[1], [1], [0], [0], [0, 0, 1, 0], [], []>} : vector<8x8xbf16>, vector<16x8xbf16>, vector<8x16xf32> -> vector<8x16xf32>
    "tpu.trace_stop"() : () -> ()
    %cst_730 = arith.constant dense<0xFF800000> : vector<8xf32>
    %808 = vector.multi_reduction <maximumf>, %807, %cst_730 [1] : vector<8x16xf32> to vector<8xf32>
    %809 = vector.shape_cast %808 : vector<8xf32> to vector<8x1xf32>
    %810 = vector.broadcast %809 : vector<8x1xf32> to vector<8x16xf32>
    %811 = arith.subf %807, %810 : vector<8x16xf32>
    %812 = math.exp %811 : vector<8x16xf32>
    %cst_731 = arith.constant dense<0.000000e+00> : vector<8xf32>
    %813 = vector.multi_reduction <add>, %812, %cst_731 [1] : vector<8x16xf32> to vector<8xf32>
    %814 = vector.shape_cast %813 : vector<8xf32> to vector<8x1xf32>
    %815 = vector.broadcast %814 : vector<8x1xf32> to vector<8x16xf32>
    %816 = arith.divf %812, %815 : vector<8x16xf32>
    %817 = arith.truncf %816 : vector<8x16xf32> to vector<8x16xbf16>
    %818 = arith.truncf %802 : vector<16x8xf32> to vector<16x8xbf16>
    %cst_732 = arith.constant dense<0.000000e+00> : vector<8x8xf32>
    %819 = tpu.matmul %817, %818, %cst_732 {dimension_numbers = #tpu.dot_dimension_numbers<[1], [0], [0], [1], [0, 0, 1, 1], [], []>} : vector<8x16xbf16>, vector<16x8xbf16>, vector<8x8xf32> -> vector<8x8xf32>
    %820 = arith.truncf %819 : vector<8x8xf32> to vector<8x8xbf16>
    %c1_733 = arith.constant 1 : index
    %c2_734 = arith.constant 2 : index
    %c0_735 = arith.constant 0 : index
    %c0_736 = arith.constant 0 : index
    %821 = vector.load %arg13[%c1_733, %c2_734, %c0_735, %c0_736] : memref<2x4x8x32xbf16, #tpu.memory_space<vmem>>, vector<1x1x8x32xbf16>
    %822 = vector.shape_cast %821 : vector<1x1x8x32xbf16> to vector<8x32xbf16>
    %cst_737 = arith.constant dense<0.000000e+00> : vector<8x32xf32>
    %823 = tpu.matmul %820, %822, %cst_737 {dimension_numbers = #tpu.dot_dimension_numbers<[1], [0], [0], [1], [0, 0, 1, 1], [], []>} : vector<8x8xbf16>, vector<8x32xbf16>, vector<8x32xf32> -> vector<8x32xf32>
    %824 = arith.addf %781, %823 : vector<8x32xf32>
    %c1_738 = arith.constant 1 : index
    %c0_739 = arith.constant 0 : index
    %c3_740 = arith.constant 3 : index
    %c0_741 = arith.constant 0 : index
    %c0_742 = arith.constant 0 : index
    %825 = vector.load %arg11[%c1_738, %c0_739, %c3_740, %c0_741, %c0_742] : memref<2x3x4x32x8xbf16, #tpu.memory_space<vmem>>, vector<1x1x1x32x8xbf16>
    %826 = vector.shape_cast %825 : vector<1x1x1x32x8xbf16> to vector<32x8xbf16>
    %cst_743 = arith.constant dense<0.000000e+00> : vector<8x8xf32>
    %827 = tpu.matmul %696, %826, %cst_743 {dimension_numbers = #tpu.dot_dimension_numbers<[1], [0], [0], [1], [0, 0, 1, 1], [], []>} : vector<8x32xbf16>, vector<32x8xbf16>, vector<8x8xf32> -> vector<8x8xf32>
    %c1_744 = arith.constant 1 : index
    %c0_745 = arith.constant 0 : index
    %c3_746 = arith.constant 3 : index
    %c0_747 = arith.constant 0 : index
    %c0_748 = arith.constant 0 : index
    %828 = vector.load %arg12[%c1_744, %c0_745, %c3_746, %c0_747, %c0_748] : memref<2x3x4x1x8xf32, #tpu.memory_space<vmem>>, vector<1x1x1x1x8xf32>
    %829 = vector.shape_cast %828 : vector<1x1x1x1x8xf32> to vector<1x8xf32>
    %830 = vector.broadcast %829 : vector<1x8xf32> to vector<8x8xf32>
    %831 = arith.addf %827, %830 : vector<8x8xf32>
    %c1_749 = arith.constant 1 : index
    %c1_750 = arith.constant 1 : index
    %c3_751 = arith.constant 3 : index
    %c0_752 = arith.constant 0 : index
    %c0_753 = arith.constant 0 : index
    %832 = vector.load %arg11[%c1_749, %c1_750, %c3_751, %c0_752, %c0_753] : memref<2x3x4x32x8xbf16, #tpu.memory_space<vmem>>, vector<1x1x1x32x8xbf16>
    %833 = vector.shape_cast %832 : vector<1x1x1x32x8xbf16> to vector<32x8xbf16>
    %cst_754 = arith.constant dense<0.000000e+00> : vector<16x8xf32>
    %834 = tpu.matmul %18, %833, %cst_754 {dimension_numbers = #tpu.dot_dimension_numbers<[1], [0], [0], [1], [0, 0, 1, 1], [], []>} : vector<16x32xbf16>, vector<32x8xbf16>, vector<16x8xf32> -> vector<16x8xf32>
    %c1_755 = arith.constant 1 : index
    %c1_756 = arith.constant 1 : index
    %c3_757 = arith.constant 3 : index
    %c0_758 = arith.constant 0 : index
    %c0_759 = arith.constant 0 : index
    %835 = vector.load %arg12[%c1_755, %c1_756, %c3_757, %c0_758, %c0_759] : memref<2x3x4x1x8xf32, #tpu.memory_space<vmem>>, vector<1x1x1x1x8xf32>
    %836 = vector.shape_cast %835 : vector<1x1x1x1x8xf32> to vector<1x8xf32>
    %837 = vector.broadcast %836 : vector<1x8xf32> to vector<16x8xf32>
    %838 = arith.addf %834, %837 : vector<16x8xf32>
    %c1_760 = arith.constant 1 : index
    %c2_761 = arith.constant 2 : index
    %c3_762 = arith.constant 3 : index
    %c0_763 = arith.constant 0 : index
    %c0_764 = arith.constant 0 : index
    %839 = vector.load %arg11[%c1_760, %c2_761, %c3_762, %c0_763, %c0_764] : memref<2x3x4x32x8xbf16, #tpu.memory_space<vmem>>, vector<1x1x1x32x8xbf16>
    %840 = vector.shape_cast %839 : vector<1x1x1x32x8xbf16> to vector<32x8xbf16>
    %cst_765 = arith.constant dense<0.000000e+00> : vector<16x8xf32>
    %841 = tpu.matmul %18, %840, %cst_765 {dimension_numbers = #tpu.dot_dimension_numbers<[1], [0], [0], [1], [0, 0, 1, 1], [], []>} : vector<16x32xbf16>, vector<32x8xbf16>, vector<16x8xf32> -> vector<16x8xf32>
    %c1_766 = arith.constant 1 : index
    %c2_767 = arith.constant 2 : index
    %c3_768 = arith.constant 3 : index
    %c0_769 = arith.constant 0 : index
    %c0_770 = arith.constant 0 : index
    %842 = vector.load %arg12[%c1_766, %c2_767, %c3_768, %c0_769, %c0_770] : memref<2x3x4x1x8xf32, #tpu.memory_space<vmem>>, vector<1x1x1x1x8xf32>
    %843 = vector.shape_cast %842 : vector<1x1x1x1x8xf32> to vector<1x8xf32>
    %844 = vector.broadcast %843 : vector<1x8xf32> to vector<16x8xf32>
    %845 = arith.addf %841, %844 : vector<16x8xf32>
    %cst_771 = arith.constant 0.353553385 : f32
    %846 = vector.broadcast %cst_771 : f32 to vector<8x8xf32>
    %847 = arith.mulf %831, %846 : vector<8x8xf32>
    %848 = arith.truncf %847 : vector<8x8xf32> to vector<8x8xbf16>
    %849 = arith.truncf %838 : vector<16x8xf32> to vector<16x8xbf16>
    "tpu.trace_start"() <{level = 10 : i32, message = "qd,kd->qk"}> : () -> ()
    %cst_772 = arith.constant dense<0.000000e+00> : vector<8x16xf32>
    %850 = tpu.matmul %848, %849, %cst_772 {dimension_numbers = #tpu.dot_dimension_numbers<[1], [1], [0], [0], [0, 0, 1, 0], [], []>} : vector<8x8xbf16>, vector<16x8xbf16>, vector<8x16xf32> -> vector<8x16xf32>
    "tpu.trace_stop"() : () -> ()
    %cst_773 = arith.constant dense<0xFF800000> : vector<8xf32>
    %851 = vector.multi_reduction <maximumf>, %850, %cst_773 [1] : vector<8x16xf32> to vector<8xf32>
    %852 = vector.shape_cast %851 : vector<8xf32> to vector<8x1xf32>
    %853 = vector.broadcast %852 : vector<8x1xf32> to vector<8x16xf32>
    %854 = arith.subf %850, %853 : vector<8x16xf32>
    %855 = math.exp %854 : vector<8x16xf32>
    %cst_774 = arith.constant dense<0.000000e+00> : vector<8xf32>
    %856 = vector.multi_reduction <add>, %855, %cst_774 [1] : vector<8x16xf32> to vector<8xf32>
    %857 = vector.shape_cast %856 : vector<8xf32> to vector<8x1xf32>
    %858 = vector.broadcast %857 : vector<8x1xf32> to vector<8x16xf32>
    %859 = arith.divf %855, %858 : vector<8x16xf32>
    %860 = arith.truncf %859 : vector<8x16xf32> to vector<8x16xbf16>
    %861 = arith.truncf %845 : vector<16x8xf32> to vector<16x8xbf16>
    %cst_775 = arith.constant dense<0.000000e+00> : vector<8x8xf32>
    %862 = tpu.matmul %860, %861, %cst_775 {dimension_numbers = #tpu.dot_dimension_numbers<[1], [0], [0], [1], [0, 0, 1, 1], [], []>} : vector<8x16xbf16>, vector<16x8xbf16>, vector<8x8xf32> -> vector<8x8xf32>
    %863 = arith.truncf %862 : vector<8x8xf32> to vector<8x8xbf16>
    %c1_776 = arith.constant 1 : index
    %c3_777 = arith.constant 3 : index
    %c0_778 = arith.constant 0 : index
    %c0_779 = arith.constant 0 : index
    %864 = vector.load %arg13[%c1_776, %c3_777, %c0_778, %c0_779] : memref<2x4x8x32xbf16, #tpu.memory_space<vmem>>, vector<1x1x8x32xbf16>
    %865 = vector.shape_cast %864 : vector<1x1x8x32xbf16> to vector<8x32xbf16>
    %cst_780 = arith.constant dense<0.000000e+00> : vector<8x32xf32>
    %866 = tpu.matmul %863, %865, %cst_780 {dimension_numbers = #tpu.dot_dimension_numbers<[1], [0], [0], [1], [0, 0, 1, 1], [], []>} : vector<8x8xbf16>, vector<8x32xbf16>, vector<8x32xf32> -> vector<8x32xf32>
    %867 = arith.addf %824, %866 : vector<8x32xf32>
    %c1_781 = arith.constant 1 : index
    %c0_782 = arith.constant 0 : index
    %c0_783 = arith.constant 0 : index
    %868 = vector.load %arg14[%c1_781, %c0_782, %c0_783] : memref<2x1x32xf32, #tpu.memory_space<vmem>>, vector<1x1x32xf32>
    %869 = vector.shape_cast %868 : vector<1x1x32xf32> to vector<1x32xf32>
    %870 = vector.broadcast %869 : vector<1x32xf32> to vector<8x32xf32>
    %871 = arith.addf %867, %870 : vector<8x32xf32>
    %872 = arith.addf %695, %871 : vector<8x32xf32>
    %c1_784 = arith.constant 1 : index
    %c1_785 = arith.constant 1 : index
    %c0_786 = arith.constant 0 : index
    %c0_787 = arith.constant 0 : index
    %873 = vector.load %arg19[%c1_784, %c1_785, %c0_786, %c0_787] : memref<2x3x1x32xf32, #tpu.memory_space<vmem>>, vector<1x1x1x32xf32>
    %874 = vector.shape_cast %873 : vector<1x1x1x32xf32> to vector<1x32xf32>
    %c1_788 = arith.constant 1 : index
    %c1_789 = arith.constant 1 : index
    %c0_790 = arith.constant 0 : index
    %c0_791 = arith.constant 0 : index
    %875 = vector.load %arg20[%c1_788, %c1_789, %c0_790, %c0_791] : memref<2x3x1x32xf32, #tpu.memory_space<vmem>>, vector<1x1x1x32xf32>
    %876 = vector.shape_cast %875 : vector<1x1x1x32xf32> to vector<1x32xf32>
    %cst_792 = arith.constant dense<0.000000e+00> : vector<8xf32>
    %877 = vector.multi_reduction <add>, %872, %cst_792 [1] : vector<8x32xf32> to vector<8xf32>
    %878 = vector.shape_cast %877 : vector<8xf32> to vector<8x1xf32>
    %cst_793 = arith.constant 3.200000e+01 : f32
    %879 = vector.broadcast %cst_793 : f32 to vector<8x1xf32>
    %880 = arith.divf %878, %879 : vector<8x1xf32>
    %881 = vector.broadcast %880 : vector<8x1xf32> to vector<8x32xf32>
    %882 = arith.subf %872, %881 : vector<8x32xf32>
    %883 = arith.mulf %882, %882 : vector<8x32xf32>
    %cst_794 = arith.constant dense<0.000000e+00> : vector<8xf32>
    %884 = vector.multi_reduction <add>, %883, %cst_794 [1] : vector<8x32xf32> to vector<8xf32>
    %885 = vector.shape_cast %884 : vector<8xf32> to vector<8x1xf32>
    %cst_795 = arith.constant 3.200000e+01 : f32
    %886 = vector.broadcast %cst_795 : f32 to vector<8x1xf32>
    %887 = arith.divf %885, %886 : vector<8x1xf32>
    %888 = vector.broadcast %880 : vector<8x1xf32> to vector<8x32xf32>
    %889 = arith.subf %872, %888 : vector<8x32xf32>
    %cst_796 = arith.constant 9.99999974E-6 : f32
    %890 = vector.broadcast %cst_796 : f32 to vector<8x1xf32>
    %891 = arith.addf %887, %890 : vector<8x1xf32>
    %892 = math.rsqrt %891 : vector<8x1xf32>
    %893 = vector.broadcast %892 : vector<8x1xf32> to vector<8x32xf32>
    %894 = arith.mulf %889, %893 : vector<8x32xf32>
    %895 = vector.broadcast %874 : vector<1x32xf32> to vector<8x32xf32>
    %896 = arith.mulf %894, %895 : vector<8x32xf32>
    %897 = vector.broadcast %876 : vector<1x32xf32> to vector<8x32xf32>
    %898 = arith.addf %896, %897 : vector<8x32xf32>
    %899 = arith.truncf %898 : vector<8x32xf32> to vector<8x32xbf16>
    %c1_797 = arith.constant 1 : index
    %c0_798 = arith.constant 0 : index
    %c0_799 = arith.constant 0 : index
    %900 = vector.load %arg15[%c1_797, %c0_798, %c0_799] : memref<2x32x2048xbf16, #tpu.memory_space<vmem>>, vector<1x32x2048xbf16>
    %901 = vector.shape_cast %900 : vector<1x32x2048xbf16> to vector<32x2048xbf16>
    %cst_800 = arith.constant dense<0.000000e+00> : vector<8x2048xf32>
    %902 = tpu.matmul %899, %901, %cst_800 {dimension_numbers = #tpu.dot_dimension_numbers<[1], [0], [0], [1], [0, 0, 1, 1], [], []>} : vector<8x32xbf16>, vector<32x2048xbf16>, vector<8x2048xf32> -> vector<8x2048xf32>
    %c1_801 = arith.constant 1 : index
    %c0_802 = arith.constant 0 : index
    %c0_803 = arith.constant 0 : index
    %903 = vector.load %arg16[%c1_801, %c0_802, %c0_803] : memref<2x1x2048xf32, #tpu.memory_space<vmem>>, vector<1x1x2048xf32>
    %904 = vector.shape_cast %903 : vector<1x1x2048xf32> to vector<1x2048xf32>
    %905 = vector.broadcast %904 : vector<1x2048xf32> to vector<8x2048xf32>
    %906 = arith.addf %902, %905 : vector<8x2048xf32>
    %cst_804 = arith.constant 0.000000e+00 : f32
    %907 = vector.broadcast %cst_804 : f32 to vector<8x2048xf32>
    %908 = arith.maximumf %906, %907 : vector<8x2048xf32>
    %909 = arith.truncf %908 : vector<8x2048xf32> to vector<8x2048xbf16>
    %c1_805 = arith.constant 1 : index
    %c0_806 = arith.constant 0 : index
    %c0_807 = arith.constant 0 : index
    %910 = vector.load %arg17[%c1_805, %c0_806, %c0_807] : memref<2x2048x32xbf16, #tpu.memory_space<vmem>>, vector<1x2048x32xbf16>
    %911 = vector.shape_cast %910 : vector<1x2048x32xbf16> to vector<2048x32xbf16>
    %cst_808 = arith.constant dense<0.000000e+00> : vector<8x32xf32>
    %912 = tpu.matmul %909, %911, %cst_808 {dimension_numbers = #tpu.dot_dimension_numbers<[1], [0], [0], [1], [0, 0, 1, 1], [], []>} : vector<8x2048xbf16>, vector<2048x32xbf16>, vector<8x32xf32> -> vector<8x32xf32>
    %c1_809 = arith.constant 1 : index
    %c0_810 = arith.constant 0 : index
    %c0_811 = arith.constant 0 : index
    %913 = vector.load %arg18[%c1_809, %c0_810, %c0_811] : memref<2x1x32xf32, #tpu.memory_space<vmem>>, vector<1x1x32xf32>
    %914 = vector.shape_cast %913 : vector<1x1x32xf32> to vector<1x32xf32>
    %915 = vector.broadcast %914 : vector<1x32xf32> to vector<8x32xf32>
    %916 = arith.addf %912, %915 : vector<8x32xf32>
    %917 = arith.addf %898, %916 : vector<8x32xf32>
    %c1_812 = arith.constant 1 : index
    %c2_813 = arith.constant 2 : index
    %c0_814 = arith.constant 0 : index
    %c0_815 = arith.constant 0 : index
    %918 = vector.load %arg19[%c1_812, %c2_813, %c0_814, %c0_815] : memref<2x3x1x32xf32, #tpu.memory_space<vmem>>, vector<1x1x1x32xf32>
    %919 = vector.shape_cast %918 : vector<1x1x1x32xf32> to vector<1x32xf32>
    %c1_816 = arith.constant 1 : index
    %c2_817 = arith.constant 2 : index
    %c0_818 = arith.constant 0 : index
    %c0_819 = arith.constant 0 : index
    %920 = vector.load %arg20[%c1_816, %c2_817, %c0_818, %c0_819] : memref<2x3x1x32xf32, #tpu.memory_space<vmem>>, vector<1x1x1x32xf32>
    %921 = vector.shape_cast %920 : vector<1x1x1x32xf32> to vector<1x32xf32>
    %cst_820 = arith.constant dense<0.000000e+00> : vector<8xf32>
    %922 = vector.multi_reduction <add>, %917, %cst_820 [1] : vector<8x32xf32> to vector<8xf32>
    %923 = vector.shape_cast %922 : vector<8xf32> to vector<8x1xf32>
    %cst_821 = arith.constant 3.200000e+01 : f32
    %924 = vector.broadcast %cst_821 : f32 to vector<8x1xf32>
    %925 = arith.divf %923, %924 : vector<8x1xf32>
    %926 = vector.broadcast %925 : vector<8x1xf32> to vector<8x32xf32>
    %927 = arith.subf %917, %926 : vector<8x32xf32>
    %928 = arith.mulf %927, %927 : vector<8x32xf32>
    %cst_822 = arith.constant dense<0.000000e+00> : vector<8xf32>
    %929 = vector.multi_reduction <add>, %928, %cst_822 [1] : vector<8x32xf32> to vector<8xf32>
    %930 = vector.shape_cast %929 : vector<8xf32> to vector<8x1xf32>
    %cst_823 = arith.constant 3.200000e+01 : f32
    %931 = vector.broadcast %cst_823 : f32 to vector<8x1xf32>
    %932 = arith.divf %930, %931 : vector<8x1xf32>
    %933 = vector.broadcast %925 : vector<8x1xf32> to vector<8x32xf32>
    %934 = arith.subf %917, %933 : vector<8x32xf32>
    %cst_824 = arith.constant 9.99999974E-6 : f32
    %935 = vector.broadcast %cst_824 : f32 to vector<8x1xf32>
    %936 = arith.addf %932, %935 : vector<8x1xf32>
    %937 = math.rsqrt %936 : vector<8x1xf32>
    %938 = vector.broadcast %937 : vector<8x1xf32> to vector<8x32xf32>
    %939 = arith.mulf %934, %938 : vector<8x32xf32>
    %940 = vector.broadcast %919 : vector<1x32xf32> to vector<8x32xf32>
    %941 = arith.mulf %939, %940 : vector<8x32xf32>
    %942 = vector.broadcast %921 : vector<1x32xf32> to vector<8x32xf32>
    %943 = arith.addf %941, %942 : vector<8x32xf32>
    %944 = arith.truncf %943 : vector<8x32xf32> to vector<8x32xbf16>
    %c0_825 = arith.constant 0 : index
    %c0_826 = arith.constant 0 : index
    %945 = vector.load %arg21[%c0_825, %c0_826] : memref<32x128xbf16, #tpu.memory_space<vmem>>, vector<32x128xbf16>
    %cst_827 = arith.constant dense<0.000000e+00> : vector<8x128xf32>
    %946 = tpu.matmul %944, %945, %cst_827 {dimension_numbers = #tpu.dot_dimension_numbers<[1], [0], [0], [1], [0, 0, 1, 1], [], []>} : vector<8x32xbf16>, vector<32x128xbf16>, vector<8x128xf32> -> vector<8x128xf32>
    %c0_828 = arith.constant 0 : index
    %c0_829 = arith.constant 0 : index
    %947 = vector.load %arg22[%c0_828, %c0_829] : memref<1x128xf32, #tpu.memory_space<vmem>>, vector<1x128xf32>
    %948 = vector.broadcast %947 : vector<1x128xf32> to vector<8x128xf32>
    %949 = arith.addf %946, %948 : vector<8x128xf32>
    %950 = vector.shape_cast %949 : vector<8x128xf32> to vector<1x8x128xf32>
    %c0_830 = arith.constant 0 : index
    %c0_831 = arith.constant 0 : index
    %c0_832 = arith.constant 0 : index
    %951 = vector.load %arg23[%c0_830, %c0_831, %c0_832] : memref<1x8x128xf32, #tpu.memory_space<vmem>>, vector<1x8x128xf32>
    tpu.vector_store %arg23[%c0_830, %c0_831, %c0_832], %950 {strides = array<i32>} : memref<1x8x128xf32, #tpu.memory_space<vmem>>, vector<1x8x128xf32>,
    return
  }
  func.func @transform_0(%arg0: i32) -> (i32, i32, i32) {
    %c0_i32 = arith.constant 0 : i32
    %c0_i32_0 = arith.constant 0 : i32
    %c0_i32_1 = arith.constant 0 : i32
    return %arg0, %c0_i32, %c0_i32_0 : i32, i32, i32
  }
  func.func @transform_1(%arg0: i32) -> (i32, i32, i32) {
    %c0_i32 = arith.constant 0 : i32
    %c0_i32_0 = arith.constant 0 : i32
    %c0_i32_1 = arith.constant 0 : i32
    return %arg0, %c0_i32, %c0_i32_0 : i32, i32, i32
  }
  func.func @transform_2(%arg0: i32) -> (i32, i32, i32) {
    %c0_i32 = arith.constant 0 : i32
    %c0_i32_0 = arith.constant 0 : i32
    %c0_i32_1 = arith.constant 0 : i32
    return %arg0, %c0_i32, %c0_i32_0 : i32, i32, i32
  }
  func.func @transform_3(%arg0: i32) -> (i32, i32) {
    %c0_i32 = arith.constant 0 : i32
    %c0_i32_0 = arith.constant 0 : i32
    %c0_i32_1 = arith.constant 0 : i32
    return %c0_i32, %c0_i32_0 : i32, i32
  }
  func.func @transform_4(%arg0: i32) -> (i32, i32, i32) {
    %c0_i32 = arith.constant 0 : i32
    %c0_i32_0 = arith.constant 0 : i32
    %c0_i32_1 = arith.constant 0 : i32
    %c0_i32_2 = arith.constant 0 : i32
    return %c0_i32, %c0_i32_0, %c0_i32_1 : i32, i32, i32
  }
  func.func @transform_5(%arg0: i32) -> (i32, i32, i32) {
    %c0_i32 = arith.constant 0 : i32
    %c0_i32_0 = arith.constant 0 : i32
    %c0_i32_1 = arith.constant 0 : i32
    %c0_i32_2 = arith.constant 0 : i32
    return %c0_i32, %c0_i32_0, %c0_i32_1 : i32, i32, i32
  }
  func.func @transform_6(%arg0: i32) -> (i32, i32, i32, i32, i32) {
    %c0_i32 = arith.constant 0 : i32
    %c0_i32_0 = arith.constant 0 : i32
    %c0_i32_1 = arith.constant 0 : i32
    %c0_i32_2 = arith.constant 0 : i32
    %c0_i32_3 = arith.constant 0 : i32
    %c0_i32_4 = arith.constant 0 : i32
    return %c0_i32, %c0_i32_0, %c0_i32_1, %c0_i32_2, %c0_i32_3 : i32, i32, i32, i32, i32
  }
  func.func @transform_7(%arg0: i32) -> (i32, i32, i32, i32, i32) {
    %c0_i32 = arith.constant 0 : i32
    %c0_i32_0 = arith.constant 0 : i32
    %c0_i32_1 = arith.constant 0 : i32
    %c0_i32_2 = arith.constant 0 : i32
    %c0_i32_3 = arith.constant 0 : i32
    %c0_i32_4 = arith.constant 0 : i32
    return %c0_i32, %c0_i32_0, %c0_i32_1, %c0_i32_2, %c0_i32_3 : i32, i32, i32, i32, i32
  }
  func.func @transform_8(%arg0: i32) -> (i32, i32, i32, i32) {
    %c0_i32 = arith.constant 0 : i32
    %c0_i32_0 = arith.constant 0 : i32
    %c0_i32_1 = arith.constant 0 : i32
    %c0_i32_2 = arith.constant 0 : i32
    %c0_i32_3 = arith.constant 0 : i32
    return %c0_i32, %c0_i32_0, %c0_i32_1, %c0_i32_2 : i32, i32, i32, i32
  }
  func.func @transform_9(%arg0: i32) -> (i32, i32, i32) {
    %c0_i32 = arith.constant 0 : i32
    %c0_i32_0 = arith.constant 0 : i32
    %c0_i32_1 = arith.constant 0 : i32
    %c0_i32_2 = arith.constant 0 : i32
    return %c0_i32, %c0_i32_0, %c0_i32_1 : i32, i32, i32
  }
  func.func @transform_10(%arg0: i32) -> (i32, i32, i32, i32, i32) {
    %c0_i32 = arith.constant 0 : i32
    %c0_i32_0 = arith.constant 0 : i32
    %c0_i32_1 = arith.constant 0 : i32
    %c0_i32_2 = arith.constant 0 : i32
    %c0_i32_3 = arith.constant 0 : i32
    %c0_i32_4 = arith.constant 0 : i32
    return %c0_i32, %c0_i32_0, %c0_i32_1, %c0_i32_2, %c0_i32_3 : i32, i32, i32, i32, i32
  }
  func.func @transform_11(%arg0: i32) -> (i32, i32, i32, i32, i32) {
    %c0_i32 = arith.constant 0 : i32
    %c0_i32_0 = arith.constant 0 : i32
    %c0_i32_1 = arith.constant 0 : i32
    %c0_i32_2 = arith.constant 0 : i32
    %c0_i32_3 = arith.constant 0 : i32
    %c0_i32_4 = arith.constant 0 : i32
    return %c0_i32, %c0_i32_0, %c0_i32_1, %c0_i32_2, %c0_i32_3 : i32, i32, i32, i32, i32
  }
  func.func @transform_12(%arg0: i32) -> (i32, i32, i32, i32) {
    %c0_i32 = arith.constant 0 : i32
    %c0_i32_0 = arith.constant 0 : i32
    %c0_i32_1 = arith.constant 0 : i32
    %c0_i32_2 = arith.constant 0 : i32
    %c0_i32_3 = arith.constant 0 : i32
    return %c0_i32, %c0_i32_0, %c0_i32_1, %c0_i32_2 : i32, i32, i32, i32
  }
  func.func @transform_13(%arg0: i32) -> (i32, i32, i32) {
    %c0_i32 = arith.constant 0 : i32
    %c0_i32_0 = arith.constant 0 : i32
    %c0_i32_1 = arith.constant 0 : i32
    %c0_i32_2 = arith.constant 0 : i32
    return %c0_i32, %c0_i32_0, %c0_i32_1 : i32, i32, i32
  }
  func.func @transform_14(%arg0: i32) -> (i32, i32, i32) {
    %c0_i32 = arith.constant 0 : i32
    %c0_i32_0 = arith.constant 0 : i32
    %c0_i32_1 = arith.constant 0 : i32
    %c0_i32_2 = arith.constant 0 : i32
    return %c0_i32, %c0_i32_0, %c0_i32_1 : i32, i32, i32
  }
  func.func @transform_15(%arg0: i32) -> (i32, i32, i32) {
    %c0_i32 = arith.constant 0 : i32
    %c0_i32_0 = arith.constant 0 : i32
    %c0_i32_1 = arith.constant 0 : i32
    %c0_i32_2 = arith.constant 0 : i32
    return %c0_i32, %c0_i32_0, %c0_i32_1 : i32, i32, i32
  }
  func.func @transform_16(%arg0: i32) -> (i32, i32, i32) {
    %c0_i32 = arith.constant 0 : i32
    %c0_i32_0 = arith.constant 0 : i32
    %c0_i32_1 = arith.constant 0 : i32
    %c0_i32_2 = arith.constant 0 : i32
    return %c0_i32, %c0_i32_0, %c0_i32_1 : i32, i32, i32
  }
  func.func @transform_17(%arg0: i32) -> (i32, i32, i32) {
    %c0_i32 = arith.constant 0 : i32
    %c0_i32_0 = arith.constant 0 : i32
    %c0_i32_1 = arith.constant 0 : i32
    %c0_i32_2 = arith.constant 0 : i32
    return %c0_i32, %c0_i32_0, %c0_i32_1 : i32, i32, i32
  }
  func.func @transform_18(%arg0: i32) -> (i32, i32, i32, i32) {
    %c0_i32 = arith.constant 0 : i32
    %c0_i32_0 = arith.constant 0 : i32
    %c0_i32_1 = arith.constant 0 : i32
    %c0_i32_2 = arith.constant 0 : i32
    %c0_i32_3 = arith.constant 0 : i32
    return %c0_i32, %c0_i32_0, %c0_i32_1, %c0_i32_2 : i32, i32, i32, i32
  }
  func.func @transform_19(%arg0: i32) -> (i32, i32, i32, i32) {
    %c0_i32 = arith.constant 0 : i32
    %c0_i32_0 = arith.constant 0 : i32
    %c0_i32_1 = arith.constant 0 : i32
    %c0_i32_2 = arith.constant 0 : i32
    %c0_i32_3 = arith.constant 0 : i32
    return %c0_i32, %c0_i32_0, %c0_i32_1, %c0_i32_2 : i32, i32, i32, i32
  }
  func.func @transform_20(%arg0: i32) -> (i32, i32) {
    %c0_i32 = arith.constant 0 : i32
    %c0_i32_0 = arith.constant 0 : i32
    %c0_i32_1 = arith.constant 0 : i32
    return %c0_i32, %c0_i32_0 : i32, i32
  }
  func.func @transform_21(%arg0: i32) -> (i32, i32) {
    %c0_i32 = arith.constant 0 : i32
    %c0_i32_0 = arith.constant 0 : i32
    %c0_i32_1 = arith.constant 0 : i32
    return %c0_i32, %c0_i32_0 : i32, i32
  }
  func.func @transform_22(%arg0: i32) -> (i32, i32, i32) {
    %c0_i32 = arith.constant 0 : i32
    %c0_i32_0 = arith.constant 0 : i32
    %c0_i32_1 = arith.constant 0 : i32
    return %arg0, %c0_i32, %c0_i32_0 : i32, i32, i32
  }
}

</mosaic_0001>

<bundles_post_ra>
// kernel: decoder_forward.1
= control target key start
LH: loop header
LB: loop body
LE: loop exit
PB: predicated region body
PF: predicated region fallthrough
CT: control target
= control target key end

     0   :  { %s16477_s0 = inlined_call_operand.vmem [shape: s32[2,1,8], index: 0, kind: input, shape index: {}]   ;;  %s16478_s1 = inlined_call_operand.vmem [shape: s32[2,8,1], index: 1, kind: input, shape index: {}]   ;;  %s16479_s2 = inlined_call_operand.vmem [shape: f32[2,16,32], index: 2, kind: input, shape index: {}]   ;;  %s16480_s3 = inlined_call_operand.vmem [shape: bf16[64,32], index: 3, kind: input, shape index: {}]   ;;  %s16481_s4 = inlined_call_operand.vmem [shape: f32[1,8,32], index: 4, kind: input, shape index: {}]   ;;  %s16482_s5 = inlined_call_operand.vmem [shape: f32[1,16,32], index: 5, kind: input, shape index: {}]   ;;  %s16483_s6 = inlined_call_operand.vmem [shape: bf16[2,3,4,32,8], index: 6, kind: input, shape index: {}]   ;;  %s16484_s7 = inlined_call_operand.vmem [shape: f32[2,3,4,1,8], index: 7, kind: input, shape index: {}]   ;;  %s16485_s8 = inlined_call_operand.vmem [shape: bf16[2,4,8,32], index: 8, kind: input, shape index: {}]   ;;  %s16486_s9 = inlined_call_operand.vmem [shape: f32[2,1,32], index: 9, kind: input, shape index: {}]   ;;  %s16487_s10 = inlined_call_operand.vmem [shape: bf16[2,3,4,32,8], index: 10, kind: input, shape index: {}]   ;;  %s16488_s11 = inlined_call_operand.vmem [shape: f32[2,3,4,1,8], index: 11, kind: input, shape index: {}]   ;;  %s16489_s12 = inlined_call_operand.vmem [shape: bf16[2,4,8,32], index: 12, kind: input, shape index: {}]   ;;  %s16490_s13 = inlined_call_operand.vmem [shape: f32[2,1,32], index: 13, kind: input, shape index: {}]   ;;  %s16491_s14 = inlined_call_operand.vmem [shape: bf16[2,32,2048], index: 14, kind: input, shape index: {}]   ;;  %s16492_s15 = inlined_call_operand.vmem [shape: f32[2,1,2048], index: 15, kind: input, shape index: {}]   ;;  %s16493_s16 = inlined_call_operand.vmem [shape: bf16[2,2048,32], index: 16, kind: input, shape index: {}]   ;;  %s16494_s17 = inlined_call_operand.vmem [shape: f32[2,1,32], index: 17, kind: input, shape index: {}]   ;;  %s16495_s18 = inlined_call_operand.vmem [shape: f32[2,3,1,32], index: 18, kind: input, shape index: {}]   ;;  %s16496_s19 = inlined_call_operand.vmem [shape: f32[2,3,1,32], index: 19, kind: input, shape index: {}]   ;;  %s16497_s20 = inlined_call_operand.vmem [shape: bf16[32,128], index: 20, kind: input, shape index: {}]   ;;  %s16498_s21 = inlined_call_operand.vmem [shape: f32[1,128], index: 21, kind: input, shape index: {}]   ;;  %s16499_s22 = inlined_call_operand.hbm [shape: f32[2,8,128], index: 22, kind: output, shape index: {}]  }
   0x1   :  { %16511 = sst [smem:[#allocation11_spill]] %s16477_s0 }
   0x2   :  { %16512 = sst [smem:[#allocation12_spill]] %s16478_s1 }
   0x3   :  { %16513 = sst [smem:[#allocation13_spill]] %s16479_s2 }
   0x4   :  { %16514 = sst [smem:[#allocation14_spill]] %s16480_s3 }
   0x5   :  { %16515 = sst [smem:[#allocation15_spill]] %s16481_s4 }
   0x6   :  { %16516 = sst [smem:[#allocation16_spill]] %s16482_s5 }
   0x7   :  { %16517 = sst [smem:[#allocation17_spill]] %s16483_s6 }
   0x8   :  { %16518 = sst [smem:[#allocation18_spill]] %s16498_s21 }
   0x9   :  { %16519 = sst [smem:[#allocation19_spill]] %s16499_s22 }
   0xa   :  { %27 = vsyncpa [#allocation3], 0 }
   0xb   :  { %29 = vsyncpa [#allocation3 + $0x1], 0  ;;  %s13958_s3 = smov 0   ;;  %s13960_s28 = smov 0  }
   0xc   :  { %s13962_s29 = smov 0   ;;  %s13964_s30 = smov 0  }
   0xd LB: > { %16520 = sst [smem:[#allocation5_spill]] %s13825_s3  ;;  %s13979_s4 = sadd.s32 4294967295, %s13837_s30   ;;  %s13837_s30 = sphi %s13964_s30, %s16541_s30   ;;  %s13833_s29 = sphi %s13962_s29, %s16543_s29   ;;  %s13829_s28 = sphi %s13960_s28, %s16545_s28   ;;  %s13825_s3 = sphi %s13958_s3, %s16544_s3  }
   0xe   : > { %16521 = sst [smem:[#allocation6_spill]] %s13833_s29  ;;  %s10844_s0 = sadd.s32 4294967294, %s13837_s30  }
   0xf   : > { %16522 = sst [smem:[#allocation7_spill]] %s13837_s30  ;;  %s13983_s23 = sadd.s32 1, %s13837_s30  }
  0x10   : > { %16523 = sst [smem:[#allocation8_spill]] %s13983_s23  ;;  %s519_s1 = sadd.s32 1, %s13833_s29 }
  0x11   : > { %s516_s5 = ssub.s32 %s13837_s30, %s13983_s23  ;;  %p529_p0 = scmp.ne.s32.totalorder %s13833_s29, %s13829_s28 }
  0x12   : > { %p517_p1 = scmp.eq.s32.totalorder %s516_s5, 0  ;;  %p530_p2 = scmp.eq.s32.totalorder %s13979_s4, 1 }
  0x13   : > { %p535_p3 = scmp.ne.s32.totalorder %s13829_s28, %s13825_s3  ;;  %p536_p4 = scmp.eq.s32.totalorder %s10844_s0, 1 }
  0x14   : > { %s13994_s24 = scalar_select %p517_p1, %s13833_s29, %s519_s1  }
  0x15   : > { %p13996_p5 = por %p530_p2, %p529_p0  ;;  %p14000_p6 = por %p536_p4, %p535_p3 }
  0x16   : > { %16524 = sst [smem:[#allocation9_spill]] %s13994_s24  ;;  %p10847_p7 = scmp.ge.s32.totalorder %s13837_s30, 1 }
  0x17   : > { %s16526_s25 = scalar_select %p14000_p6, 1, 0 }
  0x18   : > { %p632_p8 = scmp.lt.s32.totalorder %s13837_s30, 3 }
  0x19   : > { %16527 = sst [smem:[#allocation10_spill]] %s16526_s25 }
  0x1a   : > { %p633_p9 = pnand %p10847_p7, %p632_p8 }
  0x1b   : > { %p701_p10 = scmp.lt.s32.totalorder (!%p633_p9), %s13979_s4, 1  ;;  %s16528_s27 = sld [smem:[#allocation14_spill]] (!%p633_p9) }
  0x1c   : > { %636 = sbr.rel (%p633_p9) target bundleno = 18062 (0x468e), region = 108  ;;  %s16529_s29 = sld [smem:[#allocation12_spill]] (!%p633_p9) }
  0x1d   : > { %s16530_s30 = sld [smem:[#allocation17_spill]] (!%p633_p9) }
  0x1e   : > { %s16533_s3 = sld [smem:[#allocation11_spill]] (!%p633_p9) }
  0x1f   : > { %s16537_s2 = sld [smem:[#allocation19_spill]] (!%p633_p9) }
  0x21   : > { %v13343_v0 = vld [vmem:[%s16528_s27 + $0x18] sm:$0xff]   ;;  %v13839_v1 = vmov 0   ;;  %v13840_v2 = vmov 0.0   ;;  %s14013_s0 = scalar_select %p701_p10, %s13979_s4, 1  ;;  %v13344_v3 = vld [vmem:[%s16528_s27 + $0x10] sm:$0xff]   ;;  %v715_v4 = vlaneseq  ;;  %v13345_v6 = vld [vmem:[%s16528_s27 + $0x8] sm:$0xff]  }
  0x22   : > { %13342 = vset.pattern.permute.xlu0 %v13839_v1  ;;  %12608 = vmatprep.subr.bf16.mxu0 %v13840_v2  ;;  %vm13841_vm0 = vmmov 0   ;;  %v13346_v9 = vld [vmem:[%s16528_s27] sm:$0xff]   ;;  %vm757_vm1 = vcmask 523264   ;;  %vm846_vm3 = vcmask 261120   ;;  %v10876_v25 = vld [vmem:[%s16484_s7 + $0x8] ss:$0 sm:$0xff] }
  0x23   : > { %12609 = vmatpush3.bf16.msra.mxu0 %v13343_v0  ;;  %12620 = vmatprep.subr.bf16.mxu1 %v13840_v2  ;;  %s10849_s26 = sshll.u32 %s14013_s0, 3  ;;  %s16531_s22 = smov %s16530_s30  ;;  %v13347_v7 = vld [vmem:[%s16530_s30 + $0x8] sm:$0xff]   ;;  %v14036_v8 = vand.u32 127, %v715_v4  ;;  %vm1086_vm4 = vcmask 1043456   ;;  %v10867_v37 = vld [vmem:[%s16484_s7 + $0x4] ss:$0 sm:$0xff] }
  0x24   : > { %12610 = vmatprep.subr.bf16.mxu0 %v13840_v2  ;;  %s707_s23 = scalar_lea.vmem %s16529_s29, %s10849_s26  ;;  %12616 = vmatprep.mubr.msk.bf16.mxu0 %vm13841_vm0, %v13840_v2  ;;  %v13348_v12 = vld [vmem:[%s16531_s22 + $0x88] sm:$0xff]   ;;  %v13349_v14 = vld [vmem:[%s16531_s22] sm:$0xff]   ;;  %s16532_s29 = sld [smem:[#allocation15_spill]]  ;;  %vm1023_vm5 = vcmask 64512   ;;  %v13353_v48 = vld [vmem:[%s16531_s22 + $0x18] sm:$0xff]   ;;  %v14134_v54 = vshrl.u32 %v715_v4, 7 }
  0x25   : > { %v714_v5 = vld [vmem:[%s707_s23] sm:$0xff]  ;;  %12624 = vmatprep.mubr.msk.bf16.mxu1 %vm13841_vm0, %v13840_v2  ;;  %12621 = vmatpush3.bf16.msra.mxu1 %v13347_v7  ;;  %v13351_v20 = vld [vmem:[%s16531_s22 + $0x48] sm:$0xff]   ;;  %v13354_v50 = vld [vmem:[%s16531_s22 + $0x10] sm:$0xff]   ;;  %s703_s30 = scalar_lea.vmem %s16533_s3, %s14013_s0  ;;  %s12007_s5 = sshll.u32 %s14013_s0, 4  ;;  %vm2526_vm8 = vcmask 130048  }
  0x26   : > { %718 = vperm.xlu0 %13342, %v714_v5   ;;  %12622 = vmatprep.subr.bf16.mxu1 %v13840_v2  ;;  %v13350_v15 = vld [vmem:[%s16531_s22 + $0x80] sm:$0xff]   ;;  %v13355_v51 = vld [vmem:[%s16531_s22 + $0x98] sm:$0xff]   ;;  %v13356_v52 = vld [vmem:[%s16531_s22 + $0x90] sm:$0xff]   ;;  %v14137_v55 = vsub.s32 0, %v14134_v54  ;;  %vm811_vm7 = vcmp.gt.s32.totalorder %v14036_v8, %v14134_v54  ;;  %s16535_s26 = sld [smem:[#allocation16_spill]]  ;;  %s698_s0 = sand.u32 1, %s13829_s28  }
  0x27   : > { %12611 = vmatpush3.bf16.msra.mxu0 %v13344_v3  ;;  %v13352_v24 = vld [vmem:[%s16531_s22 + $0x40] sm:$0xff]   ;;  %v812_v58 = vsel %vm811_vm7, -1e+09, %v13840_v2  ;;  %s12004_s3 = sshll.u32 %s13979_s4, 7  ;;  %s10751_s21 = scalar_lea.sflag [#allocation3], %s698_s0 }
  0x28   : > { %12612 = vmatprep.subr.bf16.mxu0 %v13840_v2  ;;  %v10858_v38 = vld [vmem:[%s16484_s7] ss:$0 sm:$0xff]  ;;  %s16436_s1 = scalar_lea.hbm %s16537_s2, %s12004_s3  ;;  %s13842_s4 = smov [#allocation2]  }
  0x29   : > { %12623 = vmatpush3.bf16.msra.mxu1 %v13349_v14  ;;  %v808_v53 = vld [vmem:[%s703_s30] sm:$0x1]  ;;  %s16534_s30 = sld [smem:[#allocation13_spill]] }
  0x2a   : > { %12628 = vmatprep.subr.bf16.mxu1 %v13840_v2  ;;  %v732_v16 = vld [vmem:[%s16532_s29] sm:$0xff]  ;;  %vm813_vm6 = vcmp.eq.s32.totalorder %v808_v53, 0  ;;  %s16536_s29 = sld [smem:[#allocation18_spill]] }
  0x2b   : > { %12613 = vmatpush3.bf16.msra.mxu0 %v13345_v6  ;;  %v814_v56 = vsel %vm813_vm6, -1e+09, %v13840_v2 }
  0x2c   : > { %12614 = vmatprep.subr.bf16.mxu0 %v13840_v2  ;;  %v819_v57 = vrot.slane %v814_v56, %v14137_v55 }
  0x2e   : > { %v14144_v59 = vadd.f32 %v819_v57, %v812_v58  ;;  %v10911_v58 = vld [vmem:[%s16485_s8 + $0x4] sm:$0xf] }
  0x2f   : > { %12615 = vmatpush3.bf16.msra.mxu0 %v13346_v9  ;;  %s712_s23 = scalar_lea.vmem %s16534_s30, %s12007_s5  ;;  %s10848_s5 = sshll.u32 %s698_s0, 3 }
  0x30   : > { %12636 = vmatprep.subr.bf16.mxu0 %v13840_v2  ;;  %s700_s30 = scalar_lea.vmem [#allocation2], %s10848_s5  ;;  %s13781_s5 = sshll.u32 %s13842_s4, 4  ;;  %s13782_s5 = int_to_ptr.vmem [resolvable:$false] %s13781_s5 }
  0xa1   : > { %v719_v10 = vpop.permute.xlu0 %718 }
  0xa2   : > { %vm720_vm2 = vcmp.eq.s32.totalorder %v719_v10, %v14036_v8  ;;  %v10905_v8 = vld [vmem:[%s16484_s7 + $0x9] ss:$0 sm:$0xff] }
  0xa3   : > { %v10852_v11 = vsel %vm720_vm2, 1.0, %v13840_v2 }
  0xa4   : > { %v723_v13 = vpack.c.bf16 %v10852_v11, %v10852_v11 }
  0xa6   : > { %12617 = vmatmul.mubr.msk.bf16.vlgmr.msra.gmra.mxu0 %vm757_vm1, %v723_v13 }
  0xa7   : > { %12637 = vmatpush3.bf16.msra.mxu0 %v13348_v12  ;;  %12640 = vmatprep.mubr.msk.bf16.mxu0 %vm13841_vm0, %v13840_v2 }
  0xa8   : > { %12638 = vmatprep.subr.bf16.mxu0 %v13840_v2 }
  0xab   : > { %12639 = vmatpush3.bf16.msra.mxu0 %v13350_v15 }
  0xac   : > { %12650 = vmatprep.subr.bf16.mxu0 %v13840_v2 }
 0x166   : > { %v795_v17 = vpop.f32.mrf.mxu0 }
 0x167   : > { %v14063_v18 = vadd.f32 %v795_v17, %v732_v16 }
 0x168   : > { %v12618_v19 = vpop.f32.mrf.mxu0 }
 0x169   : > { %v14070_v21 = vpack.c.bf16 %v14063_v18, %v14063_v18 }
 0x16a   : > { %v798_v22 = vpop.f32.mrf.mxu0 }
 0x16b   : > { %12625 = vmatmul.mubr.msk.bf16.vlgmr.msra.gmra.mxu1 %vm846_vm3, %v14070_v21  ;;  %12641 = vmatmul.mubr.msk.bf16.vlgmr.msra.gmra.mxu0 %vm846_vm3, %v14070_v21 }
 0x16c   : > { %v12619_v23 = vpop.f32.mrf.mxu0  ;;  %12629 = vmatpush3.bf16.msra.mxu1 %v13351_v20  ;;  %12632 = vmatprep.mubr.msk.bf16.mxu1 %vm13841_vm0, %v13840_v2 }
 0x16d   : > { %12630 = vmatprep.subr.bf16.mxu1 %v13840_v2  ;;  %12652 = vmatprep.mubr.msk.bf16.mxu0 %vm13841_vm0, %v13840_v2 }
 0x170   : > { %12631 = vmatpush3.bf16.msra.mxu1 %v13352_v24 }
 0x171   : > { %12644 = vmatprep.subr.bf16.mxu1 %v13840_v2 }
 0x173   : > { %12633 = vmatmul.mubr.msk.bf16.vlgmr.msra.gmra.mxu1 %vm846_vm3, %v14070_v21 }
 0x174   : > { %12646 = vmatprep.mubr.msk.bf16.mxu1 %vm13841_vm0, %v13840_v2 }
 0x22b   : > { %v884_v26 = vpop.f32.mrf.mxu1  ;;  %v1014_v27 = vpop.f32.mrf.mxu0 }
 0x22c   : > { %v1015_v28 = vadd.f32 %v10876_v25, %v1014_v27  ;;  %v885_v42 = vadd.f32 %v10858_v38, %v884_v26  ;;  %v13357_v26 = vld [vmem:[%s16531_s22 + $0x58] sm:$0xff]  }
 0x22d   : > { %v12626_v29 = vpop.f32.mrf.mxu1  ;;  %v12642_v30 = vpop.f32.mrf.mxu0 }
 0x22e   : > { %v1082_v31 = vpack.c.bf16 %v1015_v28, %v1015_v28  ;;  %v1020_v47 = vmul.f32 0.35355338, %v885_v42  ;;  %v13358_v28 = vld [vmem:[%s16531_s22 + $0x50] sm:$0xff]  }
 0x22f   : > { %v887_v32 = vpop.f32.mrf.mxu1  ;;  %v1017_v33 = vpop.f32.mrf.mxu0 }
 0x230   : > { %v1088_v34 = vsel %vm1086_vm4, %v1082_v31, 0  ;;  %v1021_v49 = vpack.c.bf16 %v1020_v47, %v1020_v47  ;;  %v10896_v33 = vld [vmem:[%s16484_s7 + $0x5] ss:$0 sm:$0xff] }
 0x231   : > { %v12627_v35 = vpop.f32.mrf.mxu1  ;;  %v12643_v36 = vpop.f32.mrf.mxu0  ;;  %12651 = vmatpush3.bf16.msra.mxu0 %v1088_v34  ;;  %v10887_v34 = vld [vmem:[%s16484_s7 + $0x1] ss:$0 sm:$0xff] }
 0x232   : > { %12664 = vmatprep.subr.bf16.mxu0 %v13840_v2 }
 0x233   : > { %v949_v39 = vpop.f32.mrf.mxu1 }
 0x234   : > { %v950_v40 = vadd.f32 %v10867_v37, %v949_v39 }
 0x235   : > { %v12634_v41 = vpop.f32.mrf.mxu1 }
 0x236   : > { %v1022_v43 = vpack.c.bf16 %v950_v40, %v950_v40 }
 0x237   : > { %v952_v44 = vpop.f32.mrf.mxu1 }
 0x238   : > { %v1028_v45 = vsel %vm1023_vm5, %v1022_v43, 0 }
 0x239   : > { %v12635_v46 = vpop.f32.mrf.mxu1  ;;  %12645 = vmatpush3.bf16.xpose.msra.mxu1 %v1028_v45 }
 0x23a   : > { %12656 = vmatprep.subr.bf16.mxu1 %v13840_v2 }
 0x240   : > { %12647 = vmatmul.mubr.msk.bf16.vlgmr.msra.gmra.mxu1 %vm1023_vm5, %v1021_v49 }
 0x241   : > { %12657 = vmatpush3.bf16.msra.mxu1 %v13353_v48  ;;  %12660 = vmatprep.mubr.msk.bf16.mxu1 %vm13841_vm0, %v13840_v2 }
 0x242   : > { %12658 = vmatprep.subr.bf16.mxu1 %v13840_v2 }
 0x245   : > { %12659 = vmatpush3.bf16.msra.mxu1 %v13354_v50 }
 0x246   : > { %12672 = vmatprep.subr.bf16.mxu1 %v13840_v2 }
 0x248   : > { %12661 = vmatmul.mubr.msk.bf16.vlgmr.msra.gmra.mxu1 %vm846_vm3, %v14070_v21 }
 0x249   : > { %12673 = vmatpush3.bf16.msra.mxu1 %v13355_v51  ;;  %12676 = vmatprep.mubr.msk.bf16.mxu1 %vm13841_vm0, %v13840_v2 }
 0x24a   : > { %12674 = vmatprep.subr.bf16.mxu1 %v13840_v2 }
 0x24d   : > { %12675 = vmatpush3.bf16.msra.mxu1 %v13356_v52 }
 0x24e   : > { %12686 = vmatprep.subr.bf16.mxu1 %v13840_v2 }
 0x250   : > { %12677 = vmatmul.mubr.msk.bf16.vlgmr.msra.gmra.mxu1 %vm846_vm3, %v14070_v21 }
 0x251   : > { %12688 = vmatprep.mubr.msk.bf16.mxu1 %vm13841_vm0, %v13840_v2 }
 0x300   : > { %v1064_v60 = vpop.f32.mrf.mxu1 }
 0x301   : > { %v1065_v61 = vadd.f32 %v1064_v60, %v14144_v59  ;;  %v1442_v60 = vsel %vm1086_vm4, %v10911_v58, 0 }
 0x302   : > { %v12648_v62 = vpop.f32.mrf.mxu1 }
 0x303   : > { %v1070_v63 = vsel %vm1023_vm5, %v1065_v61, -inf }
 0x304   : > { %v1067_v0 = vpop.f32.mrf.mxu1  ;;  %1071 = vmax.xlane.f32.xlu0 %v1070_v63  ;;  %v1131_v63 = vld [vmem:[%s16485_s8] sm:$0xf] }
 0x306   : > { %v12649_v3 = vpop.f32.mrf.mxu1 }
 0x308   : > { %v1191_v4 = vpop.f32.mrf.mxu1 }
 0x309   : > { %v1192_v38 = vadd.f32 %v10887_v34, %v1191_v4  ;;  %v1488_v4 = vsel %vm1086_vm4, %v1131_v63, 0 }
 0x30a   : > { %v12662_v5 = vpop.f32.mrf.mxu1 }
 0x30b   : > { %v1327_v43 = vmul.f32 0.35355338, %v1192_v38  ;;  %v13359_v5 = vld [vmem:[%s16531_s22 + $0x68] sm:$0xff]  }
 0x30c   : > { %v1194_v6 = vpop.f32.mrf.mxu1 }
 0x30d   : > { %v1328_v44 = vpack.c.bf16 %v1327_v43, %v1327_v43  ;;  %v10937_v43 = vld [vmem:[%s16484_s7 + $0xa] ss:$0 sm:$0xff] }
 0x30e   : > { %v12663_v7 = vpop.f32.mrf.mxu1 }
 0x30f   : > { %v13360_v7 = vld [vmem:[%s16531_s22 + $0x60] sm:$0xff]  }
 0x310   : > { %v1321_v9 = vpop.f32.mrf.mxu1 }
 0x311   : > { %v1322_v10 = vadd.f32 %v10905_v8, %v1321_v9  ;;  %v13361_v9 = vld [vmem:[%s16531_s22 + $0x28] sm:$0xff]  }
 0x312   : > { %v12678_v11 = vpop.f32.mrf.mxu1 }
 0x313   : > { %v1388_v12 = vpack.c.bf16 %v1322_v10, %v1322_v10 }
 0x314   : > { %v1324_v13 = vpop.f32.mrf.mxu1 }
 0x315   : > { %v1393_v14 = vsel %vm1086_vm4, %v1388_v12, 0  ;;  %v13362_v13 = vld [vmem:[%s16531_s22 + $0x20] sm:$0xff]  }
 0x316   : > { %v12679_v15 = vpop.f32.mrf.mxu1  ;;  %12687 = vmatpush3.bf16.msra.mxu1 %v1393_v14 }
 0x317   : > { %12698 = vmatprep.subr.bf16.mxu1 %v13840_v2 }
 0x38d   : > { %v1072_v16 = vpop.xlane.xlu0 %1071 }
 0x38e   : > { %v1073_v17 = vsub.f32 %v1065_v61, %v1072_v16  ;;  %v13363_v16 = vld [vmem:[%s16531_s22 + $0xa8] sm:$0xff]  }
 0x390   : > { %v1074_v19 = vmul.f32 1.442695, %v1073_v17 }
 0x392   : > { %13701 = vpow2.f32 %v1074_v19 }
 0x39f   : > { %v13702_v20 = vpop.eup %13701 }
 0x3a0   : > { %v1076_v22 = vsel %vm1023_vm5, %v13702_v20, 0.0 }
 0x3a1   : > { %1077 = vadd.xlane.f32.xlu1 %v1076_v22 }
 0x42a   : > { %v1078_v23 = vpop.xlane.xlu1 %1077 }
 0x42b   : > { %13703 = vrcp.f32 %v1078_v23  ;;  %v10928_v23 = vld [vmem:[%s16484_s7 + $0x6] ss:$0 sm:$0xff] }
 0x438   : > { %v13704_v24 = vpop.eup %13703 }
 0x439   : > { %v1080_v25 = vmul.f32 %v13704_v24, %v13702_v20  ;;  %v13364_v20 = vld [vmem:[%s16531_s22 + $0xa0] sm:$0xff]  }
 0x43b   : > { %v1081_v27 = vpack.c.bf16 %v1080_v25, %v1080_v25 }
 0x43d   : > { %12653 = vmatmul.mubr.msk.bf16.vlgmr.msra.gmra.mxu0 %vm1023_vm5, %v1081_v27 }
 0x43e   : > { %12665 = vmatpush3.bf16.msra.mxu0 %v13357_v26  ;;  %12668 = vmatprep.mubr.msk.bf16.mxu0 %vm13841_vm0, %v13840_v2 }
 0x43f   : > { %12666 = vmatprep.subr.bf16.mxu0 %v13840_v2 }
 0x442   : > { %12667 = vmatpush3.bf16.msra.mxu0 %v13358_v28 }
 0x443   : > { %12680 = vmatprep.subr.bf16.mxu0 %v13840_v2 }
 0x445   : > { %12669 = vmatmul.mubr.msk.bf16.vlgmr.msra.gmra.mxu0 %vm846_vm3, %v14070_v21 }
 0x446   : > { %12682 = vmatprep.mubr.msk.bf16.mxu0 %vm13841_vm0, %v13840_v2 }
 0x4fd   : > { %v1124_v29 = vpop.f32.mrf.mxu0 }
 0x4fe   : > { %v1130_v6 = vpack.c.bf16 %v1124_v29, %v1124_v29 }
 0x4ff   : > { %v12654_v30 = vpop.f32.mrf.mxu0 }
 0x501   : > { %v1127_v31 = vpop.f32.mrf.mxu0 }
 0x503   : > { %v12655_v32 = vpop.f32.mrf.mxu0 }
 0x505   : > { %v1256_v35 = vpop.f32.mrf.mxu0 }
 0x506   : > { %v1257_v36 = vadd.f32 %v10896_v33, %v1256_v35  ;;  %v10919_v35 = vld [vmem:[%s16484_s7 + $0x2] ss:$0 sm:$0xff] }
 0x507   : > { %v12670_v37 = vpop.f32.mrf.mxu0 }
 0x508   : > { %v1329_v39 = vpack.c.bf16 %v1257_v36, %v1257_v36 }
 0x509   : > { %v1259_v40 = vpop.f32.mrf.mxu0 }
 0x50a   : > { %v1334_v41 = vsel %vm1023_vm5, %v1329_v39, 0 }
 0x50b   : > { %v12671_v42 = vpop.f32.mrf.mxu0  ;;  %12681 = vmatpush3.bf16.xpose.msra.mxu0 %v1334_v41 }
 0x50c   : > { %12692 = vmatprep.subr.bf16.mxu0 %v13840_v2 }
 0x512   : > { %12683 = vmatmul.mubr.msk.bf16.vlgmr.msra.gmra.mxu0 %vm1023_vm5, %v1328_v44 }
 0x513   : > { %12694 = vmatprep.mubr.msk.bf16.mxu0 %vm13841_vm0, %v13840_v2  ;;  %12693 = vmatpush3.bf16.msra.mxu0 %v1442_v60 }
 0x514   : > { %12704 = vmatprep.subr.bf16.mxu0 %v13840_v2 }
 0x5d2   : > { %v1370_v45 = vpop.f32.mrf.mxu0 }
 0x5d3   : > { %v1371_v46 = vadd.f32 %v1370_v45, %v14144_v59 }
 0x5d4   : > { %v12684_v47 = vpop.f32.mrf.mxu0 }
 0x5d5   : > { %v1376_v48 = vsel %vm1023_vm5, %v1371_v46, -inf }
 0x5d6   : > { %1377 = vmax.xlane.f32.xlu1 %v1376_v48  ;;  %v1373_v49 = vpop.f32.mrf.mxu0 }
 0x5d8   : > { %v12685_v50 = vpop.f32.mrf.mxu0 }
 0x65f   : > { %v1378_v51 = vpop.xlane.xlu1 %1377 }
 0x660   : > { %v1379_v52 = vsub.f32 %v1371_v46, %v1378_v51 }
 0x662   : > { %v1380_v53 = vmul.f32 1.442695, %v1379_v52 }
 0x664   : > { %13705 = vpow2.f32 %v1380_v53 }
 0x671   : > { %v13706_v56 = vpop.eup %13705 }
 0x672   : > { %v1382_v57 = vsel %vm1023_vm5, %v13706_v56, 0.0 }
 0x673   : > { %1383 = vadd.xlane.f32.xlu1 %v1382_v57 }
 0x6fc   : > { %v1384_v61 = vpop.xlane.xlu1 %1383 }
 0x6fd   : > { %13707 = vrcp.f32 %v1384_v61 }
 0x70a   : > { %v13708_v62 = vpop.eup %13707 }
 0x70b   : > { %v1386_v0 = vmul.f32 %v13708_v62, %v13706_v56 }
 0x70d   : > { %v1387_v3 = vpack.c.bf16 %v1386_v0, %v1386_v0 }
 0x70f   : > { %12689 = vmatmul.mubr.msk.bf16.vlgmr.msra.gmra.mxu1 %vm1023_vm5, %v1387_v3  ;;  %v10943_v3 = vld [vmem:[%s16485_s8 + $0x8] sm:$0xf] }
 0x710   : > { %12699 = vmatpush3.bf16.msra.mxu1 %v1488_v4  ;;  %12700 = vmatprep.mubr.msk.bf16.mxu1 %vm13841_vm0, %v13840_v2  ;;  %v1840_v4 = vsel %vm1086_vm4, %v10943_v3, 0  ;;  %v10974_v3 = vld [vmem:[%s16485_s8 + $0xc] sm:$0xf] }
 0x711   : > { %12712 = vmatprep.subr.bf16.mxu1 %v13840_v2 }
 0x717   : > { %12701 = vmatmul.mubr.msk.bf16.vlgmr.msra.gmra.mxu1 %vm1023_vm5, %v1130_v6 }
 0x718   : > { %12713 = vmatpush3.bf16.msra.mxu1 %v13359_v5  ;;  %12716 = vmatprep.mubr.msk.bf16.mxu1 %vm13841_vm0, %v13840_v2 }
 0x719   : > { %12714 = vmatprep.subr.bf16.mxu1 %v13840_v2 }
 0x71c   : > { %12715 = vmatpush3.bf16.msra.mxu1 %v13360_v7 }
 0x71d   : > { %12728 = vmatprep.subr.bf16.mxu1 %v13840_v2 }
 0x71f   : > { %12717 = vmatmul.mubr.msk.bf16.vlgmr.msra.gmra.mxu1 %vm846_vm3, %v14070_v21 }
 0x720   : > { %12730 = vmatprep.mubr.msk.bf16.mxu1 %vm13841_vm0, %v13840_v2 }
 0x7cf   : > { %v1429_v8 = vpop.f32.mrf.mxu1 }
 0x7d0   : > { %v1435_v10 = vpack.c.bf16 %v1429_v8, %v1429_v8  ;;  %v13365_v8 = vld [vmem:[%s16531_s22 + $0x38] sm:$0xff]  }
 0x7d1   : > { %v12690_v11 = vpop.f32.mrf.mxu1 }
 0x7d2   : > { %12695 = vmatmul.mubr.msk.bf16.vlgmr.msra.gmra.mxu0 %vm1023_vm5, %v1435_v10  ;;  %v13366_v10 = vld [vmem:[%s16531_s22 + $0x30] sm:$0xff]   ;;  %v13367_v11 = vld [vmem:[%s16531_s22 + $0xb8] sm:$0xff]  }
 0x7d3   : > { %v1432_v12 = vpop.f32.mrf.mxu1  ;;  %12705 = vmatpush3.bf16.msra.mxu0 %v13361_v9  ;;  %12708 = vmatprep.mubr.msk.bf16.mxu0 %vm13841_vm0, %v13840_v2 }
 0x7d4   : > { %12706 = vmatprep.subr.bf16.mxu0 %v13840_v2  ;;  %v13368_v12 = vld [vmem:[%s16531_s22 + $0xb0] sm:$0xff]  }
 0x7d5   : > { %v12691_v14 = vpop.f32.mrf.mxu1 }
 0x7d6   : > { %v13369_v14 = vld [vmem:[%s16531_s22 + $0x78] sm:$0xff]  }
 0x7d7   : > { %v14221_v15 = vpop.f32.mrf.mxu1  ;;  %12707 = vmatpush3.bf16.msra.mxu0 %v13362_v13 }
 0x7d8   : > { %12720 = vmatprep.subr.bf16.mxu0 %v13840_v2 }
 0x7d9   : > { %v12702_v17 = vpop.f32.mrf.mxu1 }
 0x7da   : > { %12709 = vmatmul.mubr.msk.bf16.vlgmr.msra.gmra.mxu0 %vm846_vm3, %v14070_v21 }
 0x7db   : > { %v1527_v19 = vpop.f32.mrf.mxu1  ;;  %12721 = vmatpush3.bf16.msra.mxu0 %v13363_v16  ;;  %12724 = vmatprep.mubr.msk.bf16.mxu0 %vm13841_vm0, %v13840_v2 }
 0x7dc   : > { %12722 = vmatprep.subr.bf16.mxu0 %v13840_v2 }
 0x7dd   : > { %v12703_v22 = vpop.f32.mrf.mxu1 }
 0x7df   : > { %v1654_v24 = vpop.f32.mrf.mxu1  ;;  %12723 = vmatpush3.bf16.msra.mxu0 %v13364_v20  ;;  %v13370_v20 = vld [vmem:[%s16531_s22 + $0x70] sm:$0xff]  }
 0x7e0   : > { %v1655_v25 = vadd.f32 %v10928_v23, %v1654_v24  ;;  %12734 = vmatprep.subr.bf16.mxu0 %v13840_v2 }
 0x7e1   : > { %v12718_v26 = vpop.f32.mrf.mxu1 }
 0x7e2   : > { %v1727_v27 = vpack.c.bf16 %v1655_v25, %v1655_v25  ;;  %12725 = vmatmul.mubr.msk.bf16.vlgmr.msra.gmra.mxu0 %vm846_vm3, %v14070_v21 }
 0x7e3   : > { %v1657_v28 = vpop.f32.mrf.mxu1  ;;  %12736 = vmatprep.mubr.msk.bf16.mxu0 %vm13841_vm0, %v13840_v2 }
 0x7e4   : > { %v1732_v29 = vsel %vm1023_vm5, %v1727_v27, 0  ;;  %v10968_v27 = vld [vmem:[%s16484_s7 + $0xb] ss:$0 sm:$0xff] }
 0x7e5   : > { %v12719_v30 = vpop.f32.mrf.mxu1  ;;  %12729 = vmatpush3.bf16.xpose.msra.mxu1 %v1732_v29 }
 0x7e6   : > { %12740 = vmatprep.subr.bf16.mxu1 %v13840_v2 }
 0x892   : > { %v14245_v31 = vpop.f32.mrf.mxu0 }
 0x894   : > { %v12696_v32 = vpop.f32.mrf.mxu0 }
 0x896   : > { %v1481_v33 = vpop.f32.mrf.mxu0 }
 0x898   : > { %v12697_v34 = vpop.f32.mrf.mxu0 }
 0x89a   : > { %v1589_v36 = vpop.f32.mrf.mxu0 }
 0x89b   : > { %v1590_v37 = vadd.f32 %v10919_v35, %v1589_v36 }
 0x89c   : > { %v12710_v38 = vpop.f32.mrf.mxu0 }
 0x89d   : > { %v1725_v39 = vmul.f32 0.35355338, %v1590_v37 }
 0x89e   : > { %v1592_v40 = vpop.f32.mrf.mxu0 }
 0x89f   : > { %v1726_v41 = vpack.c.bf16 %v1725_v39, %v1725_v39 }
 0x8a0   : > { %v12711_v42 = vpop.f32.mrf.mxu0 }
 0x8a1   : > { %12731 = vmatmul.mubr.msk.bf16.vlgmr.msra.gmra.mxu1 %vm1023_vm5, %v1726_v41  ;;  %v10959_v41 = vld [vmem:[%s16484_s7 + $0x7] ss:$0 sm:$0xff]  ;;  %v10950_v42 = vld [vmem:[%s16484_s7 + $0x3] ss:$0 sm:$0xff] }
 0x8a2   : > { %v1719_v44 = vpop.f32.mrf.mxu0  ;;  %12742 = vmatprep.mubr.msk.bf16.mxu1 %vm13841_vm0, %v13840_v2  ;;  %12741 = vmatpush3.bf16.msra.mxu1 %v1840_v4  ;;  %v2193_v4 = vsel %vm1086_vm4, %v10974_v3, 0 }
 0x8a3   : > { %v1720_v45 = vadd.f32 %v10937_v43, %v1719_v44  ;;  %12754 = vmatprep.subr.bf16.mxu1 %v13840_v2 }
 0x8a4   : > { %v12726_v46 = vpop.f32.mrf.mxu0 }
 0x8a5   : > { %v1786_v47 = vpack.c.bf16 %v1720_v45, %v1720_v45 }
 0x8a6   : > { %v1722_v48 = vpop.f32.mrf.mxu0 }
 0x8a7   : > { %v1791_v49 = vsel %vm1086_vm4, %v1786_v47, 0 }
 0x8a8   : > { %v12727_v50 = vpop.f32.mrf.mxu0  ;;  %12735 = vmatpush3.bf16.msra.mxu0 %v1791_v49 }
 0x8a9   : > { %12746 = vmatprep.subr.bf16.mxu0 %v13840_v2 }
 0x961   : > { %v1768_v51 = vpop.f32.mrf.mxu1 }
 0x962   : > { %v1769_v52 = vadd.f32 %v1768_v51, %v14144_v59 }
 0x963   : > { %v12732_v53 = vpop.f32.mrf.mxu1 }
 0x964   : > { %v1774_v56 = vsel %vm1023_vm5, %v1769_v52, -inf }
 0x965   : > { %1775 = vmax.xlane.f32.xlu1 %v1774_v56  ;;  %v1771_v57 = vpop.f32.mrf.mxu1 }
 0x967   : > { %v12733_v58 = vpop.f32.mrf.mxu1 }
 0x9ee   : > { %v1776_v60 = vpop.xlane.xlu1 %1775 }
 0x9ef   : > { %v1777_v61 = vsub.f32 %v1769_v52, %v1776_v60 }
 0x9f1   : > { %v1778_v62 = vmul.f32 1.442695, %v1777_v61 }
 0x9f3   : > { %13709 = vpow2.f32 %v1778_v62 }
 0xa00   : > { %v13710_v63 = vpop.eup %13709 }
 0xa01   : > { %v1780_v0 = vsel %vm1023_vm5, %v13710_v63, 0.0 }
 0xa02   : > { %1781 = vadd.xlane.f32.xlu1 %v1780_v0 }
 0xa8b   : > { %v1782_v5 = vpop.xlane.xlu1 %1781 }
 0xa8c   : > { %13711 = vrcp.f32 %v1782_v5 }
 0xa99   : > { %v13712_v6 = vpop.eup %13711 }
 0xa9a   : > { %v1784_v7 = vmul.f32 %v13712_v6, %v13710_v63 }
 0xa9c   : > { %v1785_v9 = vpack.c.bf16 %v1784_v7, %v1784_v7 }
 0xa9e   : > { %12737 = vmatmul.mubr.msk.bf16.vlgmr.msra.gmra.mxu0 %vm1023_vm5, %v1785_v9 }
 0xa9f   : > { %12747 = vmatpush3.bf16.msra.mxu0 %v13365_v8  ;;  %12750 = vmatprep.mubr.msk.bf16.mxu0 %vm13841_vm0, %v13840_v2 }
 0xaa0   : > { %12748 = vmatprep.subr.bf16.mxu0 %v13840_v2 }
 0xaa3   : > { %12749 = vmatpush3.bf16.msra.mxu0 %v13366_v10 }
 0xaa4   : > { %12762 = vmatprep.subr.bf16.mxu0 %v13840_v2 }
 0xaa6   : > { %12751 = vmatmul.mubr.msk.bf16.vlgmr.msra.gmra.mxu0 %vm846_vm3, %v14070_v21 }
 0xaa7   : > { %12763 = vmatpush3.bf16.msra.mxu0 %v13367_v11  ;;  %12766 = vmatprep.mubr.msk.bf16.mxu0 %vm13841_vm0, %v13840_v2 }
 0xaa8   : > { %12764 = vmatprep.subr.bf16.mxu0 %v13840_v2 }
 0xaab   : > { %12765 = vmatpush3.bf16.msra.mxu0 %v13368_v12 }
 0xaac   : > { %12776 = vmatprep.subr.bf16.mxu0 %v13840_v2 }
 0xaae   : > { %12767 = vmatmul.mubr.msk.bf16.vlgmr.msra.gmra.mxu0 %vm846_vm3, %v14070_v21 }
 0xaaf   : > { %12778 = vmatprep.mubr.msk.bf16.mxu0 %vm13841_vm0, %v13840_v2 }
 0xb5e   : > { %v1827_v13 = vpop.f32.mrf.mxu0 }
 0xb5f   : > { %v1833_v16 = vpack.c.bf16 %v1827_v13, %v1827_v13 }
 0xb60   : > { %v12738_v17 = vpop.f32.mrf.mxu0 }
 0xb61   : > { %12743 = vmatmul.mubr.msk.bf16.vlgmr.msra.gmra.mxu1 %vm1023_vm5, %v1833_v16  ;;  %v10976_v16 = vld [vmem:[%s16486_s9] ss:$0 sm:$0xff] }
 0xb62   : > { %v1830_v19 = vpop.f32.mrf.mxu0  ;;  %12755 = vmatpush3.bf16.msra.mxu1 %v13369_v14  ;;  %12758 = vmatprep.mubr.msk.bf16.mxu1 %vm13841_vm0, %v13840_v2 }
 0xb63   : > { %12756 = vmatprep.subr.bf16.mxu1 %v13840_v2 }
 0xb64   : > { %v12739_v22 = vpop.f32.mrf.mxu0 }
 0xb66   : > { %v1942_v23 = vpop.f32.mrf.mxu0  ;;  %12757 = vmatpush3.bf16.msra.mxu1 %v13370_v20 }
 0xb67   : > { %12770 = vmatprep.subr.bf16.mxu1 %v13840_v2  ;;  %v1943_v46 = vadd.f32 %v10950_v42, %v1942_v23 }
 0xb68   : > { %v12752_v24 = vpop.f32.mrf.mxu0 }
 0xb69   : > { %12759 = vmatmul.mubr.msk.bf16.vlgmr.msra.gmra.mxu1 %vm846_vm3, %v14070_v21  ;;  %v1525_v21 = vadd.f32 %v14221_v15, %v14245_v31  ;;  %v2078_v49 = vmul.f32 0.35355338, %v1943_v46 }
 0xb6a   : > { %v1945_v25 = vpop.f32.mrf.mxu0  ;;  %12772 = vmatprep.mubr.msk.bf16.mxu1 %vm13841_vm0, %v13840_v2 }
 0xb6b   : > { %v2079_v50 = vpack.c.bf16 %v2078_v49, %v2078_v49  ;;  %v10988_v49 = vld [vmem:[%s16488_s11 + $0x4] ss:$0 sm:$0xff] }
 0xb6c   : > { %v12753_v26 = vpop.f32.mrf.mxu0 }
 0xb6e   : > { %v2072_v28 = vpop.f32.mrf.mxu0 }
 0xb6f   : > { %v2073_v29 = vadd.f32 %v10968_v27, %v2072_v28 }
 0xb70   : > { %v12768_v30 = vpop.f32.mrf.mxu0 }
 0xb71   : > { %v2139_v32 = vpack.c.bf16 %v2073_v29, %v2073_v29 }
 0xb72   : > { %v2075_v33 = vpop.f32.mrf.mxu0 }
 0xb73   : > { %v2144_v34 = vsel %vm1086_vm4, %v2139_v32, 0  ;;  %v801_v32 = vld [vmem:[%s712_s23] sm:$0xff]  ;;  %v802_v33 = vld [vmem:[%s712_s23 + $0x8] sm:$0xff]  ;;  %s10764_s23 = sshll.u32 %s700_s30, 4  ;;  %s16438_s23 = int_to_ptr.vmem [resolvable:$true] %s10764_s23 }
 0xb74   : > { %v12769_v35 = vpop.f32.mrf.mxu0  ;;  %12777 = vmatpush3.bf16.msra.mxu0 %v2144_v34  ;;  %v804_v34 = vld [vmem:[%s16535_s26 + $0x8] sm:$0xff]  ;;  %s13777_s27 = scalar_lea.vmem %s16438_s23, 128  ;;  %p13784_p0 = scmp.lt.s32.totalorder %s16438_s23, %s13782_s5 }
 0xb75   : > { %12788 = vmatprep.subr.bf16.mxu0 %v13840_v2  ;;  %v13371_v35 = vld [vmem:[%s16487_s10 + $0x48] sm:$0xff]   ;;  %p13778_p11 = scmp.ne.s32.totalorder %s16438_s23, %s13777_s27 }
 0xb77   : > { %p13779_p12 = pnand %p13778_p11, %p13996_p5 }
 0xb79   : > { %p13780_p13 = pneg %p13779_p12 }
 0xc21   : > { %v1876_v36 = vpop.f32.mrf.mxu1 }
 0xc22   : > { %v1882_v37 = vadd.f32 %v1876_v36, %v1525_v21  ;;  %v806_v36 = vadd.f32 %v804_v34, %v802_v33 }
 0xc23   : > { %v12744_v38 = vpop.f32.mrf.mxu1 }
 0xc25   : > { %v1879_v39 = vpop.f32.mrf.mxu1 }
 0xc26   : > { %v13373_v39 = vld [vmem:[%s16487_s10 + $0x8] sm:$0xff]  }
 0xc27   : > { %v12745_v40 = vpop.f32.mrf.mxu1 }
 0xc28   : > { %v13374_v40 = vld [vmem:[%s16487_s10] sm:$0xff]  }
 0xc29   : > { %v2007_v43 = vpop.f32.mrf.mxu1 }
 0xc2a   : > { %v2008_v44 = vadd.f32 %v10959_v41, %v2007_v43 }
 0xc2b   : > { %v12760_v45 = vpop.f32.mrf.mxu1 }
 0xc2c   : > { %v2080_v47 = vpack.c.bf16 %v2008_v44, %v2008_v44  ;;  %v10977_v45 = vld [vmem:[%s16495_s18] ss:$0 sm:$0xff] }
 0xc2d   : > { %v2010_v48 = vpop.f32.mrf.mxu1 }
 0xc2e   : > { %v2085_v15 = vsel %vm1023_vm5, %v2080_v47, 0  ;;  %v10978_v47 = vld [vmem:[%s16496_s19] ss:$0 sm:$0xff] }
 0xc2f   : > { %v12761_v31 = vpop.f32.mrf.mxu1  ;;  %12771 = vmatpush3.bf16.xpose.msra.mxu1 %v2085_v15 }
 0xc30   : > { %12782 = vmatprep.subr.bf16.mxu1 %v13840_v2 }
 0xc36   : > { %12773 = vmatmul.mubr.msk.bf16.vlgmr.msra.gmra.mxu1 %vm1023_vm5, %v2079_v50 }
 0xc37   : > { %12784 = vmatprep.mubr.msk.bf16.mxu1 %vm13841_vm0, %v13840_v2  ;;  %12783 = vmatpush3.bf16.msra.mxu1 %v2193_v4 }
 0xc38   : > { %12796 = vmatprep.subr.bf16.mxu1 %v13840_v2 }
 0xcf6   : > { %v2121_v51 = vpop.f32.mrf.mxu1 }
 0xcf7   : > { %v2122_v52 = vadd.f32 %v2121_v51, %v14144_v59 }
 0xcf8   : > { %v12774_v53 = vpop.f32.mrf.mxu1 }
 0xcf9   : > { %v2127_v56 = vsel %vm1023_vm5, %v2122_v52, -inf }
 0xcfa   : > { %2128 = vmax.xlane.f32.xlu1 %v2127_v56  ;;  %v2124_v57 = vpop.f32.mrf.mxu1 }
 0xcfc   : > { %v12775_v58 = vpop.f32.mrf.mxu1 }
 0xd83   : > { %v2129_v60 = vpop.xlane.xlu1 %2128 }
 0xd84   : > { %v2130_v61 = vsub.f32 %v2122_v52, %v2129_v60 }
 0xd86   : > { %v2131_v62 = vmul.f32 1.442695, %v2130_v61  ;;  %v10979_v61 = vld [vmem:[%s16488_s11] ss:$0 sm:$0xff] }
 0xd88   : > { %13713 = vpow2.f32 %v2131_v62 }
 0xd95   : > { %v13714_v63 = vpop.eup %13713 }
 0xd96   : > { %v2133_v0 = vsel %vm1023_vm5, %v13714_v63, 0.0 }
 0xd97   : > { %2134 = vadd.xlane.f32.xlu1 %v2133_v0 }
 0xe20   : > { %v2135_v5 = vpop.xlane.xlu1 %2134 }
 0xe21   : > { %13715 = vrcp.f32 %v2135_v5  ;;  %v13375_v5 = vld [vmem:[%s16487_s10 + $0x18] sm:$0xff]  }
 0xe2e   : > { %v13716_v6 = vpop.eup %13715 }
 0xe2f   : > { %v2137_v7 = vmul.f32 %v13716_v6, %v13714_v63 }
 0xe31   : > { %v2138_v8 = vpack.c.bf16 %v2137_v7, %v2137_v7 }
 0xe33   : > { %12779 = vmatmul.mubr.msk.bf16.vlgmr.msra.gmra.mxu0 %vm1023_vm5, %v2138_v8  ;;  %v13376_v8 = vld [vmem:[%s16487_s10 + $0x10] sm:$0xff]  }
 0xe34   : > { %12792 = vmatprep.mubr.msk.bf16.mxu0 %vm13841_vm0, %v13840_v2  ;;  %12789 = vmatpush3.bf16.msra.mxu0 %v13373_v39  ;;  %v13379_v39 = vld [vmem:[%s16487_s10 + $0x58] sm:$0xff]  }
 0xe35   : > { %12790 = vmatprep.subr.bf16.mxu0 %v13840_v2 }
 0xe38   : > { %12791 = vmatpush3.bf16.msra.mxu0 %v13374_v40 }
 0xe39   : > { %12804 = vmatprep.subr.bf16.mxu0 %v13840_v2 }
 0xef3   : > { %v2180_v9 = vpop.f32.mrf.mxu0 }
 0xef4   : > { %v2186_v10 = vpack.c.bf16 %v2180_v9, %v2180_v9  ;;  %v13377_v9 = vld [vmem:[%s16487_s10 + $0x88] sm:$0xff]  }
 0xef5   : > { %v12780_v11 = vpop.f32.mrf.mxu0 }
 0xef6   : > { %12785 = vmatmul.mubr.msk.bf16.vlgmr.msra.gmra.mxu1 %vm1023_vm5, %v2186_v10  ;;  %v13378_v10 = vld [vmem:[%s16487_s10 + $0x80] sm:$0xff]  }
 0xef7   : > { %v2183_v12 = vpop.f32.mrf.mxu0  ;;  %12800 = vmatprep.mubr.msk.bf16.mxu1 %vm13841_vm0, %v13840_v2  ;;  %12797 = vmatpush3.bf16.msra.mxu1 %v13371_v35 }
 0xef8   : > { %12798 = vmatprep.subr.bf16.mxu1 %v13840_v2 }
 0xef9   : > { %v12781_v13 = vpop.f32.mrf.mxu0 }
 0xfb6   : > { %v2229_v14 = vpop.f32.mrf.mxu1 }
 0xfb7   : > { %v2235_v17 = vadd.f32 %v2229_v14, %v1882_v37  ;;  %v13372_v37 = vld [vmem:[%s16487_s10 + $0x40] sm:$0xff]  }
 0xfb8   : > { %v12786_v19 = vpop.f32.mrf.mxu1  ;;  %12799 = vmatpush3.bf16.msra.mxu1 %v13372_v37 }
 0xfb9   : > { %v2243_v20 = vadd.f32 %v10976_v16, %v2235_v17  ;;  %12812 = vmatprep.subr.bf16.mxu1 %v13840_v2 }
 0xfba   : > { %v2232_v22 = vpop.f32.mrf.mxu1 }
 0xfbb   : > { %v2244_v23 = vadd.f32 %v2243_v20, %v14063_v18  ;;  %v803_v18 = vld [vmem:[%s16535_s26] sm:$0xff] }
 0xfbc   : > { %v12787_v24 = vpop.f32.mrf.mxu1  ;;  %v805_v21 = vadd.f32 %v803_v18, %v801_v32 }
 0xfbd   : > { %v2247_v25 = vsel %vm846_vm3, %v2244_v23, 0.0 }
 0xfbe   : > { %2248 = vadd.xlane.f32.xlu1 %v2247_v25  ;;  %v14363_v38 = vpack.c.bf16 %v806_v36, %v805_v21 }
 0xfc0   : > { %12801 = vmatmul.mubr.msk.bf16.vlgmr.msra.gmra.mxu1 %vm846_vm3, %v14363_v38 }
 0xfc1   : > { %12814 = vmatprep.mubr.msk.bf16.mxu1 %vm13841_vm0, %v13840_v2 }
0x1047   : > { %v2249_v26 = vpop.xlane.xlu1 %2248 }
0x1048   : > { %v2251_v27 = vmul.f32 0.03125, %v2249_v26 }
0x104a   : > { %v2252_v28 = vsub.f32 %v2244_v23, %v2251_v27 }
0x104c   : > { %v2253_v29 = vmul.f32 %v2252_v28, %v2252_v28 }
0x104e   : > { %v2254_v30 = vsel %vm846_vm3, %v2253_v29, 0.0 }
0x104f   : > { %2255 = vadd.xlane.f32.xlu1 %v2254_v30  ;;  %v10997_v30 = vld [vmem:[%s16488_s11 + $0x8] ss:$0 sm:$0xff] }
0x1080   : > { %v2404_v50 = vpop.f32.mrf.mxu1 }
0x1081   : > { %v2405_v52 = vadd.f32 %v10988_v49, %v2404_v50 }
0x1082   : > { %v12802_v51 = vpop.f32.mrf.mxu1 }
0x1084   : > { %v2407_v53 = vpop.f32.mrf.mxu1 }
0x1085   : > { %v2408_v56 = vadd.f32 %v10988_v49, %v2407_v53  ;;  %v11008_v49 = vld [vmem:[%s16488_s11 + $0x1] ss:$0 sm:$0xff] }
0x1086   : > { %v12803_v57 = vpop.f32.mrf.mxu1 }
0x1087   : > { %v2479_v58 = vpack.c.bf16 %v2408_v56, %v2405_v52 }
0x1089   : > { %v2484_v60 = vsel %vm1023_vm5, %v2479_v58, 0 }
0x108a   : > { %12813 = vmatpush3.bf16.xpose.msra.mxu1 %v2484_v60 }
0x108b   : > { %12824 = vmatprep.subr.bf16.mxu1 %v13840_v2 }
0x10d8   : > { %v2256_v41 = vpop.xlane.xlu1 %2255 }
0x10d9   : > { %v2257_v42 = vmul.f32 0.03125, %v2256_v41  ;;  %v13380_v41 = vld [vmem:[%s16487_s10 + $0x50] sm:$0xff]  }
0x10db   : > { %v2258_v43 = vadd.f32 1e-05, %v2257_v42 }
0x10dd   : > { %13717 = vrsqrt.f32 %v2258_v43 }
0x10ea   : > { %v13718_v44 = vpop.eup %13717 }
0x10eb   : > { %v2260_v46 = vmul.f32 %v13718_v44, %v2252_v28 }
0x10ed   : > { %v2267_v48 = vmul.f32 %v10977_v45, %v2260_v46 }
0x10ef   : > { %v14384_v15 = vadd.f32 %v10978_v47, %v2267_v48  ;;  %v11017_v47 = vld [vmem:[%s16488_s11 + $0x5] ss:$0 sm:$0xff] }
0x10f1   : > { %v14388_v31 = vpack.c.bf16 %v14384_v15, %v14384_v15 }
0x10f3   : > { %12793 = vmatmul.mubr.msk.bf16.vlgmr.msra.gmra.mxu0 %vm846_vm3, %v14388_v31 }
0x10f4   : > { %12808 = vmatprep.mubr.msk.bf16.mxu0 %vm13841_vm0, %v13840_v2  ;;  %12805 = vmatpush3.bf16.msra.mxu0 %v13377_v9 }
0x10f5   : > { %12806 = vmatprep.subr.bf16.mxu0 %v13840_v2 }
0x10f8   : > { %12807 = vmatpush3.bf16.msra.mxu0 %v13378_v10 }
0x10f9   : > { %12818 = vmatprep.subr.bf16.mxu0 %v13840_v2 }
0x10fb   : > { %12809 = vmatmul.mubr.msk.bf16.vlgmr.msra.gmra.mxu0 %vm846_vm3, %v14363_v38 }
0x10fc   : > { %12820 = vmatprep.mubr.msk.bf16.mxu0 %vm13841_vm0, %v13840_v2 }
0x11b3   : > { %v2336_v62 = vpop.f32.mrf.mxu0 }
0x11b4   : > { %v2337_v63 = vadd.f32 %v10979_v61, %v2336_v62  ;;  %v13381_v62 = vld [vmem:[%s16487_s10 + $0x98] sm:$0xff]  }
0x11b5   : > { %v12794_v0 = vpop.f32.mrf.mxu0 }
0x11b6   : > { %v2477_v3 = vmul.f32 0.35355338, %v2337_v63  ;;  %v13382_v63 = vld [vmem:[%s16487_s10 + $0x90] sm:$0xff]  }
0x11b7   : > { %v2339_v4 = vpop.f32.mrf.mxu0 }
0x11b8   : > { %v2478_v6 = vpack.c.bf16 %v2477_v3, %v2477_v3 }
0x11b9   : > { %v12795_v7 = vpop.f32.mrf.mxu0 }
0x11ba   : > { %12815 = vmatmul.mubr.msk.bf16.vlgmr.msra.gmra.mxu1 %vm1023_vm5, %v2478_v6 }
0x11bb   : > { %12825 = vmatpush3.bf16.msra.mxu1 %v13375_v5  ;;  %12828 = vmatprep.mubr.msk.bf16.mxu1 %vm13841_vm0, %v13840_v2  ;;  %v2470_v23 = vpop.f32.mrf.mxu0 }
0x11bc   : > { %12826 = vmatprep.subr.bf16.mxu1 %v13840_v2  ;;  %v2471_v18 = vadd.f32 %v10997_v30, %v2470_v23  ;;  %v11032_v23 = vld [vmem:[%s16489_s12 + $0x4] sm:$0xf] }
0x11bd   : > { %v12810_v24 = vpop.f32.mrf.mxu0 }
0x11be   : > { %v2894_v24 = vsel %vm1086_vm4, %v11032_v23, 0 }
0x11bf   : > { %12827 = vmatpush3.bf16.msra.mxu1 %v13376_v8  ;;  %v2473_v32 = vpop.f32.mrf.mxu0 }
0x11c0   : > { %12840 = vmatprep.subr.bf16.mxu1 %v13840_v2  ;;  %v2474_v33 = vadd.f32 %v10997_v30, %v2473_v32 }
0x11c1   : > { %v12811_v34 = vpop.f32.mrf.mxu0 }
0x11c2   : > { %12829 = vmatmul.mubr.msk.bf16.vlgmr.msra.gmra.mxu1 %vm846_vm3, %v14388_v31  ;;  %v2539_v35 = vpack.c.bf16 %v2474_v33, %v2471_v18  ;;  %v13383_v18 = vld [vmem:[%s16487_s10 + $0x68] sm:$0xff]   ;;  %v13384_v33 = vld [vmem:[%s16487_s10 + $0x60] sm:$0xff]  }
0x11c3   : > { %12844 = vmatprep.mubr.msk.bf16.mxu1 %vm13841_vm0, %v13840_v2  ;;  %12841 = vmatpush3.bf16.msra.mxu1 %v13381_v62 }
0x11c4   : > { %12819 = vmatpush3.bf16.msra.mxu0 %v2539_v35  ;;  %12842 = vmatprep.subr.bf16.mxu1 %v13840_v2  ;;  %v13385_v35 = vld [vmem:[%s16487_s10 + $0x28] sm:$0xff]  }
0x11c5   : > { %12832 = vmatprep.subr.bf16.mxu0 %v13840_v2 }
0x11c7   : > { %12843 = vmatpush3.bf16.msra.mxu1 %v13382_v63 }
0x11c8   : > { %12854 = vmatprep.subr.bf16.mxu1 %v13840_v2 }
0x11ca   : > { %12845 = vmatmul.mubr.msk.bf16.vlgmr.msra.gmra.mxu1 %vm846_vm3, %v14363_v38 }
0x11cb   : > { %12856 = vmatprep.mubr.msk.bf16.mxu1 %vm13841_vm0, %v13840_v2 }
0x127a   : > { %v2520_v11 = vpop.f32.mrf.mxu1 }
0x127b   : > { %v2527_v12 = vsel %vm2526_vm8, %v2520_v11, -inf }
0x127c   : > { %2528 = vmax.xlane.f32.xlu0 %v2527_v12  ;;  %v12816_v13 = vpop.f32.mrf.mxu1 }
0x127e   : > { %v2523_v14 = vpop.f32.mrf.mxu1 }
0x127f   : > { %v11026_v14 = vld [vmem:[%s16488_s11 + $0x9] ss:$0 sm:$0xff] }
0x1280   : > { %v12817_v16 = vpop.f32.mrf.mxu1 }
0x1282   : > { %v2644_v17 = vpop.f32.mrf.mxu1 }
0x1283   : > { %v2645_v56 = vadd.f32 %v11008_v49, %v2644_v17  ;;  %v11049_v49 = vld [vmem:[%s16488_s11 + $0x6] ss:$0 sm:$0xff] }
0x1284   : > { %v12830_v19 = vpop.f32.mrf.mxu1 }
0x1285   : > { %v2782_v60 = vmul.f32 0.35355338, %v2645_v56 }
0x1286   : > { %v2647_v20 = vpop.f32.mrf.mxu1 }
0x1287   : > { %v2783_v61 = vpack.c.bf16 %v2782_v60, %v2782_v60 }
0x1288   : > { %v12831_v22 = vpop.f32.mrf.mxu1 }
0x128a   : > { %v2775_v7 = vpop.f32.mrf.mxu1 }
0x128b   : > { %v2776_v16 = vadd.f32 %v11026_v14, %v2775_v7  ;;  %v13387_v7 = vld [vmem:[%s16487_s10 + $0xa8] sm:$0xff]  }
0x128c   : > { %v12846_v8 = vpop.f32.mrf.mxu1 }
0x128d   : > { %v13388_v8 = vld [vmem:[%s16487_s10 + $0xa0] sm:$0xff]  }
0x128e   : > { %v2778_v17 = vpop.f32.mrf.mxu1 }
0x128f   : > { %v2779_v19 = vadd.f32 %v11026_v14, %v2778_v17 }
0x1290   : > { %v12847_v20 = vpop.f32.mrf.mxu1 }
0x1291   : > { %v2843_v22 = vpack.c.bf16 %v2779_v19, %v2776_v16 }
0x1293   : > { %12855 = vmatpush3.bf16.msra.mxu1 %v2843_v22 }
0x1294   : > { %12866 = vmatprep.subr.bf16.mxu1 %v13840_v2 }
0x1305   : > { %v2529_v25 = vpop.xlane.xlu0 %2528 }
0x1306   : > { %v2530_v26 = vsub.f32 %v2520_v11, %v2529_v25 }
0x1308   : > { %v2531_v27 = vmul.f32 1.442695, %v2530_v26 }
0x130a   : > { %13719 = vpow2.f32 %v2531_v27  ;;  %v2584_v27 = vld [vmem:[%s16489_s12] sm:$0xf] }
0x130b   : > { %v2940_v30 = vsel %vm1086_vm4, %v2584_v27, 0 }
0x1317   : > { %v13720_v28 = vpop.eup %13719 }
0x1318   : > { %v2533_v29 = vsel %vm2526_vm8, %v13720_v28, 0.0 }
0x1319   : > { %2534 = vadd.xlane.f32.xlu1 %v2533_v29 }
0x13a2   : > { %v2535_v21 = vpop.xlane.xlu1 %2534 }
0x13a3   : > { %13721 = vrcp.f32 %v2535_v21 }
0x13b0   : > { %v13722_v36 = vpop.eup %13721 }
0x13b1   : > { %v2537_v37 = vmul.f32 %v13722_v36, %v13720_v28 }
0x13b3   : > { %v2538_v40 = vpack.c.bf16 %v2537_v37, %v2537_v37 }
0x13b5   : > { %12821 = vmatmul.mubr.msk.bf16.vlgmr.msra.gmra.mxu0 %vm2526_vm8, %v2538_v40 }
0x13b6   : > { %12833 = vmatpush3.bf16.msra.mxu0 %v13379_v39  ;;  %12836 = vmatprep.mubr.msk.bf16.mxu0 %vm13841_vm0, %v13840_v2  ;;  %v13386_v39 = vld [vmem:[%s16487_s10 + $0x20] sm:$0xff]  }
0x13b7   : > { %12834 = vmatprep.subr.bf16.mxu0 %v13840_v2 }
0x13ba   : > { %12835 = vmatpush3.bf16.msra.mxu0 %v13380_v41 }
0x13bb   : > { %12848 = vmatprep.subr.bf16.mxu0 %v13840_v2 }
0x13bd   : > { %12837 = vmatmul.mubr.msk.bf16.vlgmr.msra.gmra.mxu0 %vm846_vm3, %v14363_v38 }
0x13be   : > { %12850 = vmatprep.mubr.msk.bf16.mxu0 %vm13841_vm0, %v13840_v2 }
0x1475   : > { %v14450_v42 = vpop.f32.mrf.mxu0 }
0x1476   : > { %v2583_v32 = vpack.c.bf16 %v14450_v42, %v14450_v42 }
0x1477   : > { %v12822_v43 = vpop.f32.mrf.mxu0 }
0x1479   : > { %v2580_v44 = vpop.f32.mrf.mxu0 }
0x147b   : > { %v12823_v45 = vpop.f32.mrf.mxu0 }
0x147d   : > { %v2709_v46 = vpop.f32.mrf.mxu0 }
0x147e   : > { %v2710_v51 = vadd.f32 %v11017_v47, %v2709_v46 }
0x147f   : > { %v12838_v48 = vpop.f32.mrf.mxu0 }
0x1481   : > { %v2712_v50 = vpop.f32.mrf.mxu0 }
0x1482   : > { %v2713_v52 = vadd.f32 %v11017_v47, %v2712_v50 }
0x1483   : > { %v12839_v53 = vpop.f32.mrf.mxu0 }
0x1484   : > { %v2784_v57 = vpack.c.bf16 %v2713_v52, %v2710_v51 }
0x1486   : > { %v2789_v58 = vsel %vm1023_vm5, %v2784_v57, 0 }
0x1487   : > { %12849 = vmatpush3.bf16.xpose.msra.mxu0 %v2789_v58 }
0x1488   : > { %12860 = vmatprep.subr.bf16.mxu0 %v13840_v2 }
0x148e   : > { %12851 = vmatmul.mubr.msk.bf16.vlgmr.msra.gmra.mxu0 %vm1023_vm5, %v2783_v61  ;;  %v11040_v61 = vld [vmem:[%s16488_s11 + $0x2] ss:$0 sm:$0xff] }
0x148f   : > { %12862 = vmatprep.mubr.msk.bf16.mxu0 %vm13841_vm0, %v13840_v2  ;;  %12861 = vmatpush3.bf16.msra.mxu0 %v2894_v24  ;;  %v11058_v24 = vld [vmem:[%s16488_s11 + $0xa] ss:$0 sm:$0xff] }
0x1490   : > { %12872 = vmatprep.subr.bf16.mxu0 %v13840_v2 }
0x154e   : > { %v2825_v0 = vpop.f32.mrf.mxu0 }
0x154f   : > { %v2831_v3 = vsel %vm2526_vm8, %v2825_v0, -inf }
0x1550   : > { %2832 = vmax.xlane.f32.xlu0 %v2831_v3  ;;  %v12852_v4 = vpop.f32.mrf.mxu0 }
0x1552   : > { %v2828_v5 = vpop.f32.mrf.mxu0 }
0x1554   : > { %v12853_v6 = vpop.f32.mrf.mxu0 }
0x15d9   : > { %v2833_v9 = vpop.xlane.xlu0 %2832 }
0x15da   : > { %v2834_v10 = vsub.f32 %v2825_v0, %v2833_v9 }
0x15dc   : > { %v2835_v11 = vmul.f32 1.442695, %v2834_v10 }
0x15de   : > { %13723 = vpow2.f32 %v2835_v11 }
0x15eb   : > { %v13724_v12 = vpop.eup %13723 }
0x15ec   : > { %v2837_v13 = vsel %vm2526_vm8, %v13724_v12, 0.0 }
0x15ed   : > { %2838 = vadd.xlane.f32.xlu1 %v2837_v13 }
0x1676   : > { %v2839_v25 = vpop.xlane.xlu1 %2838 }
0x1677   : > { %13725 = vrcp.f32 %v2839_v25 }
0x1684   : > { %v13726_v26 = vpop.eup %13725 }
0x1685   : > { %v2841_v28 = vmul.f32 %v13726_v26, %v13724_v12 }
0x1687   : > { %v2842_v29 = vpack.c.bf16 %v2841_v28, %v2841_v28 }
0x1689   : > { %12857 = vmatmul.mubr.msk.bf16.vlgmr.msra.gmra.mxu1 %vm2526_vm8, %v2842_v29 }
0x168a   : > { %12867 = vmatpush3.bf16.msra.mxu1 %v2940_v30  ;;  %12868 = vmatprep.mubr.msk.bf16.mxu1 %vm13841_vm0, %v13840_v2  ;;  %v11064_v30 = vld [vmem:[%s16489_s12 + $0x8] sm:$0xf] }
0x168b   : > { %12880 = vmatprep.subr.bf16.mxu1 %v13840_v2 }
0x1691   : > { %12869 = vmatmul.mubr.msk.bf16.vlgmr.msra.gmra.mxu1 %vm1023_vm5, %v2583_v32 }
0x1692   : > { %12881 = vmatpush3.bf16.msra.mxu1 %v13383_v18  ;;  %12884 = vmatprep.mubr.msk.bf16.mxu1 %vm13841_vm0, %v13840_v2  ;;  %v3291_v18 = vsel %vm1086_vm4, %v11064_v30, 0 }
0x1693   : > { %12882 = vmatprep.subr.bf16.mxu1 %v13840_v2 }
0x1696   : > { %12883 = vmatpush3.bf16.msra.mxu1 %v13384_v33 }
0x1697   : > { %12896 = vmatprep.subr.bf16.mxu1 %v13840_v2 }
0x1699   : > { %12885 = vmatmul.mubr.msk.bf16.vlgmr.msra.gmra.mxu1 %vm846_vm3, %v14363_v38 }
0x169a   : > { %12898 = vmatprep.mubr.msk.bf16.mxu1 %vm13841_vm0, %v13840_v2 }
0x1749   : > { %v2881_v34 = vpop.f32.mrf.mxu1 }
0x174a   : > { %v2887_v21 = vpack.c.bf16 %v2881_v34, %v2881_v34 }
0x174b   : > { %v12858_v36 = vpop.f32.mrf.mxu1 }
0x174c   : > { %12863 = vmatmul.mubr.msk.bf16.vlgmr.msra.gmra.mxu0 %vm1023_vm5, %v2887_v21  ;;  %v13390_v36 = vld [vmem:[%s16487_s10 + $0x30] sm:$0xff]  }
0x174d   : > { %v2884_v37 = vpop.f32.mrf.mxu1  ;;  %12873 = vmatpush3.bf16.msra.mxu0 %v13385_v35  ;;  %12876 = vmatprep.mubr.msk.bf16.mxu0 %vm13841_vm0, %v13840_v2  ;;  %v13389_v35 = vld [vmem:[%s16487_s10 + $0x38] sm:$0xff]  }
0x174e   : > { %12874 = vmatprep.subr.bf16.mxu0 %v13840_v2 }
0x174f   : > { %v12859_v40 = vpop.f32.mrf.mxu1 }
0x1751   : > { %v14521_v41 = vpop.f32.mrf.mxu1  ;;  %12875 = vmatpush3.bf16.msra.mxu0 %v13386_v39  ;;  %v13391_v39 = vld [vmem:[%s16487_s10 + $0x78] sm:$0xff]  }
0x1752   : > { %12888 = vmatprep.subr.bf16.mxu0 %v13840_v2 }
0x1753   : > { %v12870_v42 = vpop.f32.mrf.mxu1 }
0x1754   : > { %12877 = vmatmul.mubr.msk.bf16.vlgmr.msra.gmra.mxu0 %vm846_vm3, %v14388_v31 }
0x1755   : > { %v2979_v43 = vpop.f32.mrf.mxu1  ;;  %12892 = vmatprep.mubr.msk.bf16.mxu0 %vm13841_vm0, %v13840_v2  ;;  %12889 = vmatpush3.bf16.msra.mxu0 %v13387_v7 }
0x1756   : > { %12890 = vmatprep.subr.bf16.mxu0 %v13840_v2 }
0x1757   : > { %v12871_v44 = vpop.f32.mrf.mxu1 }
0x1758   : > { %v13392_v44 = vld [vmem:[%s16487_s10 + $0x70] sm:$0xff]  }
0x1759   : > { %v3106_v45 = vpop.f32.mrf.mxu1  ;;  %12891 = vmatpush3.bf16.msra.mxu0 %v13388_v8  ;;  %v13393_v8 = vld [vmem:[%s16487_s10 + $0xb8] sm:$0xff]  }
0x175a   : > { %v3107_v50 = vadd.f32 %v11049_v49, %v3106_v45  ;;  %12902 = vmatprep.subr.bf16.mxu0 %v13840_v2 }
0x175b   : > { %v12886_v46 = vpop.f32.mrf.mxu1 }
0x175c   : > { %12893 = vmatmul.mubr.msk.bf16.vlgmr.msra.gmra.mxu0 %vm846_vm3, %v14363_v38 }
0x175d   : > { %v3109_v47 = vpop.f32.mrf.mxu1  ;;  %12904 = vmatprep.mubr.msk.bf16.mxu0 %vm13841_vm0, %v13840_v2 }
0x175e   : > { %v3110_v51 = vadd.f32 %v11049_v49, %v3109_v47 }
0x175f   : > { %v12887_v48 = vpop.f32.mrf.mxu1 }
0x1760   : > { %v3181_v52 = vpack.c.bf16 %v3110_v51, %v3107_v50 }
0x1762   : > { %v3186_v53 = vsel %vm1023_vm5, %v3181_v52, 0 }
0x1763   : > { %12897 = vmatpush3.bf16.xpose.msra.mxu1 %v3186_v53 }
0x1764   : > { %12908 = vmatprep.subr.bf16.mxu1 %v13840_v2 }
0x180c   : > { %v14533_v56 = vpop.f32.mrf.mxu0 }
0x180d   : > { %v2977_v49 = vadd.f32 %v14521_v41, %v14533_v56 }
0x180e   : > { %v12864_v57 = vpop.f32.mrf.mxu0 }
0x1810   : > { %v2933_v58 = vpop.f32.mrf.mxu0 }
0x1812   : > { %v12865_v60 = vpop.f32.mrf.mxu0 }
0x1813   : > { %v11080_v60 = vld [vmem:[%s16488_s11 + $0x7] ss:$0 sm:$0xff] }
0x1814   : > { %v3041_v62 = vpop.f32.mrf.mxu0 }
0x1815   : > { %v3042_v63 = vadd.f32 %v11040_v61, %v3041_v62  ;;  %v11071_v62 = vld [vmem:[%s16488_s11 + $0x3] ss:$0 sm:$0xff] }
0x1816   : > { %v12878_v0 = vpop.f32.mrf.mxu0 }
0x1817   : > { %v3179_v3 = vmul.f32 0.35355338, %v3042_v63 }
0x1818   : > { %v3044_v4 = vpop.f32.mrf.mxu0 }
0x1819   : > { %v3180_v5 = vpack.c.bf16 %v3179_v3, %v3179_v3 }
0x181a   : > { %v12879_v6 = vpop.f32.mrf.mxu0 }
0x181b   : > { %12899 = vmatmul.mubr.msk.bf16.vlgmr.msra.gmra.mxu1 %vm1023_vm5, %v3180_v5 }
0x181c   : > { %12910 = vmatprep.mubr.msk.bf16.mxu1 %vm13841_vm0, %v13840_v2  ;;  %v3172_v14 = vpop.f32.mrf.mxu0  ;;  %12909 = vmatpush3.bf16.msra.mxu1 %v3291_v18  ;;  %v11095_v18 = vld [vmem:[%s16489_s12 + $0xc] sm:$0xf] }
0x181d   : > { %v3173_v25 = vadd.f32 %v11058_v24, %v3172_v14  ;;  %12922 = vmatprep.subr.bf16.mxu1 %v13840_v2 }
0x181e   : > { %v12894_v16 = vpop.f32.mrf.mxu0 }
0x1820   : > { %v3175_v26 = vpop.f32.mrf.mxu0 }
0x1821   : > { %v3176_v27 = vadd.f32 %v11058_v24, %v3175_v26 }
0x1822   : > { %v12895_v28 = vpop.f32.mrf.mxu0 }
0x1823   : > { %v3240_v29 = vpack.c.bf16 %v3176_v27, %v3173_v25  ;;  %v11089_v25 = vld [vmem:[%s16488_s11 + $0xb] ss:$0 sm:$0xff] }
0x1825   : > { %12903 = vmatpush3.bf16.msra.mxu0 %v3240_v29 }
0x1826   : > { %12914 = vmatprep.subr.bf16.mxu0 %v13840_v2 }
0x18db   : > { %v3222_v9 = vpop.f32.mrf.mxu1 }
0x18dc   : > { %v3228_v10 = vsel %vm2526_vm8, %v3222_v9, -inf }
0x18dd   : > { %3229 = vmax.xlane.f32.xlu0 %v3228_v10  ;;  %v12900_v11 = vpop.f32.mrf.mxu1 }
0x18df   : > { %v3225_v12 = vpop.f32.mrf.mxu1 }
0x18e1   : > { %v12901_v13 = vpop.f32.mrf.mxu1 }
0x1966   : > { %v3230_v17 = vpop.xlane.xlu0 %3229 }
0x1967   : > { %v3231_v19 = vsub.f32 %v3222_v9, %v3230_v17  ;;  %v13394_v9 = vld [vmem:[%s16487_s10 + $0xb0] sm:$0xff]  }
0x1969   : > { %v3232_v20 = vmul.f32 1.442695, %v3231_v19 }
0x196b   : > { %13727 = vpow2.f32 %v3232_v20 }
0x1978   : > { %v13728_v22 = vpop.eup %13727 }
0x1979   : > { %v3234_v23 = vsel %vm2526_vm8, %v13728_v22, 0.0 }
0x197a   : > { %3235 = vadd.xlane.f32.xlu1 %v3234_v23 }
0x1a03   : > { %v3236_v32 = vpop.xlane.xlu1 %3235 }
0x1a04   : > { %13729 = vrcp.f32 %v3236_v32  ;;  %v3643_v32 = vsel %vm1086_vm4, %v11095_v18, 0  ;;  %v3737_v18 = vld [vmem:[%s16491_s14 + $0x50] sm:$0xff] }
0x1a11   : > { %v13730_v33 = vpop.eup %13729 }
0x1a12   : > { %v3238_v34 = vmul.f32 %v13730_v33, %v13728_v22 }
0x1a14   : > { %v3239_v21 = vpack.c.bf16 %v3238_v34, %v3238_v34 }
0x1a16   : > { %12905 = vmatmul.mubr.msk.bf16.vlgmr.msra.gmra.mxu0 %vm2526_vm8, %v3239_v21 }
0x1a17   : > { %12915 = vmatpush3.bf16.msra.mxu0 %v13389_v35  ;;  %12918 = vmatprep.mubr.msk.bf16.mxu0 %vm13841_vm0, %v13840_v2 }
0x1a18   : > { %12916 = vmatprep.subr.bf16.mxu0 %v13840_v2 }
0x1a1b   : > { %12917 = vmatpush3.bf16.msra.mxu0 %v13390_v36 }
0x1a1c   : > { %12930 = vmatprep.subr.bf16.mxu0 %v13840_v2 }
0x1a1e   : > { %12919 = vmatmul.mubr.msk.bf16.vlgmr.msra.gmra.mxu0 %vm846_vm3, %v14388_v31 }
0x1a1f   : > { %12934 = vmatprep.mubr.msk.bf16.mxu0 %vm13841_vm0, %v13840_v2  ;;  %12931 = vmatpush3.bf16.msra.mxu0 %v13393_v8 }
0x1a20   : > { %12932 = vmatprep.subr.bf16.mxu0 %v13840_v2 }
0x1a23   : > { %12933 = vmatpush3.bf16.msra.mxu0 %v13394_v9 }
0x1a24   : > { %12944 = vmatprep.subr.bf16.mxu0 %v13840_v2 }
0x1a26   : > { %12935 = vmatmul.mubr.msk.bf16.vlgmr.msra.gmra.mxu0 %vm846_vm3, %v14363_v38 }
0x1a27   : > { %12946 = vmatprep.mubr.msk.bf16.mxu0 %vm13841_vm0, %v13840_v2 }
0x1ad6   : > { %v3278_v37 = vpop.f32.mrf.mxu0 }
0x1ad7   : > { %v3284_v40 = vpack.c.bf16 %v3278_v37, %v3278_v37 }
0x1ad8   : > { %v12906_v42 = vpop.f32.mrf.mxu0 }
0x1ad9   : > { %12911 = vmatmul.mubr.msk.bf16.vlgmr.msra.gmra.mxu1 %vm1023_vm5, %v3284_v40 }
0x1ada   : > { %v3281_v43 = vpop.f32.mrf.mxu0  ;;  %12923 = vmatpush3.bf16.msra.mxu1 %v13391_v39  ;;  %12926 = vmatprep.mubr.msk.bf16.mxu1 %vm13841_vm0, %v13840_v2 }
0x1adb   : > { %12924 = vmatprep.subr.bf16.mxu1 %v13840_v2 }
0x1adc   : > { %v12907_v31 = vpop.f32.mrf.mxu0 }
0x1ade   : > { %v3393_v45 = vpop.f32.mrf.mxu0  ;;  %12925 = vmatpush3.bf16.msra.mxu1 %v13392_v44  ;;  %v11097_v44 = vld [vmem:[%s16490_s13] ss:$0 sm:$0xff] }
0x1adf   : > { %12938 = vmatprep.subr.bf16.mxu1 %v13840_v2  ;;  %v3394_v56 = vadd.f32 %v11071_v62, %v3393_v45 }
0x1ae0   : > { %v12920_v46 = vpop.f32.mrf.mxu0 }
0x1ae1   : > { %12927 = vmatmul.mubr.msk.bf16.vlgmr.msra.gmra.mxu1 %vm846_vm3, %v14363_v38  ;;  %v3531_v6 = vmul.f32 0.35355338, %v3394_v56  ;;  %v3727_v56 = vld [vmem:[%s16491_s14] sm:$0xff] }
0x1ae2   : > { %v3396_v47 = vpop.f32.mrf.mxu0  ;;  %12940 = vmatprep.mubr.msk.bf16.mxu1 %vm13841_vm0, %v13840_v2 }
0x1ae3   : > { %v3532_v7 = vpack.c.bf16 %v3531_v6, %v3531_v6 }
0x1ae4   : > { %v12921_v48 = vpop.f32.mrf.mxu0 }
0x1ae6   : > { %v3524_v16 = vpop.f32.mrf.mxu0 }
0x1ae7   : > { %v3525_v26 = vadd.f32 %v11089_v25, %v3524_v16  ;;  %v3754_v16 = vld [vmem:[%s16491_s14 + $0xd8] sm:$0xff] }
0x1ae8   : > { %v12936_v17 = vpop.f32.mrf.mxu0 }
0x1aea   : > { %v3527_v27 = vpop.f32.mrf.mxu0 }
0x1aeb   : > { %v3528_v28 = vadd.f32 %v11089_v25, %v3527_v27 }
0x1aec   : > { %v12937_v29 = vpop.f32.mrf.mxu0 }
0x1aed   : > { %v3592_v30 = vpack.c.bf16 %v3528_v28, %v3525_v26  ;;  %v11100_v26 = vld [vmem:[%s16495_s18 + $0x1] ss:$0 sm:$0xff] }
0x1aee   : > { %v11101_v28 = vld [vmem:[%s16496_s19 + $0x1] ss:$0 sm:$0xff] }
0x1aef   : > { %12945 = vmatpush3.bf16.msra.mxu0 %v3592_v30  ;;  %v3729_v30 = vld [vmem:[%s16491_s14 + $0x10] sm:$0xff] }
0x1b99   : > { %v3327_v50 = vpop.f32.mrf.mxu1 }
0x1b9a   : > { %v14596_v51 = vadd.f32 %v3327_v50, %v2977_v49 }
0x1b9b   : > { %v12912_v52 = vpop.f32.mrf.mxu1 }
0x1b9d   : > { %v3330_v53 = vpop.f32.mrf.mxu1 }
0x1b9f   : > { %v12913_v57 = vpop.f32.mrf.mxu1 }
0x1ba1   : > { %v3458_v58 = vpop.f32.mrf.mxu1 }
0x1ba2   : > { %v3459_v0 = vadd.f32 %v11080_v60, %v3458_v58 }
0x1ba3   : > { %v12928_v61 = vpop.f32.mrf.mxu1 }
0x1ba4   : > { %v3751_v61 = vld [vmem:[%s16491_s14 + $0xc0] sm:$0xff] }
0x1ba5   : > { %v3461_v63 = vpop.f32.mrf.mxu1 }
0x1ba6   : > { %v3462_v3 = vadd.f32 %v11080_v60, %v3461_v63  ;;  %v3752_v63 = vld [vmem:[%s16491_s14 + $0xc8] sm:$0xff] }
0x1ba7   : > { %v12929_v41 = vpop.f32.mrf.mxu1 }
0x1ba8   : > { %v3533_v4 = vpack.c.bf16 %v3462_v3, %v3459_v0 }
0x1baa   : > { %v3538_v5 = vsel %vm1023_vm5, %v3533_v4, 0  ;;  %v3735_v4 = vld [vmem:[%s16491_s14 + $0x40] sm:$0xff] }
0x1bab   : > { %12939 = vmatpush3.bf16.xpose.msra.mxu1 %v3538_v5  ;;  %v3728_v5 = vld [vmem:[%s16491_s14 + $0x8] sm:$0xff]  ;;  %v11103_v6 = vcombine.high %v3727_v56, %v3735_v4  ;;  %v11102_v8 = vcombine.low %v3727_v56, %v3735_v4  ;;  %v3734_v56 = vld [vmem:[%s16491_s14 + $0x38] sm:$0xff] }
0x1bac   : > { %12950 = vmatprep.subr.bf16.mxu1 %v13840_v2  ;;  %v3742_v4 = vld [vmem:[%s16491_s14 + $0x78] sm:$0xff] }
0x1bb2   : > { %12941 = vmatmul.mubr.msk.bf16.vlgmr.msra.gmra.mxu1 %vm1023_vm5, %v3532_v7  ;;  %v3736_v7 = vld [vmem:[%s16491_s14 + $0x48] sm:$0xff] }
0x1bb3   : > { %12952 = vmatprep.mubr.msk.bf16.mxu1 %vm13841_vm0, %v13840_v2  ;;  %12951 = vmatpush3.bf16.msra.mxu1 %v3643_v32  ;;  %v11104_v9 = vcombine.low %v3728_v5, %v3736_v7  ;;  %v3730_v32 = vld [vmem:[%s16491_s14 + $0x18] sm:$0xff] }
0x1c72   : > { %v3574_v10 = vpop.f32.mrf.mxu1 }
0x1c73   : > { %v3580_v11 = vsel %vm2526_vm8, %v3574_v10, -inf }
0x1c74   : > { %3581 = vmax.xlane.f32.xlu0 %v3580_v11  ;;  %v12942_v12 = vpop.f32.mrf.mxu1  ;;  %v3745_v11 = vld [vmem:[%s16491_s14 + $0x90] sm:$0xff] }
0x1c75   : > { %v3753_v12 = vld [vmem:[%s16491_s14 + $0xd0] sm:$0xff] }
0x1c76   : > { %v3577_v13 = vpop.f32.mrf.mxu1  ;;  %v11122_v17 = vcombine.low %v3745_v11, %v3753_v12 }
0x1c77   : > { %v3746_v13 = vld [vmem:[%s16491_s14 + $0x98] sm:$0xff] }
0x1c78   : > { %v12943_v14 = vpop.f32.mrf.mxu1 }
0x1c79   : > { %v11123_v14 = vcombine.high %v3745_v11, %v3753_v12  ;;  %v13395_v11 = vld [vmem:[%s16493_s16 + $0x78] sm:$0xff]  }
0x1c7a   : > { %v13396_v12 = vld [vmem:[%s16493_s16 + $0xf8] sm:$0xff]  }
0x1cfd   : > { %v3582_v19 = vpop.xlane.xlu0 %3581 }
0x1cfe   : > { %v3583_v20 = vsub.f32 %v3574_v10, %v3582_v19  ;;  %v11105_v10 = vcombine.high %v3728_v5, %v3736_v7  ;;  %v11124_v19 = vcombine.low %v3746_v13, %v3754_v16 }
0x1d00   : > { %v3584_v22 = vmul.f32 1.442695, %v3583_v20  ;;  %v11125_v20 = vcombine.high %v3746_v13, %v3754_v16  ;;  %v13397_v13 = vld [vmem:[%s16493_s16 + $0x38] sm:$0xff]   ;;  %v13399_v16 = vld [vmem:[%s16493_s16 + $0x70] sm:$0xff]  }
0x1d02   : > { %13731 = vpow2.f32 %v3584_v22 }
0x1d0f   : > { %v13732_v23 = vpop.eup %13731 }
0x1d10   : > { %v3586_v24 = vsel %vm2526_vm8, %v13732_v23, 0.0 }
0x1d11   : > { %3587 = vadd.xlane.f32.xlu1 %v3586_v24 }
0x1d9a   : > { %v3588_v33 = vpop.xlane.xlu1 %3587 }
0x1d9b   : > { %13733 = vrcp.f32 %v3588_v33  ;;  %v3738_v33 = vld [vmem:[%s16491_s14 + $0x58] sm:$0xff] }
0x1da8   : > { %v13734_v34 = vpop.eup %13733 }
0x1da9   : > { %v3590_v35 = vmul.f32 %v13734_v34, %v13732_v23 }
0x1dab   : > { %v3591_v21 = vpack.c.bf16 %v3590_v35, %v3590_v35 }
0x1dad   : > { %12947 = vmatmul.mubr.msk.bf16.vlgmr.msra.gmra.mxu0 %vm2526_vm8, %v3591_v21  ;;  %v11107_v21 = vcombine.high %v3729_v30, %v3737_v18 }
0x1dae   : > { %4038 = vmatprep.mubr.bf16.mxu0 %v13839_v1 }
0x1e6d   : > { %v3630_v36 = vpop.f32.mrf.mxu0 }
0x1e6e   : > { %v3636_v37 = vpack.c.bf16 %v3630_v36, %v3630_v36  ;;  %v11109_v36 = vcombine.high %v3730_v32, %v3738_v33 }
0x1e6f   : > { %v12948_v39 = vpop.f32.mrf.mxu0 }
0x1e70   : > { %12953 = vmatmul.mubr.msk.bf16.vlgmr.msra.gmra.mxu1 %vm1023_vm5, %v3636_v37  ;;  %v3747_v37 = vld [vmem:[%s16491_s14 + $0xa0] sm:$0xff] }
0x1e71   : > { %v3633_v40 = vpop.f32.mrf.mxu0  ;;  %4079 = vmatprep.mubr.bf16.mxu1 %v13839_v1  ;;  %v3755_v39 = vld [vmem:[%s16491_s14 + $0xe0] sm:$0xff] }
0x1e72   : > { %v3748_v40 = vld [vmem:[%s16491_s14 + $0xa8] sm:$0xff] }
0x1e73   : > { %v12949_v42 = vpop.f32.mrf.mxu0 }
0x1e74   : > { %v3756_v42 = vld [vmem:[%s16491_s14 + $0xe8] sm:$0xff] }
0x1f30   : > { %v3679_v43 = vpop.f32.mrf.mxu1 }
0x1f31   : > { %v3685_v31 = vadd.f32 %v3679_v43, %v14596_v51  ;;  %v3743_v51 = vld [vmem:[%s16491_s14 + $0x80] sm:$0xff]  ;;  %v11106_v43 = vcombine.low %v3729_v30, %v3737_v18  ;;  %v13411_v30 = vld [vmem:[%s16493_s16 + $0x58] sm:$0xff]  }
0x1f32   : > { %v12954_v45 = vpop.f32.mrf.mxu1  ;;  %v11119_v62 = vcombine.high %v3743_v51, %v3751_v61  ;;  %v11118_v0 = vcombine.low %v3743_v51, %v3751_v61  ;;  %v3750_v51 = vld [vmem:[%s16491_s14 + $0xb8] sm:$0xff] }
0x1f33   : > { %v3693_v46 = vadd.f32 %v11097_v44, %v3685_v31  ;;  %v11108_v44 = vcombine.low %v3730_v32, %v3738_v33  ;;  %v11127_v31 = vcombine.high %v3747_v37, %v3755_v39  ;;  %v11129_v45 = vcombine.high %v3748_v40, %v3756_v42  ;;  %v3758_v61 = vld [vmem:[%s16491_s14 + $0xf8] sm:$0xff] }
0x1f34   : > { %v3682_v47 = vpop.f32.mrf.mxu1  ;;  %4018 = vmatprep.subr.bf16.mxu0 %v11119_v62  ;;  %v13412_v18 = vld [vmem:[%s16493_s16 + $0xd8] sm:$0xff]  }
0x1f35   : > { %v3694_v48 = vadd.f32 %v3693_v46, %v14384_v15  ;;  %v3744_v15 = vld [vmem:[%s16491_s14 + $0x88] sm:$0xff]  ;;  %4019 = vmatpush1.bf16.msra.mxu0 %v11118_v0  ;;  %v3731_v46 = vld [vmem:[%s16491_s14 + $0x20] sm:$0xff]  ;;  %v11133_v0 = vcombine.high %v3750_v51, %v3758_v61  ;;  %v13413_v32 = vld [vmem:[%s16493_s16 + $0x18] sm:$0xff]  }
0x1f36   : > { %v12955_v49 = vpop.f32.mrf.mxu1  ;;  %v11120_v3 = vcombine.low %v3744_v15, %v3752_v63  ;;  %v11121_v41 = vcombine.high %v3744_v15, %v3752_v63  ;;  %4020 = vmatprep.subr.bf16.mxu0 %v11103_v6  ;;  %v3739_v47 = vld [vmem:[%s16491_s14 + $0x60] sm:$0xff]  ;;  %v11132_v6 = vcombine.low %v3750_v51, %v3758_v61  ;;  %v13414_v33 = vld [vmem:[%s16493_s16 + $0x98] sm:$0xff]  }
0x1f37   : > { %v3699_v50 = vsel %vm846_vm3, %v3694_v48, 0.0  ;;  %v3740_v49 = vld [vmem:[%s16491_s14 + $0x68] sm:$0xff]  ;;  %v11110_v15 = vcombine.low %v3731_v46, %v3739_v47 }
0x1f38   : > { %3700 = vadd.xlane.f32.xlu0 %v3699_v50  ;;  %4059 = vmatprep.subr.bf16.mxu1 %v11121_v41  ;;  %v11126_v50 = vcombine.low %v3747_v37, %v3755_v39  ;;  %v3741_v41 = vld [vmem:[%s16491_s14 + $0x70] sm:$0xff]  ;;  %v13419_v39 = vld [vmem:[%s16493_s16 + $0x48] sm:$0xff]  }
0x1f39   : > { %4060 = vmatpush1.bf16.msra.mxu1 %v11120_v3  ;;  %4021 = vmatpush1.bf16.msra.mxu0 %v11102_v8  ;;  %v3733_v3 = vld [vmem:[%s16491_s14 + $0x30] sm:$0xff]  ;;  %v11117_v8 = vcombine.high %v3734_v56, %v3742_v4 }
0x1f3a   : > { %4061 = vmatprep.subr.bf16.mxu1 %v11105_v10  ;;  %4100 = vmatprep.subr.bf16.mxu0 %v11123_v14  ;;  %v11115_v7 = vcombine.high %v3733_v3, %v3741_v41  ;;  %v11116_v10 = vcombine.low %v3734_v56, %v3742_v4  ;;  %v13398_v14 = vld [vmem:[%s16493_s16 + $0xb8] sm:$0xff]   ;;  %v13418_v37 = vld [vmem:[%s16493_s16 + $0x90] sm:$0xff]   ;;  %v14896_v4 = vsub.s32 5, %v14134_v54 }
0x1f3d   : > { %4062 = vmatpush1.bf16.msra.mxu1 %v11104_v9  ;;  %v11114_v9 = vcombine.low %v3733_v3, %v3741_v41 }
0x1f3e   : > { %4141 = vmatprep.subr.bf16.mxu1 %v11125_v20  ;;  %v13402_v20 = vld [vmem:[%s16493_s16 + $0xb0] sm:$0xff]  }
0x1fc1   : > { %v3701_v52 = vpop.xlane.xlu0 %3700 }
0x1fc2   : > { %v3702_v53 = vmul.f32 0.03125, %v3701_v52  ;;  %v11128_v52 = vcombine.low %v3748_v40, %v3756_v42  ;;  %v13420_v40 = vld [vmem:[%s16493_s16 + $0xc8] sm:$0xff]  }
0x1fc3   : > { %v13421_v42 = vld [vmem:[%s16493_s16 + $0x8] sm:$0xff]  }
0x1fc4   : > { %v3703_v57 = vsub.f32 %v3694_v48, %v3702_v53  ;;  %v3732_v48 = vld [vmem:[%s16491_s14 + $0x28] sm:$0xff]  ;;  %v11111_v53 = vcombine.high %v3731_v46, %v3739_v47  ;;  %v13426_v46 = vld [vmem:[%s16493_s16 + $0x80] sm:$0xff]   ;;  %v13427_v47 = vld [vmem:[%s16493_s16 + $0x178] sm:$0xff]  }
0x1fc5   : > { %v11112_v62 = vcombine.low %v3732_v48, %v3740_v49 }
0x1fc6   : > { %v3704_v58 = vmul.f32 %v3703_v57, %v3703_v57 }
0x1fc8   : > { %v3705_v60 = vsel %vm846_vm3, %v3704_v58, 0.0  ;;  %v3749_v58 = vld [vmem:[%s16491_s14 + $0xb0] sm:$0xff] }
0x1fc9   : > { %3706 = vadd.xlane.f32.xlu1 %v3705_v60  ;;  %v3757_v60 = vld [vmem:[%s16491_s14 + $0xf0] sm:$0xff] }
0x1fca   : > { %v11131_v63 = vcombine.high %v3749_v58, %v3757_v60  ;;  %v11130_v5 = vcombine.low %v3749_v58, %v3757_v60 }
0x2052   : > { %v3707_v22 = vpop.xlane.xlu1 %3706 }
0x2053   : > { %v3708_v23 = vmul.f32 0.03125, %v3707_v22  ;;  %v13403_v22 = vld [vmem:[%s16493_s16 + $0x68] sm:$0xff]  }
0x2055   : > { %v3709_v24 = vadd.f32 1e-05, %v3708_v23  ;;  %v13404_v23 = vld [vmem:[%s16493_s16 + $0xe8] sm:$0xff]  }
0x2057   : > { %13735 = vrsqrt.f32 %v3709_v24  ;;  %v13405_v24 = vld [vmem:[%s16493_s16 + $0x28] sm:$0xff]  }
0x2064   : > { %v13736_v25 = vpop.eup %13735 }
0x2065   : > { %v3711_v27 = vmul.f32 %v13736_v25, %v3703_v57  ;;  %v11113_v57 = vcombine.high %v3732_v48, %v3740_v49  ;;  %v13406_v25 = vld [vmem:[%s16493_s16 + $0xa8] sm:$0xff]   ;;  %v13428_v48 = vld [vmem:[%s16493_s16 + $0x1f8] sm:$0xff]   ;;  %v14874_v49 = vsub.s32 2, %v14134_v54 }
0x2067   : > { %v3718_v29 = vmul.f32 %v11100_v26, %v3711_v27  ;;  %v13407_v26 = vld [vmem:[%s16493_s16 + $0x60] sm:$0xff]  }
0x2068   : > { %v13408_v27 = vld [vmem:[%s16493_s16 + $0xe0] sm:$0xff]  }
0x2069   : > { %v14695_v34 = vadd.f32 %v11101_v28, %v3718_v29  ;;  %v13409_v28 = vld [vmem:[%s16493_s16 + $0x20] sm:$0xff]  }
0x206a   : > { %v13410_v29 = vld [vmem:[%s16493_s16 + $0xa0] sm:$0xff]  }
0x206b   : > { %v14699_v35 = vpack.c.bf16 %v14695_v34, %v14695_v34 }
0x206d   : > { %11134 = vmatmul.mubr.msk.bf16.vlgmr.msra.gmra.mxu0 %vm846_vm3, %v14699_v35  ;;  %11135 = vmatmul.mubr.msk.bf16.vlgmr.msra.gmra.mxu1 %vm846_vm3, %v14699_v35 }
0x206e   : > { %4101 = vmatpush1.bf16.msra.mxu0 %v11122_v17  ;;  %4142 = vmatpush1.bf16.msra.mxu1 %v11124_v19  ;;  %v13400_v17 = vld [vmem:[%s16493_s16 + $0xf0] sm:$0xff]  }
0x206f   : > { %4102 = vmatprep.subr.bf16.mxu0 %v11107_v21  ;;  %4143 = vmatprep.subr.bf16.mxu1 %v11109_v36  ;;  %v13401_v19 = vld [vmem:[%s16493_s16 + $0x30] sm:$0xff]  }
0x2070   : > { %4120 = vmatprep.mubr.bf16.mxu0 %v13839_v1  ;;  %4161 = vmatprep.mubr.bf16.mxu1 %v13839_v1  ;;  %v13416_v21 = vld [vmem:[%s16493_s16 + $0xd0] sm:$0xff]  }
0x2071   : > { %v13417_v36 = vld [vmem:[%s16493_s16 + $0x10] sm:$0xff]  }
0x2072   : > { %4103 = vmatpush1.bf16.msra.mxu0 %v11106_v43  ;;  %4144 = vmatpush1.bf16.msra.mxu1 %v11108_v44  ;;  %v13422_v43 = vld [vmem:[%s16493_s16 + $0x88] sm:$0xff]   ;;  %v13423_v44 = vld [vmem:[%s16493_s16 + $0x40] sm:$0xff]  }
0x2073   : > { %4182 = vmatprep.subr.bf16.mxu0 %v11127_v31  ;;  %4223 = vmatprep.subr.bf16.mxu1 %v11129_v45  ;;  %v13424_v31 = vld [vmem:[%s16493_s16 + $0xc0] sm:$0xff]  }
0x2074   : > { %v13425_v45 = vld [vmem:[%s16493_s16] sm:$0xff]  }
0x2075   : > { %11136 = vmatmul.mubr.msk.bf16.vlgmr.msra.gmra.mxu0 %vm846_vm3, %v14699_v35  ;;  %11137 = vmatmul.mubr.msk.bf16.vlgmr.msra.gmra.mxu1 %vm846_vm3, %v14699_v35 }
0x2076   : > { %4183 = vmatpush1.bf16.msra.mxu0 %v11126_v50  ;;  %4224 = vmatpush1.bf16.msra.mxu1 %v11128_v52  ;;  %v14879_v50 = vld [vmem:[%s16492_s15] sm:$0xff]  ;;  %v14882_v52 = vsub.s32 1, %v14134_v54 }
0x2077   : > { %4184 = vmatprep.subr.bf16.mxu0 %v11111_v53  ;;  %4225 = vmatprep.subr.bf16.mxu1 %v11113_v57  ;;  %v14885_v53 = vsub.s32 3, %v14134_v54  ;;  %v3766_v57 = vrot.slane %v14879_v50, %v14137_v55  ;;  %v3774_v58 = vrot.slane %v14879_v50, %v14874_v49 }
0x2078   : > { %4202 = vmatprep.mubr.bf16.mxu0 %v13839_v1  ;;  %4243 = vmatprep.mubr.bf16.mxu1 %v13839_v1  ;;  %v3770_v60 = vrot.slane %v14879_v50, %v14882_v52 }
0x2079   : > { %v3778_v51 = vrot.slane %v14879_v50, %v14885_v53 }
0x207a   : > { %4185 = vmatpush1.bf16.msra.mxu0 %v11110_v15  ;;  %4226 = vmatpush1.bf16.msra.mxu1 %v11112_v62 }
0x207b   : > { %4264 = vmatprep.subr.bf16.mxu0 %v11131_v63  ;;  %4305 = vmatprep.subr.bf16.mxu1 %v11133_v0 }
0x207d   : > { %11138 = vmatmul.mubr.msk.bf16.vlgmr.msra.gmra.mxu0 %vm846_vm3, %v14699_v35  ;;  %11139 = vmatmul.mubr.msk.bf16.vlgmr.msra.gmra.mxu1 %vm846_vm3, %v14699_v35 }
0x207e   : > { %4265 = vmatpush1.bf16.msra.mxu0 %v11130_v5  ;;  %4306 = vmatpush1.bf16.msra.mxu1 %v11132_v6  ;;  %v14899_v5 = vsub.s32 7, %v14134_v54 }
0x207f   : > { %4266 = vmatprep.subr.bf16.mxu0 %v11115_v7  ;;  %4307 = vmatprep.subr.bf16.mxu1 %v11117_v8 }
0x2080   : > { %4284 = vmatprep.mubr.bf16.mxu0 %v13839_v1  ;;  %4325 = vmatprep.mubr.bf16.mxu1 %v13839_v1 }
0x2082   : > { %4267 = vmatpush1.bf16.msra.mxu0 %v11114_v9  ;;  %4308 = vmatpush1.bf16.msra.mxu1 %v11116_v10 }
0x2083   : > { %12133 = vmatprep.subr.bf16.mxu0 %v13395_v11  ;;  %12155 = vmatprep.subr.bf16.mxu1 %v13396_v12 }
0x2085   : > { %11140 = vmatmul.mubr.msk.bf16.vlgmr.msra.gmra.mxu0 %vm846_vm3, %v14699_v35  ;;  %11141 = vmatmul.mubr.msk.bf16.vlgmr.msra.gmra.mxu1 %vm846_vm3, %v14699_v35  ;;  %v13415_v35 = vld [vmem:[%s16493_s16 + $0x50] sm:$0xff]  }
0x2086   : > { %12134 = vmatpush3.bf16.msra.mxu0 %v13397_v13  ;;  %12156 = vmatpush3.bf16.msra.mxu1 %v13398_v14 }
0x2087   : > { %12135 = vmatprep.subr.bf16.mxu0 %v13399_v16  ;;  %12157 = vmatprep.subr.bf16.mxu1 %v13400_v17  ;;  %v3786_v17 = vrot.slane %v14879_v50, %v14896_v4 }
0x208a   : > { %12136 = vmatpush3.bf16.msra.mxu0 %v13401_v19  ;;  %12158 = vmatpush3.bf16.msra.mxu1 %v13402_v20  ;;  %v3794_v19 = vrot.slane %v14879_v50, %v14899_v5  ;;  %v13429_v20 = vld [vmem:[%s16493_s16 + $0x138] sm:$0xff]  }
0x208b   : > { %12137 = vmatprep.subr.bf16.mxu0 %v13403_v22  ;;  %12159 = vmatprep.subr.bf16.mxu1 %v13404_v23  ;;  %v13430_v22 = vld [vmem:[%s16493_s16 + $0x1b8] sm:$0xff]  }
0x208e   : > { %12138 = vmatpush3.bf16.msra.mxu0 %v13405_v24  ;;  %12160 = vmatpush3.bf16.msra.mxu1 %v13406_v25 }
0x208f   : > { %12139 = vmatprep.subr.bf16.mxu0 %v13407_v26  ;;  %12161 = vmatprep.subr.bf16.mxu1 %v13408_v27  ;;  %v13431_v27 = vld [vmem:[%s16493_s16 + $0x170] sm:$0xff]  }
0x2092   : > { %12140 = vmatpush3.bf16.msra.mxu0 %v13409_v28  ;;  %12162 = vmatpush3.bf16.msra.mxu1 %v13410_v29  ;;  %v13432_v28 = vld [vmem:[%s16493_s16 + $0x1f0] sm:$0xff]  }
0x2093   : > { %12141 = vmatprep.subr.bf16.mxu0 %v13411_v30  ;;  %12163 = vmatprep.subr.bf16.mxu1 %v13412_v18 }
0x2096   : > { %12142 = vmatpush3.bf16.msra.mxu0 %v13413_v32  ;;  %12164 = vmatpush3.bf16.msra.mxu1 %v13414_v33  ;;  %v13433_v33 = vld [vmem:[%s16493_s16 + $0x130] sm:$0xff]  }
0x2097   : > { %12143 = vmatprep.subr.bf16.mxu0 %v13415_v35  ;;  %12165 = vmatprep.subr.bf16.mxu1 %v13416_v21  ;;  %v13434_v35 = vld [vmem:[%s16493_s16 + $0x1b0] sm:$0xff]  }
0x209a   : > { %12144 = vmatpush3.bf16.msra.mxu0 %v13417_v36  ;;  %12166 = vmatpush3.bf16.msra.mxu1 %v13418_v37  ;;  %v13435_v37 = vld [vmem:[%s16493_s16 + $0x168] sm:$0xff]  }
0x209b   : > { %12145 = vmatprep.subr.bf16.mxu0 %v13419_v39  ;;  %12167 = vmatprep.subr.bf16.mxu1 %v13420_v40  ;;  %v13436_v39 = vld [vmem:[%s16493_s16 + $0x1e8] sm:$0xff]  }
0x209e   : > { %12146 = vmatpush3.bf16.msra.mxu0 %v13421_v42  ;;  %12168 = vmatpush3.bf16.msra.mxu1 %v13422_v43 }
0x209f   : > { %12147 = vmatprep.subr.bf16.mxu0 %v13423_v44  ;;  %12169 = vmatprep.subr.bf16.mxu1 %v13424_v31 }
0x20a2   : > { %12148 = vmatpush3.bf16.msra.mxu0 %v13425_v45  ;;  %12170 = vmatpush3.bf16.msra.mxu1 %v13426_v46  ;;  %v13437_v46 = vld [vmem:[%s16493_s16 + $0x128] sm:$0xff]  }
0x20a3   : > { %12177 = vmatprep.subr.bf16.mxu0 %v13427_v47  ;;  %12199 = vmatprep.subr.bf16.mxu1 %v13428_v48  ;;  %v13438_v47 = vld [vmem:[%s16493_s16 + $0x1a8] sm:$0xff]  }
0x212d   : > { %v4040_v61 = vpop.f32.mrf.mxu0  ;;  %v4081_v15 = vpop.f32.mrf.mxu1 }
0x212e   : > { %v4041_v62 = vadd.f32 %v4040_v61, %v3766_v57  ;;  %v4082_v63 = vadd.f32 %v4081_v15, %v3774_v58  ;;  %v13439_v58 = vld [vmem:[%s16493_s16 + $0x160] sm:$0xff]   ;;  %v14950_v15 = vsub.s32 6, %v14134_v54 }
0x212f   : > { %v4042_v0 = vpop.f32.mrf.mxu0  ;;  %v4083_v3 = vpop.f32.mrf.mxu1 }
0x2130   : > { %v4043_v41 = vadd.f32 %v4042_v0, %v3770_v60  ;;  %v4084_v56 = vadd.f32 %v4083_v3, %v3778_v51  ;;  %v4334_v6 = vmax.f32 %v4041_v62, 0.0  ;;  %v4336_v7 = vmax.f32 %v4082_v63, 0.0  ;;  %v13440_v60 = vld [vmem:[%s16493_s16 + $0x1e0] sm:$0xff]   ;;  %v14961_v0 = vld [vmem:[%s16492_s15 + $0x8] sm:$0xff] }
0x2131   : > { %v4044_v8 = vpop.f32.mrf.mxu0  ;;  %v4085_v9 = vpop.f32.mrf.mxu1  ;;  %v13441_v62 = vld [vmem:[%s16493_s16 + $0x120] sm:$0xff]  }
0x2132   : > { %v4335_v10 = vmax.f32 %v4043_v41, 0.0  ;;  %v4337_v11 = vmax.f32 %v4084_v56, 0.0  ;;  %v4350_v23 = vpack.c.bf16 %v4334_v6, %v4334_v6  ;;  %v4352_v24 = vpack.c.bf16 %v4336_v7, %v4336_v7  ;;  %v13442_v63 = vld [vmem:[%s16493_s16 + $0x1a0] sm:$0xff]   ;;  %v13443_v56 = vld [vmem:[%s16493_s16 + $0x158] sm:$0xff]  }
0x2133   : > { %v4045_v12 = vpop.f32.mrf.mxu0  ;;  %v4086_v13 = vpop.f32.mrf.mxu1  ;;  %v13444_v6 = vld [vmem:[%s16493_s16 + $0x1d8] sm:$0xff]   ;;  %v3822_v7 = vrot.slane %v14961_v0, %v14950_v15 }
0x2134   : > { %v4351_v14 = vpack.c.bf16 %v4335_v10, %v4335_v10  ;;  %v4353_v16 = vpack.c.bf16 %v4337_v11, %v4337_v11  ;;  %v13445_v10 = vld [vmem:[%s16493_s16 + $0x118] sm:$0xff]   ;;  %v14978_v12 = vsub.s32 4, %v14134_v54  ;;  %v13449_v54 = vld [vmem:[%s16493_s16 + $0x110] sm:$0xff]  }
0x2135   : > { %v14911_v25 = vpop.f32.mrf.mxu0  ;;  %v14913_v26 = vpop.f32.mrf.mxu1  ;;  %v13446_v11 = vld [vmem:[%s16493_s16 + $0x198] sm:$0xff]  }
0x2136   : > { %5429 = vmatprep.mubr.bf16.mxu0 %v4351_v14  ;;  %5469 = vmatprep.mubr.bf16.mxu1 %v4353_v16  ;;  %v13447_v16 = vld [vmem:[%s16493_s16 + $0x150] sm:$0xff]  }
0x2137   : > { %v4124_v29 = vpop.f32.mrf.mxu0  ;;  %v4165_v30 = vpop.f32.mrf.mxu1  ;;  %5430 = vmatmul.mubr.bf16.vlgmr.msra.gmra.mxu0 %v4350_v23  ;;  %5470 = vmatmul.mubr.bf16.vlgmr.msra.gmra.mxu1 %v4352_v24  ;;  %v13450_v23 = vld [vmem:[%s16493_s16 + $0x190] sm:$0xff]   ;;  %v3782_v24 = vrot.slane %v14879_v50, %v14978_v12 }
0x2138   : > { %v4125_v18 = vadd.f32 %v4124_v29, %v3786_v17  ;;  %v4166_v32 = vadd.f32 %v4165_v30, %v3794_v19  ;;  %12178 = vmatpush3.bf16.msra.mxu0 %v13429_v20  ;;  %12200 = vmatpush3.bf16.msra.mxu1 %v13430_v22  ;;  %v13448_v17 = vld [vmem:[%s16493_s16 + $0x1d0] sm:$0xff]   ;;  %v13451_v30 = vld [vmem:[%s16493_s16 + $0x148] sm:$0xff]  }
0x2139   : > { %v4126_v21 = vpop.f32.mrf.mxu0  ;;  %v4167_v36 = vpop.f32.mrf.mxu1  ;;  %12179 = vmatprep.subr.bf16.mxu0 %v13431_v27  ;;  %12201 = vmatprep.subr.bf16.mxu1 %v13432_v28  ;;  %v3790_v27 = vrot.slane %v14879_v50, %v14950_v15 }
0x213a   : > { %v4339_v40 = vmax.f32 %v4125_v18, 0.0  ;;  %v4341_v42 = vmax.f32 %v4166_v32, 0.0  ;;  %v13452_v18 = vld [vmem:[%s16493_s16 + $0x1c8] sm:$0xff]   ;;  %v3802_v32 = vrot.slane %v14961_v0, %v14882_v52 }
0x213b   : > { %v4127_v43 = vpop.f32.mrf.mxu0  ;;  %v4168_v44 = vpop.f32.mrf.mxu1  ;;  %v13453_v21 = vld [vmem:[%s16493_s16 + $0x108] sm:$0xff]  }
0x213c   : > { %v4355_v31 = vpack.c.bf16 %v4339_v40, %v4339_v40  ;;  %v4357_v45 = vpack.c.bf16 %v4341_v42, %v4341_v42  ;;  %12180 = vmatpush3.bf16.msra.mxu0 %v13433_v33  ;;  %12202 = vmatpush3.bf16.msra.mxu1 %v13434_v35  ;;  %v3810_v33 = vrot.slane %v14961_v0, %v14885_v53  ;;  %v13454_v36 = vld [vmem:[%s16493_s16 + $0x188] sm:$0xff]   ;;  %v13455_v40 = vld [vmem:[%s16493_s16 + $0x140] sm:$0xff]  }
0x213d   : > { %v14939_v48 = vpop.f32.mrf.mxu0  ;;  %v14941_v57 = vpop.f32.mrf.mxu1  ;;  %12181 = vmatprep.subr.bf16.mxu0 %v13435_v37  ;;  %12203 = vmatprep.subr.bf16.mxu1 %v13436_v39  ;;  %v4123_v37 = vadd.f32 %v14911_v25, %v3782_v24  ;;  %v4164_v39 = vadd.f32 %v14913_v26, %v3790_v27  ;;  %v13456_v42 = vld [vmem:[%s16493_s16 + $0x1c0] sm:$0xff]   ;;  %v13475_v24 = vld [vmem:[%s16493_s16 + $0x258] sm:$0xff]  }
0x213e   : > { %5509 = vmatprep.mubr.bf16.mxu0 %v4355_v31  ;;  %5549 = vmatprep.mubr.bf16.mxu1 %v4357_v45  ;;  %v13457_v25 = vld [vmem:[%s16493_s16 + $0x100] sm:$0xff]   ;;  %v13476_v27 = vld [vmem:[%s16493_s16 + $0x2d8] sm:$0xff]  }
0x213f   : > { %v4206_v51 = vpop.f32.mrf.mxu0  ;;  %v4247_v61 = vpop.f32.mrf.mxu1  ;;  %v13458_v26 = vld [vmem:[%s16493_s16 + $0x180] sm:$0xff]   ;;  %v4338_v31 = vmax.f32 %v4123_v37, 0.0  ;;  %v4340_v45 = vmax.f32 %v4164_v39, 0.0  ;;  %v3818_v37 = vrot.slane %v14961_v0, %v14896_v4  ;;  %v3826_v39 = vrot.slane %v14961_v0, %v14899_v5 }
0x2140   : > { %12182 = vmatpush3.bf16.msra.mxu0 %v13437_v46  ;;  %12204 = vmatpush3.bf16.msra.mxu1 %v13438_v47  ;;  %v4207_v43 = vadd.f32 %v4206_v51, %v3802_v32  ;;  %v4248_v44 = vadd.f32 %v4247_v61, %v3810_v33  ;;  %v13459_v46 = vld [vmem:[%s16493_s16 + $0x278] sm:$0xff]   ;;  %v13481_v32 = vld [vmem:[%s16493_s16 + $0x210] sm:$0xff]   ;;  %v3798_v33 = vrot.slane %v14961_v0, %v14137_v55 }
0x2141   : > { %v4208_v3 = vpop.f32.mrf.mxu0  ;;  %v4249_v41 = vpop.f32.mrf.mxu1  ;;  %12183 = vmatprep.subr.bf16.mxu0 %v13439_v58  ;;  %12205 = vmatprep.subr.bf16.mxu1 %v13440_v60  ;;  %v13460_v47 = vld [vmem:[%s16493_s16 + $0x2f8] sm:$0xff]   ;;  %v4354_v61 = vpack.c.bf16 %v4338_v31, %v4338_v31 }
0x2142   : > { %v4343_v58 = vmax.f32 %v4207_v43, 0.0  ;;  %v4345_v60 = vmax.f32 %v4248_v44, 0.0  ;;  %v13461_v51 = vld [vmem:[%s16493_s16 + $0x238] sm:$0xff]   ;;  %v13463_v41 = vld [vmem:[%s16493_s16 + $0x270] sm:$0xff]   ;;  %v13486_v43 = vld [vmem:[%s16493_s16 + $0x288] sm:$0xff]  }
0x2143   : > { %v4209_v8 = vpop.f32.mrf.mxu0  ;;  %v4250_v9 = vpop.f32.mrf.mxu1  ;;  %v13487_v44 = vld [vmem:[%s16493_s16 + $0x240] sm:$0xff]  }
0x2144   : > { %12184 = vmatpush3.bf16.msra.mxu0 %v13441_v62  ;;  %12206 = vmatpush3.bf16.msra.mxu1 %v13442_v63  ;;  %v4356_v62 = vpack.c.bf16 %v4340_v45, %v4340_v45  ;;  %v13462_v63 = vld [vmem:[%s16493_s16 + $0x2b8] sm:$0xff]   ;;  %v4359_v3 = vpack.c.bf16 %v4343_v58, %v4343_v58  ;;  %v13466_v8 = vld [vmem:[%s16493_s16 + $0x2b0] sm:$0xff]   ;;  %v13467_v9 = vld [vmem:[%s16493_s16 + $0x268] sm:$0xff]  }
0x2145   : > { %v14980_v13 = vpop.f32.mrf.mxu0  ;;  %v4327_v14 = vpop.f32.mrf.mxu1  ;;  %12185 = vmatprep.subr.bf16.mxu0 %v13443_v56  ;;  %12207 = vmatprep.subr.bf16.mxu1 %v13444_v6  ;;  %v13464_v56 = vld [vmem:[%s16493_s16 + $0x2f0] sm:$0xff]   ;;  %v4361_v6 = vpack.c.bf16 %v4345_v60, %v4345_v60  ;;  %v13489_v45 = vld [vmem:[%s16493_s16 + $0x200] sm:$0xff]  }
0x2146   : > { %v14988_v19 = vadd.f32 %v4327_v14, %v3822_v7  ;;  %v13465_v7 = vld [vmem:[%s16493_s16 + $0x230] sm:$0xff]   ;;  %v13470_v14 = vld [vmem:[%s16493_s16 + $0x2a8] sm:$0xff]  }
0x2147   : > { %v14990_v20 = vpop.f32.mrf.mxu0  ;;  %v14992_v22 = vpop.f32.mrf.mxu1 }
0x2148   : > { %12186 = vmatpush3.bf16.msra.mxu0 %v13445_v10  ;;  %12208 = vmatpush3.bf16.msra.mxu1 %v13446_v11  ;;  %v13468_v10 = vld [vmem:[%s16493_s16 + $0x2e8] sm:$0xff]   ;;  %v4289_v31 = vadd.f32 %v14990_v20, %v3818_v37  ;;  %v13492_v20 = vld [vmem:[%s16493_s16 + $0x3f8] sm:$0xff]  }
0x2149   : > { %v4290_v28 = vpop.f32.mrf.mxu0  ;;  %v4331_v29 = vpop.f32.mrf.mxu1  ;;  %12187 = vmatprep.subr.bf16.mxu0 %v13447_v16  ;;  %12209 = vmatprep.subr.bf16.mxu1 %v13448_v17  ;;  %v13469_v11 = vld [vmem:[%s16493_s16 + $0x228] sm:$0xff]   ;;  %v13471_v16 = vld [vmem:[%s16493_s16 + $0x260] sm:$0xff]  }
0x214a   : > { %v13472_v17 = vld [vmem:[%s16493_s16 + $0x2e0] sm:$0xff]   ;;  %v13477_v28 = vld [vmem:[%s16493_s16 + $0x218] sm:$0xff]   ;;  %v13518_v37 = vld [vmem:[%s16493_s16 + $0x388] sm:$0xff]  }
0x214b   : > { %v4291_v35 = vpop.f32.mrf.mxu0  ;;  %v4332_v50 = vpop.f32.mrf.mxu1  ;;  %v13478_v29 = vld [vmem:[%s16493_s16 + $0x298] sm:$0xff]  }
0x214c   : > { %12188 = vmatpush3.bf16.msra.mxu0 %v13449_v54  ;;  %12210 = vmatpush3.bf16.msra.mxu1 %v13450_v23  ;;  %v13473_v54 = vld [vmem:[%s16493_s16 + $0x220] sm:$0xff]   ;;  %v13482_v35 = vld [vmem:[%s16493_s16 + $0x290] sm:$0xff]   ;;  %v13483_v50 = vld [vmem:[%s16493_s16 + $0x248] sm:$0xff]  }
0x214d   : > { %12189 = vmatprep.subr.bf16.mxu0 %v13451_v30  ;;  %12211 = vmatprep.subr.bf16.mxu1 %v13452_v18  ;;  %v13474_v23 = vld [vmem:[%s16493_s16 + $0x2a0] sm:$0xff]   ;;  %v13479_v30 = vld [vmem:[%s16493_s16 + $0x250] sm:$0xff]  }
0x214e   : > { %v13480_v18 = vld [vmem:[%s16493_s16 + $0x2d0] sm:$0xff]  }
0x2150   : > { %12190 = vmatpush3.bf16.msra.mxu0 %v13453_v21  ;;  %12212 = vmatpush3.bf16.msra.mxu1 %v13454_v36  ;;  %v3806_v21 = vrot.slane %v14961_v0, %v14874_v49  ;;  %v13484_v36 = vld [vmem:[%s16493_s16 + $0x2c8] sm:$0xff]  }
0x2151   : > { %12191 = vmatprep.subr.bf16.mxu0 %v13455_v40  ;;  %12213 = vmatprep.subr.bf16.mxu1 %v13456_v42  ;;  %v13485_v40 = vld [vmem:[%s16493_s16 + $0x208] sm:$0xff]   ;;  %v4205_v42 = vadd.f32 %v14939_v48, %v3798_v33  ;;  %v4330_v48 = vadd.f32 %v14992_v22, %v3826_v39  ;;  %v4347_v22 = vmax.f32 %v4289_v31, 0.0  ;;  %v3814_v33 = vrot.slane %v14961_v0, %v14978_v12  ;;  %v13519_v39 = vld [vmem:[%s16493_s16 + $0x340] sm:$0xff]  }
0x2152   : > { %v13517_v0 = vld [vmem:[%s16493_s16 + $0x308] sm:$0xff]  }
0x2153   : > { %v4349_v60 = vmax.f32 %v4330_v48, 0.0 }
0x2154   : > { %12192 = vmatpush3.bf16.msra.mxu0 %v13457_v25  ;;  %12214 = vmatpush3.bf16.msra.mxu1 %v13458_v26  ;;  %v4246_v25 = vadd.f32 %v14941_v57, %v3806_v21  ;;  %v13488_v26 = vld [vmem:[%s16493_s16 + $0x2c0] sm:$0xff]   ;;  %v13516_v21 = vld [vmem:[%s16493_s16 + $0x3c8] sm:$0xff]  }
0x2155   : > { %12221 = vmatprep.subr.bf16.mxu0 %v13459_v46  ;;  %12243 = vmatprep.subr.bf16.mxu1 %v13460_v47  ;;  %v4342_v46 = vmax.f32 %v4205_v42, 0.0  ;;  %v13490_v57 = vld [vmem:[%s16493_s16 + $0x280] sm:$0xff]   ;;  %v13491_v47 = vld [vmem:[%s16493_s16 + $0x378] sm:$0xff]  }
0x2156   : > { %v4344_v58 = vmax.f32 %v4246_v25, 0.0 }
0x2157   : > { %5510 = vmatmul.mubr.bf16.vlgmr.msra.gmra.mxu0 %v4354_v61  ;;  %5550 = vmatmul.mubr.bf16.vlgmr.msra.gmra.mxu1 %v4356_v62  ;;  %v4358_v61 = vpack.c.bf16 %v4342_v46, %v4342_v46  ;;  %v13494_v62 = vld [vmem:[%s16493_s16 + $0x3b8] sm:$0xff]  }
0x2158   : > { %12222 = vmatpush3.bf16.msra.mxu0 %v13461_v51  ;;  %5589 = vmatprep.mubr.bf16.mxu0 %v4359_v3  ;;  %v13493_v51 = vld [vmem:[%s16493_s16 + $0x338] sm:$0xff]   ;;  %v13495_v3 = vld [vmem:[%s16493_s16 + $0x370] sm:$0xff]  }
0x2159   : > { %12244 = vmatpush3.bf16.msra.mxu1 %v13462_v63  ;;  %5629 = vmatprep.mubr.bf16.mxu1 %v4361_v6  ;;  %v4360_v63 = vpack.c.bf16 %v4344_v58, %v4344_v58  ;;  %v4365_v6 = vpack.c.bf16 %v4349_v60, %v4349_v60 }
0x215a   : > { %12223 = vmatprep.subr.bf16.mxu0 %v13463_v41  ;;  %12245 = vmatprep.subr.bf16.mxu1 %v13464_v56  ;;  %v4363_v41 = vpack.c.bf16 %v4347_v22, %v4347_v22  ;;  %v13496_v56 = vld [vmem:[%s16493_s16 + $0x3f0] sm:$0xff]  }
0x215c   : > { %12224 = vmatpush3.bf16.msra.mxu0 %v13465_v7  ;;  %v13497_v7 = vld [vmem:[%s16493_s16 + $0x330] sm:$0xff]  }
0x215d   : > { %12246 = vmatpush3.bf16.msra.mxu1 %v13466_v8  ;;  %12225 = vmatprep.subr.bf16.mxu0 %v13467_v9  ;;  %v13498_v8 = vld [vmem:[%s16493_s16 + $0x3b0] sm:$0xff]   ;;  %v13499_v9 = vld [vmem:[%s16493_s16 + $0x368] sm:$0xff]  }
0x215e   : > { %12247 = vmatprep.subr.bf16.mxu1 %v13468_v10  ;;  %v13500_v10 = vld [vmem:[%s16493_s16 + $0x3e8] sm:$0xff]  }
0x2160   : > { %12226 = vmatpush3.bf16.msra.mxu0 %v13469_v11  ;;  %v13501_v11 = vld [vmem:[%s16493_s16 + $0x328] sm:$0xff]  }
0x2161   : > { %12248 = vmatpush3.bf16.msra.mxu1 %v13470_v14  ;;  %12227 = vmatprep.subr.bf16.mxu0 %v13471_v16  ;;  %v13502_v14 = vld [vmem:[%s16493_s16 + $0x3a8] sm:$0xff]   ;;  %v13503_v16 = vld [vmem:[%s16493_s16 + $0x360] sm:$0xff]  }
0x2162   : > { %12249 = vmatprep.subr.bf16.mxu1 %v13472_v17  ;;  %v13504_v17 = vld [vmem:[%s16493_s16 + $0x3e0] sm:$0xff]  }
0x2164   : > { %12228 = vmatpush3.bf16.msra.mxu0 %v13473_v54  ;;  %v13505_v54 = vld [vmem:[%s16493_s16 + $0x320] sm:$0xff]  }
0x2165   : > { %12250 = vmatpush3.bf16.msra.mxu1 %v13474_v23  ;;  %12229 = vmatprep.subr.bf16.mxu0 %v13475_v24  ;;  %v13506_v23 = vld [vmem:[%s16493_s16 + $0x3a0] sm:$0xff]   ;;  %v13507_v24 = vld [vmem:[%s16493_s16 + $0x358] sm:$0xff]  }
0x2166   : > { %12251 = vmatprep.subr.bf16.mxu1 %v13476_v27  ;;  %v13508_v27 = vld [vmem:[%s16493_s16 + $0x3d8] sm:$0xff]  }
0x2168   : > { %12230 = vmatpush3.bf16.msra.mxu0 %v13477_v28  ;;  %v13509_v28 = vld [vmem:[%s16493_s16 + $0x318] sm:$0xff]  }
0x2169   : > { %12252 = vmatpush3.bf16.msra.mxu1 %v13478_v29  ;;  %12231 = vmatprep.subr.bf16.mxu0 %v13479_v30  ;;  %v13510_v29 = vld [vmem:[%s16493_s16 + $0x398] sm:$0xff]   ;;  %v13511_v30 = vld [vmem:[%s16493_s16 + $0x350] sm:$0xff]  }
0x216a   : > { %12253 = vmatprep.subr.bf16.mxu1 %v13480_v18  ;;  %v13512_v18 = vld [vmem:[%s16493_s16 + $0x3d0] sm:$0xff]  }
0x216c   : > { %12232 = vmatpush3.bf16.msra.mxu0 %v13481_v32  ;;  %v13513_v32 = vld [vmem:[%s16493_s16 + $0x310] sm:$0xff]  }
0x216d   : > { %12254 = vmatpush3.bf16.msra.mxu1 %v13482_v35  ;;  %12233 = vmatprep.subr.bf16.mxu0 %v13483_v50  ;;  %v13514_v35 = vld [vmem:[%s16493_s16 + $0x390] sm:$0xff]   ;;  %v13515_v50 = vld [vmem:[%s16493_s16 + $0x348] sm:$0xff]  }
0x216e   : > { %12255 = vmatprep.subr.bf16.mxu1 %v13484_v36  ;;  %v4287_v36 = vadd.f32 %v14980_v13, %v3814_v33  ;;  %v13521_v13 = vld [vmem:[%s16493_s16 + $0x300] sm:$0xff]  }
0x2170   : > { %12234 = vmatpush3.bf16.msra.mxu0 %v13485_v40  ;;  %v13520_v40 = vld [vmem:[%s16493_s16 + $0x3c0] sm:$0xff]   ;;  %v4346_v42 = vmax.f32 %v4287_v36, 0.0 }
0x2171   : > { %12256 = vmatpush3.bf16.msra.mxu1 %v13486_v43  ;;  %12235 = vmatprep.subr.bf16.mxu0 %v13487_v44  ;;  %v13522_v43 = vld [vmem:[%s16493_s16 + $0x380] sm:$0xff]   ;;  %v4348_v44 = vmax.f32 %v14988_v19, 0.0 }
0x2172   : > { %12257 = vmatprep.subr.bf16.mxu1 %v13488_v26  ;;  %v4362_v25 = vpack.c.bf16 %v4346_v42, %v4346_v42  ;;  %v11142_v19 = vld [vmem:[%s16494_s17] ss:$0 sm:$0xff] }
0x2173   : > { %v4364_v26 = vpack.c.bf16 %v4348_v44, %v4348_v44 }
0x2174   : > { %12236 = vmatpush3.bf16.msra.mxu0 %v13489_v45 }
0x2175   : > { %12258 = vmatpush3.bf16.msra.mxu1 %v13490_v57  ;;  %12265 = vmatprep.subr.bf16.mxu0 %v13491_v47 }
0x2176   : > { %12287 = vmatprep.subr.bf16.mxu1 %v13492_v20 }
0x2177   : > { %5590 = vmatmul.mubr.bf16.vlgmr.msra.gmra.mxu0 %v4358_v61 }
0x2178   : > { %5630 = vmatmul.mubr.bf16.vlgmr.msra.gmra.mxu1 %v4360_v63  ;;  %12266 = vmatpush3.bf16.msra.mxu0 %v13493_v51 }
0x2179   : > { %5669 = vmatprep.mubr.bf16.mxu0 %v4363_v41  ;;  %12288 = vmatpush3.bf16.msra.mxu1 %v13494_v62 }
0x217a   : > { %5709 = vmatprep.mubr.bf16.mxu1 %v4365_v6  ;;  %12267 = vmatprep.subr.bf16.mxu0 %v13495_v3 }
0x217b   : > { %12289 = vmatprep.subr.bf16.mxu1 %v13496_v56 }
0x217c   : > { %12268 = vmatpush3.bf16.msra.mxu0 %v13497_v7 }
0x217d   : > { %12290 = vmatpush3.bf16.msra.mxu1 %v13498_v8  ;;  %12269 = vmatprep.subr.bf16.mxu0 %v13499_v9 }
0x217e   : > { %12291 = vmatprep.subr.bf16.mxu1 %v13500_v10 }
0x2180   : > { %12270 = vmatpush3.bf16.msra.mxu0 %v13501_v11 }
0x2181   : > { %12292 = vmatpush3.bf16.msra.mxu1 %v13502_v14  ;;  %12271 = vmatprep.subr.bf16.mxu0 %v13503_v16 }
0x2182   : > { %12293 = vmatprep.subr.bf16.mxu1 %v13504_v17 }
0x2184   : > { %12272 = vmatpush3.bf16.msra.mxu0 %v13505_v54 }
0x2185   : > { %12294 = vmatpush3.bf16.msra.mxu1 %v13506_v23  ;;  %12273 = vmatprep.subr.bf16.mxu0 %v13507_v24 }
0x2186   : > { %12295 = vmatprep.subr.bf16.mxu1 %v13508_v27 }
0x2188   : > { %12274 = vmatpush3.bf16.msra.mxu0 %v13509_v28 }
0x2189   : > { %12296 = vmatpush3.bf16.msra.mxu1 %v13510_v29  ;;  %12275 = vmatprep.subr.bf16.mxu0 %v13511_v30 }
0x218a   : > { %12297 = vmatprep.subr.bf16.mxu1 %v13512_v18 }
0x218c   : > { %12276 = vmatpush3.bf16.msra.mxu0 %v13513_v32 }
0x218d   : > { %12298 = vmatpush3.bf16.msra.mxu1 %v13514_v35  ;;  %12277 = vmatprep.subr.bf16.mxu0 %v13515_v50 }
0x218e   : > { %12299 = vmatprep.subr.bf16.mxu1 %v13516_v21 }
0x2190   : > { %12278 = vmatpush3.bf16.msra.mxu0 %v13517_v0 }
0x2191   : > { %12300 = vmatpush3.bf16.msra.mxu1 %v13518_v37  ;;  %12279 = vmatprep.subr.bf16.mxu0 %v13519_v39 }
0x2192   : > { %12301 = vmatprep.subr.bf16.mxu1 %v13520_v40 }
0x2194   : > { %12280 = vmatpush3.bf16.msra.mxu0 %v13521_v13 }
0x2195   : > { %12302 = vmatpush3.bf16.msra.mxu1 %v13522_v43  ;;  %12956 = vmatprep.subr.bf16.mxu0 %v13840_v2 }
0x2196   : > { %12964 = vmatprep.subr.bf16.mxu1 %v13840_v2 }
0x2197   : > { %5670 = vmatmul.mubr.bf16.vlgmr.msra.gmra.mxu0 %v4362_v25 }
0x2198   : > { %5710 = vmatmul.mubr.bf16.vlgmr.msra.gmra.mxu1 %v4364_v26  ;;  %12960 = vmatprep.mubr.msk.bf16.mxu0 %vm13841_vm0, %v13840_v2 }
0x2199   : > { %12968 = vmatprep.mubr.msk.bf16.mxu1 %vm13841_vm0, %v13840_v2 }
0x21f7   : > { %v12149_v31 = vpop.f32.mrf.mxu0  ;;  %v12171_v48 = vpop.f32.mrf.mxu1 }
0x21f9   : > { %v12150_v45 = vpop.f32.mrf.mxu0  ;;  %v12172_v46 = vpop.f32.mrf.mxu1 }
0x21fa   : > { %v12151_v57 = vadd.f32 %v12150_v45, %v12149_v31  ;;  %v12173_v47 = vadd.f32 %v12172_v46, %v12171_v48 }
0x21fb   : > { %v12152_v58 = vpop.f32.mrf.mxu0  ;;  %v12174_v20 = vpop.f32.mrf.mxu1 }
0x21fc   : > { %v5432_v22 = vadd.f32 %v12151_v57, %v11142_v19  ;;  %v13523_v57 = vld [vmem:[%s16531_s22 + $0xc8] sm:$0xff]   ;;  %v13526_v58 = vld [vmem:[%s16531_s22 + $0x100] sm:$0xff]  }
0x21fd   : > { %v12153_v60 = vpop.f32.mrf.mxu0  ;;  %v12175_v51 = vpop.f32.mrf.mxu1  ;;  %12957 = vmatpush3.bf16.msra.mxu0 %v13523_v57 }
0x21fe   : > { %v5472_v61 = vadd.f32 %v12173_v47, %v5432_v22  ;;  %v13524_v47 = vld [vmem:[%s16531_s22 + $0x108] sm:$0xff]   ;;  %12958 = vmatprep.subr.bf16.mxu0 %v13840_v2 }
0x21ff   : > { %12965 = vmatpush3.bf16.msra.mxu1 %v13524_v47 }
0x2200   : > { %12966 = vmatprep.subr.bf16.mxu1 %v13840_v2 }
0x2203   : > { %12967 = vmatpush3.bf16.msra.mxu1 %v13526_v58 }
0x2204   : > { %12980 = vmatprep.subr.bf16.mxu1 %v13840_v2 }
0x2217   : > { %v12193_v62 = vpop.f32.mrf.mxu0  ;;  %v12215_v63 = vpop.f32.mrf.mxu1 }
0x2219   : > { %v12194_v3 = vpop.f32.mrf.mxu0  ;;  %v12216_v41 = vpop.f32.mrf.mxu1 }
0x221a   : > { %v12195_v24 = vadd.f32 %v12194_v3, %v12193_v62  ;;  %v12217_v28 = vadd.f32 %v12216_v41, %v12215_v63  ;;  %v11274_v63 = vld [vmem:[%s16496_s19 + $0x2] ss:$0 sm:$0xff] }
0x221b   : > { %v12196_v56 = vpop.f32.mrf.mxu0  ;;  %v12218_v6 = vpop.f32.mrf.mxu1 }
0x221c   : > { %v5512_v27 = vadd.f32 %v12195_v24, %v5472_v61  ;;  %v11273_v61 = vld [vmem:[%s16495_s18 + $0x2] ss:$0 sm:$0xff]  ;;  %v13527_v56 = vld [vmem:[%s16531_s22 + $0x148] sm:$0xff]  }
0x221d   : > { %v12197_v7 = vpop.f32.mrf.mxu0  ;;  %v12219_v8 = vpop.f32.mrf.mxu1 }
0x221e   : > { %v5552_v30 = vadd.f32 %v12217_v28, %v5512_v27  ;;  %v13528_v7 = vld [vmem:[%s16531_s22 + $0x140] sm:$0xff]   ;;  %v11289_v8 = vld [vmem:[%s16484_s7 + $0x10] ss:$0 sm:$0xff] }
0x2237   : > { %v12237_v9 = vpop.f32.mrf.mxu0 }
0x2238   : > { %v12259_v10 = vpop.f32.mrf.mxu1 }
0x2239   : > { %v12238_v11 = vpop.f32.mrf.mxu0 }
0x223a   : > { %v12260_v14 = vpop.f32.mrf.mxu1  ;;  %v12239_v29 = vadd.f32 %v12238_v11, %v12237_v9  ;;  %v11280_v9 = vld [vmem:[%s16484_s7 + $0xc] ss:$0 sm:$0xff] }
0x223b   : > { %v12240_v16 = vpop.f32.mrf.mxu0  ;;  %v12261_v33 = vadd.f32 %v12260_v14, %v12259_v10 }
0x223c   : > { %v12262_v17 = vpop.f32.mrf.mxu1  ;;  %v5592_v18 = vadd.f32 %v12239_v29, %v5552_v30 }
0x223d   : > { %v12241_v54 = vpop.f32.mrf.mxu0 }
0x223e   : > { %v12263_v23 = vpop.f32.mrf.mxu1  ;;  %v5632_v21 = vadd.f32 %v12261_v33, %v5592_v18  ;;  %v11298_v18 = vld [vmem:[%s16484_s7 + $0x14] ss:$0 sm:$0xff] }
0x2257   : > { %v12281_v32 = vpop.f32.mrf.mxu0 }
0x2258   : > { %v12303_v35 = vpop.f32.mrf.mxu1 }
0x2259   : > { %v12282_v50 = vpop.f32.mrf.mxu0 }
0x225a   : > { %v12283_v0 = vadd.f32 %v12282_v50, %v12281_v32  ;;  %v12304_v36 = vpop.f32.mrf.mxu1 }
0x225b   : > { %v12284_v37 = vpop.f32.mrf.mxu0  ;;  %v12305_v40 = vadd.f32 %v12304_v36, %v12303_v35 }
0x225c   : > { %v5672_v39 = vadd.f32 %v12283_v0, %v5632_v21  ;;  %v12306_v13 = vpop.f32.mrf.mxu1  ;;  %v13529_v21 = vld [vmem:[%s16531_s22 + $0xd8] sm:$0xff]  }
0x225d   : > { %v12285_v42 = vpop.f32.mrf.mxu0  ;;  %v13530_v13 = vld [vmem:[%s16531_s22 + $0xd0] sm:$0xff]  }
0x225e   : > { %v5712_v43 = vadd.f32 %v12305_v40, %v5672_v39  ;;  %v12307_v44 = vpop.f32.mrf.mxu1  ;;  %v13531_v42 = vld [vmem:[%s16531_s22 + $0x158] sm:$0xff]  }
0x2260   : > { %v5717_v25 = vadd.f32 %v5712_v43, %v14695_v34  ;;  %v13525_v34 = vld [vmem:[%s16531_s22 + $0xc0] sm:$0xff]   ;;  %v13532_v43 = vld [vmem:[%s16531_s22 + $0x150] sm:$0xff]  }
0x2261   : > { %12959 = vmatpush3.bf16.msra.mxu0 %v13525_v34  ;;  %v11328_v34 = vld [vmem:[%s16484_s7 + $0x15] ss:$0 sm:$0xff] }
0x2262   : > { %v5722_v26 = vsel %vm846_vm3, %v5717_v25, 0.0  ;;  %12972 = vmatprep.subr.bf16.mxu0 %v13840_v2 }
0x2263   : > { %5723 = vadd.xlane.f32.xlu0 %v5722_v26 }
0x22ec   : > { %v5724_v31 = vpop.xlane.xlu0 %5723 }
0x22ed   : > { %v5725_v48 = vmul.f32 0.03125, %v5724_v31 }
0x22ef   : > { %v5726_v19 = vsub.f32 %v5717_v25, %v5725_v48 }
0x22f1   : > { %v5727_v45 = vmul.f32 %v5726_v19, %v5726_v19 }
0x22f3   : > { %v5728_v46 = vsel %vm846_vm3, %v5727_v45, 0.0 }
0x22f4   : > { %5729 = vadd.xlane.f32.xlu1 %v5728_v46 }
0x237d   : > { %v5730_v20 = vpop.xlane.xlu1 %5729 }
0x237e   : > { %v5731_v22 = vmul.f32 0.03125, %v5730_v20 }
0x2380   : > { %v5732_v60 = vadd.f32 1e-05, %v5731_v22 }
0x2382   : > { %13737 = vrsqrt.f32 %v5732_v60 }
0x238f   : > { %v13738_v51 = vpop.eup %13737 }
0x2390   : > { %v5734_v62 = vmul.f32 %v13738_v51, %v5726_v19 }
0x2392   : > { %v5741_v3 = vmul.f32 %v11273_v61, %v5734_v62 }
0x2394   : > { %v15276_v41 = vadd.f32 %v11274_v63, %v5741_v3 }
0x2396   : > { %v15283_v6 = vpack.c.bf16 %v15276_v41, %v15276_v41 }
0x2398   : > { %12961 = vmatmul.mubr.msk.bf16.vlgmr.msra.gmra.mxu0 %vm846_vm3, %v15283_v6  ;;  %12969 = vmatmul.mubr.msk.bf16.vlgmr.msra.gmra.mxu1 %vm846_vm3, %v15283_v6 }
0x2399   : > { %12973 = vmatpush3.bf16.msra.mxu0 %v13527_v56  ;;  %12976 = vmatprep.mubr.msk.bf16.mxu0 %vm13841_vm0, %v13840_v2 }
0x239a   : > { %12974 = vmatprep.subr.bf16.mxu0 %v13840_v2  ;;  %12982 = vmatprep.mubr.msk.bf16.mxu1 %vm13841_vm0, %v13840_v2 }
0x239d   : > { %12975 = vmatpush3.bf16.msra.mxu0 %v13528_v7 }
0x239e   : > { %12986 = vmatprep.subr.bf16.mxu0 %v13840_v2 }
0x23a0   : > { %12977 = vmatmul.mubr.msk.bf16.vlgmr.msra.gmra.mxu0 %vm846_vm3, %v15283_v6 }
0x23a1   : > { %12988 = vmatprep.mubr.msk.bf16.mxu0 %vm13841_vm0, %v13840_v2 }
0x2458   : > { %v5812_v10 = vpop.f32.mrf.mxu0  ;;  %v5877_v11 = vpop.f32.mrf.mxu1 }
0x2459   : > { %v5878_v14 = vadd.f32 %v11289_v8, %v5877_v11  ;;  %v5813_v54 = vadd.f32 %v11280_v9, %v5812_v10 }
0x245a   : > { %v12962_v16 = vpop.f32.mrf.mxu0  ;;  %v12970_v17 = vpop.f32.mrf.mxu1 }
0x245b   : > { %v5950_v23 = vpack.c.bf16 %v5878_v14, %v5878_v14  ;;  %v5948_v32 = vmul.f32 0.35355338, %v5813_v54  ;;  %v13533_v14 = vld [vmem:[%s16531_s22 + $0x118] sm:$0xff]   ;;  %v13534_v17 = vld [vmem:[%s16531_s22 + $0x110] sm:$0xff]  }
0x245c   : > { %v5815_v24 = vpop.f32.mrf.mxu0  ;;  %v5880_v27 = vpop.f32.mrf.mxu1 }
0x245d   : > { %v5955_v28 = vsel %vm1023_vm5, %v5950_v23, 0  ;;  %v5949_v0 = vpack.c.bf16 %v5948_v32, %v5948_v32 }
0x245e   : > { %v12963_v29 = vpop.f32.mrf.mxu0  ;;  %v12971_v30 = vpop.f32.mrf.mxu1  ;;  %12981 = vmatpush3.bf16.xpose.msra.mxu1 %v5955_v28  ;;  %v11319_v28 = vld [vmem:[%s16484_s7 + $0x11] ss:$0 sm:$0xff] }
0x245f   : > { %12992 = vmatprep.subr.bf16.mxu1 %v13840_v2  ;;  %v11310_v29 = vld [vmem:[%s16484_s7 + $0xd] ss:$0 sm:$0xff] }
0x2460   : > { %v5942_v33 = vpop.f32.mrf.mxu0 }
0x2461   : > { %v5943_v35 = vadd.f32 %v11298_v18, %v5942_v33 }
0x2462   : > { %v12978_v50 = vpop.f32.mrf.mxu0 }
0x2463   : > { %v6009_v36 = vpack.c.bf16 %v5943_v35, %v5943_v35 }
0x2464   : > { %v5945_v37 = vpop.f32.mrf.mxu0 }
0x2465   : > { %v6014_v39 = vsel %vm1086_vm4, %v6009_v36, 0  ;;  %12983 = vmatmul.mubr.msk.bf16.vlgmr.msra.gmra.mxu1 %vm1023_vm5, %v5949_v0 }
0x2466   : > { %v12979_v40 = vpop.f32.mrf.mxu0  ;;  %12987 = vmatpush3.bf16.msra.mxu0 %v6014_v39  ;;  %12993 = vmatpush3.bf16.msra.mxu1 %v13529_v21 }
0x2467   : > { %12994 = vmatprep.subr.bf16.mxu1 %v13840_v2  ;;  %12996 = vmatprep.mubr.msk.bf16.mxu1 %vm13841_vm0, %v13840_v2 }
0x2468   : > { %13000 = vmatprep.subr.bf16.mxu0 %v13840_v2 }
0x246a   : > { %12995 = vmatpush3.bf16.msra.mxu1 %v13530_v13 }
0x246b   : > { %13008 = vmatprep.subr.bf16.mxu1 %v13840_v2 }
0x246d   : > { %12997 = vmatmul.mubr.msk.bf16.vlgmr.msra.gmra.mxu1 %vm846_vm3, %v15283_v6 }
0x246e   : > { %13009 = vmatpush3.bf16.msra.mxu1 %v13531_v42  ;;  %13012 = vmatprep.mubr.msk.bf16.mxu1 %vm13841_vm0, %v13840_v2 }
0x246f   : > { %13010 = vmatprep.subr.bf16.mxu1 %v13840_v2 }
0x2472   : > { %13011 = vmatpush3.bf16.msra.mxu1 %v13532_v43 }
0x2473   : > { %13022 = vmatprep.subr.bf16.mxu1 %v13840_v2 }
0x2475   : > { %13013 = vmatmul.mubr.msk.bf16.vlgmr.msra.gmra.mxu1 %vm846_vm3, %v15283_v6 }
0x2476   : > { %13024 = vmatprep.mubr.msk.bf16.mxu1 %vm13841_vm0, %v13840_v2 }
0x2525   : > { %v5991_v44 = vpop.f32.mrf.mxu1 }
0x2526   : > { %v5992_v25 = vadd.f32 %v5991_v44, %v14144_v59 }
0x2527   : > { %v12984_v26 = vpop.f32.mrf.mxu1 }
0x2528   : > { %v5997_v31 = vsel %vm1023_vm5, %v5992_v25, -inf }
0x2529   : > { %5998 = vmax.xlane.f32.xlu0 %v5997_v31  ;;  %v5994_v48 = vpop.f32.mrf.mxu1 }
0x252b   : > { %v12985_v19 = vpop.f32.mrf.mxu1 }
0x252d   : > { %v6118_v45 = vpop.f32.mrf.mxu1 }
0x252e   : > { %v6119_v33 = vadd.f32 %v11310_v29, %v6118_v45  ;;  %v11334_v45 = vld [vmem:[%s16485_s8 + $0x14] sm:$0xf] }
0x252f   : > { %v12998_v46 = vpop.f32.mrf.mxu1 }
0x2530   : > { %v6254_v36 = vmul.f32 0.35355338, %v6119_v33  ;;  %v6369_v46 = vsel %vm1086_vm4, %v11334_v45, 0 }
0x2531   : > { %v6121_v57 = vpop.f32.mrf.mxu1 }
0x2532   : > { %v6255_v37 = vpack.c.bf16 %v6254_v36, %v6254_v36 }
0x2533   : > { %v12999_v47 = vpop.f32.mrf.mxu1 }
0x2535   : > { %v6248_v58 = vpop.f32.mrf.mxu1 }
0x2536   : > { %v6249_v20 = vadd.f32 %v11328_v34, %v6248_v58  ;;  %v11304_v34 = vld [vmem:[%s16485_s8 + $0x10] sm:$0xf] }
0x2537   : > { %v13014_v22 = vpop.f32.mrf.mxu1 }
0x2538   : > { %v6315_v60 = vpack.c.bf16 %v6249_v20, %v6249_v20  ;;  %v6415_v22 = vsel %vm1086_vm4, %v11304_v34, 0 }
0x2539   : > { %v6251_v51 = vpop.f32.mrf.mxu1 }
0x253a   : > { %v6320_v61 = vsel %vm1086_vm4, %v6315_v60, 0  ;;  %v13535_v60 = vld [vmem:[%s16531_s22 + $0x128] sm:$0xff]  }
0x253b   : > { %v13015_v62 = vpop.f32.mrf.mxu1  ;;  %13023 = vmatpush3.bf16.msra.mxu1 %v6320_v61  ;;  %v13536_v61 = vld [vmem:[%s16531_s22 + $0x120] sm:$0xff]  }
0x253c   : > { %13034 = vmatprep.subr.bf16.mxu1 %v13840_v2 }
0x25b2   : > { %v5999_v63 = vpop.xlane.xlu0 %5998 }
0x25b3   : > { %v6000_v3 = vsub.f32 %v5992_v25, %v5999_v63  ;;  %v13537_v63 = vld [vmem:[%s16531_s22 + $0xe8] sm:$0xff]  }
0x25b5   : > { %v6001_v56 = vmul.f32 1.442695, %v6000_v3 }
0x25b7   : > { %13739 = vpow2.f32 %v6001_v56 }
0x25c4   : > { %v13740_v7 = vpop.eup %13739 }
0x25c5   : > { %v6003_v8 = vsel %vm1023_vm5, %v13740_v7, 0.0 }
0x25c6   : > { %6004 = vadd.xlane.f32.xlu1 %v6003_v8  ;;  %v13538_v8 = vld [vmem:[%s16531_s22 + $0xe0] sm:$0xff]  }
0x264f   : > { %v6005_v9 = vpop.xlane.xlu1 %6004 }
0x2650   : > { %13741 = vrcp.f32 %v6005_v9 }
0x265d   : > { %v13742_v10 = vpop.eup %13741 }
0x265e   : > { %v6007_v11 = vmul.f32 %v13742_v10, %v13740_v7 }
0x2660   : > { %v6008_v16 = vpack.c.bf16 %v6007_v11, %v6007_v11  ;;  %v13539_v11 = vld [vmem:[%s16531_s22 + $0x168] sm:$0xff]  }
0x2662   : > { %12989 = vmatmul.mubr.msk.bf16.vlgmr.msra.gmra.mxu0 %vm1023_vm5, %v6008_v16 }
0x2663   : > { %13001 = vmatpush3.bf16.msra.mxu0 %v13533_v14  ;;  %13004 = vmatprep.mubr.msk.bf16.mxu0 %vm13841_vm0, %v13840_v2 }
0x2664   : > { %13002 = vmatprep.subr.bf16.mxu0 %v13840_v2 }
0x2667   : > { %13003 = vmatpush3.bf16.msra.mxu0 %v13534_v17  ;;  %v13540_v17 = vld [vmem:[%s16531_s22 + $0x160] sm:$0xff]  }
0x2668   : > { %13016 = vmatprep.subr.bf16.mxu0 %v13840_v2 }
0x266a   : > { %13005 = vmatmul.mubr.msk.bf16.vlgmr.msra.gmra.mxu0 %vm846_vm3, %v15283_v6 }
0x266b   : > { %13018 = vmatprep.mubr.msk.bf16.mxu0 %vm13841_vm0, %v13840_v2 }
0x2722   : > { %v6050_v54 = vpop.f32.mrf.mxu0 }
0x2723   : > { %v6056_v51 = vpack.c.bf16 %v6050_v54, %v6050_v54 }
0x2724   : > { %v12990_v23 = vpop.f32.mrf.mxu0 }
0x2725   : > { %v11351_v23 = vld [vmem:[%s16484_s7 + $0x12] ss:$0 sm:$0xff] }
0x2726   : > { %v6053_v24 = vpop.f32.mrf.mxu0 }
0x2728   : > { %v12991_v27 = vpop.f32.mrf.mxu0 }
0x272a   : > { %v6183_v30 = vpop.f32.mrf.mxu0 }
0x272b   : > { %v6184_v18 = vadd.f32 %v11319_v28, %v6183_v30 }
0x272c   : > { %v13006_v32 = vpop.f32.mrf.mxu0 }
0x272d   : > { %v6256_v35 = vpack.c.bf16 %v6184_v18, %v6184_v18 }
0x272e   : > { %v6186_v50 = vpop.f32.mrf.mxu0 }
0x272f   : > { %v6261_v21 = vsel %vm1023_vm5, %v6256_v35, 0 }
0x2730   : > { %v13007_v0 = vpop.f32.mrf.mxu0  ;;  %13017 = vmatpush3.bf16.xpose.msra.mxu0 %v6261_v21 }
0x2731   : > { %13028 = vmatprep.subr.bf16.mxu0 %v13840_v2  ;;  %v11342_v0 = vld [vmem:[%s16484_s7 + $0xe] ss:$0 sm:$0xff] }
0x2737   : > { %13019 = vmatmul.mubr.msk.bf16.vlgmr.msra.gmra.mxu0 %vm1023_vm5, %v6255_v37 }
0x2738   : > { %13030 = vmatprep.mubr.msk.bf16.mxu0 %vm13841_vm0, %v13840_v2  ;;  %13029 = vmatpush3.bf16.msra.mxu0 %v6369_v46 }
0x2739   : > { %13040 = vmatprep.subr.bf16.mxu0 %v13840_v2 }
0x27f7   : > { %v6297_v39 = vpop.f32.mrf.mxu0 }
0x27f8   : > { %v6298_v40 = vadd.f32 %v6297_v39, %v14144_v59 }
0x27f9   : > { %v13020_v13 = vpop.f32.mrf.mxu0 }
0x27fa   : > { %v6303_v42 = vsel %vm1023_vm5, %v6298_v40, -inf }
0x27fb   : > { %6304 = vmax.xlane.f32.xlu0 %v6303_v42  ;;  %v6300_v43 = vpop.f32.mrf.mxu0 }
0x27fd   : > { %v13021_v44 = vpop.f32.mrf.mxu0 }
0x27fe   : > { %v11360_v44 = vld [vmem:[%s16484_s7 + $0x16] ss:$0 sm:$0xff] }
0x2884   : > { %v6305_v25 = vpop.xlane.xlu0 %6304 }
0x2885   : > { %v6306_v26 = vsub.f32 %v6298_v40, %v6305_v25 }
0x2887   : > { %v6307_v31 = vmul.f32 1.442695, %v6306_v26 }
0x2889   : > { %13743 = vpow2.f32 %v6307_v31 }
0x2896   : > { %v13744_v48 = vpop.eup %13743 }
0x2897   : > { %v6309_v19 = vsel %vm1023_vm5, %v13744_v48, 0.0 }
0x2898   : > { %6310 = vadd.xlane.f32.xlu1 %v6309_v19 }
0x2921   : > { %v6311_v57 = vpop.xlane.xlu1 %6310 }
0x2922   : > { %13745 = vrcp.f32 %v6311_v57 }
0x292f   : > { %v13746_v47 = vpop.eup %13745 }
0x2930   : > { %v6313_v58 = vmul.f32 %v13746_v47, %v13744_v48 }
0x2932   : > { %v6314_v20 = vpack.c.bf16 %v6313_v58, %v6313_v58 }
0x2934   : > { %13025 = vmatmul.mubr.msk.bf16.vlgmr.msra.gmra.mxu1 %vm1023_vm5, %v6314_v20 }
0x2935   : > { %13035 = vmatpush3.bf16.msra.mxu1 %v6415_v22  ;;  %13036 = vmatprep.mubr.msk.bf16.mxu1 %vm13841_vm0, %v13840_v2 }
0x2936   : > { %13048 = vmatprep.subr.bf16.mxu1 %v13840_v2 }
0x293c   : > { %13037 = vmatmul.mubr.msk.bf16.vlgmr.msra.gmra.mxu1 %vm1023_vm5, %v6056_v51 }
0x293d   : > { %13049 = vmatpush3.bf16.msra.mxu1 %v13535_v60  ;;  %13052 = vmatprep.mubr.msk.bf16.mxu1 %vm13841_vm0, %v13840_v2 }
0x293e   : > { %13050 = vmatprep.subr.bf16.mxu1 %v13840_v2 }
0x2941   : > { %13051 = vmatpush3.bf16.msra.mxu1 %v13536_v61 }
0x2942   : > { %13064 = vmatprep.subr.bf16.mxu1 %v13840_v2 }
0x2944   : > { %13053 = vmatmul.mubr.msk.bf16.vlgmr.msra.gmra.mxu1 %vm846_vm3, %v15283_v6 }
0x2945   : > { %13066 = vmatprep.mubr.msk.bf16.mxu1 %vm13841_vm0, %v13840_v2 }
0x29f4   : > { %v6356_v62 = vpop.f32.mrf.mxu1 }
0x29f5   : > { %v6362_v3 = vpack.c.bf16 %v6356_v62, %v6356_v62 }
0x29f6   : > { %v13026_v56 = vpop.f32.mrf.mxu1 }
0x29f7   : > { %13031 = vmatmul.mubr.msk.bf16.vlgmr.msra.gmra.mxu0 %vm1023_vm5, %v6362_v3  ;;  %v11366_v3 = vld [vmem:[%s16485_s8 + $0x18] sm:$0xf] }
0x29f8   : > { %v6359_v7 = vpop.f32.mrf.mxu1  ;;  %13041 = vmatpush3.bf16.msra.mxu0 %v13537_v63  ;;  %13044 = vmatprep.mubr.msk.bf16.mxu0 %vm13841_vm0, %v13840_v2  ;;  %v6767_v56 = vsel %vm1086_vm4, %v11366_v3, 0 }
0x29f9   : > { %13042 = vmatprep.subr.bf16.mxu0 %v13840_v2 }
0x29fa   : > { %v13027_v9 = vpop.f32.mrf.mxu1 }
0x29fc   : > { %v15417_v10 = vpop.f32.mrf.mxu1  ;;  %13043 = vmatpush3.bf16.msra.mxu0 %v13538_v8 }
0x29fd   : > { %13056 = vmatprep.subr.bf16.mxu0 %v13840_v2 }
0x29fe   : > { %v13038_v14 = vpop.f32.mrf.mxu1 }
0x29ff   : > { %13045 = vmatmul.mubr.msk.bf16.vlgmr.msra.gmra.mxu0 %vm846_vm3, %v15283_v6 }
0x2a00   : > { %v6454_v16 = vpop.f32.mrf.mxu1  ;;  %13057 = vmatpush3.bf16.msra.mxu0 %v13539_v11  ;;  %13060 = vmatprep.mubr.msk.bf16.mxu0 %vm13841_vm0, %v13840_v2  ;;  %v13541_v11 = vld [vmem:[%s16531_s22 + $0xf8] sm:$0xff]  }
0x2a01   : > { %13058 = vmatprep.subr.bf16.mxu0 %v13840_v2  ;;  %v13542_v16 = vld [vmem:[%s16531_s22 + $0xf0] sm:$0xff]  }
0x2a02   : > { %v13039_v54 = vpop.f32.mrf.mxu1 }
0x2a03   : > { %v13544_v54 = vld [vmem:[%s16531_s22 + $0x170] sm:$0xff]  }
0x2a04   : > { %v6581_v24 = vpop.f32.mrf.mxu1  ;;  %13059 = vmatpush3.bf16.msra.mxu0 %v13540_v17  ;;  %v13543_v17 = vld [vmem:[%s16531_s22 + $0x178] sm:$0xff]  }
0x2a05   : > { %v6582_v27 = vadd.f32 %v11351_v23, %v6581_v24  ;;  %13070 = vmatprep.subr.bf16.mxu0 %v13840_v2  ;;  %v13545_v24 = vld [vmem:[%s16531_s22 + $0x138] sm:$0xff]  }
0x2a06   : > { %v13054_v28 = vpop.f32.mrf.mxu1 }
0x2a07   : > { %v6654_v29 = vpack.c.bf16 %v6582_v27, %v6582_v27  ;;  %13061 = vmatmul.mubr.msk.bf16.vlgmr.msra.gmra.mxu0 %vm846_vm3, %v15283_v6 }
0x2a08   : > { %v6584_v30 = vpop.f32.mrf.mxu1  ;;  %13072 = vmatprep.mubr.msk.bf16.mxu0 %vm13841_vm0, %v13840_v2 }
0x2a09   : > { %v6659_v18 = vsel %vm1023_vm5, %v6654_v29, 0  ;;  %v13546_v30 = vld [vmem:[%s16531_s22 + $0x130] sm:$0xff]  }
0x2a0a   : > { %v13055_v32 = vpop.f32.mrf.mxu1  ;;  %13065 = vmatpush3.bf16.xpose.msra.mxu1 %v6659_v18 }
0x2a0b   : > { %13076 = vmatprep.subr.bf16.mxu1 %v13840_v2 }
0x2ab7   : > { %v15441_v33 = vpop.f32.mrf.mxu0 }
0x2ab9   : > { %v13032_v35 = vpop.f32.mrf.mxu0 }
0x2abb   : > { %v6408_v50 = vpop.f32.mrf.mxu0 }
0x2abd   : > { %v13033_v21 = vpop.f32.mrf.mxu0 }
0x2abf   : > { %v6516_v36 = vpop.f32.mrf.mxu0 }
0x2ac0   : > { %v6517_v37 = vadd.f32 %v11342_v0, %v6516_v36  ;;  %v11391_v0 = vld [vmem:[%s16484_s7 + $0x17] ss:$0 sm:$0xff] }
0x2ac1   : > { %v13046_v39 = vpop.f32.mrf.mxu0 }
0x2ac2   : > { %v6652_v40 = vmul.f32 0.35355338, %v6517_v37 }
0x2ac3   : > { %v6519_v13 = vpop.f32.mrf.mxu0 }
0x2ac4   : > { %v6653_v42 = vpack.c.bf16 %v6652_v40, %v6652_v40 }
0x2ac5   : > { %v13047_v43 = vpop.f32.mrf.mxu0 }
0x2ac6   : > { %13067 = vmatmul.mubr.msk.bf16.vlgmr.msra.gmra.mxu1 %vm1023_vm5, %v6653_v42 }
0x2ac7   : > { %v6646_v25 = vpop.f32.mrf.mxu0  ;;  %13078 = vmatprep.mubr.msk.bf16.mxu1 %vm13841_vm0, %v13840_v2  ;;  %13077 = vmatpush3.bf16.msra.mxu1 %v6767_v56 }
0x2ac8   : > { %v6647_v26 = vadd.f32 %v11360_v44, %v6646_v25  ;;  %13090 = vmatprep.subr.bf16.mxu1 %v13840_v2 }
0x2ac9   : > { %v13062_v31 = vpop.f32.mrf.mxu0 }
0x2aca   : > { %v6713_v48 = vpack.c.bf16 %v6647_v26, %v6647_v26 }
0x2acb   : > { %v6649_v19 = vpop.f32.mrf.mxu0 }
0x2acc   : > { %v6718_v45 = vsel %vm1086_vm4, %v6713_v48, 0  ;;  %v11382_v19 = vld [vmem:[%s16484_s7 + $0x13] ss:$0 sm:$0xff] }
0x2acd   : > { %v13063_v46 = vpop.f32.mrf.mxu0  ;;  %13071 = vmatpush3.bf16.msra.mxu0 %v6718_v45  ;;  %v11373_v45 = vld [vmem:[%s16484_s7 + $0xf] ss:$0 sm:$0xff] }
0x2ace   : > { %13082 = vmatprep.subr.bf16.mxu0 %v13840_v2 }
0x2b86   : > { %v6695_v57 = vpop.f32.mrf.mxu1 }
0x2b87   : > { %v6696_v47 = vadd.f32 %v6695_v57, %v14144_v59 }
0x2b88   : > { %v13068_v34 = vpop.f32.mrf.mxu1 }
0x2b89   : > { %v6701_v58 = vsel %vm1023_vm5, %v6696_v47, -inf }
0x2b8a   : > { %6702 = vmax.xlane.f32.xlu0 %v6701_v58  ;;  %v6698_v20 = vpop.f32.mrf.mxu1 }
0x2b8c   : > { %v13069_v22 = vpop.f32.mrf.mxu1 }
0x2c13   : > { %v6703_v60 = vpop.xlane.xlu0 %6702 }
0x2c14   : > { %v6704_v51 = vsub.f32 %v6696_v47, %v6703_v60 }
0x2c16   : > { %v6705_v61 = vmul.f32 1.442695, %v6704_v51 }
0x2c18   : > { %13747 = vpow2.f32 %v6705_v61 }
0x2c25   : > { %v13748_v62 = vpop.eup %13747 }
0x2c26   : > { %v6707_v63 = vsel %vm1023_vm5, %v13748_v62, 0.0 }
0x2c27   : > { %6708 = vadd.xlane.f32.xlu1 %v6707_v63 }
0x2cb0   : > { %v6709_v7 = vpop.xlane.xlu1 %6708 }
0x2cb1   : > { %13749 = vrcp.f32 %v6709_v7 }
0x2cbe   : > { %v13750_v8 = vpop.eup %13749 }
0x2cbf   : > { %v6711_v9 = vmul.f32 %v13750_v8, %v13748_v62 }
0x2cc1   : > { %v6712_v14 = vpack.c.bf16 %v6711_v9, %v6711_v9 }
0x2cc3   : > { %13073 = vmatmul.mubr.msk.bf16.vlgmr.msra.gmra.mxu0 %vm1023_vm5, %v6712_v14 }
0x2cc4   : > { %13083 = vmatpush3.bf16.msra.mxu0 %v13541_v11  ;;  %13086 = vmatprep.mubr.msk.bf16.mxu0 %vm13841_vm0, %v13840_v2 }
0x2cc5   : > { %13084 = vmatprep.subr.bf16.mxu0 %v13840_v2 }
0x2cc8   : > { %13085 = vmatpush3.bf16.msra.mxu0 %v13542_v16  ;;  %v11397_v16 = vld [vmem:[%s16485_s8 + $0x1c] sm:$0xf] }
0x2cc9   : > { %13098 = vmatprep.subr.bf16.mxu0 %v13840_v2 }
0x2ccb   : > { %13087 = vmatmul.mubr.msk.bf16.vlgmr.msra.gmra.mxu0 %vm846_vm3, %v15283_v6 }
0x2ccc   : > { %13099 = vmatpush3.bf16.msra.mxu0 %v13543_v17  ;;  %13102 = vmatprep.mubr.msk.bf16.mxu0 %vm13841_vm0, %v13840_v2 }
0x2ccd   : > { %13100 = vmatprep.subr.bf16.mxu0 %v13840_v2 }
0x2cd0   : > { %13101 = vmatpush3.bf16.msra.mxu0 %v13544_v54 }
0x2cd1   : > { %13112 = vmatprep.subr.bf16.mxu0 %v13840_v2 }
0x2cd3   : > { %13103 = vmatmul.mubr.msk.bf16.vlgmr.msra.gmra.mxu0 %vm846_vm3, %v15283_v6 }
0x2cd4   : > { %13114 = vmatprep.mubr.msk.bf16.mxu0 %vm13841_vm0, %v13840_v2 }
0x2d83   : > { %v6754_v23 = vpop.f32.mrf.mxu0 }
0x2d84   : > { %v6760_v27 = vpack.c.bf16 %v6754_v23, %v6754_v23 }
0x2d85   : > { %v13074_v28 = vpop.f32.mrf.mxu0 }
0x2d86   : > { %13079 = vmatmul.mubr.msk.bf16.vlgmr.msra.gmra.mxu1 %vm1023_vm5, %v6760_v27 }
0x2d87   : > { %v6757_v29 = vpop.f32.mrf.mxu0  ;;  %13091 = vmatpush3.bf16.msra.mxu1 %v13545_v24  ;;  %13094 = vmatprep.mubr.msk.bf16.mxu1 %vm13841_vm0, %v13840_v2 }
0x2d88   : > { %13092 = vmatprep.subr.bf16.mxu1 %v13840_v2 }
0x2d89   : > { %v13075_v18 = vpop.f32.mrf.mxu0 }
0x2d8b   : > { %v6869_v32 = vpop.f32.mrf.mxu0  ;;  %13093 = vmatpush3.bf16.msra.mxu1 %v13546_v30 }
0x2d8c   : > { %13106 = vmatprep.subr.bf16.mxu1 %v13840_v2  ;;  %v6870_v34 = vadd.f32 %v11373_v45, %v6869_v32 }
0x2d8d   : > { %v13088_v35 = vpop.f32.mrf.mxu0 }
0x2d8e   : > { %13095 = vmatmul.mubr.msk.bf16.vlgmr.msra.gmra.mxu1 %vm846_vm3, %v15283_v6  ;;  %v6452_v6 = vadd.f32 %v15417_v10, %v15441_v33  ;;  %v7005_v22 = vmul.f32 0.35355338, %v6870_v34  ;;  %v11400_v35 = vld [vmem:[%s16486_s9 + $0x1] ss:$0 sm:$0xff]  ;;  %v11404_v34 = vld [vmem:[%s16496_s19 + $0x3] ss:$0 sm:$0xff] }
0x2d8f   : > { %v6872_v50 = vpop.f32.mrf.mxu0  ;;  %13108 = vmatprep.mubr.msk.bf16.mxu1 %vm13841_vm0, %v13840_v2 }
0x2d90   : > { %v7006_v60 = vpack.c.bf16 %v7005_v22, %v7005_v22 }
0x2d91   : > { %v13089_v21 = vpop.f32.mrf.mxu0 }
0x2d93   : > { %v6999_v36 = vpop.f32.mrf.mxu0 }
0x2d94   : > { %v7000_v37 = vadd.f32 %v11391_v0, %v6999_v36 }
0x2d95   : > { %v13104_v39 = vpop.f32.mrf.mxu0 }
0x2d96   : > { %v7066_v40 = vpack.c.bf16 %v7000_v37, %v7000_v37 }
0x2d97   : > { %v7002_v13 = vpop.f32.mrf.mxu0 }
0x2d98   : > { %v7071_v42 = vsel %vm1086_vm4, %v7066_v40, 0 }
0x2d99   : > { %v13105_v43 = vpop.f32.mrf.mxu0  ;;  %13113 = vmatpush3.bf16.msra.mxu0 %v7071_v42 }
0x2d9a   : > { %13124 = vmatprep.subr.bf16.mxu0 %v13840_v2 }
0x2e46   : > { %v6803_v44 = vpop.f32.mrf.mxu1 }
0x2e47   : > { %v6809_v25 = vadd.f32 %v6803_v44, %v6452_v6 }
0x2e48   : > { %v13080_v26 = vpop.f32.mrf.mxu1 }
0x2e49   : > { %v13549_v26 = vld [vmem:[%s16487_s10 + $0xc8] sm:$0xff]  }
0x2e4a   : > { %v6806_v31 = vpop.f32.mrf.mxu1 }
0x2e4b   : > { %v13550_v31 = vld [vmem:[%s16487_s10 + $0xc0] sm:$0xff]  }
0x2e4c   : > { %v13081_v48 = vpop.f32.mrf.mxu1 }
0x2e4e   : > { %v6934_v46 = vpop.f32.mrf.mxu1 }
0x2e4f   : > { %v6935_v57 = vadd.f32 %v11382_v19, %v6934_v46 }
0x2e50   : > { %v13096_v47 = vpop.f32.mrf.mxu1 }
0x2e51   : > { %v7007_v58 = vpack.c.bf16 %v6935_v57, %v6935_v57  ;;  %v11403_v57 = vld [vmem:[%s16495_s18 + $0x3] ss:$0 sm:$0xff] }
0x2e52   : > { %v6937_v20 = vpop.f32.mrf.mxu1 }
0x2e53   : > { %v7012_v10 = vsel %vm1023_vm5, %v7007_v58, 0 }
0x2e54   : > { %v13097_v33 = vpop.f32.mrf.mxu1  ;;  %13107 = vmatpush3.bf16.xpose.msra.mxu1 %v7012_v10 }
0x2e55   : > { %13118 = vmatprep.subr.bf16.mxu1 %v13840_v2  ;;  %v11419_v33 = vld [vmem:[%s16488_s11 + $0x10] ss:$0 sm:$0xff] }
0x2e5b   : > { %13109 = vmatmul.mubr.msk.bf16.vlgmr.msra.gmra.mxu1 %vm1023_vm5, %v7006_v60 }
0x2e5c   : > { %13120 = vmatprep.mubr.msk.bf16.mxu1 %vm13841_vm0, %v13840_v2 }
0x2f1b   : > { %v7048_v51 = vpop.f32.mrf.mxu1 }
0x2f1c   : > { %v7049_v61 = vadd.f32 %v7048_v51, %v14144_v59  ;;  %v7120_v59 = vsel %vm1086_vm4, %v11397_v16, 0 }
0x2f1d   : > { %v13110_v62 = vpop.f32.mrf.mxu1  ;;  %13119 = vmatpush3.bf16.msra.mxu1 %v7120_v59  ;;  %v13551_v59 = vld [vmem:[%s16487_s10 + $0xd8] sm:$0xff]  }
0x2f1e   : > { %v7054_v63 = vsel %vm1023_vm5, %v7049_v61, -inf  ;;  %13132 = vmatprep.subr.bf16.mxu1 %v13840_v2 }
0x2f1f   : > { %7055 = vmax.xlane.f32.xlu0 %v7054_v63  ;;  %v7051_v3 = vpop.f32.mrf.mxu1 }
0x2f21   : > { %v13111_v56 = vpop.f32.mrf.mxu1 }
0x2fa8   : > { %v7056_v7 = vpop.xlane.xlu0 %7055 }
0x2fa9   : > { %v7057_v8 = vsub.f32 %v7049_v61, %v7056_v7  ;;  %v11410_v7 = vld [vmem:[%s16488_s11 + $0xc] ss:$0 sm:$0xff] }
0x2fab   : > { %v7058_v9 = vmul.f32 1.442695, %v7057_v8 }
0x2fad   : > { %13751 = vpow2.f32 %v7058_v9 }
0x2fba   : > { %v13752_v11 = vpop.eup %13751 }
0x2fbb   : > { %v7060_v14 = vsel %vm1023_vm5, %v13752_v11, 0.0 }
0x2fbc   : > { %7061 = vadd.xlane.f32.xlu1 %v7060_v14 }
0x3045   : > { %v7062_v17 = vpop.xlane.xlu1 %7061 }
0x3046   : > { %13753 = vrcp.f32 %v7062_v17 }
0x3053   : > { %v13754_v54 = vpop.eup %13753 }
0x3054   : > { %v7064_v23 = vmul.f32 %v13754_v54, %v13752_v11 }
0x3056   : > { %v7065_v24 = vpack.c.bf16 %v7064_v23, %v7064_v23  ;;  %v13552_v23 = vld [vmem:[%s16487_s10 + $0xd0] sm:$0xff]  }
0x3058   : > { %13115 = vmatmul.mubr.msk.bf16.vlgmr.msra.gmra.mxu0 %vm1023_vm5, %v7065_v24  ;;  %v13553_v24 = vld [vmem:[%s16487_s10 + $0x148] sm:$0xff]  }
0x3059   : > { %13128 = vmatprep.mubr.msk.bf16.mxu0 %vm13841_vm0, %v13840_v2  ;;  %13125 = vmatpush3.bf16.msra.mxu0 %v13549_v26 }
0x305a   : > { %13126 = vmatprep.subr.bf16.mxu0 %v13840_v2 }
0x305d   : > { %13127 = vmatpush3.bf16.msra.mxu0 %v13550_v31 }
0x305e   : > { %13140 = vmatprep.subr.bf16.mxu0 %v13840_v2 }
0x3118   : > { %v7107_v27 = vpop.f32.mrf.mxu0 }
0x3119   : > { %v7113_v28 = vpack.c.bf16 %v7107_v27, %v7107_v27  ;;  %v13554_v27 = vld [vmem:[%s16487_s10 + $0x140] sm:$0xff]  }
0x311a   : > { %v13116_v29 = vpop.f32.mrf.mxu0 }
0x311b   : > { %13121 = vmatmul.mubr.msk.bf16.vlgmr.msra.gmra.mxu1 %vm1023_vm5, %v7113_v28 }
0x311c   : > { %v7110_v30 = vpop.f32.mrf.mxu0  ;;  %13136 = vmatprep.mubr.msk.bf16.mxu1 %vm13841_vm0, %v13840_v2 }
0x311e   : > { %v13117_v18 = vpop.f32.mrf.mxu0 }
0x31db   : > { %v7156_v32 = vpop.f32.mrf.mxu1 }
0x31dc   : > { %v7162_v50 = vadd.f32 %v7156_v32, %v6809_v25  ;;  %v13547_v25 = vld [vmem:[%s16487_s10 + $0x108] sm:$0xff]  }
0x31dd   : > { %v13122_v21 = vpop.f32.mrf.mxu1  ;;  %13133 = vmatpush3.bf16.msra.mxu1 %v13547_v25 }
0x31de   : > { %v7171_v0 = vadd.f32 %v11400_v35, %v7162_v50  ;;  %13134 = vmatprep.subr.bf16.mxu1 %v13840_v2 }
0x31df   : > { %v7159_v36 = vpop.f32.mrf.mxu1 }
0x31e0   : > { %v7172_v37 = vadd.f32 %v7171_v0, %v15276_v41  ;;  %v13548_v41 = vld [vmem:[%s16487_s10 + $0x100] sm:$0xff]  }
0x31e1   : > { %v13123_v39 = vpop.f32.mrf.mxu1  ;;  %13135 = vmatpush3.bf16.msra.mxu1 %v13548_v41 }
0x31e2   : > { %v7177_v40 = vsel %vm846_vm3, %v7172_v37, 0.0  ;;  %13148 = vmatprep.subr.bf16.mxu1 %v13840_v2 }
0x31e3   : > { %7178 = vadd.xlane.f32.xlu0 %v7177_v40 }
0x31e4   : > { %13137 = vmatmul.mubr.msk.bf16.vlgmr.msra.gmra.mxu1 %vm846_vm3, %v14363_v38 }
0x31e5   : > { %13150 = vmatprep.mubr.msk.bf16.mxu1 %vm13841_vm0, %v13840_v2 }
0x326c   : > { %v7179_v13 = vpop.xlane.xlu0 %7178 }
0x326d   : > { %v7180_v42 = vmul.f32 0.03125, %v7179_v13 }
0x326f   : > { %v7181_v43 = vsub.f32 %v7172_v37, %v7180_v42 }
0x3271   : > { %v7182_v6 = vmul.f32 %v7181_v43, %v7181_v43 }
0x3273   : > { %v7183_v44 = vsel %vm846_vm3, %v7182_v6, 0.0  ;;  %v11428_v6 = vld [vmem:[%s16488_s11 + $0x14] ss:$0 sm:$0xff] }
0x3274   : > { %7184 = vadd.xlane.f32.xlu1 %v7183_v44 }
0x32a4   : > { %v7332_v22 = vpop.f32.mrf.mxu1 }
0x32a5   : > { %v7333_v51 = vadd.f32 %v11419_v33, %v7332_v22 }
0x32a6   : > { %v13138_v60 = vpop.f32.mrf.mxu1 }
0x32a8   : > { %v7335_v61 = vpop.f32.mrf.mxu1 }
0x32a9   : > { %v7336_v62 = vadd.f32 %v11419_v33, %v7335_v61 }
0x32aa   : > { %v13139_v63 = vpop.f32.mrf.mxu1 }
0x32ab   : > { %v7407_v3 = vpack.c.bf16 %v7336_v62, %v7333_v51  ;;  %v11449_v51 = vld [vmem:[%s16488_s11 + $0x11] ss:$0 sm:$0xff]  ;;  %v11440_v62 = vld [vmem:[%s16488_s11 + $0xd] ss:$0 sm:$0xff] }
0x32ad   : > { %v7412_v56 = vsel %vm1023_vm5, %v7407_v3, 0 }
0x32ae   : > { %13149 = vmatpush3.bf16.xpose.msra.mxu1 %v7412_v56 }
0x32af   : > { %13160 = vmatprep.subr.bf16.mxu1 %v13840_v2 }
0x32fd   : > { %v7185_v48 = vpop.xlane.xlu1 %7184 }
0x32fe   : > { %v7186_v19 = vmul.f32 0.03125, %v7185_v48 }
0x3300   : > { %v7187_v45 = vadd.f32 1e-05, %v7186_v19 }
0x3302   : > { %13755 = vrsqrt.f32 %v7187_v45 }
0x330f   : > { %v13756_v46 = vpop.eup %13755 }
0x3310   : > { %v7189_v47 = vmul.f32 %v13756_v46, %v7181_v43  ;;  %v13555_v46 = vld [vmem:[%s16487_s10 + $0x118] sm:$0xff]  }
0x3312   : > { %v7196_v58 = vmul.f32 %v11403_v57, %v7189_v47  ;;  %v13556_v47 = vld [vmem:[%s16487_s10 + $0x110] sm:$0xff]  }
0x3314   : > { %v15568_v20 = vadd.f32 %v11404_v34, %v7196_v58 }
0x3316   : > { %v15572_v10 = vpack.c.bf16 %v15568_v20, %v15568_v20 }
0x3318   : > { %13129 = vmatmul.mubr.msk.bf16.vlgmr.msra.gmra.mxu0 %vm846_vm3, %v15572_v10 }
0x3319   : > { %13144 = vmatprep.mubr.msk.bf16.mxu0 %vm13841_vm0, %v13840_v2  ;;  %13141 = vmatpush3.bf16.msra.mxu0 %v13553_v24 }
0x331a   : > { %13142 = vmatprep.subr.bf16.mxu0 %v13840_v2 }
0x331d   : > { %13143 = vmatpush3.bf16.msra.mxu0 %v13554_v27 }
0x331e   : > { %13154 = vmatprep.subr.bf16.mxu0 %v13840_v2 }
0x3320   : > { %13145 = vmatmul.mubr.msk.bf16.vlgmr.msra.gmra.mxu0 %vm846_vm3, %v14363_v38 }
0x3321   : > { %13156 = vmatprep.mubr.msk.bf16.mxu0 %vm13841_vm0, %v13840_v2 }
0x33d8   : > { %v7267_v8 = vpop.f32.mrf.mxu0 }
0x33d9   : > { %v7268_v9 = vadd.f32 %v11410_v7, %v7267_v8 }
0x33da   : > { %v13130_v11 = vpop.f32.mrf.mxu0 }
0x33db   : > { %v7405_v14 = vmul.f32 0.35355338, %v7268_v9 }
0x33dc   : > { %v7270_v16 = vpop.f32.mrf.mxu0 }
0x33dd   : > { %v7406_v17 = vpack.c.bf16 %v7405_v14, %v7405_v14 }
0x33de   : > { %v13131_v54 = vpop.f32.mrf.mxu0 }
0x33df   : > { %13151 = vmatmul.mubr.msk.bf16.vlgmr.msra.gmra.mxu1 %vm1023_vm5, %v7406_v17  ;;  %v13558_v17 = vld [vmem:[%s16487_s10 + $0x150] sm:$0xff]  }
0x33e0   : > { %13161 = vmatpush3.bf16.msra.mxu1 %v13551_v59  ;;  %13164 = vmatprep.mubr.msk.bf16.mxu1 %vm13841_vm0, %v13840_v2  ;;  %v7398_v36 = vpop.f32.mrf.mxu0  ;;  %v13557_v59 = vld [vmem:[%s16487_s10 + $0x158] sm:$0xff]  }
0x33e1   : > { %13162 = vmatprep.subr.bf16.mxu1 %v13840_v2  ;;  %v7399_v25 = vadd.f32 %v11428_v6, %v7398_v36 }
0x33e2   : > { %v13146_v37 = vpop.f32.mrf.mxu0 }
0x33e4   : > { %13163 = vmatpush3.bf16.msra.mxu1 %v13552_v23  ;;  %v7401_v44 = vpop.f32.mrf.mxu0 }
0x33e5   : > { %13176 = vmatprep.subr.bf16.mxu1 %v13840_v2  ;;  %v7402_v26 = vadd.f32 %v11428_v6, %v7401_v44 }
0x33e6   : > { %v13147_v41 = vpop.f32.mrf.mxu0 }
0x33e7   : > { %13165 = vmatmul.mubr.msk.bf16.vlgmr.msra.gmra.mxu1 %vm846_vm3, %v15572_v10  ;;  %v7466_v31 = vpack.c.bf16 %v7402_v26, %v7399_v25  ;;  %v11434_v25 = vld [vmem:[%s16489_s12 + $0x10] sm:$0xf] }
0x33e8   : > { %13180 = vmatprep.mubr.msk.bf16.mxu1 %vm13841_vm0, %v13840_v2  ;;  %13177 = vmatpush3.bf16.msra.mxu1 %v13557_v59 }
0x33e9   : > { %13155 = vmatpush3.bf16.msra.mxu0 %v7466_v31  ;;  %13178 = vmatprep.subr.bf16.mxu1 %v13840_v2  ;;  %v7868_v31 = vsel %vm1086_vm4, %v11434_v25, 0 }
0x33ea   : > { %13168 = vmatprep.subr.bf16.mxu0 %v13840_v2 }
0x33ec   : > { %13179 = vmatpush3.bf16.msra.mxu1 %v13558_v17 }
0x33ed   : > { %13190 = vmatprep.subr.bf16.mxu1 %v13840_v2 }
0x33ef   : > { %13181 = vmatmul.mubr.msk.bf16.vlgmr.msra.gmra.mxu1 %vm846_vm3, %v14363_v38 }
0x33f0   : > { %13192 = vmatprep.mubr.msk.bf16.mxu1 %vm13841_vm0, %v13840_v2 }
0x349f   : > { %v7448_v28 = vpop.f32.mrf.mxu1 }
0x34a0   : > { %v7454_v29 = vsel %vm2526_vm8, %v7448_v28, -inf }
0x34a1   : > { %7455 = vmax.xlane.f32.xlu0 %v7454_v29  ;;  %v13152_v30 = vpop.f32.mrf.mxu1 }
0x34a3   : > { %v7451_v18 = vpop.f32.mrf.mxu1 }
0x34a5   : > { %v13153_v32 = vpop.f32.mrf.mxu1 }
0x34a7   : > { %v7572_v35 = vpop.f32.mrf.mxu1 }
0x34a8   : > { %v7573_v8 = vadd.f32 %v11440_v62, %v7572_v35 }
0x34a9   : > { %v13166_v50 = vpop.f32.mrf.mxu1 }
0x34aa   : > { %v7710_v14 = vmul.f32 0.35355338, %v7573_v8  ;;  %v11481_v8 = vld [vmem:[%s16488_s11 + $0x12] ss:$0 sm:$0xff] }
0x34ab   : > { %v7575_v21 = vpop.f32.mrf.mxu1 }
0x34ac   : > { %v7711_v16 = vpack.c.bf16 %v7710_v14, %v7710_v14 }
0x34ad   : > { %v13167_v0 = vpop.f32.mrf.mxu1 }
0x34ae   : > { %v11458_v0 = vld [vmem:[%s16488_s11 + $0x15] ss:$0 sm:$0xff] }
0x34af   : > { %v7703_v29 = vpop.f32.mrf.mxu1 }
0x34b0   : > { %v7704_v37 = vadd.f32 %v11458_v0, %v7703_v29 }
0x34b1   : > { %v13182_v30 = vpop.f32.mrf.mxu1 }
0x34b3   : > { %v7706_v36 = vpop.f32.mrf.mxu1 }
0x352a   : > { %v7456_v39 = vpop.xlane.xlu0 %7455 }
0x352b   : > { %v7457_v40 = vsub.f32 %v7448_v28, %v7456_v39  ;;  %v13183_v39 = vpop.f32.mrf.mxu1 }
0x352d   : > { %v7458_v13 = vmul.f32 1.442695, %v7457_v40  ;;  %v7707_v40 = vadd.f32 %v11458_v0, %v7706_v36 }
0x352f   : > { %13757 = vpow2.f32 %v7458_v13  ;;  %v7771_v13 = vpack.c.bf16 %v7707_v40, %v7704_v37 }
0x3531   : > { %13191 = vmatpush3.bf16.msra.mxu1 %v7771_v13 }
0x3532   : > { %13202 = vmatprep.subr.bf16.mxu1 %v13840_v2 }
0x353c   : > { %v13758_v42 = vpop.eup %13757 }
0x353d   : > { %v7460_v43 = vsel %vm2526_vm8, %v13758_v42, 0.0 }
0x353e   : > { %7461 = vadd.xlane.f32.xlu1 %v7460_v43 }
0x35c7   : > { %v7462_v48 = vpop.xlane.xlu1 %7461 }
0x35c8   : > { %13759 = vrcp.f32 %v7462_v48  ;;  %v13559_v48 = vld [vmem:[%s16487_s10 + $0x128] sm:$0xff]  }
0x35d5   : > { %v13760_v19 = vpop.eup %13759 }
0x35d6   : > { %v7464_v45 = vmul.f32 %v13760_v19, %v13758_v42  ;;  %v11464_v42 = vld [vmem:[%s16489_s12 + $0x14] sm:$0xf] }
0x35d7   : > { %v7822_v43 = vsel %vm1086_vm4, %v11464_v42, 0 }
0x35d8   : > { %v7465_v57 = vpack.c.bf16 %v7464_v45, %v7464_v45  ;;  %v13560_v45 = vld [vmem:[%s16487_s10 + $0x120] sm:$0xff]  }
0x35da   : > { %13157 = vmatmul.mubr.msk.bf16.vlgmr.msra.gmra.mxu0 %vm2526_vm8, %v7465_v57  ;;  %v13561_v57 = vld [vmem:[%s16487_s10 + $0xe8] sm:$0xff]  }
0x35db   : > { %13169 = vmatpush3.bf16.msra.mxu0 %v13555_v46  ;;  %13172 = vmatprep.mubr.msk.bf16.mxu0 %vm13841_vm0, %v13840_v2 }
0x35dc   : > { %13170 = vmatprep.subr.bf16.mxu0 %v13840_v2 }
0x35df   : > { %13171 = vmatpush3.bf16.msra.mxu0 %v13556_v47 }
0x35e0   : > { %13184 = vmatprep.subr.bf16.mxu0 %v13840_v2 }
0x35e2   : > { %13173 = vmatmul.mubr.msk.bf16.vlgmr.msra.gmra.mxu0 %vm846_vm3, %v14363_v38 }
0x35e3   : > { %13186 = vmatprep.mubr.msk.bf16.mxu0 %vm13841_vm0, %v13840_v2 }
0x369a   : > { %v15634_v34 = vpop.f32.mrf.mxu0 }
0x369b   : > { %v7510_v19 = vpack.c.bf16 %v15634_v34, %v15634_v34 }
0x369c   : > { %v13158_v58 = vpop.f32.mrf.mxu0 }
0x369e   : > { %v7507_v33 = vpop.f32.mrf.mxu0 }
0x369f   : > { %v13562_v33 = vld [vmem:[%s16487_s10 + $0xe0] sm:$0xff]  }
0x36a0   : > { %v13159_v22 = vpop.f32.mrf.mxu0 }
0x36a2   : > { %v7637_v60 = vpop.f32.mrf.mxu0 }
0x36a3   : > { %v7638_v3 = vadd.f32 %v11449_v51, %v7637_v60 }
0x36a4   : > { %v13174_v61 = vpop.f32.mrf.mxu0 }
0x36a6   : > { %v7640_v63 = vpop.f32.mrf.mxu0 }
0x36a7   : > { %v7641_v56 = vadd.f32 %v11449_v51, %v7640_v63 }
0x36a8   : > { %v13175_v7 = vpop.f32.mrf.mxu0 }
0x36a9   : > { %v7712_v9 = vpack.c.bf16 %v7641_v56, %v7638_v3 }
0x36ab   : > { %v7717_v11 = vsel %vm1023_vm5, %v7712_v9, 0 }
0x36ac   : > { %13185 = vmatpush3.bf16.xpose.msra.mxu0 %v7717_v11 }
0x36ad   : > { %13196 = vmatprep.subr.bf16.mxu0 %v13840_v2 }
0x36b3   : > { %13187 = vmatmul.mubr.msk.bf16.vlgmr.msra.gmra.mxu0 %vm1023_vm5, %v7711_v16 }
0x36b4   : > { %13198 = vmatprep.mubr.msk.bf16.mxu0 %vm13841_vm0, %v13840_v2  ;;  %13197 = vmatpush3.bf16.msra.mxu0 %v7822_v43 }
0x36b5   : > { %13208 = vmatprep.subr.bf16.mxu0 %v13840_v2 }
0x3773   : > { %v7753_v54 = vpop.f32.mrf.mxu0 }
0x3774   : > { %v7759_v23 = vsel %vm2526_vm8, %v7753_v54, -inf }
0x3775   : > { %7760 = vmax.xlane.f32.xlu0 %v7759_v23  ;;  %v13188_v24 = vpop.f32.mrf.mxu0 }
0x3776   : > { %v11472_v24 = vld [vmem:[%s16488_s11 + $0xe] ss:$0 sm:$0xff] }
0x3777   : > { %v7756_v27 = vpop.f32.mrf.mxu0 }
0x3779   : > { %v13189_v28 = vpop.f32.mrf.mxu0 }
0x37fe   : > { %v7761_v18 = vpop.xlane.xlu0 %7760 }
0x37ff   : > { %v7762_v32 = vsub.f32 %v7753_v54, %v7761_v18 }
0x3801   : > { %v7763_v35 = vmul.f32 1.442695, %v7762_v32 }
0x3803   : > { %13761 = vpow2.f32 %v7763_v35 }
0x3810   : > { %v13762_v50 = vpop.eup %13761 }
0x3811   : > { %v7765_v21 = vsel %vm2526_vm8, %v13762_v50, 0.0 }
0x3812   : > { %7766 = vadd.xlane.f32.xlu1 %v7765_v21  ;;  %v13564_v21 = vld [vmem:[%s16487_s10 + $0x160] sm:$0xff]  }
0x389b   : > { %v7767_v6 = vpop.xlane.xlu1 %7766 }
0x389c   : > { %13763 = vrcp.f32 %v7767_v6 }
0x38a9   : > { %v13764_v44 = vpop.eup %13763 }
0x38aa   : > { %v7769_v41 = vmul.f32 %v13764_v44, %v13762_v50  ;;  %v13563_v50 = vld [vmem:[%s16487_s10 + $0x168] sm:$0xff]  }
0x38ac   : > { %v7770_v26 = vpack.c.bf16 %v7769_v41, %v7769_v41 }
0x38ae   : > { %13193 = vmatmul.mubr.msk.bf16.vlgmr.msra.gmra.mxu1 %vm2526_vm8, %v7770_v26  ;;  %v11490_v26 = vld [vmem:[%s16488_s11 + $0x16] ss:$0 sm:$0xff] }
0x38af   : > { %13203 = vmatpush3.bf16.msra.mxu1 %v7868_v31  ;;  %13204 = vmatprep.mubr.msk.bf16.mxu1 %vm13841_vm0, %v13840_v2 }
0x38b0   : > { %13216 = vmatprep.subr.bf16.mxu1 %v13840_v2 }
0x38b6   : > { %13205 = vmatmul.mubr.msk.bf16.vlgmr.msra.gmra.mxu1 %vm1023_vm5, %v7510_v19 }
0x38b7   : > { %13217 = vmatpush3.bf16.msra.mxu1 %v13559_v48  ;;  %13220 = vmatprep.mubr.msk.bf16.mxu1 %vm13841_vm0, %v13840_v2 }
0x38b8   : > { %13218 = vmatprep.subr.bf16.mxu1 %v13840_v2 }
0x38bb   : > { %13219 = vmatpush3.bf16.msra.mxu1 %v13560_v45 }
0x38bc   : > { %13232 = vmatprep.subr.bf16.mxu1 %v13840_v2 }
0x38be   : > { %13221 = vmatmul.mubr.msk.bf16.vlgmr.msra.gmra.mxu1 %vm846_vm3, %v14363_v38 }
0x38bf   : > { %13234 = vmatprep.mubr.msk.bf16.mxu1 %vm13841_vm0, %v13840_v2 }
0x396e   : > { %v7809_v46 = vpop.f32.mrf.mxu1 }
0x396f   : > { %v7815_v47 = vpack.c.bf16 %v7809_v46, %v7809_v46 }
0x3970   : > { %v13194_v34 = vpop.f32.mrf.mxu1 }
0x3971   : > { %13199 = vmatmul.mubr.msk.bf16.vlgmr.msra.gmra.mxu0 %vm1023_vm5, %v7815_v47 }
0x3972   : > { %v7812_v58 = vpop.f32.mrf.mxu1  ;;  %13209 = vmatpush3.bf16.msra.mxu0 %v13561_v57  ;;  %13212 = vmatprep.mubr.msk.bf16.mxu0 %vm13841_vm0, %v13840_v2  ;;  %v11496_v57 = vld [vmem:[%s16489_s12 + $0x18] sm:$0xf] }
0x3973   : > { %13210 = vmatprep.subr.bf16.mxu0 %v13840_v2  ;;  %v8219_v47 = vsel %vm1086_vm4, %v11496_v57, 0 }
0x3974   : > { %v13195_v22 = vpop.f32.mrf.mxu1 }
0x3975   : > { %v13565_v22 = vld [vmem:[%s16487_s10 + $0xf8] sm:$0xff]  }
0x3976   : > { %v15705_v60 = vpop.f32.mrf.mxu1  ;;  %13211 = vmatpush3.bf16.msra.mxu0 %v13562_v33 }
0x3977   : > { %13224 = vmatprep.subr.bf16.mxu0 %v13840_v2 }
0x3978   : > { %v13206_v51 = vpop.f32.mrf.mxu1 }
0x3979   : > { %13213 = vmatmul.mubr.msk.bf16.vlgmr.msra.gmra.mxu0 %vm846_vm3, %v15572_v10 }
0x397a   : > { %v7907_v61 = vpop.f32.mrf.mxu1  ;;  %13228 = vmatprep.mubr.msk.bf16.mxu0 %vm13841_vm0, %v13840_v2  ;;  %13225 = vmatpush3.bf16.msra.mxu0 %v13563_v50 }
0x397b   : > { %13226 = vmatprep.subr.bf16.mxu0 %v13840_v2  ;;  %v13566_v61 = vld [vmem:[%s16487_s10 + $0xf0] sm:$0xff]  }
0x397c   : > { %v13207_v62 = vpop.f32.mrf.mxu1 }
0x397e   : > { %v8034_v63 = vpop.f32.mrf.mxu1  ;;  %13227 = vmatpush3.bf16.msra.mxu0 %v13564_v21 }
0x397f   : > { %v8035_v9 = vadd.f32 %v11481_v8, %v8034_v63  ;;  %13238 = vmatprep.subr.bf16.mxu0 %v13840_v2  ;;  %v13567_v63 = vld [vmem:[%s16487_s10 + $0x138] sm:$0xff]  }
0x3980   : > { %v13222_v3 = vpop.f32.mrf.mxu1 }
0x3981   : > { %13229 = vmatmul.mubr.msk.bf16.vlgmr.msra.gmra.mxu0 %vm846_vm3, %v14363_v38 }
0x3982   : > { %v8037_v56 = vpop.f32.mrf.mxu1  ;;  %13240 = vmatprep.mubr.msk.bf16.mxu0 %vm13841_vm0, %v13840_v2 }
0x3983   : > { %v8038_v11 = vadd.f32 %v11481_v8, %v8037_v56  ;;  %v13568_v8 = vld [vmem:[%s16487_s10 + $0x130] sm:$0xff]  }
0x3984   : > { %v13223_v7 = vpop.f32.mrf.mxu1 }
0x3985   : > { %v8109_v14 = vpack.c.bf16 %v8038_v11, %v8035_v9 }
0x3987   : > { %v8114_v16 = vsel %vm1023_vm5, %v8109_v14, 0 }
0x3988   : > { %13233 = vmatpush3.bf16.xpose.msra.mxu1 %v8114_v16 }
0x3989   : > { %13244 = vmatprep.subr.bf16.mxu1 %v13840_v2 }
0x3a31   : > { %v15717_v59 = vpop.f32.mrf.mxu0 }
0x3a33   : > { %v13200_v17 = vpop.f32.mrf.mxu0 }
0x3a34   : > { %v7905_v17 = vadd.f32 %v15705_v60, %v15717_v59 }
0x3a35   : > { %v7861_v54 = vpop.f32.mrf.mxu0 }
0x3a37   : > { %v13201_v23 = vpop.f32.mrf.mxu0 }
0x3a39   : > { %v7969_v27 = vpop.f32.mrf.mxu0 }
0x3a3a   : > { %v7970_v28 = vadd.f32 %v11472_v24, %v7969_v27 }
0x3a3b   : > { %v13214_v29 = vpop.f32.mrf.mxu0 }
0x3a3c   : > { %v8107_v30 = vmul.f32 0.35355338, %v7970_v28 }
0x3a3d   : > { %v7972_v18 = vpop.f32.mrf.mxu0 }
0x3a3e   : > { %v8108_v32 = vpack.c.bf16 %v8107_v30, %v8107_v30  ;;  %v11512_v30 = vld [vmem:[%s16488_s11 + $0x13] ss:$0 sm:$0xff] }
0x3a3f   : > { %v13215_v35 = vpop.f32.mrf.mxu0 }
0x3a40   : > { %13235 = vmatmul.mubr.msk.bf16.vlgmr.msra.gmra.mxu1 %vm1023_vm5, %v8108_v32  ;;  %v11503_v32 = vld [vmem:[%s16488_s11 + $0xf] ss:$0 sm:$0xff] }
0x3a41   : > { %13246 = vmatprep.mubr.msk.bf16.mxu1 %vm13841_vm0, %v13840_v2  ;;  %v8100_v13 = vpop.f32.mrf.mxu0  ;;  %13245 = vmatpush3.bf16.msra.mxu1 %v8219_v47 }
0x3a42   : > { %v8101_v48 = vadd.f32 %v11490_v26, %v8100_v13  ;;  %13258 = vmatprep.subr.bf16.mxu1 %v13840_v2  ;;  %v13570_v13 = vld [vmem:[%s16487_s10 + $0x170] sm:$0xff]  }
0x3a43   : > { %v13230_v42 = vpop.f32.mrf.mxu0 }
0x3a45   : > { %v8103_v31 = vpop.f32.mrf.mxu0 }
0x3a46   : > { %v8104_v45 = vadd.f32 %v11490_v26, %v8103_v31 }
0x3a47   : > { %v13231_v19 = vpop.f32.mrf.mxu0 }
0x3a48   : > { %v8168_v46 = vpack.c.bf16 %v8104_v45, %v8101_v48 }
0x3a4a   : > { %13239 = vmatpush3.bf16.msra.mxu0 %v8168_v46 }
0x3a4b   : > { %13250 = vmatprep.subr.bf16.mxu0 %v13840_v2 }
0x3b00   : > { %v8150_v0 = vpop.f32.mrf.mxu1 }
0x3b01   : > { %v8156_v36 = vsel %vm2526_vm8, %v8150_v0, -inf }
0x3b02   : > { %8157 = vmax.xlane.f32.xlu0 %v8156_v36  ;;  %v13236_v37 = vpop.f32.mrf.mxu1 }
0x3b04   : > { %v8153_v39 = vpop.f32.mrf.mxu1 }
0x3b06   : > { %v13237_v40 = vpop.f32.mrf.mxu1 }
0x3b07   : > { %v13569_v40 = vld [vmem:[%s16487_s10 + $0x178] sm:$0xff]  }
0x3b8b   : > { %v8158_v43 = vpop.xlane.xlu0 %8157 }
0x3b8c   : > { %v8159_v6 = vsub.f32 %v8150_v0, %v8158_v43 }
0x3b8e   : > { %v8160_v44 = vmul.f32 1.442695, %v8159_v6 }
0x3b90   : > { %13765 = vpow2.f32 %v8160_v44 }
0x3b9d   : > { %v13766_v25 = vpop.eup %13765 }
0x3b9e   : > { %v8162_v41 = vsel %vm2526_vm8, %v13766_v25, 0.0 }
0x3b9f   : > { %8163 = vadd.xlane.f32.xlu1 %v8162_v41 }
0x3c28   : > { %v8164_v34 = vpop.xlane.xlu1 %8163 }
0x3c29   : > { %13767 = vrcp.f32 %v8164_v34 }
0x3c36   : > { %v13768_v58 = vpop.eup %13767 }
0x3c37   : > { %v8166_v33 = vmul.f32 %v13768_v58, %v13766_v25 }
0x3c39   : > { %v8167_v51 = vpack.c.bf16 %v8166_v33, %v8166_v33 }
0x3c3b   : > { %13241 = vmatmul.mubr.msk.bf16.vlgmr.msra.gmra.mxu0 %vm2526_vm8, %v8167_v51 }
0x3c3c   : > { %13251 = vmatpush3.bf16.msra.mxu0 %v13565_v22  ;;  %13254 = vmatprep.mubr.msk.bf16.mxu0 %vm13841_vm0, %v13840_v2  ;;  %v11527_v22 = vld [vmem:[%s16489_s12 + $0x1c] sm:$0xf] }
0x3c3d   : > { %13252 = vmatprep.subr.bf16.mxu0 %v13840_v2  ;;  %v8571_v51 = vsel %vm1086_vm4, %v11527_v22, 0 }
0x3c40   : > { %13253 = vmatpush3.bf16.msra.mxu0 %v13566_v61 }
0x3c41   : > { %13266 = vmatprep.subr.bf16.mxu0 %v13840_v2 }
0x3c43   : > { %13255 = vmatmul.mubr.msk.bf16.vlgmr.msra.gmra.mxu0 %vm846_vm3, %v15572_v10 }
0x3c44   : > { %13270 = vmatprep.mubr.msk.bf16.mxu0 %vm13841_vm0, %v13840_v2  ;;  %13267 = vmatpush3.bf16.msra.mxu0 %v13569_v40  ;;  %v11543_v40 = vld [vmem:[%s16491_s14 + $0x140] sm:$0xff] }
0x3c45   : > { %13268 = vmatprep.subr.bf16.mxu0 %v13840_v2 }
0x3c48   : > { %13269 = vmatpush3.bf16.msra.mxu0 %v13570_v13  ;;  %v11536_v13 = vld [vmem:[%s16491_s14 + $0x108] sm:$0xff] }
0x3c49   : > { %13280 = vmatprep.subr.bf16.mxu0 %v13840_v2 }
0x3c4b   : > { %13271 = vmatmul.mubr.msk.bf16.vlgmr.msra.gmra.mxu0 %vm846_vm3, %v14363_v38 }
0x3c4c   : > { %13282 = vmatprep.mubr.msk.bf16.mxu0 %vm13841_vm0, %v13840_v2 }
0x3cfb   : > { %v8206_v62 = vpop.f32.mrf.mxu0 }
0x3cfc   : > { %v8212_v3 = vpack.c.bf16 %v8206_v62, %v8206_v62 }
0x3cfd   : > { %v13242_v56 = vpop.f32.mrf.mxu0 }
0x3cfe   : > { %13247 = vmatmul.mubr.msk.bf16.vlgmr.msra.gmra.mxu1 %vm1023_vm5, %v8212_v3 }
0x3cff   : > { %v8209_v7 = vpop.f32.mrf.mxu0  ;;  %13259 = vmatpush3.bf16.msra.mxu1 %v13567_v63  ;;  %13262 = vmatprep.mubr.msk.bf16.mxu1 %vm13841_vm0, %v13840_v2 }
0x3d00   : > { %13260 = vmatprep.subr.bf16.mxu1 %v13840_v2 }
0x3d01   : > { %v13243_v10 = vpop.f32.mrf.mxu0 }
0x3d03   : > { %v8321_v9 = vpop.f32.mrf.mxu0  ;;  %13261 = vmatpush3.bf16.msra.mxu1 %v13568_v8 }
0x3d04   : > { %13274 = vmatprep.subr.bf16.mxu1 %v13840_v2  ;;  %v8322_v59 = vadd.f32 %v11503_v32, %v8321_v9 }
0x3d05   : > { %v13256_v11 = vpop.f32.mrf.mxu0 }
0x3d06   : > { %13263 = vmatmul.mubr.msk.bf16.vlgmr.msra.gmra.mxu1 %vm846_vm3, %v14363_v38  ;;  %v8459_v37 = vmul.f32 0.35355338, %v8322_v59  ;;  %v11521_v38 = vld [vmem:[%s16488_s11 + $0x17] ss:$0 sm:$0xff]  ;;  %v11560_v59 = vld [vmem:[%s16491_s14 + $0x1c8] sm:$0xff] }
0x3d07   : > { %v8324_v14 = vpop.f32.mrf.mxu0  ;;  %13276 = vmatprep.mubr.msk.bf16.mxu1 %vm13841_vm0, %v13840_v2 }
0x3d08   : > { %v8460_v39 = vpack.c.bf16 %v8459_v37, %v8459_v37  ;;  %v11530_v14 = vld [vmem:[%s16490_s13 + $0x1] ss:$0 sm:$0xff] }
0x3d09   : > { %v13257_v16 = vpop.f32.mrf.mxu0 }
0x3d0b   : > { %v8452_v41 = vpop.f32.mrf.mxu0 }
0x3d0c   : > { %v8453_v47 = vadd.f32 %v11521_v38, %v8452_v41  ;;  %v11553_v41 = vld [vmem:[%s16491_s14 + $0x190] sm:$0xff] }
0x3d0d   : > { %v13272_v26 = vpop.f32.mrf.mxu0 }
0x3d0e   : > { %v11561_v26 = vld [vmem:[%s16491_s14 + $0x1d0] sm:$0xff] }
0x3d0f   : > { %v8455_v57 = vpop.f32.mrf.mxu0 }
0x3d10   : > { %v8456_v58 = vadd.f32 %v11521_v38, %v8455_v57 }
0x3d11   : > { %v13273_v34 = vpop.f32.mrf.mxu0 }
0x3d12   : > { %v8520_v33 = vpack.c.bf16 %v8456_v58, %v8453_v47 }
0x3d14   : > { %13281 = vmatpush3.bf16.msra.mxu0 %v8520_v33  ;;  %v11533_v33 = vld [vmem:[%s16495_s18 + $0x4] ss:$0 sm:$0xff] }
0x3dbe   : > { %v8255_v54 = vpop.f32.mrf.mxu1 }
0x3dbf   : > { %v15780_v23 = vadd.f32 %v8255_v54, %v7905_v17 }
0x3dc0   : > { %v13248_v24 = vpop.f32.mrf.mxu1 }
0x3dc2   : > { %v8258_v27 = vpop.f32.mrf.mxu1 }
0x3dc4   : > { %v13249_v28 = vpop.f32.mrf.mxu1 }
0x3dc6   : > { %v8386_v29 = vpop.f32.mrf.mxu1 }
0x3dc7   : > { %v8387_v50 = vadd.f32 %v11512_v30, %v8386_v29 }
0x3dc8   : > { %v13264_v18 = vpop.f32.mrf.mxu1 }
0x3dca   : > { %v8389_v35 = vpop.f32.mrf.mxu1 }
0x3dcb   : > { %v8390_v21 = vadd.f32 %v11512_v30, %v8389_v35 }
0x3dcc   : > { %v13265_v60 = vpop.f32.mrf.mxu1 }
0x3dcd   : > { %v8461_v0 = vpack.c.bf16 %v8390_v21, %v8387_v50  ;;  %v11559_v21 = vld [vmem:[%s16491_s14 + $0x1c0] sm:$0xff] }
0x3dcf   : > { %v8466_v36 = vsel %vm1023_vm5, %v8461_v0, 0 }
0x3dd0   : > { %13275 = vmatpush3.bf16.xpose.msra.mxu1 %v8466_v36 }
0x3dd1   : > { %13286 = vmatprep.subr.bf16.mxu1 %v13840_v2 }
0x3dd7   : > { %13277 = vmatmul.mubr.msk.bf16.vlgmr.msra.gmra.mxu1 %vm1023_vm5, %v8460_v39  ;;  %v11535_v39 = vld [vmem:[%s16491_s14 + $0x100] sm:$0xff] }
0x3dd8   : > { %13288 = vmatprep.mubr.msk.bf16.mxu1 %vm13841_vm0, %v13840_v2  ;;  %13287 = vmatpush3.bf16.msra.mxu1 %v8571_v51  ;;  %v11534_v51 = vld [vmem:[%s16496_s19 + $0x4] ss:$0 sm:$0xff] }
0x3e97   : > { %v8502_v42 = vpop.f32.mrf.mxu1 }
0x3e98   : > { %v8508_v43 = vsel %vm2526_vm8, %v8502_v42, -inf }
0x3e99   : > { %8509 = vmax.xlane.f32.xlu0 %v8508_v43  ;;  %v13278_v6 = vpop.f32.mrf.mxu1  ;;  %v11544_v43 = vld [vmem:[%s16491_s14 + $0x148] sm:$0xff] }
0x3e9a   : > { %v11569_v6 = vcombine.low %v11535_v39, %v11543_v40 }
0x3e9b   : > { %v8505_v44 = vpop.f32.mrf.mxu1 }
0x3e9c   : > { %v11571_v44 = vcombine.low %v11536_v13, %v11544_v43 }
0x3e9d   : > { %v13279_v25 = vpop.f32.mrf.mxu1 }
0x3e9e   : > { %v11572_v25 = vcombine.high %v11536_v13, %v11544_v43  ;;  %v11541_v13 = vld [vmem:[%s16491_s14 + $0x130] sm:$0xff]  ;;  %v11542_v43 = vld [vmem:[%s16491_s14 + $0x138] sm:$0xff] }
0x3f22   : > { %v8510_v31 = vpop.xlane.xlu0 %8509 }
0x3f23   : > { %v8511_v48 = vsub.f32 %v8502_v42, %v8510_v31  ;;  %v11570_v42 = vcombine.high %v11535_v39, %v11543_v40  ;;  %v11554_v31 = vld [vmem:[%s16491_s14 + $0x198] sm:$0xff] }
0x3f25   : > { %v8512_v19 = vmul.f32 1.442695, %v8511_v48  ;;  %v11589_v48 = vcombine.low %v11553_v41, %v11561_v26 }
0x3f27   : > { %13769 = vpow2.f32 %v8512_v19  ;;  %v11590_v19 = vcombine.high %v11553_v41, %v11561_v26 }
0x3f34   : > { %v13770_v45 = vpop.eup %13769 }
0x3f35   : > { %v8514_v46 = vsel %vm2526_vm8, %v13770_v45, 0.0 }
0x3f36   : > { %8515 = vadd.xlane.f32.xlu1 %v8514_v46 }
0x3fbf   : > { %v8516_v61 = vpop.xlane.xlu1 %8515 }
0x3fc0   : > { %13771 = vrcp.f32 %v8516_v61 }
0x3fcd   : > { %v13772_v62 = vpop.eup %13771 }
0x3fce   : > { %v8518_v63 = vmul.f32 %v13772_v62, %v13770_v45  ;;  %v11562_v45 = vld [vmem:[%s16491_s14 + $0x1d8] sm:$0xff]  ;;  %v11537_v62 = vld [vmem:[%s16491_s14 + $0x110] sm:$0xff] }
0x3fcf   : > { %v11591_v46 = vcombine.low %v11554_v31, %v11562_v45  ;;  %v11592_v38 = vcombine.high %v11554_v31, %v11562_v45  ;;  %v13572_v45 = vld [vmem:[%s16493_s16 + $0x4f8] sm:$0xff]  }
0x3fd0   : > { %v8519_v3 = vpack.c.bf16 %v8518_v63, %v8518_v63  ;;  %v11545_v63 = vld [vmem:[%s16491_s14 + $0x150] sm:$0xff] }
0x3fd2   : > { %13283 = vmatmul.mubr.msk.bf16.vlgmr.msra.gmra.mxu0 %vm2526_vm8, %v8519_v3  ;;  %v11538_v3 = vld [vmem:[%s16491_s14 + $0x118] sm:$0xff] }
0x3fd3   : > { %8969 = vmatprep.mubr.bf16.mxu0 %v13839_v1 }
0x4092   : > { %v8558_v56 = vpop.f32.mrf.mxu0 }
0x4093   : > { %v8564_v7 = vpack.c.bf16 %v8558_v56, %v8558_v56  ;;  %v11546_v56 = vld [vmem:[%s16491_s14 + $0x158] sm:$0xff] }
0x4094   : > { %v13284_v8 = vpop.f32.mrf.mxu0 }
0x4095   : > { %13289 = vmatmul.mubr.msk.bf16.vlgmr.msra.gmra.mxu1 %vm1023_vm5, %v8564_v7 }
0x4096   : > { %v8561_v10 = vpop.f32.mrf.mxu0  ;;  %9010 = vmatprep.mubr.bf16.mxu1 %v13839_v1 }
0x4097   : > { %v11574_v10 = vcombine.high %v11537_v62, %v11545_v63 }
0x4098   : > { %v13285_v9 = vpop.f32.mrf.mxu0 }
0x4099   : > { %v11576_v9 = vcombine.high %v11538_v3, %v11546_v56 }
0x4155   : > { %v8607_v11 = vpop.f32.mrf.mxu1 }
0x4156   : > { %v8613_v16 = vadd.f32 %v8607_v11, %v15780_v23  ;;  %v11551_v23 = vld [vmem:[%s16491_s14 + $0x180] sm:$0xff] }
0x4157   : > { %v13290_v17 = vpop.f32.mrf.mxu1  ;;  %v11586_v60 = vcombine.high %v11551_v23, %v11559_v21  ;;  %v11585_v0 = vcombine.low %v11551_v23, %v11559_v21  ;;  %v11555_v11 = vld [vmem:[%s16491_s14 + $0x1a0] sm:$0xff] }
0x4158   : > { %v8622_v54 = vadd.f32 %v11530_v14, %v8613_v16  ;;  %v11563_v14 = vld [vmem:[%s16491_s14 + $0x1e0] sm:$0xff]  ;;  %v11556_v16 = vld [vmem:[%s16491_s14 + $0x1a8] sm:$0xff] }
0x4159   : > { %v8610_v24 = vpop.f32.mrf.mxu1  ;;  %8949 = vmatprep.subr.bf16.mxu0 %v11586_v60  ;;  %v11564_v17 = vld [vmem:[%s16491_s14 + $0x1e8] sm:$0xff]  ;;  %v11565_v60 = vld [vmem:[%s16491_s14 + $0x1f0] sm:$0xff] }
0x415a   : > { %v8623_v27 = vadd.f32 %v8622_v54, %v15568_v20  ;;  %v11552_v20 = vld [vmem:[%s16491_s14 + $0x188] sm:$0xff]  ;;  %8950 = vmatpush1.bf16.msra.mxu0 %v11585_v0  ;;  %v11573_v54 = vcombine.low %v11537_v62, %v11545_v63  ;;  %v11575_v24 = vcombine.low %v11538_v3, %v11546_v56  ;;  %v11566_v0 = vld [vmem:[%s16491_s14 + $0x1f8] sm:$0xff]  ;;  %v13584_v62 = vld [vmem:[%s16493_s16 + $0x4e0] sm:$0xff]  }
0x415b   : > { %v13291_v28 = vpop.f32.mrf.mxu1  ;;  %v11587_v36 = vcombine.low %v11552_v20, %v11560_v59  ;;  %v11588_v37 = vcombine.high %v11552_v20, %v11560_v59  ;;  %8951 = vmatprep.subr.bf16.mxu0 %v11570_v42  ;;  %v11557_v20 = vld [vmem:[%s16491_s14 + $0x1b0] sm:$0xff]  ;;  %v11558_v59 = vld [vmem:[%s16491_s14 + $0x1b8] sm:$0xff]  ;;  %v13585_v63 = vld [vmem:[%s16493_s16 + $0x420] sm:$0xff]  }
0x415c   : > { %v8628_v29 = vsel %vm846_vm3, %v8623_v27, 0.0  ;;  %v11596_v28 = vcombine.high %v11556_v16, %v11564_v17  ;;  %v11598_v39 = vcombine.high %v11557_v20, %v11565_v60  ;;  %v11600_v40 = vcombine.high %v11558_v59, %v11566_v0  ;;  %v11549_v42 = vld [vmem:[%s16491_s14 + $0x170] sm:$0xff]  ;;  %v13586_v3 = vld [vmem:[%s16493_s16 + $0x4a0] sm:$0xff]   ;;  %v13587_v56 = vld [vmem:[%s16493_s16 + $0x458] sm:$0xff]  }
0x415d   : > { %8629 = vadd.xlane.f32.xlu0 %v8628_v29  ;;  %8990 = vmatprep.subr.bf16.mxu1 %v11588_v37  ;;  %v11539_v29 = vld [vmem:[%s16491_s14 + $0x120] sm:$0xff]  ;;  %v11582_v41 = vcombine.high %v11541_v13, %v11549_v42  ;;  %v11581_v31 = vcombine.low %v11541_v13, %v11549_v42 }
0x415e   : > { %8991 = vmatpush1.bf16.msra.mxu1 %v11587_v36  ;;  %8952 = vmatpush1.bf16.msra.mxu0 %v11569_v6  ;;  %v11550_v6 = vld [vmem:[%s16491_s14 + $0x178] sm:$0xff] }
0x415f   : > { %8992 = vmatprep.subr.bf16.mxu1 %v11572_v25  ;;  %9031 = vmatprep.subr.bf16.mxu0 %v11590_v19  ;;  %v11599_v25 = vcombine.low %v11558_v59, %v11566_v0  ;;  %v11584_v26 = vcombine.high %v11542_v43, %v11550_v6  ;;  %v13571_v19 = vld [vmem:[%s16493_s16 + $0x478] sm:$0xff]  }
0x4162   : > { %8993 = vmatpush1.bf16.msra.mxu1 %v11571_v44  ;;  %v11597_v44 = vcombine.low %v11557_v20, %v11565_v60 }
0x4163   : > { %9072 = vmatprep.subr.bf16.mxu1 %v11592_v38  ;;  %v13574_v38 = vld [vmem:[%s16493_s16 + $0x4b8] sm:$0xff]  }
0x41e6   : > { %v8630_v30 = vpop.xlane.xlu0 %8629 }
0x41e7   : > { %v8631_v18 = vmul.f32 0.03125, %v8630_v30  ;;  %v11547_v30 = vld [vmem:[%s16491_s14 + $0x160] sm:$0xff] }
0x41e8   : > { %v11578_v23 = vcombine.high %v11539_v29, %v11547_v30  ;;  %v11577_v36 = vcombine.low %v11539_v29, %v11547_v30  ;;  %v13599_v29 = vld [vmem:[%s16493_s16 + $0x440] sm:$0xff]  }
0x41e9   : > { %v8632_v32 = vsub.f32 %v8623_v27, %v8631_v18  ;;  %v11594_v27 = vcombine.high %v11555_v11, %v11563_v14  ;;  %v11540_v18 = vld [vmem:[%s16491_s14 + $0x128] sm:$0xff]  ;;  %v13600_v30 = vld [vmem:[%s16493_s16 + $0x4c0] sm:$0xff]  }
0x41eb   : > { %v8633_v35 = vmul.f32 %v8632_v32, %v8632_v32 }
0x41ed   : > { %v8634_v50 = vsel %vm846_vm3, %v8633_v35, 0.0  ;;  %v11593_v35 = vcombine.low %v11555_v11, %v11563_v14  ;;  %v13591_v11 = vld [vmem:[%s16493_s16 + $0x450] sm:$0xff]  }
0x41ee   : > { %8635 = vadd.xlane.f32.xlu1 %v8634_v50  ;;  %v11595_v50 = vcombine.low %v11556_v16, %v11564_v17  ;;  %v13592_v14 = vld [vmem:[%s16493_s16 + $0x4d0] sm:$0xff]  }
0x41ef   : > { %v13593_v16 = vld [vmem:[%s16493_s16 + $0x410] sm:$0xff]  }
0x41f0   : > { %v13594_v17 = vld [vmem:[%s16493_s16 + $0x490] sm:$0xff]  }
0x4277   : > { %v8636_v57 = vpop.xlane.xlu1 %8635 }
0x4278   : > { %v8637_v47 = vmul.f32 0.03125, %v8636_v57  ;;  %v13575_v57 = vld [vmem:[%s16493_s16 + $0x470] sm:$0xff]  }
0x427a   : > { %v8638_v34 = vadd.f32 1e-05, %v8637_v47  ;;  %v13577_v47 = vld [vmem:[%s16493_s16 + $0x430] sm:$0xff]  }
0x427c   : > { %13773 = vrsqrt.f32 %v8638_v34  ;;  %v13578_v34 = vld [vmem:[%s16493_s16 + $0x4b0] sm:$0xff]  }
0x4289   : > { %v13774_v58 = vpop.eup %13773 }
0x428a   : > { %v8640_v22 = vmul.f32 %v13774_v58, %v8632_v32  ;;  %v11548_v32 = vld [vmem:[%s16491_s14 + $0x168] sm:$0xff] }
0x428b   : > { %v11580_v21 = vcombine.high %v11540_v18, %v11548_v32  ;;  %v11579_v37 = vcombine.low %v11540_v18, %v11548_v32  ;;  %v13579_v58 = vld [vmem:[%s16493_s16 + $0x468] sm:$0xff]   ;;  %v13601_v18 = vld [vmem:[%s16493_s16 + $0x400] sm:$0xff]  }
0x428c   : > { %v8647_v61 = vmul.f32 %v11533_v33, %v8640_v22  ;;  %v13580_v33 = vld [vmem:[%s16493_s16 + $0x4e8] sm:$0xff]   ;;  %v13602_v32 = vld [vmem:[%s16493_s16 + $0x480] sm:$0xff]  }
0x428d   : > { %v13581_v22 = vld [vmem:[%s16493_s16 + $0x428] sm:$0xff]  }
0x428e   : > { %v15879_v7 = vadd.f32 %v11534_v51, %v8647_v61  ;;  %v13582_v51 = vld [vmem:[%s16493_s16 + $0x4a8] sm:$0xff]   ;;  %v13583_v61 = vld [vmem:[%s16493_s16 + $0x460] sm:$0xff]  }
0x4290   : > { %v15883_v8 = vpack.c.bf16 %v15879_v7, %v15879_v7 }
0x4292   : > { %11601 = vmatmul.mubr.msk.bf16.vlgmr.msra.gmra.mxu0 %vm846_vm3, %v15883_v8  ;;  %11602 = vmatmul.mubr.msk.bf16.vlgmr.msra.gmra.mxu1 %vm846_vm3, %v15883_v8 }
0x4293   : > { %9032 = vmatpush1.bf16.msra.mxu0 %v11589_v48  ;;  %9073 = vmatpush1.bf16.msra.mxu1 %v11591_v46  ;;  %v11583_v48 = vcombine.low %v11542_v43, %v11550_v6  ;;  %v13573_v46 = vld [vmem:[%s16493_s16 + $0x438] sm:$0xff]  }
0x4294   : > { %9033 = vmatprep.subr.bf16.mxu0 %v11574_v10  ;;  %9074 = vmatprep.subr.bf16.mxu1 %v11576_v9  ;;  %v13589_v10 = vld [vmem:[%s16493_s16 + $0x418] sm:$0xff]  }
0x4295   : > { %9051 = vmatprep.mubr.bf16.mxu0 %v13839_v1  ;;  %9092 = vmatprep.mubr.bf16.mxu1 %v13839_v1  ;;  %v13590_v9 = vld [vmem:[%s16493_s16 + $0x498] sm:$0xff]  }
0x4297   : > { %9034 = vmatpush1.bf16.msra.mxu0 %v11573_v54  ;;  %9075 = vmatpush1.bf16.msra.mxu1 %v11575_v24  ;;  %v13595_v54 = vld [vmem:[%s16493_s16 + $0x448] sm:$0xff]  }
0x4298   : > { %9113 = vmatprep.subr.bf16.mxu0 %v11594_v27  ;;  %9154 = vmatprep.subr.bf16.mxu1 %v11596_v28  ;;  %v13596_v24 = vld [vmem:[%s16493_s16 + $0x4c8] sm:$0xff]  }
0x4299   : > { %v13597_v27 = vld [vmem:[%s16493_s16 + $0x408] sm:$0xff]  }
0x429a   : > { %11603 = vmatmul.mubr.msk.bf16.vlgmr.msra.gmra.mxu0 %vm846_vm3, %v15883_v8  ;;  %11604 = vmatmul.mubr.msk.bf16.vlgmr.msra.gmra.mxu1 %vm846_vm3, %v15883_v8  ;;  %v13598_v28 = vld [vmem:[%s16493_s16 + $0x488] sm:$0xff]  }
0x429b   : > { %9114 = vmatpush1.bf16.msra.mxu0 %v11593_v35  ;;  %9155 = vmatpush1.bf16.msra.mxu1 %v11595_v50  ;;  %v13603_v35 = vld [vmem:[%s16493_s16 + $0x578] sm:$0xff]  }
0x429c   : > { %9115 = vmatprep.subr.bf16.mxu0 %v11578_v23  ;;  %9156 = vmatprep.subr.bf16.mxu1 %v11580_v21  ;;  %v13604_v50 = vld [vmem:[%s16493_s16 + $0x5f8] sm:$0xff]   ;;  %v16060_v23 = vld [vmem:[%s16492_s15 + $0x10] sm:$0xff] }
0x429d   : > { %9133 = vmatprep.mubr.bf16.mxu0 %v13839_v1  ;;  %9174 = vmatprep.mubr.bf16.mxu1 %v13839_v1  ;;  %v8697_v21 = vrot.slane %v16060_v23, %v14137_v55  ;;  %v8705_v20 = vrot.slane %v16060_v23, %v14874_v49  ;;  %v8701_v60 = vrot.slane %v16060_v23, %v14882_v52 }
0x429e   : > { %v8709_v59 = vrot.slane %v16060_v23, %v14885_v53 }
0x429f   : > { %9116 = vmatpush1.bf16.msra.mxu0 %v11577_v36  ;;  %9157 = vmatpush1.bf16.msra.mxu1 %v11579_v37 }
0x42a0   : > { %9195 = vmatprep.subr.bf16.mxu0 %v11598_v39  ;;  %9236 = vmatprep.subr.bf16.mxu1 %v11600_v40 }
0x42a2   : > { %11605 = vmatmul.mubr.msk.bf16.vlgmr.msra.gmra.mxu0 %vm846_vm3, %v15883_v8  ;;  %11606 = vmatmul.mubr.msk.bf16.vlgmr.msra.gmra.mxu1 %vm846_vm3, %v15883_v8 }
0x42a3   : > { %9196 = vmatpush1.bf16.msra.mxu0 %v11597_v44  ;;  %9237 = vmatpush1.bf16.msra.mxu1 %v11599_v25 }
0x42a4   : > { %9197 = vmatprep.subr.bf16.mxu0 %v11582_v41  ;;  %9238 = vmatprep.subr.bf16.mxu1 %v11584_v26 }
0x42a5   : > { %9215 = vmatprep.mubr.bf16.mxu0 %v13839_v1  ;;  %9256 = vmatprep.mubr.bf16.mxu1 %v13839_v1  ;;  %v13576_v1 = vld [vmem:[%s16493_s16 + $0x4f0] sm:$0xff]  }
0x42a7   : > { %9198 = vmatpush1.bf16.msra.mxu0 %v11581_v31  ;;  %9239 = vmatpush1.bf16.msra.mxu1 %v11583_v48 }
0x42a8   : > { %12429 = vmatprep.subr.bf16.mxu0 %v13571_v19  ;;  %12451 = vmatprep.subr.bf16.mxu1 %v13572_v45 }
0x42aa   : > { %11607 = vmatmul.mubr.msk.bf16.vlgmr.msra.gmra.mxu0 %vm846_vm3, %v15883_v8  ;;  %11608 = vmatmul.mubr.msk.bf16.vlgmr.msra.gmra.mxu1 %vm846_vm3, %v15883_v8  ;;  %v13588_v8 = vld [vmem:[%s16493_s16 + $0x4d8] sm:$0xff]  }
0x42ab   : > { %12430 = vmatpush3.bf16.msra.mxu0 %v13573_v46  ;;  %12452 = vmatpush3.bf16.msra.mxu1 %v13574_v38  ;;  %v8717_v38 = vrot.slane %v16060_v23, %v14896_v4 }
0x42ac   : > { %12431 = vmatprep.subr.bf16.mxu0 %v13575_v57  ;;  %12453 = vmatprep.subr.bf16.mxu1 %v13576_v1  ;;  %v8725_v57 = vrot.slane %v16060_v23, %v14899_v5  ;;  %v13605_v1 = vld [vmem:[%s16493_s16 + $0x538] sm:$0xff]  }
0x42af   : > { %12432 = vmatpush3.bf16.msra.mxu0 %v13577_v47  ;;  %12454 = vmatpush3.bf16.msra.mxu1 %v13578_v34  ;;  %v13606_v47 = vld [vmem:[%s16493_s16 + $0x5b8] sm:$0xff]  }
0x42b0   : > { %12433 = vmatprep.subr.bf16.mxu0 %v13579_v58  ;;  %12455 = vmatprep.subr.bf16.mxu1 %v13580_v33 }
0x42b3   : > { %12434 = vmatpush3.bf16.msra.mxu0 %v13581_v22  ;;  %12456 = vmatpush3.bf16.msra.mxu1 %v13582_v51  ;;  %v13607_v51 = vld [vmem:[%s16493_s16 + $0x570] sm:$0xff]  }
0x42b4   : > { %12435 = vmatprep.subr.bf16.mxu0 %v13583_v61  ;;  %12457 = vmatprep.subr.bf16.mxu1 %v13584_v62  ;;  %v13608_v61 = vld [vmem:[%s16493_s16 + $0x5f0] sm:$0xff]  }
0x42b7   : > { %12436 = vmatpush3.bf16.msra.mxu0 %v13585_v63  ;;  %12458 = vmatpush3.bf16.msra.mxu1 %v13586_v3 }
0x42b8   : > { %12437 = vmatprep.subr.bf16.mxu0 %v13587_v56  ;;  %12459 = vmatprep.subr.bf16.mxu1 %v13588_v8  ;;  %v13609_v8 = vld [vmem:[%s16493_s16 + $0x530] sm:$0xff]  }
0x42bb   : > { %12438 = vmatpush3.bf16.msra.mxu0 %v13589_v10  ;;  %12460 = vmatpush3.bf16.msra.mxu1 %v13590_v9  ;;  %v13610_v10 = vld [vmem:[%s16493_s16 + $0x5b0] sm:$0xff]  }
0x42bc   : > { %12439 = vmatprep.subr.bf16.mxu0 %v13591_v11  ;;  %12461 = vmatprep.subr.bf16.mxu1 %v13592_v14  ;;  %v13611_v14 = vld [vmem:[%s16493_s16 + $0x568] sm:$0xff]  }
0x42bf   : > { %12440 = vmatpush3.bf16.msra.mxu0 %v13593_v16  ;;  %12462 = vmatpush3.bf16.msra.mxu1 %v13594_v17  ;;  %v13612_v16 = vld [vmem:[%s16493_s16 + $0x5e8] sm:$0xff]  }
0x42c0   : > { %12441 = vmatprep.subr.bf16.mxu0 %v13595_v54  ;;  %12463 = vmatprep.subr.bf16.mxu1 %v13596_v24 }
0x42c3   : > { %12442 = vmatpush3.bf16.msra.mxu0 %v13597_v27  ;;  %12464 = vmatpush3.bf16.msra.mxu1 %v13598_v28 }
0x42c4   : > { %12443 = vmatprep.subr.bf16.mxu0 %v13599_v29  ;;  %12465 = vmatprep.subr.bf16.mxu1 %v13600_v30  ;;  %v13613_v30 = vld [vmem:[%s16493_s16 + $0x528] sm:$0xff]  }
0x42c7   : > { %12444 = vmatpush3.bf16.msra.mxu0 %v13601_v18  ;;  %12466 = vmatpush3.bf16.msra.mxu1 %v13602_v32  ;;  %v13614_v18 = vld [vmem:[%s16493_s16 + $0x5a8] sm:$0xff]  }
0x42c8   : > { %12473 = vmatprep.subr.bf16.mxu0 %v13603_v35  ;;  %12495 = vmatprep.subr.bf16.mxu1 %v13604_v50  ;;  %v13615_v50 = vld [vmem:[%s16493_s16 + $0x560] sm:$0xff]  }
0x4352   : > { %v8971_v0 = vpop.f32.mrf.mxu0  ;;  %v9012_v36 = vpop.f32.mrf.mxu1 }
0x4353   : > { %v8972_v37 = vadd.f32 %v8971_v0, %v8697_v21  ;;  %v9013_v39 = vadd.f32 %v9012_v36, %v8705_v20  ;;  %v13616_v21 = vld [vmem:[%s16493_s16 + $0x5e0] sm:$0xff]   ;;  %v16127_v36 = vld [vmem:[%s16492_s15 + $0x18] sm:$0xff] }
0x4354   : > { %v8973_v40 = vpop.f32.mrf.mxu0  ;;  %v9014_v13 = vpop.f32.mrf.mxu1  ;;  %v13618_v0 = vld [vmem:[%s16493_s16 + $0x5a0] sm:$0xff]  }
0x4355   : > { %v8974_v42 = vadd.f32 %v8973_v40, %v8701_v60  ;;  %v9015_v43 = vadd.f32 %v9014_v13, %v8709_v59  ;;  %v9265_v6 = vmax.f32 %v8972_v37, 0.0  ;;  %v9267_v44 = vmax.f32 %v9013_v39, 0.0  ;;  %v13617_v59 = vld [vmem:[%s16493_s16 + $0x520] sm:$0xff]   ;;  %v13619_v40 = vld [vmem:[%s16493_s16 + $0x558] sm:$0xff]  }
0x4356   : > { %v8975_v25 = vpop.f32.mrf.mxu0  ;;  %v9016_v41 = vpop.f32.mrf.mxu1  ;;  %v13620_v13 = vld [vmem:[%s16493_s16 + $0x5d8] sm:$0xff]  }
0x4357   : > { %v9266_v26 = vmax.f32 %v8974_v42, 0.0  ;;  %v9268_v31 = vmax.f32 %v9015_v43, 0.0  ;;  %v9281_v34 = vpack.c.bf16 %v9265_v6, %v9265_v6  ;;  %v9283_v58 = vpack.c.bf16 %v9267_v44, %v9267_v44  ;;  %v13621_v44 = vld [vmem:[%s16493_s16 + $0x518] sm:$0xff]  }
0x4358   : > { %v8976_v48 = vpop.f32.mrf.mxu0  ;;  %v9017_v19 = vpop.f32.mrf.mxu1  ;;  %v8753_v42 = vrot.slane %v16127_v36, %v14950_v15  ;;  %v13622_v25 = vld [vmem:[%s16493_s16 + $0x598] sm:$0xff]  }
0x4359   : > { %v9282_v45 = vpack.c.bf16 %v9266_v26, %v9266_v26  ;;  %v9284_v46 = vpack.c.bf16 %v9268_v31, %v9268_v31  ;;  %v13623_v31 = vld [vmem:[%s16493_s16 + $0x550] sm:$0xff]  }
0x435a   : > { %v16080_v33 = vpop.f32.mrf.mxu0  ;;  %v16082_v22 = vpop.f32.mrf.mxu1  ;;  %v13624_v48 = vld [vmem:[%s16493_s16 + $0x5d0] sm:$0xff]  }
0x435b   : > { %10362 = vmatprep.mubr.bf16.mxu0 %v9282_v45  ;;  %10402 = vmatprep.mubr.bf16.mxu1 %v9284_v46 }
0x435c   : > { %v9055_v62 = vpop.f32.mrf.mxu0  ;;  %v9096_v63 = vpop.f32.mrf.mxu1  ;;  %10363 = vmatmul.mubr.bf16.vlgmr.msra.gmra.mxu0 %v9281_v34  ;;  %10403 = vmatmul.mubr.bf16.vlgmr.msra.gmra.mxu1 %v9283_v58 }
0x435d   : > { %v9056_v3 = vadd.f32 %v9055_v62, %v8717_v38  ;;  %v9097_v56 = vadd.f32 %v9096_v63, %v8725_v57  ;;  %12474 = vmatpush3.bf16.msra.mxu0 %v13605_v1  ;;  %12496 = vmatpush3.bf16.msra.mxu1 %v13606_v47  ;;  %v13625_v38 = vld [vmem:[%s16493_s16 + $0x510] sm:$0xff]   ;;  %v8713_v1 = vrot.slane %v16060_v23, %v14978_v12 }
0x435e   : > { %v9057_v9 = vpop.f32.mrf.mxu0  ;;  %v9098_v11 = vpop.f32.mrf.mxu1  ;;  %12475 = vmatprep.subr.bf16.mxu0 %v13607_v51  ;;  %12497 = vmatprep.subr.bf16.mxu1 %v13608_v61  ;;  %v13626_v57 = vld [vmem:[%s16493_s16 + $0x590] sm:$0xff]   ;;  %v8721_v47 = vrot.slane %v16060_v23, %v14950_v15  ;;  %v13627_v51 = vld [vmem:[%s16493_s16 + $0x548] sm:$0xff]   ;;  %v8733_v62 = vrot.slane %v16127_v36, %v14882_v52  ;;  %v8741_v63 = vrot.slane %v16127_v36, %v14885_v53  ;;  %v13631_v52 = vld [vmem:[%s16493_s16 + $0x540] sm:$0xff]  }
0x435f   : > { %v9270_v17 = vmax.f32 %v9056_v3, 0.0  ;;  %v9272_v54 = vmax.f32 %v9097_v56, 0.0  ;;  %v13628_v61 = vld [vmem:[%s16493_s16 + $0x5c8] sm:$0xff]   ;;  %v13632_v53 = vld [vmem:[%s16493_s16 + $0x5c0] sm:$0xff]  }
0x4360   : > { %v9058_v24 = vpop.f32.mrf.mxu0  ;;  %v9099_v27 = vpop.f32.mrf.mxu1  ;;  %v13629_v23 = vld [vmem:[%s16493_s16 + $0x508] sm:$0xff]  }
0x4361   : > { %v9286_v28 = vpack.c.bf16 %v9270_v17, %v9270_v17  ;;  %v9288_v29 = vpack.c.bf16 %v9272_v54, %v9272_v54  ;;  %12476 = vmatpush3.bf16.msra.mxu0 %v13609_v8  ;;  %12498 = vmatpush3.bf16.msra.mxu1 %v13610_v10  ;;  %v13630_v56 = vld [vmem:[%s16493_s16 + $0x588] sm:$0xff]   ;;  %v9054_v8 = vadd.f32 %v16080_v33, %v8713_v1  ;;  %v13633_v33 = vld [vmem:[%s16493_s16 + $0x500] sm:$0xff]   ;;  %v13635_v17 = vld [vmem:[%s16493_s16 + $0x678] sm:$0xff]  }
0x4362   : > { %v16108_v32 = vpop.f32.mrf.mxu0  ;;  %v16110_v35 = vpop.f32.mrf.mxu1  ;;  %12477 = vmatprep.subr.bf16.mxu0 %v13611_v14  ;;  %12499 = vmatprep.subr.bf16.mxu1 %v13612_v16  ;;  %v9095_v10 = vadd.f32 %v16082_v22, %v8721_v47  ;;  %v13634_v22 = vld [vmem:[%s16493_s16 + $0x580] sm:$0xff]   ;;  %v13636_v54 = vld [vmem:[%s16493_s16 + $0x6f8] sm:$0xff]   ;;  %v13657_v1 = vld [vmem:[%s16493_s16 + $0x610] sm:$0xff]   ;;  %v8729_v47 = vrot.slane %v16127_v36, %v14137_v55  ;;  %v8749_v55 = vrot.slane %v16127_v36, %v14896_v4 }
0x4363   : > { %10442 = vmatprep.mubr.bf16.mxu0 %v9286_v28  ;;  %10482 = vmatprep.mubr.bf16.mxu1 %v9288_v29  ;;  %v9269_v14 = vmax.f32 %v9054_v8, 0.0  ;;  %v13637_v28 = vld [vmem:[%s16493_s16 + $0x638] sm:$0xff]   ;;  %v13663_v4 = vld [vmem:[%s16493_s16 + $0x640] sm:$0xff]  }
0x4364   : > { %v9137_v20 = vpop.f32.mrf.mxu0  ;;  %v9178_v60 = vpop.f32.mrf.mxu1  ;;  %v9271_v16 = vmax.f32 %v9095_v10, 0.0  ;;  %v13667_v10 = vld [vmem:[%s16493_s16 + $0x778] sm:$0xff]  }
0x4365   : > { %12478 = vmatpush3.bf16.msra.mxu0 %v13613_v30  ;;  %12500 = vmatpush3.bf16.msra.mxu1 %v13614_v18  ;;  %v9138_v9 = vadd.f32 %v9137_v20, %v8733_v62  ;;  %v9179_v11 = vadd.f32 %v9178_v60, %v8741_v63  ;;  %v9285_v29 = vpack.c.bf16 %v9269_v14, %v9269_v14  ;;  %v13638_v18 = vld [vmem:[%s16493_s16 + $0x6b8] sm:$0xff]   ;;  %v13640_v20 = vld [vmem:[%s16493_s16 + $0x6f0] sm:$0xff]   ;;  %v13661_v63 = vld [vmem:[%s16493_s16 + $0x608] sm:$0xff]  }
0x4366   : > { %v9139_v37 = vpop.f32.mrf.mxu0  ;;  %v9180_v39 = vpop.f32.mrf.mxu1  ;;  %12479 = vmatprep.subr.bf16.mxu0 %v13615_v50  ;;  %12501 = vmatprep.subr.bf16.mxu1 %v13616_v21  ;;  %v9287_v30 = vpack.c.bf16 %v9271_v16, %v9271_v16  ;;  %v13639_v21 = vld [vmem:[%s16493_s16 + $0x670] sm:$0xff]   ;;  %v8757_v62 = vrot.slane %v16127_v36, %v14899_v5  ;;  %v13664_v5 = vld [vmem:[%s16493_s16 + $0x6c0] sm:$0xff]  }
0x4367   : > { %v9274_v24 = vmax.f32 %v9138_v9, 0.0  ;;  %v9276_v27 = vmax.f32 %v9179_v11, 0.0  ;;  %v13643_v37 = vld [vmem:[%s16493_s16 + $0x668] sm:$0xff]   ;;  %v13669_v9 = vld [vmem:[%s16493_s16 + $0x738] sm:$0xff]   ;;  %v13671_v14 = vld [vmem:[%s16493_s16 + $0x770] sm:$0xff]  }
0x4368   : > { %v9140_v43 = vpop.f32.mrf.mxu0  ;;  %v9181_v6 = vpop.f32.mrf.mxu1  ;;  %v13644_v39 = vld [vmem:[%s16493_s16 + $0x6e8] sm:$0xff]  }
0x4369   : > { %12480 = vmatpush3.bf16.msra.mxu0 %v13617_v59  ;;  %12502 = vmatpush3.bf16.msra.mxu1 %v13618_v0  ;;  %v9290_v50 = vpack.c.bf16 %v9274_v24, %v9274_v24  ;;  %v9292_v60 = vpack.c.bf16 %v9276_v27, %v9276_v27  ;;  %v13641_v59 = vld [vmem:[%s16493_s16 + $0x630] sm:$0xff]   ;;  %v13648_v43 = vld [vmem:[%s16493_s16 + $0x6e0] sm:$0xff]  }
0x436a   : > { %v16143_v41 = vpop.f32.mrf.mxu0  ;;  %v9258_v26 = vpop.f32.mrf.mxu1  ;;  %12481 = vmatprep.subr.bf16.mxu0 %v13619_v40  ;;  %12503 = vmatprep.subr.bf16.mxu1 %v13620_v13  ;;  %v13642_v0 = vld [vmem:[%s16493_s16 + $0x6b0] sm:$0xff]   ;;  %v13645_v40 = vld [vmem:[%s16493_s16 + $0x628] sm:$0xff]   ;;  %v13649_v6 = vld [vmem:[%s16493_s16 + $0x620] sm:$0xff]  }
0x436b   : > { %v16151_v19 = vadd.f32 %v9258_v26, %v8753_v42  ;;  %v13646_v13 = vld [vmem:[%s16493_s16 + $0x6a8] sm:$0xff]   ;;  %v13647_v42 = vld [vmem:[%s16493_s16 + $0x660] sm:$0xff]   ;;  %v13652_v26 = vld [vmem:[%s16493_s16 + $0x6d8] sm:$0xff]  }
0x436c   : > { %v16153_v45 = vpop.f32.mrf.mxu0  ;;  %v16155_v46 = vpop.f32.mrf.mxu1  ;;  %v13673_v24 = vld [vmem:[%s16493_s16 + $0x730] sm:$0xff]  }
0x436d   : > { %12482 = vmatpush3.bf16.msra.mxu0 %v13621_v44  ;;  %12504 = vmatpush3.bf16.msra.mxu1 %v13622_v25  ;;  %v13650_v44 = vld [vmem:[%s16493_s16 + $0x6a0] sm:$0xff]   ;;  %v13651_v25 = vld [vmem:[%s16493_s16 + $0x658] sm:$0xff]   ;;  %v13674_v27 = vld [vmem:[%s16493_s16 + $0x7b0] sm:$0xff]  }
0x436e   : > { %v9221_v34 = vpop.f32.mrf.mxu0  ;;  %v9262_v58 = vpop.f32.mrf.mxu1  ;;  %12483 = vmatprep.subr.bf16.mxu0 %v13623_v31  ;;  %12505 = vmatprep.subr.bf16.mxu1 %v13624_v48  ;;  %v13653_v31 = vld [vmem:[%s16493_s16 + $0x618] sm:$0xff]  }
0x436f   : > { %v13654_v48 = vld [vmem:[%s16493_s16 + $0x698] sm:$0xff]   ;;  %v13658_v34 = vld [vmem:[%s16493_s16 + $0x690] sm:$0xff]   ;;  %v13659_v58 = vld [vmem:[%s16493_s16 + $0x648] sm:$0xff]  }
0x4370   : > { %v9222_v3 = vpop.f32.mrf.mxu0  ;;  %v9263_v15 = vpop.f32.mrf.mxu1 }
0x4371   : > { %12484 = vmatpush3.bf16.msra.mxu0 %v13625_v38  ;;  %12506 = vmatpush3.bf16.msra.mxu1 %v13626_v57  ;;  %v13655_v38 = vld [vmem:[%s16493_s16 + $0x650] sm:$0xff]   ;;  %v9136_v3 = vadd.f32 %v16108_v32, %v8729_v47  ;;  %v9261_v32 = vadd.f32 %v16155_v46, %v8757_v62 }
0x4372   : > { %12485 = vmatprep.subr.bf16.mxu0 %v13627_v51  ;;  %12507 = vmatprep.subr.bf16.mxu1 %v13628_v61  ;;  %v13656_v57 = vld [vmem:[%s16493_s16 + $0x6d0] sm:$0xff]   ;;  %v8737_v51 = vrot.slane %v16127_v36, %v14874_v49  ;;  %v13660_v61 = vld [vmem:[%s16493_s16 + $0x6c8] sm:$0xff]  }
0x4373   : > { %v13662_v49 = vld [vmem:[%s16493_s16 + $0x688] sm:$0xff]   ;;  %v9273_v8 = vmax.f32 %v9136_v3, 0.0 }
0x4374   : > { %v9177_v15 = vadd.f32 %v16110_v35, %v8737_v51  ;;  %v13666_v35 = vld [vmem:[%s16493_s16 + $0x680] sm:$0xff]  }
0x4375   : > { %12486 = vmatpush3.bf16.msra.mxu0 %v13629_v23  ;;  %12508 = vmatpush3.bf16.msra.mxu1 %v13630_v56  ;;  %v9220_v23 = vadd.f32 %v16153_v45, %v8749_v55  ;;  %v13665_v56 = vld [vmem:[%s16493_s16 + $0x600] sm:$0xff]   ;;  %v13668_v45 = vld [vmem:[%s16493_s16 + $0x7f8] sm:$0xff]   ;;  %v9289_v11 = vpack.c.bf16 %v9273_v8, %v9273_v8 }
0x4376   : > { %12487 = vmatprep.subr.bf16.mxu0 %v13631_v52  ;;  %12509 = vmatprep.subr.bf16.mxu1 %v13632_v53  ;;  %v9275_v52 = vmax.f32 %v9177_v15, 0.0  ;;  %v9280_v53 = vmax.f32 %v9261_v32, 0.0 }
0x4377   : > { %v9278_v46 = vmax.f32 %v9220_v23, 0.0 }
0x4379   : > { %12488 = vmatpush3.bf16.msra.mxu0 %v13633_v33  ;;  %12510 = vmatpush3.bf16.msra.mxu1 %v13634_v22  ;;  %v13670_v33 = vld [vmem:[%s16493_s16 + $0x7b8] sm:$0xff]   ;;  %v9291_v22 = vpack.c.bf16 %v9275_v52, %v9275_v52  ;;  %v9294_v16 = vpack.c.bf16 %v9278_v46, %v9278_v46 }
0x437a   : > { %12517 = vmatprep.subr.bf16.mxu0 %v13635_v17  ;;  %12539 = vmatprep.subr.bf16.mxu1 %v13636_v54  ;;  %v13672_v17 = vld [vmem:[%s16493_s16 + $0x7f0] sm:$0xff]   ;;  %v9296_v54 = vpack.c.bf16 %v9280_v53, %v9280_v53 }
0x437c   : > { %10443 = vmatmul.mubr.bf16.vlgmr.msra.gmra.mxu0 %v9285_v29  ;;  %10483 = vmatmul.mubr.bf16.vlgmr.msra.gmra.mxu1 %v9287_v30  ;;  %v13676_v29 = vld [vmem:[%s16493_s16 + $0x7e8] sm:$0xff]  }
0x437d   : > { %12518 = vmatpush3.bf16.msra.mxu0 %v13637_v28  ;;  %10522 = vmatprep.mubr.bf16.mxu0 %v9290_v50  ;;  %v13675_v28 = vld [vmem:[%s16493_s16 + $0x768] sm:$0xff]   ;;  %v13679_v50 = vld [vmem:[%s16493_s16 + $0x760] sm:$0xff]  }
0x437e   : > { %12540 = vmatpush3.bf16.msra.mxu1 %v13638_v18  ;;  %10562 = vmatprep.mubr.bf16.mxu1 %v9292_v60  ;;  %v13677_v30 = vld [vmem:[%s16493_s16 + $0x728] sm:$0xff]   ;;  %v13682_v60 = vld [vmem:[%s16493_s16 + $0x7a0] sm:$0xff]  }
0x437f   : > { %12519 = vmatprep.subr.bf16.mxu0 %v13639_v21  ;;  %12541 = vmatprep.subr.bf16.mxu1 %v13640_v20  ;;  %v13678_v18 = vld [vmem:[%s16493_s16 + $0x7a8] sm:$0xff]   ;;  %v13680_v21 = vld [vmem:[%s16493_s16 + $0x7e0] sm:$0xff]  }
0x4380   : > { %v13681_v20 = vld [vmem:[%s16493_s16 + $0x720] sm:$0xff]  }
0x4381   : > { %12520 = vmatpush3.bf16.msra.mxu0 %v13641_v59  ;;  %v13683_v59 = vld [vmem:[%s16493_s16 + $0x758] sm:$0xff]  }
0x4382   : > { %12542 = vmatpush3.bf16.msra.mxu1 %v13642_v0  ;;  %12521 = vmatprep.subr.bf16.mxu0 %v13643_v37  ;;  %v13684_v0 = vld [vmem:[%s16493_s16 + $0x7d8] sm:$0xff]  }
0x4383   : > { %12543 = vmatprep.subr.bf16.mxu1 %v13644_v39  ;;  %v13685_v37 = vld [vmem:[%s16493_s16 + $0x718] sm:$0xff]  }
0x4384   : > { %v13686_v39 = vld [vmem:[%s16493_s16 + $0x798] sm:$0xff]  }
0x4385   : > { %12522 = vmatpush3.bf16.msra.mxu0 %v13645_v40  ;;  %v13687_v40 = vld [vmem:[%s16493_s16 + $0x750] sm:$0xff]  }
0x4386   : > { %12544 = vmatpush3.bf16.msra.mxu1 %v13646_v13  ;;  %12523 = vmatprep.subr.bf16.mxu0 %v13647_v42  ;;  %v13688_v13 = vld [vmem:[%s16493_s16 + $0x7d0] sm:$0xff]  }
0x4387   : > { %12545 = vmatprep.subr.bf16.mxu1 %v13648_v43  ;;  %v13689_v42 = vld [vmem:[%s16493_s16 + $0x710] sm:$0xff]   ;;  %v8745_v43 = vrot.slane %v16127_v36, %v14978_v12  ;;  %v13693_v12 = vld [vmem:[%s16493_s16 + $0x708] sm:$0xff]  }
0x4389   : > { %12524 = vmatpush3.bf16.msra.mxu0 %v13649_v6  ;;  %v13690_v6 = vld [vmem:[%s16493_s16 + $0x790] sm:$0xff]   ;;  %v9218_v36 = vadd.f32 %v16143_v41, %v8745_v43  ;;  %v13697_v41 = vld [vmem:[%s16493_s16 + $0x700] sm:$0xff]  }
0x438a   : > { %12546 = vmatpush3.bf16.msra.mxu1 %v13650_v44  ;;  %12525 = vmatprep.subr.bf16.mxu0 %v13651_v25  ;;  %v13691_v44 = vld [vmem:[%s16493_s16 + $0x748] sm:$0xff]  }
0x438b   : > { %12547 = vmatprep.subr.bf16.mxu1 %v13652_v26  ;;  %v13692_v25 = vld [vmem:[%s16493_s16 + $0x7c8] sm:$0xff]  }
0x438c   : > { %v13694_v26 = vld [vmem:[%s16493_s16 + $0x788] sm:$0xff]  }
0x438d   : > { %12526 = vmatpush3.bf16.msra.mxu0 %v13653_v31  ;;  %v13695_v31 = vld [vmem:[%s16493_s16 + $0x740] sm:$0xff]  }
0x438e   : > { %12548 = vmatpush3.bf16.msra.mxu1 %v13654_v48  ;;  %12527 = vmatprep.subr.bf16.mxu0 %v13655_v38  ;;  %v13696_v48 = vld [vmem:[%s16493_s16 + $0x7c0] sm:$0xff]   ;;  %v9277_v38 = vmax.f32 %v9218_v36, 0.0 }
0x438f   : > { %12549 = vmatprep.subr.bf16.mxu1 %v13656_v57  ;;  %v13698_v57 = vld [vmem:[%s16493_s16 + $0x780] sm:$0xff]  }
0x4390   : > { %v9293_v47 = vpack.c.bf16 %v9277_v38, %v9277_v38 }
0x4391   : > { %12528 = vmatpush3.bf16.msra.mxu0 %v13657_v1  ;;  %v9279_v1 = vmax.f32 %v16151_v19, 0.0 }
0x4392   : > { %12550 = vmatpush3.bf16.msra.mxu1 %v13658_v34  ;;  %12529 = vmatprep.subr.bf16.mxu0 %v13659_v58 }
0x4393   : > { %12551 = vmatprep.subr.bf16.mxu1 %v13660_v61  ;;  %v9295_v34 = vpack.c.bf16 %v9279_v1, %v9279_v1  ;;  %v11866_v61 = vld [vmem:[%s16494_s17 + $0x1] ss:$0 sm:$0xff] }
0x4395   : > { %12530 = vmatpush3.bf16.msra.mxu0 %v13661_v63 }
0x4396   : > { %12552 = vmatpush3.bf16.msra.mxu1 %v13662_v49  ;;  %12531 = vmatprep.subr.bf16.mxu0 %v13663_v4 }
0x4397   : > { %12553 = vmatprep.subr.bf16.mxu1 %v13664_v5 }
0x4399   : > { %12532 = vmatpush3.bf16.msra.mxu0 %v13665_v56 }
0x439a   : > { %12554 = vmatpush3.bf16.msra.mxu1 %v13666_v35  ;;  %12561 = vmatprep.subr.bf16.mxu0 %v13667_v10 }
0x439b   : > { %12583 = vmatprep.subr.bf16.mxu1 %v13668_v45 }
0x439c   : > { %10523 = vmatmul.mubr.bf16.vlgmr.msra.gmra.mxu0 %v9289_v11 }
0x439d   : > { %10563 = vmatmul.mubr.bf16.vlgmr.msra.gmra.mxu1 %v9291_v22  ;;  %12562 = vmatpush3.bf16.msra.mxu0 %v13669_v9 }
0x439e   : > { %10602 = vmatprep.mubr.bf16.mxu0 %v9294_v16  ;;  %12584 = vmatpush3.bf16.msra.mxu1 %v13670_v33 }
0x439f   : > { %10642 = vmatprep.mubr.bf16.mxu1 %v9296_v54  ;;  %12563 = vmatprep.subr.bf16.mxu0 %v13671_v14 }
0x43a0   : > { %12585 = vmatprep.subr.bf16.mxu1 %v13672_v17 }
0x43a1   : > { %12564 = vmatpush3.bf16.msra.mxu0 %v13673_v24 }
0x43a2   : > { %12586 = vmatpush3.bf16.msra.mxu1 %v13674_v27  ;;  %12565 = vmatprep.subr.bf16.mxu0 %v13675_v28 }
0x43a3   : > { %12587 = vmatprep.subr.bf16.mxu1 %v13676_v29 }
0x43a5   : > { %12566 = vmatpush3.bf16.msra.mxu0 %v13677_v30 }
0x43a6   : > { %12588 = vmatpush3.bf16.msra.mxu1 %v13678_v18  ;;  %12567 = vmatprep.subr.bf16.mxu0 %v13679_v50 }
0x43a7   : > { %12589 = vmatprep.subr.bf16.mxu1 %v13680_v21 }
0x43a9   : > { %12568 = vmatpush3.bf16.msra.mxu0 %v13681_v20 }
0x43aa   : > { %12590 = vmatpush3.bf16.msra.mxu1 %v13682_v60  ;;  %12569 = vmatprep.subr.bf16.mxu0 %v13683_v59 }
0x43ab   : > { %12591 = vmatprep.subr.bf16.mxu1 %v13684_v0 }
0x43ad   : > { %12570 = vmatpush3.bf16.msra.mxu0 %v13685_v37 }
0x43ae   : > { %12592 = vmatpush3.bf16.msra.mxu1 %v13686_v39  ;;  %12571 = vmatprep.subr.bf16.mxu0 %v13687_v40 }
0x43af   : > { %12593 = vmatprep.subr.bf16.mxu1 %v13688_v13 }
0x43b1   : > { %12572 = vmatpush3.bf16.msra.mxu0 %v13689_v42 }
0x43b2   : > { %12594 = vmatpush3.bf16.msra.mxu1 %v13690_v6  ;;  %12573 = vmatprep.subr.bf16.mxu0 %v13691_v44 }
0x43b3   : > { %12595 = vmatprep.subr.bf16.mxu1 %v13692_v25 }
0x43b5   : > { %12574 = vmatpush3.bf16.msra.mxu0 %v13693_v12 }
0x43b6   : > { %12596 = vmatpush3.bf16.msra.mxu1 %v13694_v26  ;;  %12575 = vmatprep.subr.bf16.mxu0 %v13695_v31 }
0x43b7   : > { %12597 = vmatprep.subr.bf16.mxu1 %v13696_v48 }
0x43b9   : > { %12576 = vmatpush3.bf16.msra.mxu0 %v13697_v41  ;;  %v13699_v41 = vld [vmem:[%s16497_s20 + $0x8] sm:$0xff]  }
0x43ba   : > { %12598 = vmatpush3.bf16.msra.mxu1 %v13698_v57  ;;  %13292 = vmatprep.subr.bf16.mxu0 %v13840_v2 }
0x43bc   : > { %10603 = vmatmul.mubr.bf16.vlgmr.msra.gmra.mxu0 %v9293_v47 }
0x43bd   : > { %10643 = vmatmul.mubr.bf16.vlgmr.msra.gmra.mxu1 %v9295_v34  ;;  %13296 = vmatprep.mubr.msk.bf16.mxu0 %vm13841_vm0, %v13840_v2  ;;  %v11997_v34 = vld [vmem:[%s16495_s18 + $0x5] ss:$0 sm:$0xff] }
0x43be   : > { %13293 = vmatpush3.bf16.msra.mxu0 %v13699_v41 }
0x43bf   : > { %13294 = vmatprep.subr.bf16.mxu0 %v13840_v2  ;;  %v11999_v2 = vld [vmem:[%s16536_s29] ss:$0 sm:$0xff]  ;;  %s13783_s29 = scalar_lea.vmem %s13782_s5, 256 }
0x43c0   : > { %p13785_p1 = scmp.lt.s32.totalorder %s13783_s29, %s13777_s27 }
0x43c2   : > { %p13786_p2 = por %p13785_p1, %p13784_p0 }
0x43c4   : > { %p13787_p3 = pnand %p13786_p2, %p13780_p13 }
0x441c   : > { %v12445_v58 = vpop.f32.mrf.mxu0  ;;  %v12467_v51 = vpop.f32.mrf.mxu1 }
0x441e   : > { %v12446_v55 = vpop.f32.mrf.mxu0  ;;  %v12468_v19 = vpop.f32.mrf.mxu1 }
0x441f   : > { %v12447_v62 = vadd.f32 %v12446_v55, %v12445_v58  ;;  %v12469_v63 = vadd.f32 %v12468_v19, %v12467_v51  ;;  %v11998_v51 = vld [vmem:[%s16496_s19 + $0x5] ss:$0 sm:$0xff] }
0x4420   : > { %v12448_v3 = vpop.f32.mrf.mxu0  ;;  %v12470_v49 = vpop.f32.mrf.mxu1 }
0x4421   : > { %v10365_v4 = vadd.f32 %v12447_v62, %v11866_v61 }
0x4422   : > { %v12449_v15 = vpop.f32.mrf.mxu0  ;;  %v12471_v5 = vpop.f32.mrf.mxu1 }
0x4423   : > { %v10405_v23 = vadd.f32 %v12469_v63, %v10365_v4 }
0x443c   : > { %v12489_v32 = vpop.f32.mrf.mxu0  ;;  %v12511_v56 = vpop.f32.mrf.mxu1 }
0x443e   : > { %v12490_v8 = vpop.f32.mrf.mxu0  ;;  %v12512_v35 = vpop.f32.mrf.mxu1 }
0x443f   : > { %v12491_v54 = vadd.f32 %v12490_v8, %v12489_v32  ;;  %v12513_v27 = vadd.f32 %v12512_v35, %v12511_v56 }
0x4440   : > { %v12492_v10 = vpop.f32.mrf.mxu0  ;;  %v12514_v52 = vpop.f32.mrf.mxu1 }
0x4441   : > { %v10445_v24 = vadd.f32 %v12491_v54, %v10405_v23 }
0x4442   : > { %v12493_v45 = vpop.f32.mrf.mxu0  ;;  %v12515_v46 = vpop.f32.mrf.mxu1 }
0x4443   : > { %v10485_v29 = vadd.f32 %v12513_v27, %v10445_v24 }
0x445c   : > { %v12533_v53 = vpop.f32.mrf.mxu0 }
0x445d   : > { %v12555_v9 = vpop.f32.mrf.mxu1 }
0x445e   : > { %v12534_v11 = vpop.f32.mrf.mxu0 }
0x445f   : > { %v12556_v33 = vpop.f32.mrf.mxu1  ;;  %v12535_v28 = vadd.f32 %v12534_v11, %v12533_v53 }
0x4460   : > { %v12536_v22 = vpop.f32.mrf.mxu0  ;;  %v12557_v50 = vadd.f32 %v12556_v33, %v12555_v9 }
0x4461   : > { %v12558_v14 = vpop.f32.mrf.mxu1  ;;  %v10525_v30 = vadd.f32 %v12535_v28, %v10485_v29 }
0x4462   : > { %v12537_v16 = vpop.f32.mrf.mxu0 }
0x4463   : > { %v12559_v17 = vpop.f32.mrf.mxu1  ;;  %v10565_v60 = vadd.f32 %v12557_v50, %v10525_v30 }
0x447c   : > { %v12577_v18 = vpop.f32.mrf.mxu0 }
0x447d   : > { %v12599_v21 = vpop.f32.mrf.mxu1 }
0x447e   : > { %v12578_v20 = vpop.f32.mrf.mxu0 }
0x447f   : > { %v12579_v59 = vadd.f32 %v12578_v20, %v12577_v18  ;;  %v12600_v0 = vpop.f32.mrf.mxu1 }
0x4480   : > { %v12580_v37 = vpop.f32.mrf.mxu0  ;;  %v12601_v40 = vadd.f32 %v12600_v0, %v12599_v21 }
0x4481   : > { %v10605_v39 = vadd.f32 %v12579_v59, %v10565_v60  ;;  %v12602_v13 = vpop.f32.mrf.mxu1 }
0x4482   : > { %v12581_v42 = vpop.f32.mrf.mxu0 }
0x4483   : > { %v10645_v43 = vadd.f32 %v12601_v40, %v10605_v39  ;;  %v12603_v6 = vpop.f32.mrf.mxu1 }
0x4485   : > { %v10650_v44 = vadd.f32 %v10645_v43, %v15879_v7  ;;  %v13700_v7 = vld [vmem:[%s16497_s20] sm:$0xff]  }
0x4486   : > { %13295 = vmatpush3.bf16.msra.mxu0 %v13700_v7 }
0x4487   : > { %v10655_v25 = vsel %vm846_vm3, %v10650_v44, 0.0 }
0x4488   : > { %10656 = vadd.xlane.f32.xlu0 %v10655_v25 }
0x4511   : > { %v10657_v12 = vpop.xlane.xlu0 %10656 }
0x4512   : > { %v10658_v36 = vmul.f32 0.03125, %v10657_v12 }
0x4514   : > { %v10659_v26 = vsub.f32 %v10650_v44, %v10658_v36 }
0x4516   : > { %v10660_v31 = vmul.f32 %v10659_v26, %v10659_v26 }
0x4518   : > { %v10661_v48 = vsel %vm846_vm3, %v10660_v31, 0.0 }
0x4519   : > { %10662 = vadd.xlane.f32.xlu1 %v10661_v48 }
0x45a2   : > { %v10663_v38 = vpop.xlane.xlu1 %10662 }
0x45a3   : > { %v10664_v57 = vmul.f32 0.03125, %v10663_v38 }
0x45a5   : > { %v10665_v1 = vadd.f32 1e-05, %v10664_v57 }
0x45a7   : > { %13775 = vrsqrt.f32 %v10665_v1 }
0x45b4   : > { %v13776_v47 = vpop.eup %13775 }
0x45b5   : > { %v10667_v58 = vmul.f32 %v13776_v47, %v10659_v26 }
0x45b7   : > { %v10674_v61 = vmul.f32 %v11997_v34, %v10667_v58 }
0x45b9   : > { %v10681_v55 = vadd.f32 %v11998_v51, %v10674_v61 }
0x45bb   : > { %v10682_v19 = vpack.c.bf16 %v10681_v55, %v10681_v55 }
0x45bd   : > { %13297 = vmatmul.mubr.msk.bf16.vlgmr.msra.gmra.mxu0 %vm846_vm3, %v10682_v19 }
0x467d   : > { %v10743_v62 = vpop.f32.mrf.mxu0 }
0x467e   : > { %v10744_v63 = vadd.f32 %v11999_v2, %v10743_v62 }
0x467f   : > { %v13298_v3 = vpop.f32.mrf.mxu0 }
0x4680   : > { %10749 = vst [vmem:[%s700_s30] sm:$0xff] %v10744_v63 }
0x4681   : > { %v10746_v49 = vpop.f32.mrf.mxu0 }
0x4682   : > { %13790 = shalt.err (!%p13787_p3)
}
0x4683   : > { %s13791_s3 = scalar_lea.hbm %s16436_s1, 128  ;;  %s13795_s24 = scalar_lea.hbm %s16537_s2, 256 }
0x4684   : > { %p13792_p4 = scmp.ne.s32.totalorder %s16436_s1, %s13791_s3  ;;  %p13796_p9 = scmp.lt.s32.totalorder %s16436_s1, %s16537_s2 }
0x4685   : > { %p13797_p10 = scmp.lt.s32.totalorder %s13795_s24, %s13791_s3 }
0x4686   : > { %p13793_p7 = pnand %p13792_p4, %p13996_p5 }
0x4687   : > { %p13798_p11 = por %p13797_p10, %p13796_p9 }
0x4688   : > { %p13794_p8 = pneg %p13793_p7 }
0x468a   : > { %p13799_p12 = pnand %p13798_p11, %p13794_p8 }
0x468c   : > { %13802 = shalt.err (!%p13799_p12)
}
0x468d   : > { %13300 = dma.vmem_to_hbm [thread:$0]  (%p13996_p5), %s16438_s23, 128, %s16436_s1, %s10751_s21   ;;  %v13299_v4 = vpop.f32.mrf.mxu0 }
0x468e PF: > { %s16538_s27 = sld [smem:[#allocation7_spill]] }
0x468f   : > { %s16539_s5 = sld [smem:[#allocation5_spill]] }
0x4694   : > { %p13306_p13 = scmp.ge.s32.totalorder %s16538_s27, 2 }
0x4695   : > { %s10776_s0 = sand.u32 1, %s16539_s5  }
0x4696   : > { %p13303_p0 = pnand %p13306_p13, %p14000_p6  ;;  %s10777_s30 = scalar_lea.sflag [#allocation3], %s10776_s0 }
0x4698   : > { %p13304_p1 = pneg %p13303_p0 }
0x469a   : > { %13820 = dma.done.wait (%p13304_p1), %s10777_s30, 128  }
0x469b   : > { %13822 = vsyncadd (%p13304_p1), %s10777_s30, 4294967168  ;;  %s16541_s30 = sld [smem:[#allocation8_spill]]  ;;  %s16544_s3 = smov %s13829_s28 }
0x469c   : > { %s16542_s24 = sld [smem:[#allocation6_spill]] }
0x469d   : > { %s16543_s29 = sld [smem:[#allocation9_spill]] }
0x46a1   : > { %p32_p2 = scmp.ge.s32.totalorder %s16541_s30, 4  }
0x46a2   : > { %s16545_s28 = smov %s16542_s24 }
0x46a3   :  { %34 = sbr.rel (!%p32_p2) target bundleno = 13 (0xd), region = 271 }
0x46a8   :  { %10782 = vsyncpa [#allocation3], 1 }
0x46a9   :  { %10784 = vsyncpa [#allocation3 + $0x1], 1 }

</bundles_post_ra>
